<compile_context>
chip_gen: v7x
topology: tpu7x:2x2x1
jax: 0.10.0
libtpu: 0.0.40
codegen_flags: <defaults>
</compile_context>

<pallas_src>
import functools

import jax
import jax.numpy as jnp
from jax.experimental import pallas as pl
from jax.experimental.pallas import tpu as pltpu

BN_EPS = 1e-5


# ----------------------------------------------------------------------------
# Fused ASPP-branches kernel: all dilation convs + pooled broadcast -> concat
# ----------------------------------------------------------------------------
def _fused_aspp_kernel(*refs, n_br, taps, H, W, has_pool):
    """One (batch, cin-chunk) grid step.

    refs = (x_ref[, pool_ref], w_0, s_0, ..., w_{B-1}, s_{B-1},
            o_ref, acc_0, ..., acc_{B-1})

    x_ref   : (1, Hp, Wp, tc)  bf16 padded activations (one cin chunk)
    pool_ref: (1, 1, C)        f32 image-pool branch result (already relu'd)
    w_i     : (T_i, tc, C)     bf16 per-tap weights, BN scale pre-folded
    s_i     : (1, C)           f32 folded BN shift
    o_ref   : (1, H*W, cat_ch) bf16 concatenated branch outputs
    acc_i   : (H*W, C)         f32 accumulator scratch (lives across cin axis)
    """
    idx = 0
    x_ref = refs[idx]; idx += 1
    pool_ref = None
    if has_pool:
        pool_ref = refs[idx]; idx += 1
    w_refs, s_refs = [], []
    for _ in range(n_br):
        w_refs.append(refs[idx]); s_refs.append(refs[idx + 1]); idx += 2
    o_ref = refs[idx]; idx += 1
    acc_refs = refs[idx:idx + n_br]

    c = pl.program_id(1)

    @pl.when(c == 0)
    def _():
        for a in acc_refs:
            a[...] = jnp.zeros_like(a)

    # Static unrolled loops: each tap is a shifted HxW window of the padded
    # block, contracted on the MXU against its own (tc, C) weight slice.
    for i in range(n_br):
        acc = acc_refs[i][...]
        for t, (dy, dx) in enumerate(taps[i]):
            tap = x_ref[0, dy:dy + H, dx:dx + W, :]            # (H, W, tc)
            tap = tap.reshape(H * W, tap.shape[-1])
            acc = acc + jnp.dot(tap, w_refs[i][t],
                                preferred_element_type=jnp.float32)
        acc_refs[i][...] = acc

    @pl.when(c == pl.num_programs(1) - 1)
    def _():
        parts = []
        if has_pool:
            parts.append(jnp.broadcast_to(pool_ref[0],
                                          (H * W, pool_ref.shape[-1])))
        for i in range(n_br):
            parts.append(jnp.maximum(acc_refs[i][...] + s_refs[i][...], 0.0))
        # Single lane-dense store of the full concatenated tile.
        o_ref[0] = jnp.concatenate(parts, axis=-1).astype(o_ref.dtype)


def _select_cin_tile(cin, Hp, Wp, H, W, C, n_br, taps_total, cat_ch,
                     budget_bytes=40 * 2**20):
    """Largest cin chunk whose per-step working set (double-buffered) fits a
    v7x-safe VMEM budget."""
    fixed = (H * W * cat_ch * 2 * 2          # bf16 output block, 2 bufs
             + n_br * H * W * C * 4          # f32 accumulator scratch
             + (n_br + 1) * C * 4 * 2)       # shifts + pooled vector
    per_tc = (Hp * Wp * 2 * 2                # bf16 activation block, 2 bufs
              + taps_total * C * 2 * 2)      # bf16 weight blocks, 2 bufs
    for tc in [cin] + [t for t in (512, 256, 128) if t < cin and cin % t == 0]:
        if fixed + per_tc * tc <= budget_bytes:
            return tc, fixed + per_tc * tc
    tc = 128 if cin % 128 == 0 else cin
    return tc, fixed + per_tc * tc


def fused_aspp_branches(x_pad, pooled_vec, w_list, s_list, offs_list, H, W,
                        out_dtype=jnp.bfloat16):
    """All ASPP branches in one pallas_call -> (N, H, W, cat_ch)."""
    N, Hp, Wp, Cin = x_pad.shape
    n_br = len(w_list)
    C = w_list[0].shape[-1]
    has_pool = pooled_vec is not None
    cat_ch = (n_br + int(has_pool)) * C
    taps_total = sum(int(w.shape[0]) for w in w_list)

    tc, vmem_est = _select_cin_tile(Cin, Hp, Wp, H, W, C, n_br, taps_total,
                                    cat_ch)
    grid = (N, Cin // tc)

    in_specs = [pl.BlockSpec((1, Hp, Wp, tc), lambda n, c: (n, 0, 0, c))]
    inputs = [x_pad]
    if has_pool:
        in_specs.append(pl.BlockSpec((1, 1, C), lambda n, c: (n, 0, 0)))
        inputs.append(pooled_vec.reshape(N, 1, C).astype(jnp.float32))
    for w, s in zip(w_list, s_list):
        T = int(w.shape[0])
        in_specs.append(pl.BlockSpec((T, tc, C), lambda n, c: (0, c, 0)))
        in_specs.append(pl.BlockSpec((1, C), lambda n, c: (0, 0)))
        inputs += [w, s]

    vmem_limit = None
    if vmem_est > 12 * 2**20:   # raise the scoped limit only when needed
        vmem_limit = int(min(max(int(1.5 * vmem_est), 32 * 2**20), 64 * 2**20))

    # TODO(synk): for very large H*W the accumulators / activation block should
    # additionally be tiled spatially (halo rows via manual DMA).
    kernel = functools.partial(
        _fused_aspp_kernel, n_br=n_br,
        taps=tuple(tuple(o) for o in offs_list), H=H, W=W, has_pool=has_pool)

    out = pl.pallas_call(
        kernel,
        out_shape=jax.ShapeDtypeStruct((N, H * W, cat_ch), out_dtype),
        grid_spec=pltpu.PrefetchScalarGridSpec(
            num_scalar_prefetch=0,
            grid=grid,
            in_specs=in_specs,
            out_specs=pl.BlockSpec((1, H * W, cat_ch), lambda n, c: (n, 0, 0)),
            scratch_shapes=[pltpu.VMEM((H * W, C), jnp.float32)
                            for _ in range(n_br)],
        ),
        compiler_params=pltpu.CompilerParams(
            dimension_semantics=("parallel", "arbitrary"),
            vmem_limit_bytes=vmem_limit),
    )(*inputs)
    return out.reshape(N, H, W, cat_ch)


# ----------------------------------------------------------------------------
# Generic fused conv + folded-BN shift + ReLU (used for the bottleneck)
# ----------------------------------------------------------------------------
def _conv_bn_relu_kernel(x_ref, w_ref, shift_ref, o_ref, acc_ref, *,
                         offsets, H, W):
    """One (batch, cout-tile, cin-chunk) grid step."""
    c = pl.program_id(2)

    @pl.when(c == 0)
    def _():
        acc_ref[...] = jnp.zeros_like(acc_ref)

    acc = acc_ref[...]
    for t, (dy, dx) in enumerate(offsets):
        tap = x_ref[0, dy:dy + H, dx:dx + W, :]            # (H, W, tc) bf16
        tap = tap.reshape(H * W, tap.shape[-1])
        acc = acc + jnp.dot(tap, w_ref[t],
                            preferred_element_type=jnp.float32)
    acc_ref[...] = acc

    @pl.when(c == pl.num_programs(2) - 1)
    def _():
        y = acc_ref[...] + shift_ref[...]                  # f32 epilogue
        o_ref[0] = jnp.maximum(y, 0.0).astype(o_ref.dtype)


def _channel_tile(c, cap):
    if c <= cap:
        return c
    for t in (cap, 256, 128):
        if t <= cap and c % t == 0:
            return t
    return c  # irregular channel count: keep full dim (still correct)


def _select_tiles(Hp, Wp, H, W, cin, cout, n_taps, budget_bytes=40 * 2**20):
    tc_cap, tn_cap = 512, 256
    while True:
        tc = _channel_tile(cin, tc_cap)
        tn = _channel_tile(cout, tn_cap)
        total = (Hp * Wp * tc * 2 * 2          # bf16 activation block, 2 bufs
                 + n_taps * tc * tn * 2 * 2    # bf16 weight block, 2 bufs
                 + H * W * tn * 4 * 2          # output block (worst-case f32)
                 + H * W * tn * 4              # f32 accumulator scratch
                 + tn * 4 * 2)                 # shift
        if total <= budget_bytes or (tc_cap <= 128 and tn_cap <= 128):
            return tc, tn, total
        if tc_cap > 128:
            tc_cap //= 2
        else:
            tn_cap //= 2


def conv_bn_relu(x_pad, w_taps, shift, offsets, H, W, out_dtype):
    """relu(conv(x, w)*bn_scale + bn_shift), NHWC, via one fused Pallas call."""
    N, Hp, Wp, Cin = x_pad.shape
    T, Cin2, Cout = w_taps.shape
    assert Cin == Cin2 and T == len(offsets)

    tc, tn, vmem_est = _select_tiles(Hp, Wp, H, W, Cin, Cout, T)
    grid = (N, Cout // tn, Cin // tc)

    vmem_limit = None
    if vmem_est > 12 * 2**20:
        vmem_limit = int(min(max(int(1.5 * vmem_est), 32 * 2**20), 64 * 2**20))

    kernel = functools.partial(_conv_bn_relu_kernel,
                               offsets=tuple(offsets), H=H, W=W)
    out = pl.pallas_call(
        kernel,
        out_shape=jax.ShapeDtypeStruct((N, H * W, Cout), out_dtype),
        grid_spec=pltpu.PrefetchScalarGridSpec(
            num_scalar_prefetch=0,
            grid=grid,
            in_specs=[
                pl.BlockSpec((1, Hp, Wp, tc), lambda n, j, c: (n, 0, 0, c)),
                pl.BlockSpec((T, tc, tn), lambda n, j, c: (0, c, j)),
                pl.BlockSpec((1, tn), lambda n, j, c: (0, j)),
            ],
            out_specs=pl.BlockSpec((1, H * W, tn), lambda n, j, c: (n, 0, j)),
            scratch_shapes=[pltpu.VMEM((H * W, tn), jnp.float32)],
        ),
        compiler_params=pltpu.CompilerParams(
            dimension_semantics=("parallel", "parallel", "arbitrary"),
            vmem_limit_bytes=vmem_limit),
    )(x_pad, w_taps, shift)
    return out.reshape(N, H, W, Cout)


# ----------------------------------------------------------------------------
# Parameter preparation (BN folding, tap-major weights, tap offsets)
# ----------------------------------------------------------------------------
def _bn_scale_shift(p):
    scale = p["gamma"] / jnp.sqrt(p["var"] + BN_EPS)
    shift = p["beta"] - p["mean"] * scale
    return scale, shift


def _prep_conv(p):
    """(Cout, Cin, kh, kw) -> tap-major bf16 matmul weights with the BN scale
    folded in, plus the f32 shift row."""
    w = p["w"]
    Cout, Cin, kh, kw = w.shape
    scale, shift = _bn_scale_shift(p)
    w_taps = jnp.transpose(w, (2, 3, 1, 0)).reshape(kh * kw, Cin, Cout)
    w_taps = (w_taps * scale[None, None, :]).astype(jnp.bfloat16)
    return w_taps, shift.reshape(1, Cout).astype(jnp.float32), kh


def _tap_offsets(k, dilation, pad):
    """Window offsets into a tensor zero-padded by `pad` per side, for a kxk
    conv whose own padding equals its dilation (k=3) or 0 (k=1)."""
    if k == 1:
        return ((pad, pad),)
    return tuple((pad + (ky - 1) * dilation, pad + (kx - 1) * dilation)
                 for ky in range(k) for kx in range(k))


# ----------------------------------------------------------------------------
# ASPPWrapper forward (sep=False, context_cfg=None, BN eval)
# ----------------------------------------------------------------------------
def aspp_wrapper_forward(x_nchw, params, dilations, pool=True,
                         align_corners=False):
    x = jnp.transpose(x_nchw, (0, 2, 3, 1)).astype(jnp.float32)   # NHWC
    N, H, W, Cin = x.shape

    # One shared zero-padded bf16 activation tensor for every ASPP branch:
    # pad by the largest dilation, each branch gets its own tap offsets.
    pad = max([d for d in dilations if d > 1] or [0])
    x_pad = jnp.pad(x.astype(jnp.bfloat16),
                    ((0, 0), (pad, pad), (pad, pad), (0, 0)))

    pooled_vec = None
    if pool:
        # image_pool: AdaptiveAvgPool2d(1) -> 1x1 ConvModule -> bilinear
        # resize.  Only N rows of work -> plain jnp; the spatial broadcast
        # happens inside the fused branch kernel.  Bilinear resize of a 1x1
        # map is an exact broadcast for either align_corners setting.
        p = params["image_pool"]
        scale, shift = _bn_scale_shift(p)
        w1 = p["w"].reshape(p["w"].shape[0], Cin).T * scale[None, :]
        pooled = jnp.mean(x, axis=(1, 2))                       # (N, Cin)
        pooled_vec = jnp.maximum(pooled @ w1 + shift[None, :], 0.0)

    # context_layer is None in this config.
    w_list, s_list, offs_list = [], [], []
    for i, d in enumerate(dilations):
        w_taps, shift, k = _prep_conv(params["aspp"][i])
        w_list.append(w_taps)
        s_list.append(shift)
        offs_list.append(_tap_offsets(k, d, pad))

    # All dilation branches + pooled broadcast in ONE kernel, emitting the
    # channel-concatenated tensor directly (x_pad read once, no concat pass).
    cat = fused_aspp_branches(x_pad, pooled_vec, w_list, s_list, offs_list,
                              H, W)

    # TODO(synk): the bottleneck kernel could consume the unpadded concat and
    # handle the 1-pixel border in-kernel to also save this pad pass.
    cat_pad = jnp.pad(cat, ((0, 0), (1, 1), (1, 1), (0, 0)))
    wb, sb, kb = _prep_conv(params["bottleneck"])
    out = conv_bn_relu(cat_pad, wb, sb, _tap_offsets(kb, 1, 1), H, W,
                       jnp.float32)
    return jnp.transpose(out, (0, 3, 1, 2))                     # NHWC -> NCHW


# ----------------------------------------------------------------------------
# Deterministic parameter construction (matches ASPPWrapper.__init__ shapes)
# ----------------------------------------------------------------------------
def _conv_module_params(key, cin, cout, k):
    kw_, kg = jax.random.split(key)
    return dict(
        w=jax.random.normal(kw_, (cout, cin, k, k), jnp.float32) * 0.1,
        gamma=1.0 + 0.1 * jax.random.normal(kg, (cout,), jnp.float32),
        beta=jnp.linspace(-0.1, 0.1, cout, dtype=jnp.float32),
        mean=jnp.linspace(-0.05, 0.05, cout, dtype=jnp.float32),
        var=0.9 + jnp.linspace(0.0, 0.2, cout, dtype=jnp.float32),
    )


def init_params(key, in_channels, channels, dilations, pool):
    keys = jax.random.split(key, 2 + len(dilations))
    params = {}
    if pool:
        params["image_pool"] = _conv_module_params(keys[0], in_channels,
                                                   channels, 1)
    params["aspp"] = []
    for i, d in enumerate(dilations):
        k = 1 if d == 1 else 3
        params["aspp"].append(
            _conv_module_params(keys[1 + i], in_channels, channels, k))
    cat_ch = (len(dilations) + int(pool)) * channels
    params["bottleneck"] = _conv_module_params(keys[-1], cat_ch, channels, 3)
    return params


# ----------------------------------------------------------------------------
# Pure-JAX reference (f32) for a correctness check
# ----------------------------------------------------------------------------
def _reference_forward(x_nchw, params, dilations, pool):
    x = jnp.transpose(x_nchw, (0, 2, 3, 1)).astype(jnp.float32)
    N, H, W, Cin = x.shape

    def cm(inp, p, dilation, k):
        w = jnp.transpose(p["w"], (2, 3, 1, 0))     # HWIO
        padv = 0 if k == 1 else dilation
        y = jax.lax.conv_general_dilated(
            inp, w, window_strides=(1, 1),
            padding=((padv, padv), (padv, padv)),
            rhs_dilation=(dilation, dilation),
            dimension_numbers=("NHWC", "HWIO", "NHWC"))
        scale, shift = _bn_scale_shift(p)
        return jnp.maximum(y * scale + shift, 0.0)

    outs = []
    if pool:
        pooled = jnp.mean(x, axis=(1, 2), keepdims=True)
        y = cm(pooled, params["image_pool"], 1, 1)
        outs.append(jnp.broadcast_to(y, (N, H, W, y.shape[-1])))
    for i, d in enumerate(dilations):
        outs.append(cm(x, params["aspp"][i], d, 1 if d == 1 else 3))
    cat = jnp.concatenate(outs, axis=-1)
    out = cm(cat, params["bottleneck"], 1, 3)
    return jnp.transpose(out, (0, 3, 1, 2))


# ----------------------------------------------------------------------------
if __name__ == "__main__":
    in_channels, channels = 4, 8
    dilations = (1, 6, 12)
    pool = True
    N, H, W = 2, 16, 16

    key = jax.random.PRNGKey(0)
    kx, kp = jax.random.split(key)
    x = jax.random.normal(kx, (N, in_channels, H, W), jnp.float32)
    params = init_params(kp, in_channels, channels, dilations, pool)

    out = aspp_wrapper_forward(x, params, dilations, pool=pool,
                               align_corners=False)
    out = jax.block_until_ready(out)
    assert out.shape == (N, channels, H, W), out.shape
    assert bool(jnp.all(jnp.isfinite(out)))

    ref = _reference_forward(x, params, dilations, pool)
    max_err = float(jnp.max(jnp.abs(out - ref)))
    assert max_err < 1e-1, f"max abs error vs reference: {max_err}"

    print("KERNEL_OK")
</pallas_src>

<mosaic_0001>
module attributes {stable_mosaic.version = 11 : i64} {
  func.func @_fused_aspp_kernel(%arg0: i32, %arg1: i32, %arg2: memref<1x40x40x4xbf16, #tpu.memory_space<vmem>>, %arg3: memref<1x1x8xf32, #tpu.memory_space<vmem>>, %arg4: memref<1x4x8xbf16, #tpu.memory_space<vmem>>, %arg5: memref<1x8xf32, #tpu.memory_space<vmem>>, %arg6: memref<9x4x8xbf16, #tpu.memory_space<vmem>>, %arg7: memref<1x8xf32, #tpu.memory_space<vmem>>, %arg8: memref<9x4x8xbf16, #tpu.memory_space<vmem>>, %arg9: memref<1x8xf32, #tpu.memory_space<vmem>>, %arg10: memref<1x256x32xbf16, #tpu.memory_space<vmem>>, %arg11: memref<256x8xf32, #tpu.memory_space<vmem>>, %arg12: memref<256x8xf32, #tpu.memory_space<vmem>>, %arg13: memref<256x8xf32, #tpu.memory_space<vmem>>) attributes {dimension_semantics = [#tpu.dimension_semantics<parallel>, #tpu.dimension_semantics<arbitrary>], iteration_bounds = array<i64: 2, 1>, scalar_prefetch = 0 : i64, scratch_operands = 3 : i64, tpu.core_type = #tpu.core_type<tc>, window_params = [{transform_indices = @transform_0, window_bounds = array<i64: 1, 40, 40, 4>}, {transform_indices = @transform_1, window_bounds = array<i64: 1, 1, 8>}, {transform_indices = @transform_2, window_bounds = array<i64: 1, 4, 8>}, {pipeline_mode = #tpu.pipeline_mode<synchronous>, transform_indices = @transform_3, window_bounds = array<i64: 1, 8>}, {transform_indices = @transform_4, window_bounds = array<i64: 9, 4, 8>}, {pipeline_mode = #tpu.pipeline_mode<synchronous>, transform_indices = @transform_5, window_bounds = array<i64: 1, 8>}, {transform_indices = @transform_6, window_bounds = array<i64: 9, 4, 8>}, {pipeline_mode = #tpu.pipeline_mode<synchronous>, transform_indices = @transform_7, window_bounds = array<i64: 1, 8>}, {transform_indices = @transform_8, window_bounds = array<i64: 1, 256, 32>}]} {
    %c0_i32 = arith.constant 0 : i32
    %0 = arith.cmpi eq, %arg1, %c0_i32 : i32
    %1 = arith.extui %0 : i1 to i32
    %c0_i32_0 = arith.constant 0 : i32
    %2 = arith.cmpi ne, %1, %c0_i32_0 : i32
    scf.if %2 {
      %cst_154 = arith.constant 0.000000e+00 : f32
      %145 = vector.broadcast %cst_154 : f32 to vector<256x8xf32>
      %c0_155 = arith.constant 0 : index
      %c0_156 = arith.constant 0 : index
      %146 = vector.load %arg11[%c0_155, %c0_156] : memref<256x8xf32, #tpu.memory_space<vmem>>, vector<256x8xf32>
      tpu.vector_store %arg11[%c0_155, %c0_156], %145 {strides = array<i32>} : memref<256x8xf32, #tpu.memory_space<vmem>>, vector<256x8xf32>,
      %cst_157 = arith.constant 0.000000e+00 : f32
      %147 = vector.broadcast %cst_157 : f32 to vector<256x8xf32>
      %c0_158 = arith.constant 0 : index
      %c0_159 = arith.constant 0 : index
      %148 = vector.load %arg12[%c0_158, %c0_159] : memref<256x8xf32, #tpu.memory_space<vmem>>, vector<256x8xf32>
      tpu.vector_store %arg12[%c0_158, %c0_159], %147 {strides = array<i32>} : memref<256x8xf32, #tpu.memory_space<vmem>>, vector<256x8xf32>,
      %cst_160 = arith.constant 0.000000e+00 : f32
      %149 = vector.broadcast %cst_160 : f32 to vector<256x8xf32>
      %c0_161 = arith.constant 0 : index
      %c0_162 = arith.constant 0 : index
      %150 = vector.load %arg13[%c0_161, %c0_162] : memref<256x8xf32, #tpu.memory_space<vmem>>, vector<256x8xf32>
      tpu.vector_store %arg13[%c0_161, %c0_162], %149 {strides = array<i32>} : memref<256x8xf32, #tpu.memory_space<vmem>>, vector<256x8xf32>,
    } else {
    }
    %c0 = arith.constant 0 : index
    %c0_1 = arith.constant 0 : index
    %3 = vector.load %arg11[%c0, %c0_1] : memref<256x8xf32, #tpu.memory_space<vmem>>, vector<256x8xf32>
    %c0_2 = arith.constant 0 : index
    %c12 = arith.constant 12 : index
    %c12_3 = arith.constant 12 : index
    %c0_4 = arith.constant 0 : index
    %4 = vector.load %arg2[%c0_2, %c12, %c12_3, %c0_4] : memref<1x40x40x4xbf16, #tpu.memory_space<vmem>>, vector<1x16x16x4xbf16>
    %5 = vector.shape_cast %4 : vector<1x16x16x4xbf16> to vector<16x16x4xbf16>
    %6 = vector.shape_cast %5 : vector<16x16x4xbf16> to vector<256x4xbf16>
    %c0_5 = arith.constant 0 : index
    %c0_6 = arith.constant 0 : index
    %c0_7 = arith.constant 0 : index
    %7 = vector.load %arg4[%c0_5, %c0_6, %c0_7] : memref<1x4x8xbf16, #tpu.memory_space<vmem>>, vector<1x4x8xbf16>
    %8 = vector.shape_cast %7 : vector<1x4x8xbf16> to vector<4x8xbf16>
    %cst = arith.constant dense<0.000000e+00> : vector<256x8xf32>
    %9 = tpu.matmul %6, %8, %cst {dimension_numbers = #tpu.dot_dimension_numbers<[1], [0], [0], [1], [0, 0, 1, 1], [], []>} : vector<256x4xbf16>, vector<4x8xbf16>, vector<256x8xf32> -> vector<256x8xf32>
    %10 = arith.addf %3, %9 : vector<256x8xf32>
    %c0_8 = arith.constant 0 : index
    %c0_9 = arith.constant 0 : index
    %11 = vector.load %arg11[%c0_8, %c0_9] : memref<256x8xf32, #tpu.memory_space<vmem>>, vector<256x8xf32>
    tpu.vector_store %arg11[%c0_8, %c0_9], %10 {strides = array<i32>} : memref<256x8xf32, #tpu.memory_space<vmem>>, vector<256x8xf32>,
    %c0_10 = arith.constant 0 : index
    %c0_11 = arith.constant 0 : index
    %12 = vector.load %arg12[%c0_10, %c0_11] : memref<256x8xf32, #tpu.memory_space<vmem>>, vector<256x8xf32>
    %c0_12 = arith.constant 0 : index
    %c6 = arith.constant 6 : index
    %c6_13 = arith.constant 6 : index
    %c0_14 = arith.constant 0 : index
    %13 = vector.load %arg2[%c0_12, %c6, %c6_13, %c0_14] : memref<1x40x40x4xbf16, #tpu.memory_space<vmem>>, vector<1x16x16x4xbf16>
    %14 = vector.shape_cast %13 : vector<1x16x16x4xbf16> to vector<16x16x4xbf16>
    %15 = vector.shape_cast %14 : vector<16x16x4xbf16> to vector<256x4xbf16>
    %c0_15 = arith.constant 0 : index
    %c0_16 = arith.constant 0 : index
    %c0_17 = arith.constant 0 : index
    %16 = vector.load %arg6[%c0_15, %c0_16, %c0_17] : memref<9x4x8xbf16, #tpu.memory_space<vmem>>, vector<1x4x8xbf16>
    %17 = vector.shape_cast %16 : vector<1x4x8xbf16> to vector<4x8xbf16>
    %cst_18 = arith.constant dense<0.000000e+00> : vector<256x8xf32>
    %18 = tpu.matmul %15, %17, %cst_18 {dimension_numbers = #tpu.dot_dimension_numbers<[1], [0], [0], [1], [0, 0, 1, 1], [], []>} : vector<256x4xbf16>, vector<4x8xbf16>, vector<256x8xf32> -> vector<256x8xf32>
    %19 = arith.addf %12, %18 : vector<256x8xf32>
    %c0_19 = arith.constant 0 : index
    %c6_20 = arith.constant 6 : index
    %c12_21 = arith.constant 12 : index
    %c0_22 = arith.constant 0 : index
    %20 = vector.load %arg2[%c0_19, %c6_20, %c12_21, %c0_22] : memref<1x40x40x4xbf16, #tpu.memory_space<vmem>>, vector<1x16x16x4xbf16>
    %21 = vector.shape_cast %20 : vector<1x16x16x4xbf16> to vector<16x16x4xbf16>
    %22 = vector.shape_cast %21 : vector<16x16x4xbf16> to vector<256x4xbf16>
    %c1 = arith.constant 1 : index
    %c0_23 = arith.constant 0 : index
    %c0_24 = arith.constant 0 : index
    %23 = vector.load %arg6[%c1, %c0_23, %c0_24] : memref<9x4x8xbf16, #tpu.memory_space<vmem>>, vector<1x4x8xbf16>
    %24 = vector.shape_cast %23 : vector<1x4x8xbf16> to vector<4x8xbf16>
    %cst_25 = arith.constant dense<0.000000e+00> : vector<256x8xf32>
    %25 = tpu.matmul %22, %24, %cst_25 {dimension_numbers = #tpu.dot_dimension_numbers<[1], [0], [0], [1], [0, 0, 1, 1], [], []>} : vector<256x4xbf16>, vector<4x8xbf16>, vector<256x8xf32> -> vector<256x8xf32>
    %26 = arith.addf %19, %25 : vector<256x8xf32>
    %c0_26 = arith.constant 0 : index
    %c6_27 = arith.constant 6 : index
    %c18 = arith.constant 18 : index
    %c0_28 = arith.constant 0 : index
    %27 = vector.load %arg2[%c0_26, %c6_27, %c18, %c0_28] : memref<1x40x40x4xbf16, #tpu.memory_space<vmem>>, vector<1x16x16x4xbf16>
    %28 = vector.shape_cast %27 : vector<1x16x16x4xbf16> to vector<16x16x4xbf16>
    %29 = vector.shape_cast %28 : vector<16x16x4xbf16> to vector<256x4xbf16>
    %c2 = arith.constant 2 : index
    %c0_29 = arith.constant 0 : index
    %c0_30 = arith.constant 0 : index
    %30 = vector.load %arg6[%c2, %c0_29, %c0_30] : memref<9x4x8xbf16, #tpu.memory_space<vmem>>, vector<1x4x8xbf16>
    %31 = vector.shape_cast %30 : vector<1x4x8xbf16> to vector<4x8xbf16>
    %cst_31 = arith.constant dense<0.000000e+00> : vector<256x8xf32>
    %32 = tpu.matmul %29, %31, %cst_31 {dimension_numbers = #tpu.dot_dimension_numbers<[1], [0], [0], [1], [0, 0, 1, 1], [], []>} : vector<256x4xbf16>, vector<4x8xbf16>, vector<256x8xf32> -> vector<256x8xf32>
    %33 = arith.addf %26, %32 : vector<256x8xf32>
    %c0_32 = arith.constant 0 : index
    %c12_33 = arith.constant 12 : index
    %c6_34 = arith.constant 6 : index
    %c0_35 = arith.constant 0 : index
    %34 = vector.load %arg2[%c0_32, %c12_33, %c6_34, %c0_35] : memref<1x40x40x4xbf16, #tpu.memory_space<vmem>>, vector<1x16x16x4xbf16>
    %35 = vector.shape_cast %34 : vector<1x16x16x4xbf16> to vector<16x16x4xbf16>
    %36 = vector.shape_cast %35 : vector<16x16x4xbf16> to vector<256x4xbf16>
    %c3 = arith.constant 3 : index
    %c0_36 = arith.constant 0 : index
    %c0_37 = arith.constant 0 : index
    %37 = vector.load %arg6[%c3, %c0_36, %c0_37] : memref<9x4x8xbf16, #tpu.memory_space<vmem>>, vector<1x4x8xbf16>
    %38 = vector.shape_cast %37 : vector<1x4x8xbf16> to vector<4x8xbf16>
    %cst_38 = arith.constant dense<0.000000e+00> : vector<256x8xf32>
    %39 = tpu.matmul %36, %38, %cst_38 {dimension_numbers = #tpu.dot_dimension_numbers<[1], [0], [0], [1], [0, 0, 1, 1], [], []>} : vector<256x4xbf16>, vector<4x8xbf16>, vector<256x8xf32> -> vector<256x8xf32>
    %40 = arith.addf %33, %39 : vector<256x8xf32>
    %c0_39 = arith.constant 0 : index
    %c12_40 = arith.constant 12 : index
    %c12_41 = arith.constant 12 : index
    %c0_42 = arith.constant 0 : index
    %41 = vector.load %arg2[%c0_39, %c12_40, %c12_41, %c0_42] : memref<1x40x40x4xbf16, #tpu.memory_space<vmem>>, vector<1x16x16x4xbf16>
    %42 = vector.shape_cast %41 : vector<1x16x16x4xbf16> to vector<16x16x4xbf16>
    %43 = vector.shape_cast %42 : vector<16x16x4xbf16> to vector<256x4xbf16>
    %c4 = arith.constant 4 : index
    %c0_43 = arith.constant 0 : index
    %c0_44 = arith.constant 0 : index
    %44 = vector.load %arg6[%c4, %c0_43, %c0_44] : memref<9x4x8xbf16, #tpu.memory_space<vmem>>, vector<1x4x8xbf16>
    %45 = vector.shape_cast %44 : vector<1x4x8xbf16> to vector<4x8xbf16>
    %cst_45 = arith.constant dense<0.000000e+00> : vector<256x8xf32>
    %46 = tpu.matmul %43, %45, %cst_45 {dimension_numbers = #tpu.dot_dimension_numbers<[1], [0], [0], [1], [0, 0, 1, 1], [], []>} : vector<256x4xbf16>, vector<4x8xbf16>, vector<256x8xf32> -> vector<256x8xf32>
    %47 = arith.addf %40, %46 : vector<256x8xf32>
    %c0_46 = arith.constant 0 : index
    %c12_47 = arith.constant 12 : index
    %c18_48 = arith.constant 18 : index
    %c0_49 = arith.constant 0 : index
    %48 = vector.load %arg2[%c0_46, %c12_47, %c18_48, %c0_49] : memref<1x40x40x4xbf16, #tpu.memory_space<vmem>>, vector<1x16x16x4xbf16>
    %49 = vector.shape_cast %48 : vector<1x16x16x4xbf16> to vector<16x16x4xbf16>
    %50 = vector.shape_cast %49 : vector<16x16x4xbf16> to vector<256x4xbf16>
    %c5 = arith.constant 5 : index
    %c0_50 = arith.constant 0 : index
    %c0_51 = arith.constant 0 : index
    %51 = vector.load %arg6[%c5, %c0_50, %c0_51] : memref<9x4x8xbf16, #tpu.memory_space<vmem>>, vector<1x4x8xbf16>
    %52 = vector.shape_cast %51 : vector<1x4x8xbf16> to vector<4x8xbf16>
    %cst_52 = arith.constant dense<0.000000e+00> : vector<256x8xf32>
    %53 = tpu.matmul %50, %52, %cst_52 {dimension_numbers = #tpu.dot_dimension_numbers<[1], [0], [0], [1], [0, 0, 1, 1], [], []>} : vector<256x4xbf16>, vector<4x8xbf16>, vector<256x8xf32> -> vector<256x8xf32>
    %54 = arith.addf %47, %53 : vector<256x8xf32>
    %c0_53 = arith.constant 0 : index
    %c18_54 = arith.constant 18 : index
    %c6_55 = arith.constant 6 : index
    %c0_56 = arith.constant 0 : index
    %55 = vector.load %arg2[%c0_53, %c18_54, %c6_55, %c0_56] : memref<1x40x40x4xbf16, #tpu.memory_space<vmem>>, vector<1x16x16x4xbf16>
    %56 = vector.shape_cast %55 : vector<1x16x16x4xbf16> to vector<16x16x4xbf16>
    %57 = vector.shape_cast %56 : vector<16x16x4xbf16> to vector<256x4xbf16>
    %c6_57 = arith.constant 6 : index
    %c0_58 = arith.constant 0 : index
    %c0_59 = arith.constant 0 : index
    %58 = vector.load %arg6[%c6_57, %c0_58, %c0_59] : memref<9x4x8xbf16, #tpu.memory_space<vmem>>, vector<1x4x8xbf16>
    %59 = vector.shape_cast %58 : vector<1x4x8xbf16> to vector<4x8xbf16>
    %cst_60 = arith.constant dense<0.000000e+00> : vector<256x8xf32>
    %60 = tpu.matmul %57, %59, %cst_60 {dimension_numbers = #tpu.dot_dimension_numbers<[1], [0], [0], [1], [0, 0, 1, 1], [], []>} : vector<256x4xbf16>, vector<4x8xbf16>, vector<256x8xf32> -> vector<256x8xf32>
    %61 = arith.addf %54, %60 : vector<256x8xf32>
    %c0_61 = arith.constant 0 : index
    %c18_62 = arith.constant 18 : index
    %c12_63 = arith.constant 12 : index
    %c0_64 = arith.constant 0 : index
    %62 = vector.load %arg2[%c0_61, %c18_62, %c12_63, %c0_64] : memref<1x40x40x4xbf16, #tpu.memory_space<vmem>>, vector<1x16x16x4xbf16>
    %63 = vector.shape_cast %62 : vector<1x16x16x4xbf16> to vector<16x16x4xbf16>
    %64 = vector.shape_cast %63 : vector<16x16x4xbf16> to vector<256x4xbf16>
    %c7 = arith.constant 7 : index
    %c0_65 = arith.constant 0 : index
    %c0_66 = arith.constant 0 : index
    %65 = vector.load %arg6[%c7, %c0_65, %c0_66] : memref<9x4x8xbf16, #tpu.memory_space<vmem>>, vector<1x4x8xbf16>
    %66 = vector.shape_cast %65 : vector<1x4x8xbf16> to vector<4x8xbf16>
    %cst_67 = arith.constant dense<0.000000e+00> : vector<256x8xf32>
    %67 = tpu.matmul %64, %66, %cst_67 {dimension_numbers = #tpu.dot_dimension_numbers<[1], [0], [0], [1], [0, 0, 1, 1], [], []>} : vector<256x4xbf16>, vector<4x8xbf16>, vector<256x8xf32> -> vector<256x8xf32>
    %68 = arith.addf %61, %67 : vector<256x8xf32>
    %c0_68 = arith.constant 0 : index
    %c18_69 = arith.constant 18 : index
    %c18_70 = arith.constant 18 : index
    %c0_71 = arith.constant 0 : index
    %69 = vector.load %arg2[%c0_68, %c18_69, %c18_70, %c0_71] : memref<1x40x40x4xbf16, #tpu.memory_space<vmem>>, vector<1x16x16x4xbf16>
    %70 = vector.shape_cast %69 : vector<1x16x16x4xbf16> to vector<16x16x4xbf16>
    %71 = vector.shape_cast %70 : vector<16x16x4xbf16> to vector<256x4xbf16>
    %c8 = arith.constant 8 : index
    %c0_72 = arith.constant 0 : index
    %c0_73 = arith.constant 0 : index
    %72 = vector.load %arg6[%c8, %c0_72, %c0_73] : memref<9x4x8xbf16, #tpu.memory_space<vmem>>, vector<1x4x8xbf16>
    %73 = vector.shape_cast %72 : vector<1x4x8xbf16> to vector<4x8xbf16>
    %cst_74 = arith.constant dense<0.000000e+00> : vector<256x8xf32>
    %74 = tpu.matmul %71, %73, %cst_74 {dimension_numbers = #tpu.dot_dimension_numbers<[1], [0], [0], [1], [0, 0, 1, 1], [], []>} : vector<256x4xbf16>, vector<4x8xbf16>, vector<256x8xf32> -> vector<256x8xf32>
    %75 = arith.addf %68, %74 : vector<256x8xf32>
    %c0_75 = arith.constant 0 : index
    %c0_76 = arith.constant 0 : index
    %76 = vector.load %arg12[%c0_75, %c0_76] : memref<256x8xf32, #tpu.memory_space<vmem>>, vector<256x8xf32>
    tpu.vector_store %arg12[%c0_75, %c0_76], %75 {strides = array<i32>} : memref<256x8xf32, #tpu.memory_space<vmem>>, vector<256x8xf32>,
    %c0_77 = arith.constant 0 : index
    %c0_78 = arith.constant 0 : index
    %77 = vector.load %arg13[%c0_77, %c0_78] : memref<256x8xf32, #tpu.memory_space<vmem>>, vector<256x8xf32>
    %c0_79 = arith.constant 0 : index
    %c0_80 = arith.constant 0 : index
    %c0_81 = arith.constant 0 : index
    %c0_82 = arith.constant 0 : index
    %78 = vector.load %arg2[%c0_79, %c0_80, %c0_81, %c0_82] : memref<1x40x40x4xbf16, #tpu.memory_space<vmem>>, vector<1x16x16x4xbf16>
    %79 = vector.shape_cast %78 : vector<1x16x16x4xbf16> to vector<16x16x4xbf16>
    %80 = vector.shape_cast %79 : vector<16x16x4xbf16> to vector<256x4xbf16>
    %c0_83 = arith.constant 0 : index
    %c0_84 = arith.constant 0 : index
    %c0_85 = arith.constant 0 : index
    %81 = vector.load %arg8[%c0_83, %c0_84, %c0_85] : memref<9x4x8xbf16, #tpu.memory_space<vmem>>, vector<1x4x8xbf16>
    %82 = vector.shape_cast %81 : vector<1x4x8xbf16> to vector<4x8xbf16>
    %cst_86 = arith.constant dense<0.000000e+00> : vector<256x8xf32>
    %83 = tpu.matmul %80, %82, %cst_86 {dimension_numbers = #tpu.dot_dimension_numbers<[1], [0], [0], [1], [0, 0, 1, 1], [], []>} : vector<256x4xbf16>, vector<4x8xbf16>, vector<256x8xf32> -> vector<256x8xf32>
    %84 = arith.addf %77, %83 : vector<256x8xf32>
    %c0_87 = arith.constant 0 : index
    %c0_88 = arith.constant 0 : index
    %c12_89 = arith.constant 12 : index
    %c0_90 = arith.constant 0 : index
    %85 = vector.load %arg2[%c0_87, %c0_88, %c12_89, %c0_90] : memref<1x40x40x4xbf16, #tpu.memory_space<vmem>>, vector<1x16x16x4xbf16>
    %86 = vector.shape_cast %85 : vector<1x16x16x4xbf16> to vector<16x16x4xbf16>
    %87 = vector.shape_cast %86 : vector<16x16x4xbf16> to vector<256x4xbf16>
    %c1_91 = arith.constant 1 : index
    %c0_92 = arith.constant 0 : index
    %c0_93 = arith.constant 0 : index
    %88 = vector.load %arg8[%c1_91, %c0_92, %c0_93] : memref<9x4x8xbf16, #tpu.memory_space<vmem>>, vector<1x4x8xbf16>
    %89 = vector.shape_cast %88 : vector<1x4x8xbf16> to vector<4x8xbf16>
    %cst_94 = arith.constant dense<0.000000e+00> : vector<256x8xf32>
    %90 = tpu.matmul %87, %89, %cst_94 {dimension_numbers = #tpu.dot_dimension_numbers<[1], [0], [0], [1], [0, 0, 1, 1], [], []>} : vector<256x4xbf16>, vector<4x8xbf16>, vector<256x8xf32> -> vector<256x8xf32>
    %91 = arith.addf %84, %90 : vector<256x8xf32>
    %c0_95 = arith.constant 0 : index
    %c0_96 = arith.constant 0 : index
    %c24 = arith.constant 24 : index
    %c0_97 = arith.constant 0 : index
    %92 = vector.load %arg2[%c0_95, %c0_96, %c24, %c0_97] : memref<1x40x40x4xbf16, #tpu.memory_space<vmem>>, vector<1x16x16x4xbf16>
    %93 = vector.shape_cast %92 : vector<1x16x16x4xbf16> to vector<16x16x4xbf16>
    %94 = vector.shape_cast %93 : vector<16x16x4xbf16> to vector<256x4xbf16>
    %c2_98 = arith.constant 2 : index
    %c0_99 = arith.constant 0 : index
    %c0_100 = arith.constant 0 : index
    %95 = vector.load %arg8[%c2_98, %c0_99, %c0_100] : memref<9x4x8xbf16, #tpu.memory_space<vmem>>, vector<1x4x8xbf16>
    %96 = vector.shape_cast %95 : vector<1x4x8xbf16> to vector<4x8xbf16>
    %cst_101 = arith.constant dense<0.000000e+00> : vector<256x8xf32>
    %97 = tpu.matmul %94, %96, %cst_101 {dimension_numbers = #tpu.dot_dimension_numbers<[1], [0], [0], [1], [0, 0, 1, 1], [], []>} : vector<256x4xbf16>, vector<4x8xbf16>, vector<256x8xf32> -> vector<256x8xf32>
    %98 = arith.addf %91, %97 : vector<256x8xf32>
    %c0_102 = arith.constant 0 : index
    %c12_103 = arith.constant 12 : index
    %c0_104 = arith.constant 0 : index
    %c0_105 = arith.constant 0 : index
    %99 = vector.load %arg2[%c0_102, %c12_103, %c0_104, %c0_105] : memref<1x40x40x4xbf16, #tpu.memory_space<vmem>>, vector<1x16x16x4xbf16>
    %100 = vector.shape_cast %99 : vector<1x16x16x4xbf16> to vector<16x16x4xbf16>
    %101 = vector.shape_cast %100 : vector<16x16x4xbf16> to vector<256x4xbf16>
    %c3_106 = arith.constant 3 : index
    %c0_107 = arith.constant 0 : index
    %c0_108 = arith.constant 0 : index
    %102 = vector.load %arg8[%c3_106, %c0_107, %c0_108] : memref<9x4x8xbf16, #tpu.memory_space<vmem>>, vector<1x4x8xbf16>
    %103 = vector.shape_cast %102 : vector<1x4x8xbf16> to vector<4x8xbf16>
    %cst_109 = arith.constant dense<0.000000e+00> : vector<256x8xf32>
    %104 = tpu.matmul %101, %103, %cst_109 {dimension_numbers = #tpu.dot_dimension_numbers<[1], [0], [0], [1], [0, 0, 1, 1], [], []>} : vector<256x4xbf16>, vector<4x8xbf16>, vector<256x8xf32> -> vector<256x8xf32>
    %105 = arith.addf %98, %104 : vector<256x8xf32>
    %c0_110 = arith.constant 0 : index
    %c12_111 = arith.constant 12 : index
    %c12_112 = arith.constant 12 : index
    %c0_113 = arith.constant 0 : index
    %106 = vector.load %arg2[%c0_110, %c12_111, %c12_112, %c0_113] : memref<1x40x40x4xbf16, #tpu.memory_space<vmem>>, vector<1x16x16x4xbf16>
    %107 = vector.shape_cast %106 : vector<1x16x16x4xbf16> to vector<16x16x4xbf16>
    %108 = vector.shape_cast %107 : vector<16x16x4xbf16> to vector<256x4xbf16>
    %c4_114 = arith.constant 4 : index
    %c0_115 = arith.constant 0 : index
    %c0_116 = arith.constant 0 : index
    %109 = vector.load %arg8[%c4_114, %c0_115, %c0_116] : memref<9x4x8xbf16, #tpu.memory_space<vmem>>, vector<1x4x8xbf16>
    %110 = vector.shape_cast %109 : vector<1x4x8xbf16> to vector<4x8xbf16>
    %cst_117 = arith.constant dense<0.000000e+00> : vector<256x8xf32>
    %111 = tpu.matmul %108, %110, %cst_117 {dimension_numbers = #tpu.dot_dimension_numbers<[1], [0], [0], [1], [0, 0, 1, 1], [], []>} : vector<256x4xbf16>, vector<4x8xbf16>, vector<256x8xf32> -> vector<256x8xf32>
    %112 = arith.addf %105, %111 : vector<256x8xf32>
    %c0_118 = arith.constant 0 : index
    %c12_119 = arith.constant 12 : index
    %c24_120 = arith.constant 24 : index
    %c0_121 = arith.constant 0 : index
    %113 = vector.load %arg2[%c0_118, %c12_119, %c24_120, %c0_121] : memref<1x40x40x4xbf16, #tpu.memory_space<vmem>>, vector<1x16x16x4xbf16>
    %114 = vector.shape_cast %113 : vector<1x16x16x4xbf16> to vector<16x16x4xbf16>
    %115 = vector.shape_cast %114 : vector<16x16x4xbf16> to vector<256x4xbf16>
    %c5_122 = arith.constant 5 : index
    %c0_123 = arith.constant 0 : index
    %c0_124 = arith.constant 0 : index
    %116 = vector.load %arg8[%c5_122, %c0_123, %c0_124] : memref<9x4x8xbf16, #tpu.memory_space<vmem>>, vector<1x4x8xbf16>
    %117 = vector.shape_cast %116 : vector<1x4x8xbf16> to vector<4x8xbf16>
    %cst_125 = arith.constant dense<0.000000e+00> : vector<256x8xf32>
    %118 = tpu.matmul %115, %117, %cst_125 {dimension_numbers = #tpu.dot_dimension_numbers<[1], [0], [0], [1], [0, 0, 1, 1], [], []>} : vector<256x4xbf16>, vector<4x8xbf16>, vector<256x8xf32> -> vector<256x8xf32>
    %119 = arith.addf %112, %118 : vector<256x8xf32>
    %c0_126 = arith.constant 0 : index
    %c24_127 = arith.constant 24 : index
    %c0_128 = arith.constant 0 : index
    %c0_129 = arith.constant 0 : index
    %120 = vector.load %arg2[%c0_126, %c24_127, %c0_128, %c0_129] : memref<1x40x40x4xbf16, #tpu.memory_space<vmem>>, vector<1x16x16x4xbf16>
    %121 = vector.shape_cast %120 : vector<1x16x16x4xbf16> to vector<16x16x4xbf16>
    %122 = vector.shape_cast %121 : vector<16x16x4xbf16> to vector<256x4xbf16>
    %c6_130 = arith.constant 6 : index
    %c0_131 = arith.constant 0 : index
    %c0_132 = arith.constant 0 : index
    %123 = vector.load %arg8[%c6_130, %c0_131, %c0_132] : memref<9x4x8xbf16, #tpu.memory_space<vmem>>, vector<1x4x8xbf16>
    %124 = vector.shape_cast %123 : vector<1x4x8xbf16> to vector<4x8xbf16>
    %cst_133 = arith.constant dense<0.000000e+00> : vector<256x8xf32>
    %125 = tpu.matmul %122, %124, %cst_133 {dimension_numbers = #tpu.dot_dimension_numbers<[1], [0], [0], [1], [0, 0, 1, 1], [], []>} : vector<256x4xbf16>, vector<4x8xbf16>, vector<256x8xf32> -> vector<256x8xf32>
    %126 = arith.addf %119, %125 : vector<256x8xf32>
    %c0_134 = arith.constant 0 : index
    %c24_135 = arith.constant 24 : index
    %c12_136 = arith.constant 12 : index
    %c0_137 = arith.constant 0 : index
    %127 = vector.load %arg2[%c0_134, %c24_135, %c12_136, %c0_137] : memref<1x40x40x4xbf16, #tpu.memory_space<vmem>>, vector<1x16x16x4xbf16>
    %128 = vector.shape_cast %127 : vector<1x16x16x4xbf16> to vector<16x16x4xbf16>
    %129 = vector.shape_cast %128 : vector<16x16x4xbf16> to vector<256x4xbf16>
    %c7_138 = arith.constant 7 : index
    %c0_139 = arith.constant 0 : index
    %c0_140 = arith.constant 0 : index
    %130 = vector.load %arg8[%c7_138, %c0_139, %c0_140] : memref<9x4x8xbf16, #tpu.memory_space<vmem>>, vector<1x4x8xbf16>
    %131 = vector.shape_cast %130 : vector<1x4x8xbf16> to vector<4x8xbf16>
    %cst_141 = arith.constant dense<0.000000e+00> : vector<256x8xf32>
    %132 = tpu.matmul %129, %131, %cst_141 {dimension_numbers = #tpu.dot_dimension_numbers<[1], [0], [0], [1], [0, 0, 1, 1], [], []>} : vector<256x4xbf16>, vector<4x8xbf16>, vector<256x8xf32> -> vector<256x8xf32>
    %133 = arith.addf %126, %132 : vector<256x8xf32>
    %c0_142 = arith.constant 0 : index
    %c24_143 = arith.constant 24 : index
    %c24_144 = arith.constant 24 : index
    %c0_145 = arith.constant 0 : index
    %134 = vector.load %arg2[%c0_142, %c24_143, %c24_144, %c0_145] : memref<1x40x40x4xbf16, #tpu.memory_space<vmem>>, vector<1x16x16x4xbf16>
    %135 = vector.shape_cast %134 : vector<1x16x16x4xbf16> to vector<16x16x4xbf16>
    %136 = vector.shape_cast %135 : vector<16x16x4xbf16> to vector<256x4xbf16>
    %c8_146 = arith.constant 8 : index
    %c0_147 = arith.constant 0 : index
    %c0_148 = arith.constant 0 : index
    %137 = vector.load %arg8[%c8_146, %c0_147, %c0_148] : memref<9x4x8xbf16, #tpu.memory_space<vmem>>, vector<1x4x8xbf16>
    %138 = vector.shape_cast %137 : vector<1x4x8xbf16> to vector<4x8xbf16>
    %cst_149 = arith.constant dense<0.000000e+00> : vector<256x8xf32>
    %139 = tpu.matmul %136, %138, %cst_149 {dimension_numbers = #tpu.dot_dimension_numbers<[1], [0], [0], [1], [0, 0, 1, 1], [], []>} : vector<256x4xbf16>, vector<4x8xbf16>, vector<256x8xf32> -> vector<256x8xf32>
    %140 = arith.addf %133, %139 : vector<256x8xf32>
    %c0_150 = arith.constant 0 : index
    %c0_151 = arith.constant 0 : index
    %141 = vector.load %arg13[%c0_150, %c0_151] : memref<256x8xf32, #tpu.memory_space<vmem>>, vector<256x8xf32>
    tpu.vector_store %arg13[%c0_150, %c0_151], %140 {strides = array<i32>} : memref<256x8xf32, #tpu.memory_space<vmem>>, vector<256x8xf32>,
    %c0_i32_152 = arith.constant 0 : i32
    %142 = arith.cmpi eq, %arg1, %c0_i32_152 : i32
    %143 = arith.extui %142 : i1 to i32
    %c0_i32_153 = arith.constant 0 : i32
    %144 = arith.cmpi ne, %143, %c0_i32_153 : i32
    scf.if %144 {
      %c0_154 = arith.constant 0 : index
      %c0_155 = arith.constant 0 : index
      %c0_156 = arith.constant 0 : index
      %145 = vector.load %arg3[%c0_154, %c0_155, %c0_156] : memref<1x1x8xf32, #tpu.memory_space<vmem>>, vector<1x1x8xf32>
      %146 = vector.shape_cast %145 : vector<1x1x8xf32> to vector<1x8xf32>
      %147 = vector.shape_cast %146 : vector<1x8xf32> to vector<1x8xf32>
      %148 = vector.broadcast %147 : vector<1x8xf32> to vector<256x8xf32>
      %c0_157 = arith.constant 0 : index
      %c0_158 = arith.constant 0 : index
      %149 = vector.load %arg11[%c0_157, %c0_158] : memref<256x8xf32, #tpu.memory_space<vmem>>, vector<256x8xf32>
      %c0_159 = arith.constant 0 : index
      %c0_160 = arith.constant 0 : index
      %150 = vector.load %arg5[%c0_159, %c0_160] : memref<1x8xf32, #tpu.memory_space<vmem>>, vector<1x8xf32>
      %151 = vector.broadcast %150 : vector<1x8xf32> to vector<256x8xf32>
      %152 = arith.addf %149, %151 : vector<256x8xf32>
      %cst_161 = arith.constant 0.000000e+00 : f32
      %153 = vector.broadcast %cst_161 : f32 to vector<256x8xf32>
      %154 = arith.maximumf %152, %153 : vector<256x8xf32>
      %c0_162 = arith.constant 0 : index
      %c0_163 = arith.constant 0 : index
      %155 = vector.load %arg12[%c0_162, %c0_163] : memref<256x8xf32, #tpu.memory_space<vmem>>, vector<256x8xf32>
      %c0_164 = arith.constant 0 : index
      %c0_165 = arith.constant 0 : index
      %156 = vector.load %arg7[%c0_164, %c0_165] : memref<1x8xf32, #tpu.memory_space<vmem>>, vector<1x8xf32>
      %157 = vector.broadcast %156 : vector<1x8xf32> to vector<256x8xf32>
      %158 = arith.addf %155, %157 : vector<256x8xf32>
      %cst_166 = arith.constant 0.000000e+00 : f32
      %159 = vector.broadcast %cst_166 : f32 to vector<256x8xf32>
      %160 = arith.maximumf %158, %159 : vector<256x8xf32>
      %c0_167 = arith.constant 0 : index
      %c0_168 = arith.constant 0 : index
      %161 = vector.load %arg13[%c0_167, %c0_168] : memref<256x8xf32, #tpu.memory_space<vmem>>, vector<256x8xf32>
      %c0_169 = arith.constant 0 : index
      %c0_170 = arith.constant 0 : index
      %162 = vector.load %arg9[%c0_169, %c0_170] : memref<1x8xf32, #tpu.memory_space<vmem>>, vector<1x8xf32>
      %163 = vector.broadcast %162 : vector<1x8xf32> to vector<256x8xf32>
      %164 = arith.addf %161, %163 : vector<256x8xf32>
      %cst_171 = arith.constant 0.000000e+00 : f32
      %165 = vector.broadcast %cst_171 : f32 to vector<256x8xf32>
      %166 = arith.maximumf %164, %165 : vector<256x8xf32>
      %167 = tpu.concatenate %148, %154, %160, %166 in 1 : vector<256x8xf32>, vector<256x8xf32>, vector<256x8xf32>, vector<256x8xf32> -> vector<256x32xf32>
      %168 = arith.truncf %167 : vector<256x32xf32> to vector<256x32xbf16>
      %c0_172 = arith.constant 0 : index
      %c0_173 = arith.constant 0 : index
      %c0_174 = arith.constant 0 : index
      %169 = vector.load %arg10[%c0_172, %c0_173, %c0_174] : memref<1x256x32xbf16, #tpu.memory_space<vmem>>, vector<1x256x32xbf16>
      %170 = vector.shape_cast %169 : vector<1x256x32xbf16> to vector<256x32xbf16>
      %171 = vector.shape_cast %168 : vector<256x32xbf16> to vector<1x256x32xbf16>
      tpu.vector_store %arg10[%c0_172, %c0_173, %c0_174], %171 {strides = array<i32>} : memref<1x256x32xbf16, #tpu.memory_space<vmem>>, vector<1x256x32xbf16>,
    } else {
    }
    return
  }
  func.func @transform_0(%arg0: i32, %arg1: i32) -> (i32, i32, i32, i32) {
    %c0_i32 = arith.constant 0 : i32
    %c0_i32_0 = arith.constant 0 : i32
    %c0_i32_1 = arith.constant 0 : i32
    return %arg0, %c0_i32, %c0_i32_0, %arg1 : i32, i32, i32, i32
  }
  func.func @transform_1(%arg0: i32, %arg1: i32) -> (i32, i32, i32) {
    %c0_i32 = arith.constant 0 : i32
    %c0_i32_0 = arith.constant 0 : i32
    %c0_i32_1 = arith.constant 0 : i32
    return %arg0, %c0_i32, %c0_i32_0 : i32, i32, i32
  }
  func.func @transform_2(%arg0: i32, %arg1: i32) -> (i32, i32, i32) {
    %c0_i32 = arith.constant 0 : i32
    %c0_i32_0 = arith.constant 0 : i32
    %c0_i32_1 = arith.constant 0 : i32
    return %c0_i32, %arg1, %c0_i32_0 : i32, i32, i32
  }
  func.func @transform_3(%arg0: i32, %arg1: i32) -> (i32, i32) {
    %c0_i32 = arith.constant 0 : i32
    %c0_i32_0 = arith.constant 0 : i32
    %c0_i32_1 = arith.constant 0 : i32
    return %c0_i32, %c0_i32_0 : i32, i32
  }
  func.func @transform_4(%arg0: i32, %arg1: i32) -> (i32, i32, i32) {
    %c0_i32 = arith.constant 0 : i32
    %c0_i32_0 = arith.constant 0 : i32
    %c0_i32_1 = arith.constant 0 : i32
    return %c0_i32, %arg1, %c0_i32_0 : i32, i32, i32
  }
  func.func @transform_5(%arg0: i32, %arg1: i32) -> (i32, i32) {
    %c0_i32 = arith.constant 0 : i32
    %c0_i32_0 = arith.constant 0 : i32
    %c0_i32_1 = arith.constant 0 : i32
    return %c0_i32, %c0_i32_0 : i32, i32
  }
  func.func @transform_6(%arg0: i32, %arg1: i32) -> (i32, i32, i32) {
    %c0_i32 = arith.constant 0 : i32
    %c0_i32_0 = arith.constant 0 : i32
    %c0_i32_1 = arith.constant 0 : i32
    return %c0_i32, %arg1, %c0_i32_0 : i32, i32, i32
  }
  func.func @transform_7(%arg0: i32, %arg1: i32) -> (i32, i32) {
    %c0_i32 = arith.constant 0 : i32
    %c0_i32_0 = arith.constant 0 : i32
    %c0_i32_1 = arith.constant 0 : i32
    return %c0_i32, %c0_i32_0 : i32, i32
  }
  func.func @transform_8(%arg0: i32, %arg1: i32) -> (i32, i32, i32) {
    %c0_i32 = arith.constant 0 : i32
    %c0_i32_0 = arith.constant 0 : i32
    %c0_i32_1 = arith.constant 0 : i32
    return %arg0, %c0_i32, %c0_i32_0 : i32, i32, i32
  }
}

</mosaic_0001>

<bundles_post_ra>
// kernel: tpu_custom_call.1
= control target key start
LH: loop header
LB: loop body
LE: loop exit
PB: predicated region body
PF: predicated region fallthrough
CT: control target
= control target key end

     0   :  { %s14084_s27 = smov 0   ;;  %s14086_s28 = smov 0   ;;  %s17269_s0 = inlined_call_operand.vmem [shape: bf16[2,40,40,4], index: 0, kind: input, shape index: {}]   ;;  %s17270_s1 = inlined_call_operand.vmem [shape: f32[2,1,8], index: 1, kind: input, shape index: {}]   ;;  %s17271_s2 = inlined_call_operand.vmem [shape: bf16[1,4,8], index: 2, kind: input, shape index: {}]   ;;  %s17272_s3 = inlined_call_operand.vmem [shape: f32[1,8], index: 3, kind: input, shape index: {}]   ;;  %s17273_s4 = inlined_call_operand.vmem [shape: bf16[9,4,8], index: 4, kind: input, shape index: {}]   ;;  %s17274_s5 = inlined_call_operand.vmem [shape: f32[1,8], index: 5, kind: input, shape index: {}]   ;;  %s17275_s6 = inlined_call_operand.vmem [shape: bf16[9,4,8], index: 6, kind: input, shape index: {}]   ;;  %s17276_s7 = inlined_call_operand.vmem [shape: f32[1,8], index: 7, kind: input, shape index: {}]   ;;  %s17277_s8 = inlined_call_operand.vmem [shape: bf16[2,256,32], index: 8, kind: output, shape index: {}]  }
   0x1   :  { %s14088_s29 = smov 0  }
   0x2 LB: > { %s30_s30 = sadd.s32 1, %s14029_s28  ;;  %p10468_p0 = scmp.ge.s32.totalorder %s14033_s29, 1  ;;  %s14033_s29 = sphi %s14088_s29, %s18_s29   ;;  %s14029_s28 = sphi %s14086_s28, %s17285_s28   ;;  %s14025_s27 = sphi %s14084_s27, %s17284_s27  }
   0x3   : > { %p32_p1 = scmp.ge.s32.totalorder %s30_s30, 2  ;;  %p314_p2 = scmp.lt.s32.totalorder %s14033_s29, 3 }
   0x5   : > { %s17287_s30 = smov (%p32_p1, %s30_s30), 0  ;;  %p315_p3 = pnand %p10468_p0, %p314_p2 }
   0x6   : > { %vm625_vm0 = vcmask (!%p315_p3), 1041408   ;;  %v740_v0 = vld [vmem:[%s17271_s2] sm:$0x3] (!%p315_p3)  ;;  %p366_p4 = scmp.lt.s32.totalorder (!%p315_p3), %s14025_s27, 1  ;;  %vm626_vm1 = vcmask (!%p315_p3), 1045508   ;;  %vm789_vm3 = vcmask (!%p315_p3), 31744  }
   0x7   : > { %318 = sbr.rel (%p315_p3) target bundleno = 991 (0x3df), region = 52  ;;  %13627 = vmatprep.subr.msk.bf16.mxu1 (!%p315_p3), %vm625_vm0, %v740_v0  ;;  %13626 = vmatprep.subr.msk.bf16.mxu0 (!%p315_p3), %vm625_vm0, %v740_v0  ;;  %v840_v1 = vsel (!%p315_p3), %vm625_vm0, %v740_v0, 0  ;;  %v1312_v2 = vld [vmem:[%s17273_s4] sm:$0x3] (!%p315_p3)  ;;  %vm14125_vm2 = vmor (!%p315_p3), %vm625_vm0, %vm626_vm1  ;;  %v14169_v53 = vld [vmem:[%s17275_s6 + $0x2] sm:$0x3] (!%p315_p3) }
   0x8   : > { %v5721_v3 = vld [vmem:[%s17275_s6] sm:$0x3] (!%p315_p3)  ;;  %13049 = vmatpush3.bf16.msra.mxu1 (!%p315_p3), %v840_v1  ;;  %12403 = vmatpush3.bf16.msra.mxu0 (!%p315_p3), %v840_v1  ;;  %v14136_v15 = vsel (!%p315_p3), %vm625_vm0, %v1312_v2, 0  ;;  %v14179_v60 = vld [vmem:[%s17273_s4 + $0x2] sm:$0x3] (!%p315_p3)  ;;  %vm1197_vm4 = vcmask (!%p315_p3), 1040384  }
   0x9   : > { %13628 = vmatprep.subr.msk.bf16.mxu1 (!%p315_p3), %vm625_vm0, %v1312_v2  ;;  %13637 = vmatprep.subr.msk.bf16.mxu0 (!%p315_p3), %vm625_vm0, %v5721_v3  ;;  %v5851_v24 = vsel (!%p315_p3), %vm625_vm0, %v5721_v3, 0  ;;  %vm1198_vm5 = vcmask (!%p315_p3), 1044484   ;;  %vm399_vm7 = vcmask (!%p315_p3), 64512   ;;  %vm2203_vm8 = vcmask (!%p315_p3), 1042432   ;;  %s14036_s24 = smov (!%p315_p3), 8   ;;  %s14037_s23 = smov (!%p315_p3), 16  }
   0xa   : > { %vm14271_vm6 = vmor (!%p315_p3), %vm1197_vm4, %vm1198_vm5  ;;  %vm2204_vm9 = vcmask (!%p315_p3), 1046532   ;;  %vm10110_vm11 = vcmask (!%p315_p3), 130048   ;;  %vm10143_vm12 = vcmask (!%p315_p3), 195584   ;;  %vm10304_vm13 = vcmask (!%p315_p3), 257024  }
   0xb   : > { %vm15091_vm10 = vmor (!%p315_p3), %vm2203_vm8, %vm2204_vm9 }
   0xe   : > { %s17289_s27 = smov (!%p366_p4, %s14025_s27), 1 }
   0xf   : > { %s13646_s15 = smul.u32 800, %s17289_s27  ;;  %s376_s9 = scalar_lea.vmem %s17270_s1, %s17289_s27 }
  0x10   : > { %s12046_s10 = sshll.u32 %s17289_s27, 7 }
  0x11   : > { %s14122_s18 = scalar_lea.vmem %s17269_s0, %s13646_s15  ;;  %s17054_s12 = scalar_lea.vmem %s17277_s8, %s12046_s10 }
  0x12   : > { %v10472_v5 = vld [vmem:[%s14122_s18 + $0xf4] sm:$0xc]  ;;  %v10473_v6 = vld [vmem:[%s14122_s18 + $0xf8] sm:$0xf]  ;;  %v10474_v7 = vld [vmem:[%s14122_s18 + $0xfc] sm:$0x3] }
  0x13   : > { %v10520_v8 = vrot.slane %v10472_v5, 10  ;;  %v630_v9 = vrot.slane %v10473_v6, 6  ;;  %v633_v10 = vrot.slane %v10474_v7, 6  ;;  %v10496_v11 = vld [vmem:[%s14122_s18 + $0x194] sm:$0xc] }
  0x14   : > { %v10497_v12 = vld [vmem:[%s14122_s18 + $0x198] sm:$0xf]  ;;  %v10498_v13 = vld [vmem:[%s14122_s18 + $0x19c] sm:$0x3]  ;;  %v10528_v14 = vrot.slane %v10496_v11, 10 }
  0x15   : > { %v631_v16 = vsel %vm14125_vm2, %v10520_v8, %v630_v9  ;;  %v632_v17 = vrot.slane %v630_v9, 4  ;;  %v686_v18 = vrot.slane %v10497_v12, 6  ;;  %v689_v19 = vrot.slane %v10498_v13, 6  ;;  %v10475_v20 = vld [vmem:[%s14122_s18 + $0x108] sm:$0xc] }
  0x16   : > { %v10476_v21 = vld [vmem:[%s14122_s18 + $0x10c] sm:$0xf]  ;;  %v10477_v22 = vld [vmem:[%s14122_s18 + $0x110] sm:$0x3]  ;;  %v10521_v23 = vrot.slane %v10475_v20, 10 }
  0x17   : > { %v634_v25 = vsel %vm14125_vm2, %v632_v17, %v633_v10  ;;  %v687_v26 = vsel %vm14125_vm2, %v10528_v14, %v686_v18  ;;  %v688_v27 = vrot.slane %v686_v18, 4  ;;  %v637_v28 = vrot.slane %v10476_v21, 6  ;;  %v10499_v29 = vld [vmem:[%s14122_s18 + $0x1a8] sm:$0xc]  ;;  %v10500_v30 = vld [vmem:[%s14122_s18 + $0x1ac] sm:$0xf] }
  0x18   : > { %v10536_v31 = vcombine.low %v631_v16, %v634_v25  ;;  %v640_v32 = vrot.slane %v10477_v22, 6  ;;  %v10501_v33 = vld [vmem:[%s14122_s18 + $0x1b0] sm:$0x3]  ;;  %v10529_v34 = vrot.slane %v10499_v29, 10  ;;  %v693_v35 = vrot.slane %v10500_v30, 6 }
  0x19   : > { %v690_v36 = vsel %vm14125_vm2, %v688_v27, %v689_v19  ;;  %v638_v37 = vsel %vm14125_vm2, %v10521_v23, %v637_v28  ;;  %v639_v38 = vrot.slane %v637_v28, 4  ;;  %v696_v39 = vrot.slane %v10501_v33, 6  ;;  %v10478_v40 = vld [vmem:[%s14122_s18 + $0x11c] sm:$0xc]  ;;  %v10479_v41 = vld [vmem:[%s14122_s18 + $0x120] sm:$0xf] }
  0x1a   : > { %12404 = vmatprep.mubr.msk.bf16.mxu0 %vm789_vm3, %v10536_v31  ;;  %v10544_v42 = vcombine.low %v687_v26, %v690_v36  ;;  %v694_v43 = vsel %vm14125_vm2, %v10529_v34, %v693_v35  ;;  %v695_v44 = vrot.slane %v693_v35, 4  ;;  %v10480_v45 = vld [vmem:[%s14122_s18 + $0x124] sm:$0x3]  ;;  %v10522_v46 = vrot.slane %v10478_v40, 10  ;;  %v10502_v47 = vld [vmem:[%s14122_s18 + $0x1bc] sm:$0xc] }
  0x1b   : > { %v641_v48 = vsel %vm14125_vm2, %v639_v38, %v640_v32  ;;  %v644_v49 = vrot.slane %v10479_v41, 6  ;;  %v647_v50 = vrot.slane %v10480_v45, 6  ;;  %v10503_v51 = vld [vmem:[%s14122_s18 + $0x1c0] sm:$0xf]  ;;  %v10504_v52 = vld [vmem:[%s14122_s18 + $0x1c4] sm:$0x3] }
  0x1c   : > { %12420 = vmatprep.mubr.msk.bf16.mxu1 %vm789_vm3, %v10544_v42  ;;  %v10537_v54 = vcombine.low %v638_v37, %v641_v48  ;;  %v697_v55 = vsel %vm14125_vm2, %v695_v44, %v696_v39  ;;  %v10530_v56 = vrot.slane %v10502_v47, 10  ;;  %v700_v57 = vrot.slane %v10503_v51, 6  ;;  %v10481_v58 = vld [vmem:[%s14122_s18 + $0x130] sm:$0xc]  ;;  %v10482_v59 = vld [vmem:[%s14122_s18 + $0x134] sm:$0xf] }
  0x1d   : > { %v10545_v61 = vcombine.low %v694_v43, %v697_v55  ;;  %v645_v62 = vsel %vm14125_vm2, %v10522_v46, %v644_v49  ;;  %v646_v63 = vrot.slane %v644_v49, 4  ;;  %v703_v0 = vrot.slane %v10504_v52, 6  ;;  %v10483_v1 = vld [vmem:[%s14122_s18 + $0x138] sm:$0x3]  ;;  %v10505_v2 = vld [vmem:[%s14122_s18 + $0x1d0] sm:$0xc] }
  0x1e   : > { %12405 = vmatmul.mubr.msk.bf16.vlgmr.msra.gmra.mrb[0].mxu0 %vm789_vm3, %v10537_v54  ;;  %v701_v3 = vsel %vm14125_vm2, %v10530_v56, %v700_v57  ;;  %v702_v5 = vrot.slane %v700_v57, 4  ;;  %v10523_v6 = vrot.slane %v10481_v58, 10  ;;  %v651_v7 = vrot.slane %v10482_v59, 6  ;;  %v10506_v8 = vld [vmem:[%s14122_s18 + $0x1d4] sm:$0xf] }
  0x1f   : > { %12421 = vmatmul.mubr.msk.bf16.vlgmr.msra.gmra.mrb[0].mxu1 %vm789_vm3, %v10545_v61  ;;  %12743 = vmatpush3.bf16.msra.mxu0 %v5851_v24  ;;  %v648_v9 = vsel %vm14125_vm2, %v646_v63, %v647_v50  ;;  %v654_v10 = vrot.slane %v10483_v1, 6  ;;  %v10507_v11 = vld [vmem:[%s14122_s18 + $0x1d8] sm:$0x3]  ;;  %v10531_v12 = vrot.slane %v10505_v2, 10  ;;  %v707_v13 = vrot.slane %v10506_v8, 6 }
  0x20   : > { %12437 = vmatpush3.bf16.msra.mxu1 %v14136_v15  ;;  %v10538_v14 = vcombine.low %v645_v62, %v648_v9  ;;  %v704_v16 = vsel %vm14125_vm2, %v702_v5, %v703_v0  ;;  %v652_v17 = vsel %vm14125_vm2, %v10523_v6, %v651_v7  ;;  %v653_v18 = vrot.slane %v651_v7, 4  ;;  %v10484_v19 = vld [vmem:[%s14122_s18 + $0x144] sm:$0xc]  ;;  %v10485_v20 = vld [vmem:[%s14122_s18 + $0x148] sm:$0xf]  ;;  %13638 = vmatprep.subr.msk.bf16.mxu0 %vm625_vm0, %v14169_v53 }
  0x21   : > { %v10546_v21 = vcombine.low %v701_v3, %v704_v16  ;;  %v708_v22 = vsel %vm14125_vm2, %v10531_v12, %v707_v13  ;;  %v709_v15 = vrot.slane %v707_v13, 4  ;;  %v710_v23 = vrot.slane %v10507_v11, 6  ;;  %v10486_v24 = vld [vmem:[%s14122_s18 + $0x14c] sm:$0x3]  ;;  %v10508_v25 = vld [vmem:[%s14122_s18 + $0x1e4] sm:$0xc]  ;;  %13629 = vmatprep.subr.msk.bf16.mxu1 %vm625_vm0, %v14179_v60 }
  0x22   : > { %12408 = vmatprep.mubr.msk.bf16.mxu0 %vm789_vm3, %v10538_v14  ;;  %v655_v26 = vsel %vm14125_vm2, %v653_v18, %v654_v10  ;;  %v10524_v27 = vrot.slane %v10484_v19, 10  ;;  %v658_v28 = vrot.slane %v10485_v20, 6  ;;  %v661_v29 = vrot.slane %v10486_v24, 6  ;;  %v10509_v30 = vld [vmem:[%s14122_s18 + $0x1e8] sm:$0xf] }
  0x23   : > { %12424 = vmatprep.mubr.msk.bf16.mxu1 %vm789_vm3, %v10546_v21  ;;  %v10539_v31 = vcombine.low %v652_v17, %v655_v26  ;;  %v711_v32 = vsel %vm14125_vm2, %v709_v15, %v710_v23  ;;  %v10510_v33 = vld [vmem:[%s14122_s18 + $0x1ec] sm:$0x3]  ;;  %v10532_v34 = vrot.slane %v10508_v25, 10  ;;  %v714_v35 = vrot.slane %v10509_v30, 6  ;;  %v10487_v36 = vld [vmem:[%s14122_s18 + $0x158] sm:$0xc] }
  0x24   : > { %v10547_v37 = vcombine.low %v708_v22, %v711_v32  ;;  %v659_v38 = vsel %vm14125_vm2, %v10524_v27, %v658_v28  ;;  %v660_v39 = vrot.slane %v658_v28, 4  ;;  %v717_v40 = vrot.slane %v10510_v33, 6  ;;  %v10488_v41 = vld [vmem:[%s14122_s18 + $0x15c] sm:$0xf]  ;;  %v10489_v42 = vld [vmem:[%s14122_s18 + $0x160] sm:$0x3] }
  0x25   : > { %v715_v43 = vsel %vm14125_vm2, %v10532_v34, %v714_v35  ;;  %v716_v44 = vrot.slane %v714_v35, 4  ;;  %v10525_v45 = vrot.slane %v10487_v36, 10  ;;  %v665_v46 = vrot.slane %v10488_v41, 6  ;;  %v10511_v47 = vld [vmem:[%s14122_s18 + $0x1f8] sm:$0xc] }
  0x26   : > { %12409 = vmatmul.mubr.msk.bf16.gmra.mrb[4].mxu0 %vm789_vm3, %v10539_v31  ;;  %v662_v48 = vsel %vm14125_vm2, %v660_v39, %v661_v29  ;;  %v668_v49 = vrot.slane %v10489_v42, 6  ;;  %v10512_v50 = vld [vmem:[%s14122_s18 + $0x1fc] sm:$0xf]  ;;  %v10513_v51 = vld [vmem:[%s14122_s18 + $0x200] sm:$0x3]  ;;  %v10533_v52 = vrot.slane %v10511_v47, 10 }
  0x27   : > { %12425 = vmatmul.mubr.msk.bf16.gmra.mrb[4].mxu1 %vm789_vm3, %v10547_v37  ;;  %v10540_v54 = vcombine.low %v659_v38, %v662_v48  ;;  %v718_v55 = vsel %vm14125_vm2, %v716_v44, %v717_v40  ;;  %v666_v56 = vsel %vm14125_vm2, %v10525_v45, %v665_v46  ;;  %v667_v57 = vrot.slane %v665_v46, 4  ;;  %v10490_v58 = vld [vmem:[%s14122_s18 + $0x16c] sm:$0xc]  ;;  %v10491_v59 = vld [vmem:[%s14122_s18 + $0x170] sm:$0xf] }
  0x28   : > { %v10548_v61 = vcombine.low %v715_v43, %v718_v55  ;;  %v721_v62 = vrot.slane %v10512_v50, 6  ;;  %v724_v63 = vrot.slane %v10513_v51, 6  ;;  %v10492_v0 = vld [vmem:[%s14122_s18 + $0x174] sm:$0x3]  ;;  %v10526_v1 = vrot.slane %v10490_v58, 10  ;;  %v13915_v58 = vld [vmem:[%s14122_s18] sm:$0xff]  }
  0x29   : > { %12412 = vmatprep.mubr.msk.bf16.mxu0 %vm789_vm3, %v10540_v54  ;;  %v669_v2 = vsel %vm14125_vm2, %v667_v57, %v668_v49  ;;  %v672_v3 = vrot.slane %v10491_v59, 6  ;;  %v675_v5 = vrot.slane %v10492_v0, 6  ;;  %v10514_v6 = vld [vmem:[%s14122_s18 + $0x20c] sm:$0xc]  ;;  %v10515_v7 = vld [vmem:[%s14122_s18 + $0x210] sm:$0xf] }
  0x2a   : > { %12428 = vmatprep.mubr.msk.bf16.mxu1 %vm789_vm3, %v10548_v61  ;;  %v10541_v8 = vcombine.low %v666_v56, %v669_v2  ;;  %v722_v9 = vsel %vm14125_vm2, %v10533_v52, %v721_v62  ;;  %v723_v10 = vrot.slane %v721_v62, 4  ;;  %v10516_v11 = vld [vmem:[%s14122_s18 + $0x214] sm:$0x3]  ;;  %v10534_v12 = vrot.slane %v10514_v6, 10  ;;  %v10493_v13 = vld [vmem:[%s14122_s18 + $0x180] sm:$0xc] }
  0x2b   : > { %v673_v14 = vsel %vm14125_vm2, %v10526_v1, %v672_v3  ;;  %v674_v16 = vrot.slane %v672_v3, 4  ;;  %v728_v17 = vrot.slane %v10515_v7, 6  ;;  %v731_v18 = vrot.slane %v10516_v11, 6  ;;  %v10494_v19 = vld [vmem:[%s14122_s18 + $0x184] sm:$0xf] }
  0x2c   : > { %v725_v20 = vsel %vm14125_vm2, %v723_v10, %v724_v63  ;;  %v10495_v21 = vld [vmem:[%s14122_s18 + $0x188] sm:$0x3]  ;;  %v10527_v22 = vrot.slane %v10493_v13, 10  ;;  %v679_v15 = vrot.slane %v10494_v19, 6  ;;  %v10517_v23 = vld [vmem:[%s14122_s18 + $0x220] sm:$0xc] }
  0x2d   : > { %v10549_v24 = vcombine.low %v722_v9, %v725_v20  ;;  %v676_v25 = vsel %vm14125_vm2, %v674_v16, %v675_v5  ;;  %v729_v26 = vsel %vm14125_vm2, %v10534_v12, %v728_v17  ;;  %v730_v27 = vrot.slane %v728_v17, 4  ;;  %v10518_v28 = vld [vmem:[%s14122_s18 + $0x224] sm:$0xf]  ;;  %v10519_v29 = vld [vmem:[%s14122_s18 + $0x228] sm:$0x3]  ;;  %v13916_v16 = vld [vmem:[%s14122_s18 + $0x14] sm:$0xff]  }
  0x2e   : > { %12413 = vmatmul.mubr.msk.bf16.gmra.mrb[8].mxu0 %vm789_vm3, %v10541_v8  ;;  %v10542_v30 = vcombine.low %v673_v14, %v676_v25  ;;  %v680_v31 = vsel %vm14125_vm2, %v10527_v22, %v679_v15  ;;  %v681_v32 = vrot.slane %v679_v15, 4  ;;  %v682_v33 = vrot.slane %v10495_v21, 6  ;;  %v10568_v34 = vld [vmem:[%s14122_s18 + $0x78] sm:$0x8]  ;;  %v10569_v35 = vld [vmem:[%s14122_s18 + $0x7c] sm:$0xf] }
  0x2f   : > { %12429 = vmatmul.mubr.msk.bf16.gmra.mrb[8].mxu1 %vm789_vm3, %v10549_v24  ;;  %v732_v36 = vsel %vm14125_vm2, %v730_v27, %v731_v18  ;;  %v10535_v37 = vrot.slane %v10517_v23, 10  ;;  %v735_v38 = vrot.slane %v10518_v28, 6  ;;  %v738_v39 = vrot.slane %v10519_v29, 6  ;;  %v10570_v40 = vld [vmem:[%s14122_s18 + $0x80] sm:$0x7]  ;;  %v13917_v27 = vld [vmem:[%s14122_s18 + $0x28] sm:$0xff]  }
  0x30   : > { %12416 = vmatprep.mubr.msk.bf16.mxu0 %vm789_vm3, %v10542_v30  ;;  %v10550_v42 = vcombine.low %v729_v26, %v732_v36  ;;  %v683_v43 = vsel %vm14125_vm2, %v681_v32, %v682_v33  ;;  %v10616_v44 = vrot.slane %v10568_v34, 11  ;;  %v1202_v45 = vrot.slane %v10569_v35, 7  ;;  %v10571_v49 = vld [vmem:[%s14122_s18 + $0x8c] sm:$0x8]  ;;  %v10572_v50 = vld [vmem:[%s14122_s18 + $0x90] sm:$0xf] }
  0x31   : > { %v736_v46 = vsel %vm14125_vm2, %v10535_v37, %v735_v38  ;;  %v737_v47 = vrot.slane %v735_v38, 4  ;;  %v1205_v48 = vrot.slane %v10570_v40, 7  ;;  %v10543_v51 = vcombine.low %v680_v31, %v683_v43  ;;  %v10573_v55 = vld [vmem:[%s14122_s18 + $0x94] sm:$0x7]  ;;  %v10574_v1 = vld [vmem:[%s14122_s18 + $0xa0] sm:$0x8] }
  0x32   : > { %12432 = vmatprep.mubr.msk.bf16.mxu1 %vm789_vm3, %v10550_v42  ;;  %v1203_v52 = vsel %vm14271_vm6, %v10616_v44, %v1202_v45  ;;  %v1204_v54 = vrot.slane %v1202_v45, 4  ;;  %v1209_v56 = vrot.slane %v10572_v50, 7  ;;  %v10617_v59 = vrot.slane %v10571_v49, 11  ;;  %v10575_v2 = vld [vmem:[%s14122_s18 + $0xa4] sm:$0xf]  ;;  %v13919_v49 = vld [vmem:[%s14122_s18 + $0x50] sm:$0xff]  }
  0x33   : > { %v739_v57 = vsel %vm14125_vm2, %v737_v47, %v738_v39  ;;  %v1212_v0 = vrot.slane %v10573_v55, 7  ;;  %v10576_v5 = vld [vmem:[%s14122_s18 + $0xa8] sm:$0x7]  ;;  %v10618_v6 = vrot.slane %v10574_v1, 11  ;;  %v1216_v7 = vrot.slane %v10575_v2, 7 }
  0x34   : > { %v10551_v61 = vcombine.low %v736_v46, %v739_v57  ;;  %v1206_v62 = vsel %vm14271_vm6, %v1204_v54, %v1205_v48  ;;  %v1211_v63 = vrot.slane %v1209_v56, 4  ;;  %v1219_v8 = vrot.slane %v10576_v5, 7  ;;  %v10577_v11 = vld [vmem:[%s14122_s18 + $0xb4] sm:$0x8]  ;;  %v10578_v12 = vld [vmem:[%s14122_s18 + $0xb8] sm:$0xf] }
  0x35   : > { %v10632_v3 = vcombine.low %v1203_v52, %v1206_v62  ;;  %v1912_v9 = vsel %vm625_vm0, %v14179_v60, 0  ;;  %v1218_v10 = vrot.slane %v1216_v7, 4  ;;  %v1210_v13 = vsel %vm14271_vm6, %v10617_v59, %v1209_v56  ;;  %v10579_v19 = vld [vmem:[%s14122_s18 + $0xbc] sm:$0x7]  ;;  %v10580_v20 = vld [vmem:[%s14122_s18 + $0xc8] sm:$0x8] }
  0x36   : > { %12417 = vmatmul.mubr.msk.bf16.gmra.mrb[12].mxu0 %vm789_vm3, %v10543_v51  ;;  %v1213_v14 = vsel %vm14271_vm6, %v1211_v63, %v1212_v0  ;;  %v1223_v17 = vrot.slane %v10578_v12, 7  ;;  %v1217_v18 = vsel %vm14271_vm6, %v10618_v6, %v1216_v7  ;;  %v10581_v21 = vld [vmem:[%s14122_s18 + $0xcc] sm:$0xf]  ;;  %v10582_v22 = vld [vmem:[%s14122_s18 + $0xd0] sm:$0x7]  ;;  %v6353_v23 = vsel %vm625_vm0, %v14169_v53, 0 }
  0x37   : > { %12433 = vmatmul.mubr.msk.bf16.gmra.mrb[12].mxu1 %vm789_vm3, %v10551_v61  ;;  %12744 = vmatprep.mubr.msk.bf16.mxu0 %vm789_vm3, %v13915_v58  ;;  %v1220_v60 = vsel %vm14271_vm6, %v1218_v10, %v1219_v8  ;;  %v10633_v15 = vcombine.low %v1210_v13, %v1213_v14  ;;  %v10619_v24 = vrot.slane %v10577_v11, 11  ;;  %v1230_v25 = vrot.slane %v10581_v21, 7  ;;  %v10584_v33 = vld [vmem:[%s14122_s18 + $0xe0] sm:$0xf]  ;;  %v10587_v34 = vld [vmem:[%s14122_s18 + $0xf4] sm:$0xf] }
  0x38   : > { %12438 = vmatprep.mubr.msk.bf16.mxu1 %vm789_vm3, %v10632_v3  ;;  %v10634_v26 = vcombine.low %v1217_v18, %v1220_v60  ;;  %v1225_v28 = vrot.slane %v1223_v17, 4  ;;  %v1226_v29 = vrot.slane %v10579_v19, 7  ;;  %v10620_v30 = vrot.slane %v10580_v20, 11  ;;  %v14324_v53 = vld [vmem:[%s17273_s4 + $0x4] sm:$0x3]  ;;  %v13918_v46 = vld [vmem:[%s14122_s18 + $0x3c] sm:$0xff]  }
  0x39   : > { %v1232_v31 = vrot.slane %v1230_v25, 4  ;;  %v1233_v32 = vrot.slane %v10582_v22, 7  ;;  %v14329_v35 = vld [vmem:[%s17275_s6 + $0x4] sm:$0x3]  ;;  %v10583_v36 = vld [vmem:[%s14122_s18 + $0xdc] sm:$0x8]  ;;  %v1224_v37 = vsel %vm14271_vm6, %v10619_v24, %v1223_v17 }
  0x3a   : > { %v1227_v38 = vsel %vm14271_vm6, %v1225_v28, %v1226_v29  ;;  %v10585_v39 = vld [vmem:[%s14122_s18 + $0xe4] sm:$0x7]  ;;  %v1237_v40 = vrot.slane %v10584_v33, 7  ;;  %v10586_v42 = vld [vmem:[%s14122_s18 + $0xf0] sm:$0x8]  ;;  %v1231_v43 = vsel %vm14271_vm6, %v10620_v30, %v1230_v25  ;;  %v1244_v45 = vrot.slane %v10587_v34, 7 }
  0x3b   : > { %v1234_v44 = vsel %vm14271_vm6, %v1232_v31, %v1233_v32  ;;  %v10588_v47 = vld [vmem:[%s14122_s18 + $0xf8] sm:$0x7]  ;;  %v10635_v48 = vcombine.low %v1224_v37, %v1227_v38  ;;  %v10621_v50 = vrot.slane %v10583_v36, 11  ;;  %v1240_v54 = vrot.slane %v10585_v39, 7  ;;  %v10590_v58 = vld [vmem:[%s14122_s18 + $0x108] sm:$0xf] }
  0x3c   : > { %v10636_v51 = vcombine.low %v1231_v43, %v1234_v44  ;;  %v1239_v52 = vrot.slane %v1237_v40, 4  ;;  %v10622_v55 = vrot.slane %v10586_v42, 11  ;;  %v1246_v56 = vrot.slane %v1244_v45, 4  ;;  %v10593_v59 = vld [vmem:[%s14122_s18 + $0x11c] sm:$0xf]  ;;  %v13920_v8 = vld [vmem:[%s14122_s18 + $0x64] sm:$0xff]  }
  0x3d   : > { %v1247_v57 = vrot.slane %v10588_v47, 7  ;;  %v10589_v61 = vld [vmem:[%s14122_s18 + $0x104] sm:$0x8]  ;;  %v10591_v62 = vld [vmem:[%s14122_s18 + $0x10c] sm:$0x7]  ;;  %v1238_v0 = vsel %vm14271_vm6, %v10621_v50, %v1237_v40  ;;  %v1251_v2 = vrot.slane %v10590_v58, 7 }
  0x3e   : > { %12745 = vmatmul.mubr.msk.bf16.vlgmr.msra.gmra.mrb[16].mxu0 %vm789_vm3, %v13916_v16  ;;  %v10592_v63 = vld [vmem:[%s14122_s18 + $0x118] sm:$0x8]  ;;  %v1241_v1 = vsel %vm14271_vm6, %v1239_v52, %v1240_v54  ;;  %v1258_v3 = vrot.slane %v10593_v59, 7  ;;  %v1245_v5 = vsel %vm14271_vm6, %v10622_v55, %v1244_v45  ;;  %v10594_v7 = vld [vmem:[%s14122_s18 + $0x120] sm:$0x7]  ;;  %v10623_v11 = vrot.slane %v10589_v61, 11 }
  0x3f   : > { %12439 = vmatmul.mubr.msk.bf16.vlgmr.msra.gmra.mrb[16].mxu1 %vm789_vm3, %v10633_v15  ;;  %12777 = vmatpush3.bf16.msra.mxu0 %v6353_v23  ;;  %v1248_v6 = vsel %vm14271_vm6, %v1246_v56, %v1247_v57  ;;  %v13921_v10 = vld [vmem:[%s14122_s18 + $0x78] sm:$0xff]   ;;  %v1254_v12 = vrot.slane %v10591_v62, 7  ;;  %v10624_v13 = vrot.slane %v10592_v63, 11  ;;  %v1253_v16 = vrot.slane %v1251_v2, 4  ;;  %v10596_v60 = vld [vmem:[%s14122_s18 + $0x130] sm:$0xf] }
  0x40   : > { %12471 = vmatpush3.bf16.msra.mxu1 %v1912_v9  ;;  %12442 = vmatprep.mubr.msk.bf16.mxu1 %vm789_vm3, %v10634_v26  ;;  %v10637_v9 = vcombine.low %v1238_v0, %v1241_v1  ;;  %v10638_v14 = vcombine.low %v1245_v5, %v1248_v6  ;;  %v1260_v17 = vrot.slane %v1258_v3, 4  ;;  %v1261_v18 = vrot.slane %v10594_v7, 7  ;;  %v10599_v19 = vld [vmem:[%s14122_s18 + $0x144] sm:$0xf]  ;;  %v10595_v22 = vld [vmem:[%s14122_s18 + $0x12c] sm:$0x8] }
  0x41   : > { %12748 = vmatprep.mubr.msk.bf16.mxu0 %vm789_vm3, %v13917_v27  ;;  %13630 = vmatprep.subr.msk.bf16.mxu1 %vm625_vm0, %v14324_v53  ;;  %v1252_v20 = vsel %vm14271_vm6, %v10623_v11, %v1251_v2  ;;  %v1255_v21 = vsel %vm14271_vm6, %v1253_v16, %v1254_v12  ;;  %v1265_v15 = vrot.slane %v10596_v60, 7  ;;  %v13922_v23 = vld [vmem:[%s14122_s18 + $0x8c] sm:$0xff]   ;;  %v1259_v24 = vsel %vm14271_vm6, %v10624_v13, %v1258_v3  ;;  %v10597_v26 = vld [vmem:[%s14122_s18 + $0x134] sm:$0x7]  ;;  %v10598_v28 = vld [vmem:[%s14122_s18 + $0x140] sm:$0x8] }
  0x42   : > { %13639 = vmatprep.subr.msk.bf16.mxu0 %vm625_vm0, %v14329_v35  ;;  %v1262_v25 = vsel %vm14271_vm6, %v1260_v17, %v1261_v18  ;;  %v1272_v27 = vrot.slane %v10599_v19, 7  ;;  %v10600_v29 = vld [vmem:[%s14122_s18 + $0x148] sm:$0x7]  ;;  %v10639_v30 = vcombine.low %v1252_v20, %v1255_v21  ;;  %v13923_v31 = vld [vmem:[%s14122_s18 + $0xa0] sm:$0xff]   ;;  %v10625_v32 = vrot.slane %v10595_v22, 11  ;;  %v13927_v17 = vld [vmem:[%s14122_s18 + $0xf0] sm:$0xff]  }
  0x43   : > { %v10640_v33 = vcombine.low %v1259_v24, %v1262_v25  ;;  %v1267_v34 = vrot.slane %v1265_v15, 4  ;;  %v1268_v36 = vrot.slane %v10597_v26, 7  ;;  %v10626_v37 = vrot.slane %v10598_v28, 11  ;;  %v10602_v40 = vld [vmem:[%s14122_s18 + $0x158] sm:$0xf]  ;;  %v13925_v56 = vld [vmem:[%s14122_s18 + $0xc8] sm:$0xff]  }
  0x44   : > { %v1274_v38 = vrot.slane %v1272_v27, 4  ;;  %v1275_v39 = vrot.slane %v10600_v29, 7  ;;  %v10605_v42 = vld [vmem:[%s14122_s18 + $0x16c] sm:$0xf]  ;;  %v1266_v43 = vsel %vm14271_vm6, %v10625_v32, %v1265_v15  ;;  %v1279_v45 = vrot.slane %v10602_v40, 7  ;;  %v13926_v12 = vld [vmem:[%s14122_s18 + $0xdc] sm:$0xff]  }
  0x45   : > { %v1269_v44 = vsel %vm14271_vm6, %v1267_v34, %v1268_v36  ;;  %v1286_v50 = vrot.slane %v10605_v42, 7  ;;  %v10604_v52 = vld [vmem:[%s14122_s18 + $0x168] sm:$0x8]  ;;  %v10606_v54 = vld [vmem:[%s14122_s18 + $0x170] sm:$0x7]  ;;  %v14455_v40 = vsel %vm625_vm0, %v14324_v53, 0 }
  0x46   : > { %12749 = vmatmul.mubr.msk.bf16.gmra.mrb[20].mxu0 %vm789_vm3, %v13918_v46  ;;  %v1273_v46 = vsel %vm14271_vm6, %v10626_v37, %v1272_v27  ;;  %v1276_v47 = vsel %vm14271_vm6, %v1274_v38, %v1275_v39  ;;  %v10641_v55 = vcombine.low %v1266_v43, %v1269_v44  ;;  %v1281_v59 = vrot.slane %v1279_v45, 4  ;;  %v10608_v62 = vld [vmem:[%s14122_s18 + $0x180] sm:$0xf]  ;;  %v10611_v2 = vld [vmem:[%s14122_s18 + $0x194] sm:$0xf]  ;;  %v13928_v44 = vld [vmem:[%s14122_s18 + $0x104] sm:$0xff]  }
  0x47   : > { %12443 = vmatmul.mubr.msk.bf16.gmra.mrb[20].mxu1 %vm789_vm3, %v10635_v48  ;;  %12752 = vmatprep.mubr.msk.bf16.mxu0 %vm789_vm3, %v13919_v49  ;;  %v10601_v48 = vld [vmem:[%s14122_s18 + $0x154] sm:$0x8]  ;;  %v10603_v49 = vld [vmem:[%s14122_s18 + $0x15c] sm:$0x7]  ;;  %v10642_v57 = vcombine.low %v1273_v46, %v1276_v47  ;;  %v10628_v63 = vrot.slane %v10604_v52, 11  ;;  %v1288_v0 = vrot.slane %v1286_v50, 4 }
  0x48   : > { %12446 = vmatprep.mubr.msk.bf16.mxu1 %vm789_vm3, %v10636_v51  ;;  %v13924_v51 = vld [vmem:[%s14122_s18 + $0xb4] sm:$0xff]   ;;  %v10627_v58 = vrot.slane %v10601_v48, 11  ;;  %v1282_v61 = vrot.slane %v10603_v49, 7  ;;  %v1289_v1 = vrot.slane %v10606_v54, 7  ;;  %v1293_v3 = vrot.slane %v10608_v62, 7 }
  0x49   : > { %v10607_v7 = vld [vmem:[%s14122_s18 + $0x17c] sm:$0x8]  ;;  %v1300_v11 = vrot.slane %v10611_v2, 7  ;;  %v10610_v13 = vld [vmem:[%s14122_s18 + $0x190] sm:$0x8]  ;;  %v14468_v62 = vsel %vm625_vm0, %v14329_v35, 0 }
  0x4a   : > { %v1280_v5 = vsel %vm14271_vm6, %v10627_v58, %v1279_v45  ;;  %v1283_v6 = vsel %vm14271_vm6, %v1281_v59, %v1282_v61  ;;  %v10629_v18 = vrot.slane %v10607_v7, 11  ;;  %v1295_v60 = vrot.slane %v1293_v3, 4  ;;  %v10614_v20 = vld [vmem:[%s14122_s18 + $0x1a8] sm:$0xf]  ;;  %v10665_v22 = vld [vmem:[%s14122_s18 + $0x80] sm:$0xf] }
  0x4b   : > { %v10643_v16 = vcombine.low %v1280_v5, %v1283_v6  ;;  %v10630_v15 = vrot.slane %v10610_v13, 11  ;;  %v6047_v25 = vld [vmem:[%s14122_s18 + $0x8] sm:$0xf]  ;;  %v10613_v26 = vld [vmem:[%s14122_s18 + $0x1a4] sm:$0x8]  ;;  %v1307_v27 = vrot.slane %v10614_v20, 7 }
  0x4c   : > { %v1294_v28 = vsel %vm14271_vm6, %v10629_v18, %v1293_v3  ;;  %v1703_v32 = vrot.slane %v10665_v22, 6  ;;  %v6046_v34 = vld [vmem:[%s14122_s18 + $0x4] sm:$0xc]  ;;  %v6144_v36 = vrot.slane %v6047_v25, 6  ;;  %v6048_v39 = vld [vmem:[%s14122_s18 + $0xc] sm:$0x3] }
  0x4d   : > { %v1301_v37 = vsel %vm14271_vm6, %v10630_v15, %v1300_v11  ;;  %v6050_v42 = vld [vmem:[%s14122_s18 + $0x1c] sm:$0xf]  ;;  %v10631_v45 = vrot.slane %v10613_v26, 11  ;;  %v1309_v46 = vrot.slane %v1307_v27, 4  ;;  %v14460_v48 = vld [vmem:[%s14122_s18 + $0x94] sm:$0xf] }
  0x4e   : > { %12753 = vmatmul.mubr.msk.bf16.gmra.mrb[24].mxu0 %vm789_vm3, %v13920_v8  ;;  %v10609_v8 = vld [vmem:[%s14122_s18 + $0x184] sm:$0x7]  ;;  %v13929_v49 = vld [vmem:[%s14122_s18 + $0x118] sm:$0xff]   ;;  %v11472_v53 = vrot.slane %v6046_v34, 10  ;;  %v6151_v58 = vrot.slane %v6050_v42, 6  ;;  %v1710_v59 = vrot.slane %v14460_v48, 6 }
  0x4f   : > { %12447 = vmatmul.mubr.msk.bf16.gmra.mrb[24].mxu1 %vm789_vm3, %v10637_v9  ;;  %12756 = vmatprep.mubr.msk.bf16.mxu0 %vm789_vm3, %v13921_v10  ;;  %v1287_v9 = vsel %vm14271_vm6, %v10628_v63, %v1286_v50  ;;  %v1290_v10 = vsel %vm14271_vm6, %v1288_v0, %v1289_v1  ;;  %v1296_v19 = vrot.slane %v10609_v8, 7  ;;  %v6051_v61 = vld [vmem:[%s14122_s18 + $0x20] sm:$0x3]  ;;  %v10671_v63 = vld [vmem:[%s14122_s18 + $0xa8] sm:$0xf]  ;;  %v1308_v0 = vsel %vm14271_vm6, %v10631_v45, %v1307_v27 }
  0x50   : > { %12450 = vmatprep.mubr.msk.bf16.mxu1 %vm789_vm3, %v10638_v14  ;;  %v10612_v14 = vld [vmem:[%s14122_s18 + $0x198] sm:$0x7]  ;;  %v10644_v21 = vcombine.low %v1287_v9, %v1290_v10  ;;  %v10667_v2 = vld [vmem:[%s14122_s18 + $0x90] sm:$0xc]  ;;  %v6145_v7 = vsel %vm14125_vm2, %v11472_v53, %v6144_v36  ;;  %v10670_v9 = vld [vmem:[%s14122_s18 + $0xa4] sm:$0xc] }
  0x51   : > { %v1303_v24 = vrot.slane %v10612_v14, 7  ;;  %v1297_v29 = vsel %vm14271_vm6, %v1295_v60, %v1296_v19  ;;  %v10669_v3 = vld [vmem:[%s14122_s18 + $0x98] sm:$0x3]  ;;  %v6053_v5 = vld [vmem:[%s14122_s18 + $0x30] sm:$0xf]  ;;  %v6154_v13 = vrot.slane %v6051_v61, 6 }
  0x52   : > { %v10645_v43 = vcombine.low %v1294_v28, %v1297_v29  ;;  %v13930_v10 = vld [vmem:[%s14122_s18 + $0x12c] sm:$0xff]   ;;  %v1717_v14 = vrot.slane %v10671_v63, 6  ;;  %v1712_v18 = vrot.slane %v1710_v59, 4  ;;  %v1713_v60 = vrot.slane %v10669_v3, 6  ;;  %v6054_v22 = vld [vmem:[%s14122_s18 + $0x34] sm:$0x3] }
  0x53   : > { %v10672_v19 = vld [vmem:[%s14122_s18 + $0xac] sm:$0x3]  ;;  %v6158_v20 = vrot.slane %v6053_v5, 6  ;;  %v10674_v15 = vld [vmem:[%s14122_s18 + $0xbc] sm:$0xf]  ;;  %v10714_v26 = vrot.slane %v10670_v9, 10 }
  0x54   : > { %v10673_v28 = vld [vmem:[%s14122_s18 + $0xb8] sm:$0xc]  ;;  %v10677_v34 = vld [vmem:[%s14122_s18 + $0xd0] sm:$0xf]  ;;  %v6055_v45 = vld [vmem:[%s14122_s18 + $0x40] sm:$0xc] }
  0x55   : > { %v6059_v42 = vld [vmem:[%s14122_s18 + $0x58] sm:$0xf]  ;;  %v6058_v53 = vld [vmem:[%s14122_s18 + $0x54] sm:$0xc]  ;;  %v11475_v63 = vrot.slane %v6055_v45, 10 }
  0x56   : > { %12757 = vmatmul.mubr.msk.bf16.gmra.mrb[28].mxu0 %vm789_vm3, %v13922_v23  ;;  %v1302_v23 = vrot.slane %v1300_v11, 4  ;;  %v10679_v9 = vld [vmem:[%s14122_s18 + $0xe0] sm:$0xc]  ;;  %v10685_v45 = vld [vmem:[%s14122_s18 + $0x108] sm:$0xc] }
  0x57   : > { %12451 = vmatmul.mubr.msk.bf16.gmra.mrb[28].mxu1 %vm789_vm3, %v10639_v30  ;;  %12760 = vmatprep.mubr.msk.bf16.mxu0 %vm789_vm3, %v13923_v31  ;;  %v10615_v30 = vld [vmem:[%s14122_s18 + $0x1ac] sm:$0x7]  ;;  %v10664_v31 = vld [vmem:[%s14122_s18 + $0x7c] sm:$0xc] }
  0x58   : > { %12454 = vmatprep.mubr.msk.bf16.mxu1 %vm789_vm3, %v10640_v33  ;;  %v10666_v33 = vld [vmem:[%s14122_s18 + $0x84] sm:$0x3]  ;;  %v1304_v38 = vsel %vm14271_vm6, %v1302_v23, %v1303_v24  ;;  %v1310_v47 = vrot.slane %v10615_v30, 7  ;;  %v10712_v50 = vrot.slane %v10664_v31, 10  ;;  %v1719_v31 = vrot.slane %v1717_v14, 4 }
  0x59   : > { %v1706_v52 = vrot.slane %v10666_v33, 6  ;;  %v10646_v54 = vcombine.low %v1301_v37, %v1304_v38  ;;  %v6056_v23 = vld [vmem:[%s14122_s18 + $0x44] sm:$0xf]  ;;  %v10675_v33 = vld [vmem:[%s14122_s18 + $0xc0] sm:$0x3]  ;;  %v6161_v37 = vrot.slane %v6054_v22, 6 }
  0x5a   : > { %v1311_v1 = vsel %vm14271_vm6, %v1309_v46, %v1310_v47  ;;  %v1704_v35 = vsel %vm14125_vm2, %v10712_v50, %v1703_v32  ;;  %v1724_v38 = vrot.slane %v10674_v15, 6  ;;  %v6057_v46 = vld [vmem:[%s14122_s18 + $0x48] sm:$0x3]  ;;  %v10676_v47 = vld [vmem:[%s14122_s18 + $0xcc] sm:$0xc] }
  0x5b   : > { %v10716_v3 = vrot.slane %v10676_v47, 10  ;;  %v14579_v47 = vld [vmem:[%s14122_s18 + $0x94] sm:$0xf] }
  0x5c   : > { %v1726_v61 = vrot.slane %v1724_v38, 4 }
  0x5e   : > { %12761 = vmatmul.mubr.msk.bf16.gmra.mrb[32].mxu0 %vm789_vm3, %v13924_v51  ;;  %v1705_v51 = vrot.slane %v1703_v32, 4  ;;  %v1720_v32 = vrot.slane %v10672_v19, 6  ;;  %v6061_v19 = vld [vmem:[%s14122_s18 + $0x68] sm:$0xc] }
  0x5f   : > { %12455 = vmatmul.mubr.msk.bf16.gmra.mrb[32].mxu1 %vm789_vm3, %v10641_v55  ;;  %12764 = vmatprep.mubr.msk.bf16.mxu0 %vm789_vm3, %v13925_v56  ;;  %v6146_v55 = vrot.slane %v6144_v36, 4  ;;  %v6147_v56 = vrot.slane %v6048_v39, 6  ;;  %v6160_v36 = vrot.slane %v6158_v20, 4  ;;  %v6165_v39 = vrot.slane %v6056_v23, 6 }
  0x60   : > { %12458 = vmatprep.mubr.msk.bf16.mxu1 %vm789_vm3, %v10642_v57  ;;  %v6049_v57 = vld [vmem:[%s14122_s18 + $0x18] sm:$0xc]  ;;  %v1707_v6 = vsel %vm14125_vm2, %v1705_v51, %v1706_v52  ;;  %v10678_v51 = vld [vmem:[%s14122_s18 + $0xd4] sm:$0x3]  ;;  %v1731_v52 = vrot.slane %v10677_v34, 6 }
  0x61   : > { %v11473_v8 = vrot.slane %v6049_v57, 10  ;;  %v6148_v11 = vsel %vm14125_vm2, %v6146_v55, %v6147_v56  ;;  %v10729_v24 = vcombine.low %v1704_v35, %v1707_v6  ;;  %v10715_v55 = vrot.slane %v10673_v28, 10  ;;  %v6060_v57 = vld [vmem:[%s14122_s18 + $0x5c] sm:$0x3]  ;;  %v6064_v34 = vld [vmem:[%s14122_s18 + $0x7c] sm:$0xc] }
  0x62   : > { %v11489_v25 = vcombine.low %v6145_v7, %v6148_v11  ;;  %v1727_v56 = vrot.slane %v10675_v33, 6  ;;  %v1734_v5 = vrot.slane %v10678_v51, 6  ;;  %v11476_v35 = vrot.slane %v6058_v53, 10  ;;  %v6071_v53 = vld [vmem:[%s14122_s18 + $0xa8] sm:$0xf] }
  0x63   : > { %v6152_v29 = vsel %vm14125_vm2, %v11473_v8, %v6151_v58  ;;  %v1733_v7 = vrot.slane %v1731_v52, 4  ;;  %v6175_v8 = vrot.slane %v6060_v57, 6  ;;  %v1732_v23 = vsel %vm14125_vm2, %v10716_v3, %v1731_v52  ;;  %v10687_v52 = vld [vmem:[%s14122_s18 + $0x110] sm:$0x3]  ;;  %v6067_v57 = vld [vmem:[%s14122_s18 + $0x90] sm:$0xc] }
  0x64   : > { %v1728_v22 = vsel %vm14125_vm2, %v1726_v61, %v1727_v56  ;;  %v11477_v33 = vrot.slane %v6061_v19, 10  ;;  %v11478_v51 = vrot.slane %v6064_v34, 10  ;;  %v14623_v19 = vld [vmem:[%s14122_s18 + $0xbc] sm:$0xf]  ;;  %v14642_v34 = vld [vmem:[%s14122_s18 + $0xd0] sm:$0xf] }
  0x66   : > { %12765 = vmatmul.mubr.msk.bf16.gmra.mrb[36].mxu0 %vm789_vm3, %v13926_v12  ;;  %v6153_v12 = vrot.slane %v6151_v58, 4  ;;  %v6172_v58 = vrot.slane %v6059_v42, 6 }
  0x67   : > { %12459 = vmatmul.mubr.msk.bf16.gmra.mrb[36].mxu1 %vm789_vm3, %v10643_v16  ;;  %12768 = vmatprep.mubr.msk.bf16.mxu0 %vm789_vm3, %v13927_v17  ;;  %v6052_v16 = vld [vmem:[%s14122_s18 + $0x2c] sm:$0xc]  ;;  %v10713_v17 = vrot.slane %v10667_v2, 10  ;;  %v6168_v2 = vrot.slane %v6057_v46, 6 }
  0x68   : > { %12462 = vmatprep.mubr.msk.bf16.mxu1 %vm789_vm3, %v10644_v21  ;;  %v10647_v21 = vcombine.low %v1308_v0, %v1311_v1  ;;  %v11474_v27 = vrot.slane %v6052_v16, 10  ;;  %v6155_v30 = vsel %vm14125_vm2, %v6153_v12, %v6154_v13  ;;  %v6167_v0 = vrot.slane %v6165_v39, 4  ;;  %v14528_v1 = vld [vmem:[%s14122_s18 + $0xe4] sm:$0xf]  ;;  %v10681_v13 = vld [vmem:[%s14122_s18 + $0xe8] sm:$0x3] }
  0x69   : > { %v11490_v48 = vcombine.low %v6152_v29, %v6155_v30  ;;  %v6174_v12 = vrot.slane %v6172_v58, 4  ;;  %v14537_v16 = vld [vmem:[%s14122_s18 + $0xf8] sm:$0xf]  ;;  %v6173_v28 = vsel %vm14125_vm2, %v11476_v35, %v6172_v58  ;;  %v10717_v29 = vrot.slane %v10679_v9, 10  ;;  %v14585_v58 = vld [vmem:[%s14122_s18 + $0x120] sm:$0xf] }
  0x6a   : > { %v6159_v50 = vsel %vm14125_vm2, %v11474_v27, %v6158_v20  ;;  %v6063_v20 = vld [vmem:[%s14122_s18 + $0x70] sm:$0x3]  ;;  %v6169_v15 = vsel %vm14125_vm2, %v6167_v0, %v6168_v2  ;;  %v1735_v27 = vsel %vm14125_vm2, %v1733_v7, %v1734_v5  ;;  %v1745_v30 = vrot.slane %v14537_v16, 6  ;;  %v6069_v0 = vld [vmem:[%s14122_s18 + $0x98] sm:$0x3] }
  0x6b   : > { %v14596_v2 = vld [vmem:[%s14122_s18 + $0x11c] sm:$0xc]  ;;  %v6070_v7 = vld [vmem:[%s14122_s18 + $0xa4] sm:$0xc] }
  0x6e   : > { %12769 = vmatmul.mubr.msk.bf16.gmra.mrb[40].mxu0 %vm789_vm3, %v13928_v44  ;;  %v1714_v44 = vsel %vm14125_vm2, %v1712_v18, %v1713_v60  ;;  %v1725_v18 = vsel %vm14125_vm2, %v10715_v55, %v1724_v38  ;;  %v6166_v60 = vsel %vm14125_vm2, %v11475_v63, %v6165_v39  ;;  %v6182_v38 = vrot.slane %v6063_v20, 6 }
  0x6f   : > { %12463 = vmatmul.mubr.msk.bf16.gmra.mrb[40].mxu1 %vm789_vm3, %v10645_v43  ;;  %12772 = vmatprep.mubr.msk.bf16.mxu0 %vm789_vm3, %v13929_v49  ;;  %v1711_v43 = vsel %vm14125_vm2, %v10713_v17, %v1710_v59  ;;  %v1718_v49 = vsel %vm14125_vm2, %v10714_v26, %v1717_v14  ;;  %v6162_v59 = vsel %vm14125_vm2, %v6160_v36, %v6161_v37  ;;  %v1738_v14 = vrot.slane %v14528_v1, 6  ;;  %v14556_v26 = vld [vmem:[%s14122_s18 + $0xfc] sm:$0x3] }
  0x70   : > { %12466 = vmatprep.mubr.msk.bf16.mxu1 %vm789_vm3, %v10646_v54  ;;  %v1721_v54 = vsel %vm14125_vm2, %v1719_v31, %v1720_v32  ;;  %v10730_v6 = vcombine.low %v1711_v43, %v1714_v44  ;;  %v11491_v17 = vcombine.low %v6159_v50, %v6162_v59  ;;  %v14566_v31 = vld [vmem:[%s14122_s18 + $0x10c] sm:$0xf]  ;;  %v1741_v32 = vrot.slane %v10681_v13, 6 }
  0x71   : > { %v10731_v11 = vcombine.low %v1718_v49, %v1721_v54  ;;  %v1740_v37 = vrot.slane %v1738_v14, 4  ;;  %v1748_v42 = vrot.slane %v14556_v26, 6  ;;  %v11492_v43 = vcombine.low %v6166_v60, %v6169_v15  ;;  %v6072_v13 = vld [vmem:[%s14122_s18 + $0xac] sm:$0x3] }
  0x72   : > { %v1752_v46 = vrot.slane %v14566_v31, 6  ;;  %v1747_v50 = vrot.slane %v1745_v30, 4  ;;  %v10733_v54 = vcombine.low %v1732_v23, %v1735_v27  ;;  %v14589_v59 = vsel %vm14125_vm2, %v10717_v29, %v1738_v14  ;;  %v14616_v14 = vld [vmem:[%s14122_s18 + $0x134] sm:$0xf]  ;;  %v14628_v23 = vld [vmem:[%s14122_s18 + $0x130] sm:$0xc] }
  0x73   : > { %v1742_v61 = vsel %vm14125_vm2, %v1740_v37, %v1741_v32  ;;  %v10719_v63 = vrot.slane %v10685_v45, 10  ;;  %v6193_v1 = vrot.slane %v14579_v47, 6  ;;  %v10720_v60 = vrot.slane %v14596_v2, 10  ;;  %v6073_v32 = vld [vmem:[%s14122_s18 + $0xb8] sm:$0xc] }
  0x74   : > { %v1754_v35 = vrot.slane %v1752_v46, 4  ;;  %v11480_v15 = vrot.slane %v6070_v7, 10  ;;  %v6203_v27 = vrot.slane %v6072_v13, 6  ;;  %v1766_v29 = vrot.slane %v14616_v14, 6  ;;  %v14667_v47 = vld [vmem:[%s14122_s18 + $0x14c] sm:$0x3] }
  0x75   : > { %v14646_v37 = vsel %vm14125_vm2, %v10719_v63, %v1752_v46  ;;  %v14721_v7 = vld [vmem:[%s14122_s18 + $0x160] sm:$0x3] }
  0x76   : > { %12773 = vmatmul.mubr.msk.bf16.gmra.mrb[44].mxu0 %vm789_vm3, %v13930_v10  ;;  %v14532_v10 = vld [vmem:[%s14122_s18 + $0x6c] sm:$0xf] }
  0x77   : > { %12467 = vmatmul.mubr.msk.bf16.gmra.mrb[44].mxu1 %vm789_vm3, %v10647_v21  ;;  %12778 = vmatprep.mubr.msk.bf16.mxu0 %vm789_vm3, %v11489_v25  ;;  %v6065_v21 = vld [vmem:[%s14122_s18 + $0x80] sm:$0xf]  ;;  %v10682_v25 = vld [vmem:[%s14122_s18 + $0xf4] sm:$0xc] }
  0x78   : > { %12472 = vmatprep.mubr.msk.bf16.mxu1 %vm789_vm3, %v10729_v24  ;;  %v6179_v24 = vrot.slane %v14532_v10, 6  ;;  %v6186_v36 = vrot.slane %v6065_v21, 6  ;;  %v10718_v39 = vrot.slane %v10682_v25, 10  ;;  %v1749_v21 = vsel %vm14125_vm2, %v1747_v50, %v1748_v42  ;;  %v14651_v42 = vld [vmem:[%s14122_s18 + $0x144] sm:$0xc] }
  0x7a   : > { %v6181_v44 = vrot.slane %v6179_v24, 4  ;;  %v6188_v55 = vrot.slane %v6186_v36, 4  ;;  %v6180_v3 = vsel %vm14125_vm2, %v11477_v33, %v6179_v24  ;;  %v1746_v9 = vsel %vm14125_vm2, %v10718_v39, %v1745_v30  ;;  %v14631_v24 = vld [vmem:[%s14122_s18 + $0x148] sm:$0xf]  ;;  %v6075_v39 = vld [vmem:[%s14122_s18 + $0xc0] sm:$0x3] }
  0x7b   : > { %v6187_v10 = vsel %vm14125_vm2, %v11478_v51, %v6186_v36  ;;  %v10734_v30 = vcombine.low %v14589_v59, %v1742_v61  ;;  %v6207_v33 = vrot.slane %v14623_v19, 6  ;;  %v10735_v36 = vcombine.low %v1746_v9, %v1749_v21  ;;  %v14725_v9 = vld [vmem:[%s14122_s18 + $0xe0] sm:$0xc]  ;;  %v14751_v19 = vld [vmem:[%s14122_s18 + $0x170] sm:$0xf] }
  0x7c   : > { %v6183_v5 = vsel %vm14125_vm2, %v6181_v44, %v6182_v38  ;;  %v10721_v38 = vrot.slane %v14628_v23, 10  ;;  %v14680_v51 = vrot.slane %v1766_v29, 4  ;;  %v1776_v61 = vrot.slane %v14667_v47, 6  ;;  %v10703_v47 = vld [vmem:[%s14122_s18 + $0x180] sm:$0xc] }
  0x7d   : > { %v11494_v20 = vcombine.low %v6180_v3, %v6183_v5  ;;  %v14712_v5 = vld [vmem:[%s14122_s18 + $0x15c] sm:$0xf] }
  0x7e   : > { %12779 = vmatmul.mubr.msk.bf16.vlgmr.msra.gmra.mrb[16].mxu0 %vm789_vm3, %v11490_v48  ;;  %v10732_v48 = vcombine.low %v1725_v18, %v1728_v22  ;;  %v6196_v18 = vrot.slane %v6069_v0, 6  ;;  %v6195_v22 = vrot.slane %v6193_v1, 4  ;;  %v1780_v14 = vrot.slane %v14712_v5, 6 }
  0x7f   : > { %12473 = vmatmul.mubr.msk.bf16.vlgmr.msra.gmra.mrb[16].mxu1 %vm789_vm3, %v10730_v6  ;;  %12811 = vmatpush3.bf16.msra.mxu0 %v14468_v62  ;;  %v6176_v62 = vsel %vm14125_vm2, %v6174_v12, %v6175_v8  ;;  %v14604_v6 = vld [vmem:[%s14122_s18 + $0x124] sm:$0x3]  ;;  %v6200_v8 = vrot.slane %v6071_v53, 6  ;;  %v1759_v12 = vrot.slane %v14585_v58, 6  ;;  %v6214_v53 = vrot.slane %v14642_v34, 6 }
  0x80   : > { %12505 = vmatpush3.bf16.msra.mxu1 %v14455_v40  ;;  %12476 = vmatprep.mubr.msk.bf16.mxu1 %vm789_vm3, %v10731_v11  ;;  %v6066_v40 = vld [vmem:[%s14122_s18 + $0x84] sm:$0x3]  ;;  %v11493_v49 = vcombine.low %v6173_v28, %v6176_v62  ;;  %v1755_v11 = vrot.slane %v10687_v52, 6  ;;  %v1762_v25 = vrot.slane %v14604_v6, 6  ;;  %v14635_v28 = vld [vmem:[%s14122_s18 + $0x138] sm:$0x3]  ;;  %v6197_v45 = vsel %vm14125_vm2, %v6195_v22, %v6196_v18 }
  0x81   : > { %12782 = vmatprep.mubr.msk.bf16.mxu0 %vm789_vm3, %v11491_v17  ;;  %v6189_v56 = vrot.slane %v6066_v40, 6  ;;  %v11479_v17 = vrot.slane %v6067_v57, 10  ;;  %v6202_v26 = vrot.slane %v6200_v8, 4  ;;  %v1761_v62 = vrot.slane %v1759_v12, 4  ;;  %v14688_v58 = vld [vmem:[%s14122_s18 + $0x158] sm:$0xc] }
  0x82   : > { %v1773_v40 = vrot.slane %v14631_v24, 6  ;;  %v14664_v46 = vsel %vm14125_vm2, %v11480_v15, %v6200_v8  ;;  %v1769_v52 = vrot.slane %v14635_v28, 6  ;;  %v10722_v57 = vrot.slane %v14651_v42, 10  ;;  %v6082_v28 = vld [vmem:[%s14122_s18 + $0xf4] sm:$0xc] }
  0x83   : > { %v6190_v16 = vsel %vm14125_vm2, %v6188_v55, %v6189_v56  ;;  %v6194_v44 = vsel %vm14125_vm2, %v11479_v17, %v6193_v1  ;;  %v14678_v50 = vsel %vm14125_vm2, %v6202_v26, %v6203_v27  ;;  %v6209_v55 = vrot.slane %v6207_v33, 4  ;;  %v14701_v1 = vld [vmem:[%s17273_s4 + $0x6] sm:$0x3] }
  0x84   : > { %v11495_v31 = vcombine.low %v6187_v10, %v6190_v16  ;;  %v6210_v56 = vrot.slane %v6075_v39, 6  ;;  %v14693_v59 = vrot.slane %v1773_v40, 4  ;;  %v14705_v2 = vsel %vm14125_vm2, %v10720_v60, %v1759_v12  ;;  %13631 = vmatprep.subr.msk.bf16.mxu1 %vm625_vm0, %v14701_v1  ;;  %v14732_v12 = vld [vmem:[%s14122_s18 + $0xe4] sm:$0xf]  ;;  %v14738_v16 = vld [vmem:[%s14122_s18 + $0xe8] sm:$0x3] }
  0x85   : > { %v14709_v3 = vsel %vm14125_vm2, %v1761_v62, %v1762_v25  ;;  %v14718_v6 = vrot.slane %v6214_v53, 4  ;;  %v10723_v8 = vrot.slane %v14688_v58, 10  ;;  %v14743_v17 = vld [vmem:[%s17275_s6 + $0x6] sm:$0x3]  ;;  %v14747_v18 = vsel %vm14125_vm2, %v10721_v38, %v1766_v29  ;;  %v14770_v25 = vld [vmem:[%s14122_s18 + $0x16c] sm:$0xc] }
  0x86   : > { %12783 = vmatmul.mubr.msk.bf16.gmra.mrb[20].mxu0 %vm789_vm3, %v11492_v43  ;;  %v14656_v43 = vsel %vm14125_vm2, %v1754_v35, %v1755_v11  ;;  %v11496_v35 = vcombine.low %v6194_v44, %v6197_v45  ;;  %v11497_v11 = vcombine.low %v14664_v46, %v14678_v50  ;;  %v10737_v13 = vcombine.low %v14705_v2, %v14709_v3  ;;  %v6084_v39 = vld [vmem:[%s14122_s18 + $0xfc] sm:$0x3]  ;;  %v10704_v45 = vld [vmem:[%s14122_s18 + $0x184] sm:$0xf]  ;;  %v6087_v2 = vld [vmem:[%s14122_s18 + $0x110] sm:$0x3] }
  0x87   : > { %12477 = vmatmul.mubr.msk.bf16.gmra.mrb[20].mxu1 %vm789_vm3, %v10732_v48  ;;  %12786 = vmatprep.mubr.msk.bf16.mxu0 %vm789_vm3, %v11493_v49  ;;  %v14670_v48 = vld [vmem:[%s14122_s18 + $0xcc] sm:$0xc]  ;;  %v14673_v49 = vld [vmem:[%s14122_s18 + $0xd4] sm:$0x3]  ;;  %v10736_v10 = vcombine.low %v14646_v37, %v14656_v43  ;;  %v1783_v60 = vrot.slane %v14721_v7, 6  ;;  %v14765_v22 = vsel %vm14125_vm2, %v6209_v55, %v6210_v56  ;;  %v11483_v15 = vrot.slane %v14725_v9, 10 }
  0x88   : > { %12480 = vmatprep.mubr.msk.bf16.mxu1 %vm789_vm3, %v10733_v54  ;;  %v11481_v54 = vrot.slane %v6073_v32, 10  ;;  %v11482_v63 = vrot.slane %v14670_v48, 10  ;;  %v6217_v0 = vrot.slane %v14673_v49, 6  ;;  %13640 = vmatprep.subr.msk.bf16.mxu0 %vm625_vm0, %v14743_v17  ;;  %v6221_v23 = vrot.slane %v14732_v12, 6  ;;  %v10705_v48 = vld [vmem:[%s14122_s18 + $0x188] sm:$0x3] }
  0x89   : > { %v14035_v26 = vmov 0.0   ;;  %v1770_v27 = vsel %vm14125_vm2, %v14680_v51, %v1769_v52  ;;  %v1782_v62 = vrot.slane %v1780_v14, 4  ;;  %v6224_v32 = vrot.slane %v14738_v16, 6  ;;  %v6086_v52 = vld [vmem:[%s14122_s18 + $0x10c] sm:$0xf] }
  0x8a   : > { %v14761_v21 = vsel %vm14125_vm2, %v11481_v54, %v6207_v33  ;;  %402 = vst.msk [vmem:[#allocation2 + $0x10] sm:$0xff] %vm399_vm7, %v14035_v26  ;;  %400 = vst.msk [vmem:[#allocation2] sm:$0xff] %vm399_vm7, %v14035_v26  ;;  %v6215_v29 = vsel %vm14125_vm2, %v11482_v63, %v6214_v53  ;;  %v1787_v33 = vrot.slane %v14751_v19, 6  ;;  %v1774_v37 = vsel %vm14125_vm2, %v10722_v57, %v1773_v40  ;;  %v6085_v55 = vld [vmem:[%s14122_s18 + $0x108] sm:$0xc] }
  0x8b   : > { %401 = vst.msk [vmem:[#allocation2 + $0x8] sm:$0xff] %vm399_vm7, %v14035_v26  ;;  %403 = vst.msk [vmem:[#allocation2 + $0x18] sm:$0xff] %vm399_vm7, %v14035_v26  ;;  %v1777_v38 = vsel %vm14125_vm2, %v14693_v59, %v1776_v61  ;;  %v6223_v43 = vrot.slane %v6221_v23, 4  ;;  %v10724_v24 = vrot.slane %v14770_v25, 10  ;;  %v11484_v42 = vrot.slane %v6082_v28, 10 }
  0x8c   : > { %404 = vst.msk [vmem:[#allocation2 + $0x20] sm:$0xff] %vm399_vm7, %v14035_v26  ;;  %405 = vst.msk [vmem:[#allocation2 + $0x28] sm:$0xff] %vm399_vm7, %v14035_v26  ;;  %v10738_v40 = vcombine.low %v14747_v18, %v1770_v27  ;;  %v10739_v49 = vcombine.low %v1774_v37, %v1777_v38  ;;  %v6231_v51 = vrot.slane %v6084_v39, 6  ;;  %v1789_v53 = vrot.slane %v1787_v33, 4  ;;  %v6089_v56 = vld [vmem:[%s14122_s18 + $0x120] sm:$0xf] }
  0x8d   : > { %406 = vst.msk [vmem:[#allocation2 + $0x30] sm:$0xff] %vm399_vm7, %v14035_v26  ;;  %407 = vst.msk [vmem:[#allocation2 + $0x38] sm:$0xff] %vm399_vm7, %v14035_v26  ;;  %v1794_v54 = vrot.slane %v10704_v45, 6  ;;  %v1781_v57 = vsel %vm14125_vm2, %v10723_v8, %v1780_v14  ;;  %v6222_v59 = vsel %vm14125_vm2, %v11483_v15, %v6221_v23  ;;  %v10707_v61 = vld [vmem:[%s14122_s18 + $0x198] sm:$0xf]  ;;  %v1784_v58 = vsel %vm14125_vm2, %v1782_v62, %v1783_v60 }
  0x8e   : > { %12787 = vmatmul.mubr.msk.bf16.gmra.mrb[24].mxu0 %vm789_vm3, %v11494_v20  ;;  %v14754_v20 = vld [vmem:[%s14122_s18 + $0xf8] sm:$0xf]  ;;  %408 = vst.msk [vmem:[#allocation2 + $0x40] sm:$0xff] %vm399_vm7, %v14035_v26  ;;  %409 = vst.msk [vmem:[#allocation2 + $0x48] sm:$0xff] %vm399_vm7, %v14035_v26  ;;  %v6225_v63 = vsel %vm14125_vm2, %v6223_v43, %v6224_v32  ;;  %v6235_v3 = vrot.slane %v6086_v52, 6  ;;  %v6242_v8 = vrot.slane %v6089_v56, 6  ;;  %v1788_v9 = vsel %vm14125_vm2, %v10724_v24, %v1787_v33 }
  0x8f   : > { %12481 = vmatmul.mubr.msk.bf16.gmra.mrb[24].mxu1 %vm789_vm3, %v10734_v30  ;;  %12790 = vmatprep.mubr.msk.bf16.mxu0 %vm789_vm3, %v11495_v31  ;;  %410 = vst.msk [vmem:[#allocation2 + $0x50] sm:$0xff] %vm399_vm7, %v14035_v26  ;;  %411 = vst.msk [vmem:[#allocation2 + $0x58] sm:$0xff] %vm399_vm7, %v14035_v26  ;;  %v6218_v30 = vsel %vm14125_vm2, %v14718_v6, %v6217_v0  ;;  %v10702_v31 = vld [vmem:[%s14122_s18 + $0x174] sm:$0x3]  ;;  %v6228_v34 = vrot.slane %v14754_v20, 6  ;;  %v10725_v0 = vrot.slane %v10703_v47, 10 }
  0x90   : > { %12484 = vmatprep.mubr.msk.bf16.mxu1 %vm789_vm3, %v10735_v36  ;;  %412 = vst.msk [vmem:[#allocation2 + $0x60] sm:$0xff] %vm399_vm7, %v14035_v26  ;;  %413 = vst.msk [vmem:[#allocation2 + $0x68] sm:$0xff] %vm399_vm7, %v14035_v26  ;;  %v11498_v36 = vcombine.low %v14761_v21, %v14765_v22  ;;  %v1790_v44 = vrot.slane %v10702_v31, 6  ;;  %v11499_v46 = vcombine.low %v6215_v29, %v6218_v30  ;;  %v1797_v6 = vrot.slane %v10705_v48, 6  ;;  %v6088_v7 = vld [vmem:[%s14122_s18 + $0x11c] sm:$0xc] }
  0x91   : > { %414 = vst.msk [vmem:[#allocation2 + $0x70] sm:$0xff] %vm399_vm7, %v14035_v26  ;;  %415 = vst.msk [vmem:[#allocation2 + $0x78] sm:$0xff] %vm399_vm7, %v14035_v26  ;;  %v6230_v50 = vrot.slane %v6228_v34, 4  ;;  %v6229_v5 = vsel %vm14125_vm2, %v11484_v42, %v6228_v34  ;;  %v1801_v12 = vrot.slane %v10707_v61, 6  ;;  %v11500_v14 = vcombine.low %v6222_v59, %v6225_v63  ;;  %v10706_v60 = vld [vmem:[%s14122_s18 + $0x194] sm:$0xc] }
  0x92   : > { %416 = vst.msk [vmem:[#allocation2 + $0x80] sm:$0xff] %vm399_vm7, %v14035_v26  ;;  %417 = vst.msk [vmem:[#allocation2 + $0x88] sm:$0xff] %vm399_vm7, %v14035_v26  ;;  %v1796_v16 = vrot.slane %v1794_v54, 4  ;;  %v6238_v18 = vrot.slane %v6087_v2, 6  ;;  %v10708_v19 = vld [vmem:[%s14122_s18 + $0x19c] sm:$0x3]  ;;  %v10740_v20 = vcombine.low %v1781_v57, %v1784_v58  ;;  %v1795_v62 = vsel %vm14125_vm2, %v10725_v0, %v1794_v54 }
  0x93   : > { %418 = vst.msk [vmem:[#allocation2 + $0x90] sm:$0xff] %vm399_vm7, %v14035_v26  ;;  %419 = vst.msk [vmem:[#allocation2 + $0x98] sm:$0xff] %vm399_vm7, %v14035_v26  ;;  %v6237_v22 = vrot.slane %v6235_v3, 4  ;;  %v11486_v15 = vrot.slane %v6088_v7, 10  ;;  %v6244_v25 = vrot.slane %v6242_v8, 4  ;;  %v10726_v30 = vrot.slane %v10706_v60, 10 }
  0x94   : > { %420 = vst.msk [vmem:[#allocation2 + $0xa0] sm:$0xff] %vm399_vm7, %v14035_v26  ;;  %421 = vst.msk [vmem:[#allocation2 + $0xa8] sm:$0xff] %vm399_vm7, %v14035_v26  ;;  %v10710_v27 = vld [vmem:[%s14122_s18 + $0x1ac] sm:$0xf]  ;;  %v6092_v29 = vld [vmem:[%s14122_s18 + $0x134] sm:$0xf]  ;;  %v1798_v34 = vsel %vm14125_vm2, %v1796_v16, %v1797_v6 }
  0x95   : > { %422 = vst.msk [vmem:[#allocation2 + $0xb0] sm:$0xff] %vm399_vm7, %v14035_v26  ;;  %423 = vst.msk [vmem:[#allocation2 + $0xb8] sm:$0xff] %vm399_vm7, %v14035_v26  ;;  %v1803_v31 = vrot.slane %v1801_v12, 4  ;;  %v1804_v28 = vrot.slane %v10708_v19, 6  ;;  %v10762_v33 = vld [vmem:[%s14122_s18 + $0x84] sm:$0xf]  ;;  %v6243_v24 = vsel %vm14125_vm2, %v11486_v15, %v6242_v8  ;;  %v1802_v45 = vsel %vm14125_vm2, %v10726_v30, %v1801_v12 }
  0x96   : > { %12791 = vmatmul.mubr.msk.bf16.gmra.mrb[28].mxu0 %vm789_vm3, %v11496_v35  ;;  %424 = vst.msk [vmem:[#allocation2 + $0xc0] sm:$0xff] %vm399_vm7, %v14035_v26  ;;  %425 = vst.msk [vmem:[#allocation2 + $0xc8] sm:$0xff] %vm399_vm7, %v14035_v26  ;;  %v6232_v35 = vsel %vm14125_vm2, %v6230_v50, %v6231_v51  ;;  %v10709_v37 = vld [vmem:[%s14122_s18 + $0x1a8] sm:$0xc]  ;;  %v1808_v38 = vrot.slane %v10710_v27, 6  ;;  %v6249_v43 = vrot.slane %v6092_v29, 6 }
  0x97   : > { %426 = vst.msk [vmem:[#allocation2 + $0xd0] sm:$0xff] %vm399_vm7, %v14035_v26  ;;  %427 = vst.msk [vmem:[#allocation2 + $0xd8] sm:$0xff] %vm399_vm7, %v14035_v26  ;;  %12485 = vmatmul.mubr.msk.bf16.gmra.mrb[28].mxu1 %vm789_vm3, %v10736_v10  ;;  %12794 = vmatprep.mubr.msk.bf16.mxu0 %vm789_vm3, %v11497_v11  ;;  %v1791_v10 = vsel %vm14125_vm2, %v1789_v53, %v1790_v44  ;;  %v11485_v11 = vrot.slane %v6085_v55, 10  ;;  %v11501_v21 = vcombine.low %v6229_v5, %v6232_v35  ;;  %v6091_v39 = vld [vmem:[%s14122_s18 + $0x130] sm:$0xc] }
  0x98   : > { %428 = vst.msk [vmem:[#allocation2 + $0xe0] sm:$0xff] %vm399_vm7, %v14035_v26  ;;  %429 = vst.msk [vmem:[#allocation2 + $0xe8] sm:$0xff] %vm399_vm7, %v14035_v26  ;;  %12488 = vmatprep.mubr.msk.bf16.mxu1 %vm789_vm3, %v10737_v13  ;;  %v6090_v13 = vld [vmem:[%s14122_s18 + $0x124] sm:$0x3]  ;;  %v10741_v23 = vcombine.low %v1788_v9, %v1791_v10  ;;  %v6093_v42 = vld [vmem:[%s14122_s18 + $0x138] sm:$0x3] }
  0x99   : > { %430 = vst.msk [vmem:[#allocation2 + $0xf0] sm:$0xff] %vm399_vm7, %v14035_v26  ;;  %431 = vst.msk [vmem:[#allocation2 + $0xf8] sm:$0xff] %vm399_vm7, %v14035_v26  ;;  %v6236_v32 = vsel %vm14125_vm2, %v11485_v11, %v6235_v3  ;;  %v10761_v47 = vld [vmem:[%s14122_s18 + $0x80] sm:$0xe]  ;;  %v2208_v48 = vrot.slane %v10762_v33, 5  ;;  %v10727_v51 = vrot.slane %v10709_v37, 10 }
  0x9a   : > { %432 = vst.msk [vmem:[#allocation3] sm:$0xff] %vm399_vm7, %v14035_v26  ;;  %433 = vst.msk [vmem:[#allocation3 + $0x8] sm:$0xff] %vm399_vm7, %v14035_v26  ;;  %v11487_v52 = vrot.slane %v6091_v39, 10  ;;  %v10763_v53 = vld [vmem:[%s14122_s18 + $0x88] sm:$0x1]  ;;  %v6251_v55 = vrot.slane %v6249_v43, 4 }
  0x9b   : > { %434 = vst.msk [vmem:[#allocation3 + $0x10] sm:$0xff] %vm399_vm7, %v14035_v26  ;;  %435 = vst.msk [vmem:[#allocation3 + $0x18] sm:$0xff] %vm399_vm7, %v14035_v26  ;;  %v6252_v56 = vrot.slane %v6093_v42, 6  ;;  %v1810_v59 = vrot.slane %v1808_v38, 4  ;;  %v10809_v58 = vrot.slane %v10761_v47, 9  ;;  %v2210_v0 = vrot.slane %v2208_v48, 4 }
  0x9c   : > { %436 = vst.msk [vmem:[#allocation3 + $0x20] sm:$0xff] %vm399_vm7, %v14035_v26  ;;  %437 = vst.msk [vmem:[#allocation3 + $0x28] sm:$0xff] %vm399_vm7, %v14035_v26  ;;  %v10765_v63 = vld [vmem:[%s14122_s18 + $0x98] sm:$0xf]  ;;  %v2211_v2 = vrot.slane %v10763_v53, 5  ;;  %v6250_v35 = vsel %vm14125_vm2, %v11487_v52, %v6249_v43  ;;  %v1809_v7 = vsel %vm14125_vm2, %v10727_v51, %v1808_v38  ;;  %v13932_v39 = vld [vmem:[%s14122_s18 + $0x20] sm:$0xff]  }
  0x9d   : > { %438 = vst.msk [vmem:[#allocation3 + $0x30] sm:$0xff] %vm399_vm7, %v14035_v26  ;;  %439 = vst.msk [vmem:[#allocation3 + $0x38] sm:$0xff] %vm399_vm7, %v14035_v26  ;;  %v10768_v5 = vld [vmem:[%s14122_s18 + $0xac] sm:$0xf]  ;;  %v6253_v6 = vsel %vm14125_vm2, %v6251_v55, %v6252_v56  ;;  %v10764_v9 = vld [vmem:[%s14122_s18 + $0x94] sm:$0xe]  ;;  %v2209_v11 = vsel %vm15091_vm10, %v10809_v58, %v2208_v48 }
  0x9e   : > { %440 = vst.msk [vmem:[#allocation3 + $0x40] sm:$0xff] %vm399_vm7, %v14035_v26  ;;  %441 = vst.msk [vmem:[#allocation3 + $0x48] sm:$0xff] %vm399_vm7, %v14035_v26  ;;  %12795 = vmatmul.mubr.msk.bf16.gmra.mrb[32].mxu0 %vm789_vm3, %v11498_v36  ;;  %v6239_v36 = vsel %vm14125_vm2, %v6237_v22, %v6238_v18  ;;  %v2215_v10 = vrot.slane %v10765_v63, 5  ;;  %v2212_v12 = vsel %vm15091_vm10, %v2210_v0, %v2211_v2  ;;  %v2222_v16 = vrot.slane %v10768_v5, 5  ;;  %v10769_v60 = vld [vmem:[%s14122_s18 + $0xb0] sm:$0x1] }
  0x9f   : > { %442 = vst.msk [vmem:[#allocation3 + $0x50] sm:$0xff] %vm399_vm7, %v14035_v26  ;;  %443 = vst.msk [vmem:[#allocation3 + $0x58] sm:$0xff] %vm399_vm7, %v14035_v26  ;;  %12489 = vmatmul.mubr.msk.bf16.gmra.mrb[32].mxu1 %vm789_vm3, %v10738_v40  ;;  %12798 = vmatprep.mubr.msk.bf16.mxu0 %vm789_vm3, %v11499_v46  ;;  %v1805_v40 = vsel %vm14125_vm2, %v1803_v31, %v1804_v28  ;;  %v10711_v46 = vld [vmem:[%s14122_s18 + $0x1b0] sm:$0x3]  ;;  %v11502_v50 = vcombine.low %v6236_v32, %v6239_v36  ;;  %v2225_v27 = vrot.slane %v10769_v60, 5  ;;  %v13934_v2 = vld [vmem:[%s14122_s18 + $0x48] sm:$0xff]  }
  0xa0   : > { %444 = vst.msk [vmem:[#allocation3 + $0x60] sm:$0xff] %vm399_vm7, %v14035_v26  ;;  %445 = vst.msk [vmem:[#allocation3 + $0x68] sm:$0xff] %vm399_vm7, %v14035_v26  ;;  %12492 = vmatprep.mubr.msk.bf16.mxu1 %vm789_vm3, %v10739_v49  ;;  %v10742_v49 = vcombine.low %v1795_v62, %v1798_v34  ;;  %v10743_v57 = vcombine.low %v1802_v45, %v1805_v40  ;;  %v1811_v61 = vrot.slane %v10711_v46, 6  ;;  %v2217_v15 = vrot.slane %v2215_v10, 4  ;;  %v10771_v29 = vld [vmem:[%s14122_s18 + $0xc0] sm:$0xf] }
  0xa1   : > { %446 = vst.msk [vmem:[#allocation3 + $0x70] sm:$0xff] %vm399_vm7, %v14035_v26  ;;  %447 = vst.msk [vmem:[#allocation3 + $0x78] sm:$0xff] %vm399_vm7, %v14035_v26  ;;  %v11504_v18 = vcombine.low %v6250_v35, %v6253_v6  ;;  %v10826_v22 = vcombine.low %v2209_v11, %v2212_v12  ;;  %v10774_v30 = vld [vmem:[%s14122_s18 + $0xd4] sm:$0xf]  ;;  %v10770_v62 = vld [vmem:[%s14122_s18 + $0xbc] sm:$0xe] }
  0xa2   : > { %448 = vst.msk [vmem:[#allocation3 + $0x80] sm:$0xff] %vm399_vm7, %v14035_v26  ;;  %449 = vst.msk [vmem:[#allocation3 + $0x88] sm:$0xff] %vm399_vm7, %v14035_v26  ;;  %v1812_v8 = vsel %vm14125_vm2, %v1810_v59, %v1811_v61  ;;  %v2229_v32 = vrot.slane %v10771_v29, 5  ;;  %v10772_v36 = vld [vmem:[%s14122_s18 + $0xc4] sm:$0x1]  ;;  %v2236_v38 = vrot.slane %v10774_v30, 5 }
  0xa3   : > { %450 = vst.msk [vmem:[#allocation3 + $0x90] sm:$0xff] %vm399_vm7, %v14035_v26  ;;  %451 = vst.msk [vmem:[#allocation3 + $0x98] sm:$0xff] %vm399_vm7, %v14035_v26  ;;  %v10744_v19 = vcombine.low %v1809_v7, %v1812_v8  ;;  %v10773_v37 = vld [vmem:[%s14122_s18 + $0xd0] sm:$0xe]  ;;  %v10775_v43 = vld [vmem:[%s14122_s18 + $0xd8] sm:$0x1] }
  0xa4   : > { %452 = vst.msk [vmem:[#allocation3 + $0xa0] sm:$0xff] %vm399_vm7, %v14035_v26  ;;  %453 = vst.msk [vmem:[#allocation3 + $0xa8] sm:$0xff] %vm399_vm7, %v14035_v26  ;;  %v7069_v42 = vsel %vm625_vm0, %v14743_v17, 0  ;;  %v10812_v45 = vrot.slane %v10770_v62, 9  ;;  %v13933_v46 = vld [vmem:[%s14122_s18 + $0x34] sm:$0xff]   ;;  %v2231_v47 = vrot.slane %v2229_v32, 4 }
  0xa5   : > { %454 = vst.msk [vmem:[#allocation3 + $0xb0] sm:$0xff] %vm399_vm7, %v14035_v26  ;;  %455 = vst.msk [vmem:[#allocation3 + $0xb8] sm:$0xff] %vm399_vm7, %v14035_v26  ;;  %v2232_v48 = vrot.slane %v10772_v36, 5  ;;  %v2239_v51 = vrot.slane %v10775_v43, 5  ;;  %v10777_v52 = vld [vmem:[%s14122_s18 + $0xe8] sm:$0xf] }
  0xa6   : > { %456 = vst.msk [vmem:[#allocation3 + $0xc0] sm:$0xff] %vm399_vm7, %v14035_v26  ;;  %457 = vst.msk [vmem:[#allocation3 + $0xc8] sm:$0xff] %vm399_vm7, %v14035_v26  ;;  %12799 = vmatmul.mubr.msk.bf16.gmra.mrb[36].mxu0 %vm789_vm3, %v11500_v14  ;;  %v10767_v14 = vld [vmem:[%s14122_s18 + $0xa8] sm:$0xe]  ;;  %v10780_v53 = vld [vmem:[%s14122_s18 + $0xfc] sm:$0xf] }
  0xa7   : > { %458 = vst.msk [vmem:[#allocation3 + $0xd0] sm:$0xff] %vm399_vm7, %v14035_v26  ;;  %459 = vst.msk [vmem:[#allocation3 + $0xd8] sm:$0xff] %vm399_vm7, %v14035_v26  ;;  %12493 = vmatmul.mubr.msk.bf16.gmra.mrb[36].mxu1 %vm789_vm3, %v10740_v20  ;;  %12802 = vmatprep.mubr.msk.bf16.mxu0 %vm789_vm3, %v11501_v21  ;;  %v13931_v20 = vld [vmem:[%s14122_s18 + $0xc] sm:$0xff]   ;;  %v10810_v21 = vrot.slane %v10764_v9, 9  ;;  %v15152_v17 = vld [vmem:[%s17275_s6 + $0x8] sm:$0x3]  ;;  %v2233_v55 = vsel %vm15091_vm10, %v2231_v47, %v2232_v48 }
  0xa8   : > { %460 = vst.msk [vmem:[#allocation3 + $0xe0] sm:$0xff] %vm399_vm7, %v14035_v26  ;;  %461 = vst.msk [vmem:[#allocation3 + $0xe8] sm:$0xff] %vm399_vm7, %v14035_v26  ;;  %12496 = vmatprep.mubr.msk.bf16.mxu1 %vm789_vm3, %v10741_v23  ;;  %v10776_v56 = vld [vmem:[%s14122_s18 + $0xe4] sm:$0xe]  ;;  %v10778_v58 = vld [vmem:[%s14122_s18 + $0xec] sm:$0x1] }
  0xa9   : > { %462 = vst.msk [vmem:[#allocation3 + $0xf0] sm:$0xff] %vm399_vm7, %v14035_v26  ;;  %463 = vst.msk [vmem:[#allocation3 + $0xf8] sm:$0xff] %vm399_vm7, %v14035_v26  ;;  %v2216_v31 = vsel %vm15091_vm10, %v10810_v21, %v2215_v10  ;;  %v10779_v63 = vld [vmem:[%s14122_s18 + $0xf8] sm:$0xe]  ;;  %v2250_v0 = vrot.slane %v10780_v53, 5  ;;  %v13935_v6 = vld [vmem:[%s14122_s18 + $0x5c] sm:$0xff]  }
  0xaa   : > { %464 = vst.msk [vmem:[#allocation4] sm:$0xff] %vm399_vm7, %v14035_v26  ;;  %465 = vst.msk [vmem:[#allocation4 + $0x8] sm:$0xff] %vm399_vm7, %v14035_v26  ;;  %v10781_v5 = vld [vmem:[%s14122_s18 + $0x100] sm:$0x1]  ;;  %v10814_v7 = vrot.slane %v10776_v56, 9  ;;  %v2246_v10 = vrot.slane %v10778_v58, 5 }
  0xab   : > { %466 = vst.msk [vmem:[#allocation4 + $0x10] sm:$0xff] %vm399_vm7, %v14035_v26  ;;  %467 = vst.msk [vmem:[#allocation4 + $0x18] sm:$0xff] %vm399_vm7, %v14035_v26  ;;  %v10815_v11 = vrot.slane %v10779_v63, 9  ;;  %v2252_v12 = vrot.slane %v2250_v0, 4  ;;  %v13936_v21 = vld [vmem:[%s14122_s18 + $0x70] sm:$0xff]   ;;  %v13937_v30 = vld [vmem:[%s14122_s18 + $0x84] sm:$0xff]  }
  0xac   : > { %468 = vst.msk [vmem:[#allocation4 + $0x20] sm:$0xff] %vm399_vm7, %v14035_v26  ;;  %469 = vst.msk [vmem:[#allocation4 + $0x28] sm:$0xff] %vm399_vm7, %v14035_v26  ;;  %v13938_v48 = vld [vmem:[%s14122_s18 + $0x98] sm:$0xff]   ;;  %v10798_v58 = vld [vmem:[%s14122_s18 + $0x174] sm:$0xf] }
  0xad   : > { %470 = vst.msk [vmem:[#allocation4 + $0x30] sm:$0xff] %vm399_vm7, %v14035_v26  ;;  %471 = vst.msk [vmem:[#allocation4 + $0x38] sm:$0xff] %vm399_vm7, %v14035_v26  ;;  %v10794_v63 = vld [vmem:[%s14122_s18 + $0x15c] sm:$0xe] }
  0xae   : > { %472 = vst.msk [vmem:[#allocation4 + $0x40] sm:$0xff] %vm399_vm7, %v14035_v26  ;;  %473 = vst.msk [vmem:[#allocation4 + $0x48] sm:$0xff] %vm399_vm7, %v14035_v26  ;;  %12803 = vmatmul.mubr.msk.bf16.gmra.mrb[40].mxu0 %vm789_vm3, %v11502_v50  ;;  %v2238_v50 = vrot.slane %v2236_v38, 4 }
  0xaf   : > { %474 = vst.msk [vmem:[#allocation4 + $0x50] sm:$0xff] %vm399_vm7, %v14035_v26  ;;  %475 = vst.msk [vmem:[#allocation4 + $0x58] sm:$0xff] %vm399_vm7, %v14035_v26  ;;  %12497 = vmatmul.mubr.msk.bf16.gmra.mrb[40].mxu1 %vm789_vm3, %v10742_v49  ;;  %v10813_v49 = vrot.slane %v10773_v37, 9  ;;  %v10789_v37 = vld [vmem:[%s14122_s18 + $0x138] sm:$0xf] }
  0xb0   : > { %476 = vst.msk [vmem:[#allocation4 + $0x60] sm:$0xff] %vm399_vm7, %v14035_v26  ;;  %477 = vst.msk [vmem:[#allocation4 + $0x68] sm:$0xff] %vm399_vm7, %v14035_v26  ;;  %12500 = vmatprep.mubr.msk.bf16.mxu1 %vm789_vm3, %v10743_v57  ;;  %v2243_v57 = vrot.slane %v10777_v52, 5  ;;  %v2240_v61 = vsel %vm15091_vm10, %v2238_v50, %v2239_v51  ;;  %v13939_v51 = vld [vmem:[%s14122_s18 + $0xac] sm:$0xff]  }
  0xb1   : > { %478 = vst.msk [vmem:[#allocation4 + $0x70] sm:$0xff] %vm399_vm7, %v14035_v26  ;;  %479 = vst.msk [vmem:[#allocation4 + $0x78] sm:$0xff] %vm399_vm7, %v14035_v26  ;;  %v2237_v59 = vsel %vm15091_vm10, %v10813_v49, %v2236_v38  ;;  %v10792_v38 = vld [vmem:[%s14122_s18 + $0x14c] sm:$0xf]  ;;  %v10793_v49 = vld [vmem:[%s14122_s18 + $0x150] sm:$0x1] }
  0xb2   : > { %480 = vst.msk [vmem:[#allocation4 + $0x80] sm:$0xff] %vm399_vm7, %v14035_v26  ;;  %481 = vst.msk [vmem:[#allocation4 + $0x88] sm:$0xff] %vm399_vm7, %v14035_v26  ;;  %v10830_v8 = vcombine.low %v2237_v59, %v2240_v61  ;;  %v2245_v9 = vrot.slane %v2243_v57, 4  ;;  %v2278_v47 = vrot.slane %v10792_v38, 5  ;;  %v2281_v61 = vrot.slane %v10793_v49, 5 }
  0xb3   : > { %482 = vst.msk [vmem:[#allocation4 + $0x90] sm:$0xff] %vm399_vm7, %v14035_v26  ;;  %483 = vst.msk [vmem:[#allocation4 + $0x98] sm:$0xff] %vm399_vm7, %v14035_v26  ;;  %v10807_v38 = vld [vmem:[%s14122_s18 + $0x1b0] sm:$0xf] }
  0xb4   : > { %484 = vst.msk [vmem:[#allocation4 + $0xa0] sm:$0xff] %vm399_vm7, %v14035_v26  ;;  %485 = vst.msk [vmem:[#allocation4 + $0xa8] sm:$0xff] %vm399_vm7, %v14035_v26  ;;  %v2247_v60 = vsel %vm15091_vm10, %v2245_v9, %v2246_v10  ;;  %v2280_v59 = vrot.slane %v2278_v47, 4  ;;  %v2292_v9 = vrot.slane %v10798_v58, 5  ;;  %v13940_v10 = vld [vmem:[%s14122_s18 + $0xc0] sm:$0xff]  }
  0xb5   : > { %486 = vst.msk [vmem:[#allocation4 + $0xb0] sm:$0xff] %vm399_vm7, %v14035_v26  ;;  %487 = vst.msk [vmem:[#allocation4 + $0xb8] sm:$0xff] %vm399_vm7, %v14035_v26 }
  0xb6   : > { %488 = vst.msk [vmem:[#allocation4 + $0xc0] sm:$0xff] %vm399_vm7, %v14035_v26  ;;  %489 = vst.msk [vmem:[#allocation4 + $0xc8] sm:$0xff] %vm399_vm7, %v14035_v26 }
  0xb7   : > { %490 = vst.msk [vmem:[#allocation4 + $0xd0] sm:$0xff] %vm399_vm7, %v14035_v26  ;;  %491 = vst.msk [vmem:[#allocation4 + $0xd8] sm:$0xff] %vm399_vm7, %v14035_v26  ;;  %12501 = vmatmul.mubr.msk.bf16.gmra.mrb[44].mxu1 %vm789_vm3, %v10744_v19  ;;  %v10782_v19 = vld [vmem:[%s14122_s18 + $0x10c] sm:$0xe] }
  0xb8   : > { %492 = vst.msk [vmem:[#allocation4 + $0xe0] sm:$0xff] %vm399_vm7, %v14035_v26  ;;  %493 = vst.msk [vmem:[#allocation4 + $0xe8] sm:$0xff] %vm399_vm7, %v14035_v26  ;;  %12506 = vmatprep.mubr.msk.bf16.mxu1 %vm789_vm3, %v10826_v22  ;;  %v2251_v22 = vsel %vm15091_vm10, %v10815_v11, %v2250_v0  ;;  %v10796_v0 = vld [vmem:[%s14122_s18 + $0x164] sm:$0x1]  ;;  %v10799_v11 = vld [vmem:[%s14122_s18 + $0x178] sm:$0x1] }
  0xb9   : > { %494 = vst.msk [vmem:[#allocation4 + $0xf0] sm:$0xff] %vm399_vm7, %v14035_v26  ;;  %495 = vst.msk [vmem:[#allocation4 + $0xf8] sm:$0xff] %vm399_vm7, %v14035_v26  ;;  %v6245_v26 = vrot.slane %v6090_v13, 6  ;;  %v10766_v13 = vld [vmem:[%s14122_s18 + $0x9c] sm:$0x1] }
  0xba   : > { %v2218_v23 = vrot.slane %v10766_v13, 5  ;;  %v2253_v13 = vrot.slane %v10781_v5, 5 }
  0xbb   : > { %v6246_v44 = vsel %vm14125_vm2, %v6244_v25, %v6245_v26  ;;  %v10811_v25 = vrot.slane %v10767_v14, 9  ;;  %v2224_v26 = vrot.slane %v2222_v16, 4  ;;  %v10783_v14 = vld [vmem:[%s14122_s18 + $0x110] sm:$0xf] }
  0xbc   : > { %v11503_v54 = vcombine.low %v6243_v24, %v6246_v44  ;;  %v2219_v28 = vsel %vm15091_vm10, %v2217_v15, %v2218_v23  ;;  %v2919_v44 = vsel %vm625_vm0, %v14701_v1, 0  ;;  %v15146_v1 = vld [vmem:[%s17273_s4 + $0x8] sm:$0x3]  ;;  %v2254_v15 = vsel %vm15091_vm10, %v2252_v12, %v2253_v13  ;;  %v10784_v23 = vld [vmem:[%s14122_s18 + $0x114] sm:$0x1] }
  0xbd   : > { %v2223_v33 = vsel %vm15091_vm10, %v10811_v25, %v2222_v16  ;;  %v2226_v34 = vsel %vm15091_vm10, %v2224_v26, %v2225_v27  ;;  %v10827_v24 = vcombine.low %v2216_v31, %v2219_v28  ;;  %v10786_v16 = vld [vmem:[%s14122_s18 + $0x124] sm:$0xf]  ;;  %v10785_v26 = vld [vmem:[%s14122_s18 + $0x120] sm:$0xe]  ;;  %v10787_v27 = vld [vmem:[%s14122_s18 + $0x128] sm:$0x1]  ;;  %v10832_v28 = vcombine.low %v2251_v22, %v2254_v15 }
  0xbe   : > { %12806 = vmatprep.mubr.msk.bf16.mxu0 %vm789_vm3, %v11503_v54  ;;  %v10828_v40 = vcombine.low %v2223_v33, %v2226_v34  ;;  %v2230_v54 = vsel %vm15091_vm10, %v10812_v45, %v2229_v32  ;;  %v2264_v25 = vrot.slane %v10786_v16, 5  ;;  %v10816_v31 = vrot.slane %v10782_v19, 9  ;;  %v13941_v13 = vld [vmem:[%s14122_s18 + $0xd4] sm:$0xff]  }
  0xbf   : > { %12807 = vmatmul.mubr.msk.bf16.gmra.mrb[44].mxu0 %vm789_vm3, %v11504_v18  ;;  %12507 = vmatmul.mubr.msk.bf16.vlgmr.msra.gmra.mrb[16].mxu1 %vm789_vm3, %v10827_v24  ;;  %v10829_v35 = vcombine.low %v2230_v54, %v2233_v55  ;;  %v2244_v18 = vsel %vm15091_vm10, %v10814_v7, %v2243_v57  ;;  %v2260_v32 = vrot.slane %v10784_v23, 5  ;;  %v10817_v33 = vrot.slane %v10785_v26, 9  ;;  %v10795_v57 = vld [vmem:[%s14122_s18 + $0x160] sm:$0xf]  ;;  %v10802_v23 = vld [vmem:[%s14122_s18 + $0x18c] sm:$0x1] }
  0xc0   : > { %12812 = vmatprep.mubr.msk.bf16.mxu0 %vm789_vm3, %v13931_v20  ;;  %12539 = vmatpush3.bf16.msra.mxu1 %v2919_v44  ;;  %v2257_v20 = vrot.slane %v10783_v14, 5  ;;  %v10831_v29 = vcombine.low %v2244_v18, %v2247_v60  ;;  %v2266_v34 = vrot.slane %v2264_v25, 4  ;;  %v2267_v36 = vrot.slane %v10787_v27, 5  ;;  %v10790_v44 = vld [vmem:[%s14122_s18 + $0x13c] sm:$0x1] }
  0xc1   : > { %12510 = vmatprep.mubr.msk.bf16.mxu1 %vm789_vm3, %v10828_v40  ;;  %13632 = vmatprep.subr.msk.bf16.mxu1 %vm625_vm0, %v15146_v1  ;;  %v2265_v45 = vsel %vm15091_vm10, %v10817_v33, %v2264_v25  ;;  %v2274_v55 = vrot.slane %v10790_v44, 5  ;;  %v2282_v7 = vsel %vm15091_vm10, %v2280_v59, %v2281_v61  ;;  %v10820_v14 = vrot.slane %v10794_v63, 9  ;;  %v10804_v25 = vld [vmem:[%s14122_s18 + $0x19c] sm:$0xf] }
  0xc2   : > { %v2259_v62 = vrot.slane %v2257_v20, 4  ;;  %v2258_v43 = vsel %vm15091_vm10, %v10816_v31, %v2257_v20  ;;  %v2268_v40 = vsel %vm15091_vm10, %v2266_v34, %v2267_v36  ;;  %v2288_v16 = vrot.slane %v10796_v0, 5  ;;  %v10800_v20 = vld [vmem:[%s14122_s18 + $0x184] sm:$0xe]  ;;  %v13943_v33 = vld [vmem:[%s14122_s18 + $0xfc] sm:$0xff]  }
  0xc3   : > { %v10834_v53 = vcombine.low %v2265_v45, %v2268_v40  ;;  %v2294_v22 = vrot.slane %v2292_v9, 4  ;;  %v2295_v15 = vrot.slane %v10799_v11, 5  ;;  %v10822_v31 = vrot.slane %v10800_v20, 9  ;;  %v10805_v36 = vld [vmem:[%s14122_s18 + $0x1a0] sm:$0x1] }
  0xc4   : > { %v2261_v24 = vsel %vm15091_vm10, %v2259_v62, %v2260_v32  ;;  %v2302_v34 = vrot.slane %v10802_v23, 5  ;;  %v10808_v45 = vld [vmem:[%s14122_s18 + $0x1b4] sm:$0x1]  ;;  %v10864_v11 = vld [vmem:[%s14122_s18 + $0x118] sm:$0x8] }
  0xc5   : > { %v10833_v50 = vcombine.low %v2258_v43, %v2261_v24  ;;  %v2296_v32 = vsel %vm15091_vm10, %v2294_v22, %v2295_v15  ;;  %v10866_v23 = vld [vmem:[%s14122_s18 + $0x120] sm:$0x7] }
  0xc7   : > { %12813 = vmatmul.mubr.msk.bf16.vlgmr.msra.gmra.mrb[16].mxu0 %vm789_vm3, %v13932_v39  ;;  %12511 = vmatmul.mubr.msk.bf16.gmra.mrb[20].mxu1 %vm789_vm3, %v10829_v35  ;;  %v10788_v39 = vld [vmem:[%s14122_s18 + $0x134] sm:$0xe]  ;;  %v2285_v35 = vrot.slane %v10795_v57, 5  ;;  %v2316_v57 = vrot.slane %v10808_v45, 5  ;;  %v10872_v45 = vld [vmem:[%s14122_s18 + $0x148] sm:$0x7] }
  0xc8   : > { %12845 = vmatpush3.bf16.msra.mxu0 %v7069_v42  ;;  %12816 = vmatprep.mubr.msk.bf16.mxu0 %vm789_vm3, %v13933_v46  ;;  %v2271_v42 = vrot.slane %v10789_v37, 5  ;;  %v10791_v46 = vld [vmem:[%s14122_s18 + $0x148] sm:$0xe]  ;;  %v10818_v52 = vrot.slane %v10788_v39, 9  ;;  %v2306_v37 = vrot.slane %v10804_v25, 5 }
  0xc9   : > { %13641 = vmatprep.subr.msk.bf16.mxu0 %vm625_vm0, %v15152_v17  ;;  %12514 = vmatprep.mubr.msk.bf16.mxu1 %vm789_vm3, %v10830_v8  ;;  %v10819_v56 = vrot.slane %v10791_v46, 9  ;;  %v10797_v8 = vld [vmem:[%s14122_s18 + $0x170] sm:$0xe]  ;;  %v2287_v60 = vrot.slane %v2285_v35, 4  ;;  %v2286_v27 = vsel %vm15091_vm10, %v10820_v14, %v2285_v35  ;;  %v10859_v39 = vld [vmem:[%s14122_s18 + $0xf4] sm:$0xf] }
  0xca   : > { %v2273_v54 = vrot.slane %v2271_v42, 4  ;;  %v10821_v19 = vrot.slane %v10797_v8, 9  ;;  %v2309_v46 = vrot.slane %v10805_v36, 5  ;;  %v2308_v49 = vrot.slane %v2306_v37, 4  ;;  %v10865_v35 = vld [vmem:[%s14122_s18 + $0x11c] sm:$0xf] }
  0xcb   : > { %v15303_v25 = vld [vmem:[%s14122_s18 + $0x12c] sm:$0x8] }
  0xcc   : > { %v2275_v5 = vsel %vm15091_vm10, %v2273_v54, %v2274_v55  ;;  %v2293_v62 = vsel %vm15091_vm10, %v10821_v19, %v2292_v9  ;;  %v2310_v63 = vsel %vm15091_vm10, %v2308_v49, %v2309_v46  ;;  %v13945_v9 = vld [vmem:[%s14122_s18 + $0x124] sm:$0xff]   ;;  %v498_v19 = vld [vmem:[#allocation2 + $0x10] sm:$0xff] }
  0xcd   : > { %v10838_v40 = vcombine.low %v2293_v62, %v2296_v32  ;;  %v512_v62 = vld [vmem:[#allocation2 + $0x80] sm:$0xff]  ;;  %v499_v32 = vld [vmem:[#allocation2 + $0x18] sm:$0xff]  ;;  %v15337_v49 = vld [vmem:[%s14122_s18 + $0x154] sm:$0x8] }
  0xcf   : > { %12817 = vmatmul.mubr.msk.bf16.gmra.mrb[20].mxu0 %vm789_vm3, %v13934_v2  ;;  %12515 = vmatmul.mubr.msk.bf16.gmra.mrb[24].mxu1 %vm789_vm3, %v10831_v29  ;;  %v2272_v2 = vsel %vm15091_vm10, %v10818_v52, %v2271_v42  ;;  %v2289_v29 = vsel %vm15091_vm10, %v2287_v60, %v2288_v16  ;;  %v10806_v42 = vld [vmem:[%s14122_s18 + $0x1ac] sm:$0xe]  ;;  %v10862_v52 = vld [vmem:[%s14122_s18 + $0x108] sm:$0xf]  ;;  %v15291_v60 = vld [vmem:[%s14122_s18 + $0x144] sm:$0xf] }
  0xd0   : > { %12820 = vmatprep.mubr.msk.bf16.mxu0 %vm789_vm3, %v13935_v6  ;;  %12518 = vmatprep.mubr.msk.bf16.mxu1 %vm789_vm3, %v10832_v28  ;;  %v2279_v6 = vsel %vm15091_vm10, %v10819_v56, %v2278_v47  ;;  %v10835_v12 = vcombine.low %v2272_v2, %v2275_v5  ;;  %v10803_v28 = vld [vmem:[%s14122_s18 + $0x198] sm:$0xe]  ;;  %v10837_v43 = vcombine.low %v2286_v27, %v2289_v29  ;;  %v2313_v47 = vrot.slane %v10807_v38, 5  ;;  %v10861_v2 = vld [vmem:[%s14122_s18 + $0x104] sm:$0x8]  ;;  %v497_v38 = vld [vmem:[#allocation2 + $0x8] sm:$0xff] }
  0xd1   : > { %v10836_v18 = vcombine.low %v2279_v6, %v2282_v7  ;;  %v10823_v44 = vrot.slane %v10803_v28, 9  ;;  %v10824_v55 = vrot.slane %v10806_v42, 9  ;;  %v2717_v5 = vrot.slane %v10862_v52, 7  ;;  %v13944_v6 = vld [vmem:[%s14122_s18 + $0x110] sm:$0xff]   ;;  %v10863_v7 = vld [vmem:[%s14122_s18 + $0x10c] sm:$0x7] }
  0xd2   : > { %v2315_v56 = vrot.slane %v2313_v47, 4  ;;  %v10907_v16 = vrot.slane %v10861_v2, 11  ;;  %v2720_v15 = vrot.slane %v10863_v7, 7  ;;  %v496_v27 = vld [vmem:[#allocation2] sm:$0xff]  ;;  %v10908_v29 = vrot.slane %v10864_v11, 11  ;;  %v13947_v2 = vld [vmem:[%s14122_s18 + $0xf0] sm:$0xff]  }
  0xd3   : > { %v2307_v58 = vsel %vm15091_vm10, %v10823_v44, %v2306_v37  ;;  %v2719_v22 = vrot.slane %v2717_v5, 4  ;;  %v15311_v28 = vld [vmem:[%s14122_s18 + $0x158] sm:$0xf]  ;;  %v2738_v36 = vrot.slane %v15291_v60, 7  ;;  %v2727_v42 = vrot.slane %v10866_v23, 7 }
  0xd4   : > { %v15288_v14 = vsel %vm15091_vm10, %v2315_v56, %v2316_v57  ;;  %v515_v37 = vld [vmem:[#allocation2 + $0x98] sm:$0xff]  ;;  %v10911_v11 = vrot.slane %v15337_v49, 11  ;;  %v15369_v23 = vld [vmem:[%s14122_s18 + $0x16c] sm:$0xf]  ;;  %v15426_v49 = vld [vmem:[%s17272_s3] ss:$0 sm:$0xff] }
  0xd5   : > { %v15332_v46 = vsel %vm14271_vm6, %v2719_v22, %v2720_v15  ;;  %v10875_v57 = vld [vmem:[%s14122_s18 + $0x15c] sm:$0x7] }
  0xd6   : > { %v2748_v60 = vrot.slane %v10875_v57, 7  ;;  %v517_v57 = vld [vmem:[#allocation2 + $0xa8] sm:$0xff] }
  0xd7   : > { %12821 = vmatmul.mubr.msk.bf16.gmra.mrb[24].mxu0 %vm789_vm3, %v13936_v21  ;;  %12519 = vmatmul.mubr.msk.bf16.gmra.mrb[28].mxu1 %vm789_vm3, %v10833_v50  ;;  %v10801_v21 = vld [vmem:[%s14122_s18 + $0x188] sm:$0xf]  ;;  %v10860_v50 = vld [vmem:[%s14122_s18 + $0xf8] sm:$0x7] }
  0xd8   : > { %12824 = vmatprep.mubr.msk.bf16.mxu0 %vm789_vm3, %v13937_v30  ;;  %12522 = vmatprep.mubr.msk.bf16.mxu1 %vm789_vm3, %v10834_v53  ;;  %v2299_v26 = vrot.slane %v10801_v21, 5  ;;  %v13942_v30 = vld [vmem:[%s14122_s18 + $0xe8] sm:$0xff]   ;;  %v2713_v61 = vrot.slane %v10860_v50, 7  ;;  %v2745_v50 = vrot.slane %v15311_v28, 7 }
  0xda   : > { %v2301_v24 = vrot.slane %v2299_v26, 4  ;;  %v2300_v53 = vsel %vm15091_vm10, %v10822_v31, %v2299_v26  ;;  %v514_v26 = vld [vmem:[#allocation2 + $0x90] sm:$0xff] }
  0xdc   : > { %v2303_v54 = vsel %vm15091_vm10, %v2301_v24, %v2302_v34  ;;  %v15318_v34 = vld [vmem:[%s14122_s18 + $0x140] sm:$0x8]  ;;  %v15327_v24 = vsel %vm14271_vm6, %v10907_v16, %v2717_v5  ;;  %v2740_v5 = vrot.slane %v2738_v36, 4  ;;  %v502_v16 = vld [vmem:[#allocation2 + $0x30] sm:$0xff] }
  0xdd   : > { %v10839_v8 = vcombine.low %v2300_v53, %v2303_v54  ;;  %v10910_v56 = vrot.slane %v15318_v34, 11 }
  0xdf   : > { %12825 = vmatmul.mubr.msk.bf16.gmra.mrb[28].mxu0 %vm789_vm3, %v13938_v48  ;;  %12523 = vmatmul.mubr.msk.bf16.gmra.mrb[32].mxu1 %vm789_vm3, %v10835_v12  ;;  %v10858_v48 = vld [vmem:[%s14122_s18 + $0xf0] sm:$0x8] }
  0xe0   : > { %12828 = vmatprep.mubr.msk.bf16.mxu0 %vm789_vm3, %v13939_v51  ;;  %12526 = vmatprep.mubr.msk.bf16.mxu1 %vm789_vm3, %v10836_v18  ;;  %v2710_v51 = vrot.slane %v10859_v39, 7  ;;  %v10906_v59 = vrot.slane %v10858_v48, 11  ;;  %v15284_v12 = vld [vmem:[%s14122_s18 + $0x130] sm:$0xf]  ;;  %v2724_v18 = vrot.slane %v10865_v35, 7  ;;  %v13946_v39 = vld [vmem:[%s14122_s18 + $0x138] sm:$0xff]  }
  0xe1   : > { %v2731_v31 = vrot.slane %v15284_v12, 7  ;;  %v2741_v35 = vrot.slane %v10872_v45, 7  ;;  %v2752_v45 = vrot.slane %v15369_v23, 7  ;;  %v522_v23 = vld [vmem:[#allocation2 + $0xd0] sm:$0xff] }
  0xe2   : > { %v2712_v0 = vrot.slane %v2710_v51, 4  ;;  %v15295_v20 = vsel %vm14271_vm6, %v10906_v59, %v2710_v51  ;;  %v2726_v44 = vrot.slane %v2724_v18, 4  ;;  %v15342_v54 = vsel %vm14271_vm6, %v10908_v29, %v2724_v18  ;;  %v15384_v29 = vld [vmem:[%s14122_s18 + $0x168] sm:$0x8] }
  0xe3   : > { %v2747_v18 = vrot.slane %v2745_v50, 4 }
  0xe4   : > { %v15299_v21 = vsel %vm14271_vm6, %v2712_v0, %v2713_v61  ;;  %v513_v0 = vld [vmem:[#allocation2 + $0x88] sm:$0xff] }
  0xe7   : > { %12829 = vmatmul.mubr.msk.bf16.gmra.mrb[32].mxu0 %vm789_vm3, %v13940_v10  ;;  %12527 = vmatmul.mubr.msk.bf16.gmra.mrb[36].mxu1 %vm789_vm3, %v10837_v43  ;;  %v15280_v10 = vsel %vm15091_vm10, %v10824_v55, %v2313_v47  ;;  %v10923_v43 = vcombine.low %v15295_v20, %v15299_v21  ;;  %v10909_v47 = vrot.slane %v15303_v25, 11  ;;  %v2733_v55 = vrot.slane %v2731_v31, 4  ;;  %v518_v20 = vld [vmem:[#allocation2 + $0xb0] sm:$0xff]  ;;  %v500_v21 = vld [vmem:[#allocation2 + $0x20] sm:$0xff] }
  0xe8   : > { %12832 = vmatprep.mubr.msk.bf16.mxu0 %vm789_vm3, %v13941_v13  ;;  %12530 = vmatprep.mubr.msk.bf16.mxu1 %vm789_vm3, %v10838_v40  ;;  %v10840_v13 = vcombine.low %v2307_v58, %v2310_v63  ;;  %v516_v25 = vld [vmem:[#allocation2 + $0xa0] sm:$0xff] }
  0xe9   : > { %v15362_v22 = vsel %vm14271_vm6, %v10909_v47, %v2731_v31  ;;  %v10924_v31 = vcombine.low %v15327_v24, %v15332_v46  ;;  %v15479_v24 = vld [vmem:[%s17275_s6 + $0xa] sm:$0x3]  ;;  %v507_v46 = vld [vmem:[#allocation2 + $0x58] sm:$0xff] }
  0xef   : > { %12833 = vmatmul.mubr.msk.bf16.gmra.mrb[36].mxu0 %vm789_vm3, %v13942_v30  ;;  %v15307_v30 = vld [vmem:[%s14122_s18 + $0x134] sm:$0x7]  ;;  %12531 = vmatmul.mubr.msk.bf16.gmra.mrb[40].mxu1 %vm789_vm3, %v10839_v8 }
  0xf0   : > { %12836 = vmatprep.mubr.msk.bf16.mxu0 %vm789_vm3, %v13943_v33  ;;  %v10841_v33 = vcombine.low %v15280_v10, %v15288_v14  ;;  %12534 = vmatprep.mubr.msk.bf16.mxu1 %vm789_vm3, %v10840_v13  ;;  %v2734_v48 = vrot.slane %v15307_v30, 7  ;;  %v15350_v10 = vsel %vm14271_vm6, %v2726_v44, %v2727_v42  ;;  %v15387_v30 = vld [vmem:[%s14122_s18 + $0x170] sm:$0x7]  ;;  %v501_v44 = vld [vmem:[#allocation2 + $0x28] sm:$0xff]  ;;  %v15420_v42 = vsel %vm14271_vm6, %v2747_v18, %v2748_v60 }
  0xf1   : > { %v12406_v40 = vpop.f32.mrb[0].mxu0  ;;  %v10925_v34 = vcombine.low %v15342_v54, %v15350_v10 }
  0xf2   : > { %v1005_v51 = vadd.f32 %v12406_v40, %v498_v19  ;;  %v12422_v52 = vpop.f32.mrb[0].mxu1  ;;  %v876_v53 = vpop.f32.mrb[1].mxu0  ;;  %v15366_v15 = vsel %vm14271_vm6, %v2733_v55, %v2734_v48 }
  0xf3   : > { %v1021_v59 = vadd.f32 %v12422_v52, %v514_v26  ;;  %v1003_v61 = vadd.f32 %v876_v53, %v496_v27  ;;  %v940_v58 = vpop.f32.mrb[1].mxu1  ;;  %v12407_v63 = vpop.f32.mrb[2].mxu0  ;;  %v15377_v26 = vsel %vm14271_vm6, %v10910_v56, %v2738_v36  ;;  %v15381_v27 = vsel %vm14271_vm6, %v2740_v5, %v2741_v35  ;;  %v15405_v36 = vld [vmem:[%s14122_s18 + $0x17c] sm:$0x8] }
  0xf4   : > { %1038 = vst.msk [vmem:[#allocation2 + $0x10] sm:$0xff] %vm399_vm7, %v1005_v51  ;;  %v1006_v7 = vadd.f32 %v12407_v63, %v499_v32  ;;  %v12423_v8 = vpop.f32.mrb[2].mxu1  ;;  %v13948_v32 = vld [vmem:[%s14122_s18 + $0x104] sm:$0xff]   ;;  %v10927_v28 = vcombine.low %v15377_v26, %v15381_v27  ;;  %v2755_v51 = vrot.slane %v15387_v30, 7 }
  0xf5   : > { %1054 = vst.msk [vmem:[#allocation2 + $0x90] sm:$0xff] %vm399_vm7, %v1021_v59  ;;  %1036 = vst.msk [vmem:[#allocation2] sm:$0xff] %vm399_vm7, %v1003_v61  ;;  %v1022_v12 = vadd.f32 %v12423_v8, %v515_v37  ;;  %v943_v13 = vpop.f32.mrb[3].mxu1  ;;  %v15408_v37 = vld [vmem:[%s14122_s18 + $0x180] sm:$0xf]  ;;  %v13949_v61 = vld [vmem:[%s14122_s18 + $0x118] sm:$0xff]  }
  0xf6   : > { %1039 = vst.msk [vmem:[#allocation2 + $0x18] sm:$0xff] %vm399_vm7, %v1006_v7  ;;  %v1020_v19 = vadd.f32 %v943_v13, %v513_v0  ;;  %v2759_v63 = vrot.slane %v15408_v37, 7  ;;  %v13953_v26 = vld [vmem:[%s14122_s18 + $0x168] sm:$0xff]  }
  0xf7   : > { %12837 = vmatmul.mubr.msk.bf16.gmra.mrb[40].mxu0 %vm789_vm3, %v13944_v6  ;;  %v1019_v6 = vadd.f32 %v940_v58, %v512_v62  ;;  %1055 = vst.msk [vmem:[#allocation2 + $0x98] sm:$0xff] %vm399_vm7, %v1022_v12  ;;  %12535 = vmatmul.mubr.msk.bf16.gmra.mrb[44].mxu1 %vm789_vm3, %v10841_v33  ;;  %v15395_v62 = vsel %vm625_vm0, %v15146_v1, 0  ;;  %v15400_v33 = vsel %vm625_vm0, %v15152_v17, 0  ;;  %v10926_v1 = vcombine.low %v15362_v22, %v15366_v15  ;;  %v526_v22 = vld [vmem:[#allocation2 + $0xf0] sm:$0xff]  ;;  %v508_v15 = vld [vmem:[#allocation2 + $0x60] sm:$0xff] }
  0xf8   : > { %12840 = vmatprep.mubr.msk.bf16.mxu0 %vm789_vm3, %v13945_v9  ;;  %v879_v9 = vpop.f32.mrb[3].mxu0  ;;  %1053 = vst.msk [vmem:[#allocation2 + $0x88] sm:$0xff] %vm399_vm7, %v1020_v19  ;;  %12540 = vmatprep.mubr.msk.bf16.mxu1 %vm789_vm3, %v10923_v43  ;;  %v519_v43 = vld [vmem:[#allocation2 + $0xb8] sm:$0xff]  ;;  %v15416_v17 = vsel %vm14271_vm6, %v10911_v11, %v2745_v50  ;;  %v10912_v50 = vrot.slane %v15384_v29, 11  ;;  %v10913_v58 = vrot.slane %v15405_v36, 11  ;;  %v2754_v19 = vrot.slane %v2752_v45, 4 }
  0xf9   : > { %v1004_v14 = vadd.f32 %v879_v9, %v497_v38  ;;  %1052 = vst.msk [vmem:[#allocation2 + $0x80] sm:$0xff] %vm399_vm7, %v1019_v6  ;;  %v12410_v38 = vpop.f32.mrb[4].mxu0  ;;  %v10928_v9 = vcombine.low %v15416_v17, %v15420_v42  ;;  %v15440_v11 = vld [vmem:[%s14122_s18 + $0x184] sm:$0x7] }
  0xfa   : > { %v1009_v40 = vadd.f32 %v12410_v38, %v502_v16  ;;  %v12426_v47 = vpop.f32.mrb[4].mxu1  ;;  %v892_v48 = vpop.f32.mrb[5].mxu0  ;;  %v506_v16 = vld [vmem:[#allocation2 + $0x50] sm:$0xff]  ;;  %v15503_v10 = vsel %vm14271_vm6, %v2754_v19, %v2755_v51 }
  0xfb   : > { %1037 = vst.msk [vmem:[#allocation2 + $0x8] sm:$0xff] %vm399_vm7, %v1004_v14  ;;  %v1025_v52 = vadd.f32 %v12426_v47, %v518_v20  ;;  %v1007_v53 = vadd.f32 %v892_v48, %v500_v21  ;;  %v956_v55 = vpop.f32.mrb[5].mxu1  ;;  %v12411_v56 = vpop.f32.mrb[6].mxu0  ;;  %v9387_v59 = vld [vmem:[#allocation2 + $0x10] sm:$0xff]  ;;  %v15473_v48 = vsel %vm14271_vm6, %v10912_v50, %v2752_v45 }
  0xfc   : > { %1042 = vst.msk [vmem:[#allocation2 + $0x30] sm:$0xff] %vm399_vm7, %v1009_v40  ;;  %v1023_v0 = vadd.f32 %v956_v55, %v516_v25  ;;  %v12427_v5 = vpop.f32.mrb[6].mxu1  ;;  %v895_v35 = vpop.f32.mrb[7].mxu0  ;;  %v9403_v6 = vld [vmem:[#allocation2 + $0x90] sm:$0xff]  ;;  %v9426_v7 = vadd.f32 %v15426_v49, %v9387_v59  ;;  %v9385_v8 = vld [vmem:[#allocation2] sm:$0xff]  ;;  %v15492_v55 = vrot.slane %v2759_v63, 4 }
  0xfd   : > { %1058 = vst.msk [vmem:[#allocation2 + $0xb0] sm:$0xff] %vm399_vm7, %v1025_v52  ;;  %1040 = vst.msk [vmem:[#allocation2 + $0x20] sm:$0xff] %vm399_vm7, %v1007_v53  ;;  %v1026_v12 = vadd.f32 %v12427_v5, %v519_v43  ;;  %v959_v13 = vpop.f32.mrb[7].mxu1  ;;  %v1008_v14 = vadd.f32 %v895_v35, %v501_v44  ;;  %v9442_v18 = vadd.f32 %v15426_v49, %v9403_v6  ;;  %v9388_v60 = vld [vmem:[#allocation2 + $0x18] sm:$0xff]  ;;  %v15446_v20 = vld [vmem:[%s14122_s18 + $0x190] sm:$0x8] }
  0xfe   : > { %1056 = vst.msk [vmem:[#allocation2 + $0xa0] sm:$0xff] %vm399_vm7, %v1023_v0  ;;  %v1024_v21 = vadd.f32 %v959_v13, %v517_v57  ;;  %v504_v25 = vld [vmem:[#allocation2 + $0x40] sm:$0xff]  ;;  %v9404_v29 = vld [vmem:[#allocation2 + $0x98] sm:$0xff]  ;;  %v9427_v36 = vadd.f32 %v15426_v49, %v9388_v60  ;;  %v9458_v37 = vmax.f32 %v9426_v7, 0.0  ;;  %v15458_v43 = vld [vmem:[%s17273_s4 + $0xa] sm:$0x3]  ;;  %v15490_v53 = vsel %vm14271_vm6, %v10913_v58, %v2759_v63 }
  0xff   : > { %12841 = vmatmul.mubr.msk.bf16.gmra.mrb[44].mxu0 %vm789_vm3, %v13946_v39  ;;  %v503_v39 = vld [vmem:[#allocation2 + $0x38] sm:$0xff]  ;;  %1059 = vst.msk [vmem:[#allocation2 + $0xb8] sm:$0xff] %vm399_vm7, %v1026_v12  ;;  %1041 = vst.msk [vmem:[#allocation2 + $0x28] sm:$0xff] %vm399_vm7, %v1008_v14  ;;  %12541 = vmatmul.mubr.msk.bf16.vlgmr.msra.gmra.mrb[16].mxu1 %vm789_vm3, %v10924_v31  ;;  %v9443_v44 = vadd.f32 %v15426_v49, %v9404_v29  ;;  %v9402_v47 = vld [vmem:[#allocation2 + $0x88] sm:$0xff]  ;;  %v2762_v52 = vrot.slane %v15440_v11, 7  ;;  %v9474_v57 = vmax.f32 %v9442_v18, 0.0 }
 0x100   : > { %12846 = vmatprep.mubr.msk.bf16.mxu0 %vm789_vm3, %v13947_v2  ;;  %v1010_v2 = vadd.f32 %v12411_v56, %v503_v39  ;;  %v15453_v39 = vadd.f32 %v15426_v49, %v9385_v8  ;;  %1057 = vst.msk [vmem:[#allocation2 + $0xa8] sm:$0xff] %vm399_vm7, %v1024_v21  ;;  %12573 = vmatpush3.bf16.msra.mxu1 %v15395_v62  ;;  %v523_v31 = vld [vmem:[#allocation2 + $0xd8] sm:$0xff]  ;;  %v13950_v45 = vld [vmem:[%s14122_s18 + $0x12c] sm:$0xff]   ;;  %v9401_v50 = vld [vmem:[#allocation2 + $0x80] sm:$0xff]  ;;  %v10914_v56 = vrot.slane %v15446_v20, 11 }
 0x101   : > { %12544 = vmatprep.mubr.msk.bf16.mxu1 %vm789_vm3, %v10925_v34  ;;  %v12414_v62 = vpop.f32.mrb[8].mxu0  ;;  %v9475_v59 = vmax.f32 %v9443_v44, 0.0  ;;  %v505_v0 = vld [vmem:[#allocation2 + $0x48] sm:$0xff]  ;;  %v15497_v54 = vadd.f32 %v15426_v49, %v9402_v47  ;;  %v15506_v34 = vld [vmem:[%s14122_s18 + $0x194] sm:$0xf]  ;;  %13633 = vmatprep.subr.msk.bf16.mxu1 %vm625_vm0, %v15458_v43  ;;  %v15518_v14 = vadd.f32 %v15426_v49, %v9401_v50  ;;  %v13951_v18 = vld [vmem:[%s14122_s18 + $0x140] sm:$0xff]   ;;  %v15567_v27 = vsel %vm14271_vm6, %v15492_v55, %v2762_v52 }
 0x102   : > { %1043 = vst.msk [vmem:[#allocation2 + $0x38] sm:$0xff] %vm399_vm7, %v1010_v2  ;;  %v9386_v38 = vld [vmem:[#allocation2 + $0x8] sm:$0xff]  ;;  %v1013_v58 = vadd.f32 %v12414_v62, %v506_v16  ;;  %v12430_v63 = vpop.f32.mrb[8].mxu1  ;;  %v908_v2 = vpop.f32.mrb[9].mxu0  ;;  %v15513_v6 = vld [vmem:[%s14122_s18 + $0x198] sm:$0x7]  ;;  %v10930_v17 = vcombine.low %v15490_v53, %v15567_v27 }
 0x103   : > { %v15469_v40 = vadd.f32 %v15426_v49, %v9386_v38  ;;  %v1029_v30 = vadd.f32 %v12430_v63, %v522_v23  ;;  %v1011_v51 = vadd.f32 %v908_v2, %v504_v25  ;;  %v972_v7 = vpop.f32.mrb[9].mxu1  ;;  %v12415_v8 = vpop.f32.mrb[10].mxu0  ;;  %v13680_v12 = vpack.i.bf16 %v9475_v59, %v9474_v57  ;;  %v521_v13 = vld [vmem:[#allocation2 + $0xc8] sm:$0xff]  ;;  %v9391_v16 = vld [vmem:[#allocation2 + $0x30] sm:$0xff] }
 0x104   : > { %1046 = vst.msk [vmem:[#allocation2 + $0x50] sm:$0xff] %vm399_vm7, %v1013_v58  ;;  %v1014_v19 = vadd.f32 %v12415_v8, %v507_v46  ;;  %v12431_v21 = vpop.f32.mrb[10].mxu1  ;;  %v911_v29 = vpop.f32.mrb[11].mxu0  ;;  %v9430_v23 = vadd.f32 %v15426_v49, %v9391_v16  ;;  %v9407_v25 = vld [vmem:[#allocation2 + $0xb0] sm:$0xff]  ;;  %v9473_v44 = vmax.f32 %v15497_v54, 0.0  ;;  %v2769_v46 = vrot.slane %v15513_v6, 7 }
 0x105   : > { %v9457_v35 = vmax.f32 %v15469_v40, 0.0  ;;  %1062 = vst.msk [vmem:[#allocation2 + $0xd0] sm:$0xff] %vm399_vm7, %v1029_v30  ;;  %1044 = vst.msk [vmem:[#allocation2 + $0x40] sm:$0xff] %vm399_vm7, %v1011_v51  ;;  %v1030_v38 = vadd.f32 %v12431_v21, %v523_v31  ;;  %13681 = vrot.lane.b32.xlu1 %v13680_v12, %s14036_s24  ;;  %v9405_v47 = vld [vmem:[#allocation2 + $0xa0] sm:$0xff]  ;;  %v9472_v54 = vmax.f32 %v15518_v14, 0.0  ;;  %v9446_v58 = vadd.f32 %v15426_v49, %v9407_v25  ;;  %v511_v8 = vld [vmem:[#allocation2 + $0x78] sm:$0xff] }
 0x106   : > { %1047 = vst.msk [vmem:[#allocation2 + $0x58] sm:$0xff] %vm399_vm7, %v1014_v19  ;;  %v9462_v62 = vmax.f32 %v9430_v23, 0.0  ;;  %v9408_v57 = vld [vmem:[#allocation2 + $0xb8] sm:$0xff]  ;;  %v9390_v59 = vld [vmem:[#allocation2 + $0x28] sm:$0xff]  ;;  %v10929_v14 = vcombine.low %v15473_v48, %v15503_v10 }
 0x107   : > { %12847 = vmatmul.mubr.msk.bf16.vlgmr.msra.gmra.mrb[16].mxu0 %vm789_vm3, %v13948_v32  ;;  %v520_v32 = vld [vmem:[#allocation2 + $0xc0] sm:$0xff]  ;;  %1063 = vst.msk [vmem:[#allocation2 + $0xd8] sm:$0xff] %vm399_vm7, %v1030_v38  ;;  %12545 = vmatmul.mubr.msk.bf16.gmra.mrb[20].mxu1 %vm789_vm3, %v10926_v1  ;;  %v9447_v63 = vadd.f32 %v15426_v49, %v9408_v57  ;;  %v15557_v30 = vadd.f32 %v15426_v49, %v9390_v59  ;;  %v527_v12 = vld [vmem:[#allocation2 + $0xf8] sm:$0xff]  ;;  %v15574_v25 = vld [vmem:[%s14122_s18 + $0x1a8] sm:$0xf]  ;;  %v9478_v52 = vmax.f32 %v9446_v58, 0.0 }
 0x108   : > { %12879 = vmatpush3.bf16.msra.mxu0 %v15400_v33  ;;  %v9459_v33 = vmax.f32 %v9427_v36, 0.0  ;;  %12850 = vmatprep.mubr.msk.bf16.mxu0 %vm789_vm3, %v13949_v61  ;;  %v9456_v61 = vmax.f32 %v15453_v39, 0.0  ;;  %v1027_v60 = vadd.f32 %v972_v7, %v520_v32  ;;  %v9389_v36 = vld [vmem:[#allocation2 + $0x20] sm:$0xff]  ;;  %v975_v39 = vpop.f32.mrb[11].mxu1  ;;  %v1012_v32 = vadd.f32 %v911_v29, %v505_v0  ;;  %v510_v0 = vld [vmem:[#allocation2 + $0x70] sm:$0xff]  ;;  %v509_v29 = vld [vmem:[#allocation2 + $0x68] sm:$0xff] }
 0x109   : > { %13642 = vmatprep.subr.msk.bf16.mxu0 %vm625_vm0, %v15479_v24  ;;  %v9392_v40 = vld [vmem:[#allocation2 + $0x38] sm:$0xff]  ;;  %v15545_v2 = vadd.f32 %v15426_v49, %v9389_v36  ;;  %12548 = vmatprep.mubr.msk.bf16.mxu1 %vm789_vm3, %v10927_v28  ;;  %v12418_v51 = vpop.f32.mrb[12].mxu0  ;;  %v524_v7 = vld [vmem:[#allocation2 + $0xe0] sm:$0xff]  ;;  %v13690_v19 = vpack.i.bf16 %v9473_v44, %v9472_v54 }
 0x10a   : > { %v13675_v5 = vpack.i.bf16 %v9459_v33, %v9458_v37  ;;  %v2766_v37 = vrot.slane %v15506_v34, 7  ;;  %1060 = vst.msk [vmem:[#allocation2 + $0xc0] sm:$0xff] %vm399_vm7, %v1027_v60  ;;  %v1028_v33 = vadd.f32 %v975_v39, %v521_v13  ;;  %v13685_v50 = vpack.i.bf16 %v9457_v35, %v9456_v61  ;;  %1045 = vst.msk [vmem:[#allocation2 + $0x48] sm:$0xff] %vm399_vm7, %v1012_v32  ;;  %v924_v60 = vpop.f32.mrb[13].mxu0  ;;  %v525_v32 = vld [vmem:[#allocation2 + $0xe8] sm:$0xff] }
 0x10b   : > { %v9431_v31 = vadd.f32 %v15426_v49, %v9392_v40  ;;  %v9444_v61 = vadd.f32 %v15426_v49, %v9405_v47  ;;  %v9479_v13 = vmax.f32 %v9447_v63, 0.0  ;;  %v1017_v16 = vadd.f32 %v12418_v51, %v510_v0  ;;  %v12419_v39 = vpop.f32.mrb[14].mxu0  ;;  %v9395_v40 = vld [vmem:[#allocation2 + $0x50] sm:$0xff]  ;;  %v15591_v51 = vld [vmem:[%s14122_s18 + $0x1bc] sm:$0xf] }
 0x10c   : > { %13676 = vrot.lane.b32.xlu0 %v13675_v5, %s14036_s24  ;;  %1061 = vst.msk [vmem:[#allocation2 + $0xc8] sm:$0xff] %vm399_vm7, %v1028_v33  ;;  %v13952_v5 = vld [vmem:[%s14122_s18 + $0x154] sm:$0xff]   ;;  %v15571_v28 = vrot.slane %v2766_v37, 4  ;;  %v1015_v11 = vadd.f32 %v924_v60, %v508_v15  ;;  %v9460_v55 = vmax.f32 %v15545_v2, 0.0  ;;  %v1018_v33 = vadd.f32 %v12419_v39, %v511_v8  ;;  %v9393_v57 = vld [vmem:[#allocation2 + $0x40] sm:$0xff] }
 0x10d   : > { %v9463_v1 = vmax.f32 %v9431_v31, 0.0  ;;  %1050 = vst.msk [vmem:[#allocation2 + $0x70] sm:$0xff] %vm399_vm7, %v1017_v16  ;;  %v9476_v31 = vmax.f32 %v9444_v61, 0.0  ;;  %v9432_v58 = vadd.f32 %v15426_v49, %v9393_v57  ;;  %v9396_v63 = vld [vmem:[#allocation2 + $0x58] sm:$0xff]  ;;  %v10885_v2 = vld [vmem:[%s14122_s18 + $0x1a4] sm:$0x8]  ;;  %v9434_v61 = vadd.f32 %v15426_v49, %v9395_v40 }
 0x10e   : > { %1048 = vst.msk [vmem:[#allocation2 + $0x60] sm:$0xff] %vm399_vm7, %v1015_v11  ;;  %1051 = vst.msk [vmem:[#allocation2 + $0x78] sm:$0xff] %vm399_vm7, %v1018_v33  ;;  %v10915_v16 = vrot.slane %v10885_v2, 11  ;;  %v9411_v27 = vld [vmem:[#allocation2 + $0xd0] sm:$0xff]  ;;  %v2770_v20 = vsel %vm14271_vm6, %v15571_v28, %v2769_v46  ;;  %v10888_v34 = vld [vmem:[%s14122_s18 + $0x1b8] sm:$0x8] }
 0x10f   : > { %12851 = vmatmul.mubr.msk.bf16.gmra.mrb[20].mxu0 %vm789_vm3, %v13950_v45  ;;  %v9406_v45 = vld [vmem:[#allocation2 + $0xa8] sm:$0xff]  ;;  %v13695_v21 = vpack.i.bf16 %v9463_v1, %v9462_v62  ;;  %v9461_v62 = vmax.f32 %v15557_v30, 0.0  ;;  %12549 = vmatmul.mubr.msk.bf16.gmra.mrb[24].mxu1 %vm789_vm3, %v10928_v9  ;;  %v2767_v9 = vsel %vm14271_vm6, %v10914_v56, %v2766_v37  ;;  %v2780_v56 = vrot.slane %v15591_v51, 7  ;;  %v13954_v60 = vld [vmem:[%s14122_s18 + $0x17c] sm:$0xff]   ;;  %v15640_v33 = vld [vmem:[%s14122_s18 + $0x1d0] sm:$0xf] }
 0x110   : > { %12854 = vmatprep.mubr.msk.bf16.mxu0 %vm789_vm3, %v13951_v18  ;;  %13686 = vrot.lane.b32.xlu0 %v13685_v50, %s14036_s24  ;;  %v9445_v35 = vadd.f32 %v15426_v49, %v9406_v45  ;;  %v12434_v18 = vpop.f32.mrb[12].mxu1  ;;  %v927_v50 = vpop.f32.mrb[15].mxu0  ;;  %v13700_v45 = vpack.i.bf16 %v9479_v13, %v9478_v52  ;;  %v2773_v13 = vrot.slane %v15574_v25, 7  ;;  %v9450_v46 = vadd.f32 %v15426_v49, %v9411_v27 }
 0x111   : > { %v1033_v36 = vadd.f32 %v12434_v18, %v526_v22  ;;  %v988_v38 = vpop.f32.mrb[13].mxu1  ;;  %13696 = vrot.lane.b32.xlu1 %v13695_v21, %s14036_s24  ;;  %v1016_v54 = vadd.f32 %v927_v50, %v509_v29  ;;  %v9394_v1 = vld [vmem:[#allocation2 + $0x48] sm:$0xff]  ;;  %v9409_v30 = vld [vmem:[#allocation2 + $0xc0] sm:$0xff]  ;;  %12552 = vmatprep.mubr.msk.bf16.mxu1 %vm789_vm3, %v10929_v14  ;;  %v13705_v37 = vpack.i.bf16 %v9461_v62, %v9460_v55  ;;  %v10916_v39 = vrot.slane %v10888_v34, 11 }
 0x112   : > { %v9477_v23 = vmax.f32 %v9445_v35, 0.0  ;;  %v1031_v47 = vadd.f32 %v988_v38, %v524_v7  ;;  %v12435_v44 = vpop.f32.mrb[14].mxu1  ;;  %v9435_v35 = vadd.f32 %v15426_v49, %v9396_v63  ;;  %v9464_v7 = vmax.f32 %v9432_v58, 0.0  ;;  %v10890_v14 = vld [vmem:[%s14122_s18 + $0x1c0] sm:$0x7] }
 0x113   : > { %1066 = vst.msk [vmem:[#allocation2 + $0xf0] sm:$0xff] %vm399_vm7, %v1033_v36  ;;  %v1034_v59 = vadd.f32 %v12435_v44, %v527_v12  ;;  %v991_v0 = vpop.f32.mrb[15].mxu1  ;;  %1049 = vst.msk [vmem:[#allocation2 + $0x68] sm:$0xff] %vm399_vm7, %v1016_v54  ;;  %v9410_v8 = vld [vmem:[#allocation2 + $0xc8] sm:$0xff]  ;;  %v9412_v12 = vld [vmem:[#allocation2 + $0xd8] sm:$0xff]  ;;  %v9448_v53 = vadd.f32 %v15426_v49, %v9409_v30  ;;  %v2775_v25 = vrot.slane %v2773_v13, 4  ;;  %v10931_v28 = vcombine.low %v2767_v9, %v2770_v20 }
 0x114   : > { %13691 = vrot.lane.b32.xlu0 %v13690_v19, %s14036_s24  ;;  %1064 = vst.msk [vmem:[#allocation2 + $0xe0] sm:$0xff] %vm399_vm7, %v1031_v47  ;;  %v1032_v22 = vadd.f32 %v991_v0, %v525_v32  ;;  %v13710_v15 = vpack.i.bf16 %v9477_v23, %v9476_v31  ;;  %v9449_v42 = vadd.f32 %v15426_v49, %v9410_v8  ;;  %v9466_v19 = vmax.f32 %v9434_v61, 0.0  ;;  %v13955_v23 = vld [vmem:[%s14122_s18 + $0x190] sm:$0xff]   ;;  %v15646_v0 = vld [vmem:[%s14122_s18 + $0x1e4] sm:$0xf] }
 0x115   : > { %1067 = vst.msk [vmem:[#allocation2 + $0xf8] sm:$0xff] %vm399_vm7, %v1034_v59  ;;  %13701 = vrot.lane.b32.xlu1 %v13700_v45, %s14036_s24  ;;  %v9467_v48 = vmax.f32 %v9435_v35, 0.0  ;;  %v9451_v10 = vadd.f32 %v15426_v49, %v9412_v12  ;;  %v9399_v36 = vld [vmem:[#allocation2 + $0x70] sm:$0xff]  ;;  %v9397_v11 = vld [vmem:[#allocation2 + $0x60] sm:$0xff]  ;;  %v15635_v38 = vsel %vm14271_vm6, %v10915_v16, %v2773_v13  ;;  %v9480_v32 = vmax.f32 %v9448_v53, 0.0  ;;  %v9400_v55 = vld [vmem:[#allocation2 + $0x78] sm:$0xff] }
 0x116   : > { %1065 = vst.msk [vmem:[#allocation2 + $0xe8] sm:$0xff] %vm399_vm7, %v1032_v22  ;;  %v9481_v29 = vmax.f32 %v9449_v42, 0.0  ;;  %v9436_v52 = vadd.f32 %v15426_v49, %v9397_v11  ;;  %v2782_v40 = vrot.slane %v2780_v56, 4  ;;  %v2783_v47 = vrot.slane %v10890_v14, 7  ;;  %v10891_v35 = vld [vmem:[%s14122_s18 + $0x1cc] sm:$0x8] }
 0x117   : > { %12855 = vmatmul.mubr.msk.bf16.gmra.mrb[24].mxu0 %vm789_vm3, %v13952_v5  ;;  %v9433_v5 = vadd.f32 %v15426_v49, %v9394_v1  ;;  %v13715_v44 = vpack.i.bf16 %v9467_v48, %v9466_v19  ;;  %v9483_v50 = vmax.f32 %v9451_v10, 0.0  ;;  %v9438_v62 = vadd.f32 %v15426_v49, %v9399_v36  ;;  %12553 = vmatmul.mubr.msk.bf16.gmra.mrb[28].mxu1 %vm789_vm3, %v10930_v17  ;;  %v10893_v13 = vld [vmem:[%s14122_s18 + $0x1d4] sm:$0x7]  ;;  %v10896_v53 = vld [vmem:[%s14122_s18 + $0x1e8] sm:$0x7] }
 0x118   : > { %12858 = vmatprep.mubr.msk.bf16.mxu0 %vm789_vm3, %v13953_v26  ;;  %13711 = vrot.lane.b32.xlu0 %v13710_v15, %s14036_s24  ;;  %v10887_v26 = vld [vmem:[%s14122_s18 + $0x1ac] sm:$0x7]  ;;  %v9439_v57 = vadd.f32 %v15426_v49, %v9400_v55  ;;  %v13730_v54 = vpack.i.bf16 %v9481_v29, %v9480_v32  ;;  %v9468_v58 = vmax.f32 %v9436_v52, 0.0  ;;  %v9482_v15 = vmax.f32 %v9450_v46, 0.0  ;;  %v10898_v14 = vld [vmem:[%s14122_s18 + $0x1f8] sm:$0xf] }
 0x119   : > { %v9465_v18 = vmax.f32 %v9433_v5, 0.0  ;;  %v2776_v6 = vrot.slane %v10887_v26, 7  ;;  %13706 = vrot.lane.b32.xlu1 %v13705_v37, %s14036_s24  ;;  %12556 = vmatprep.mubr.msk.bf16.mxu1 %vm789_vm3, %v10931_v28  ;;  %v2781_v61 = vsel %vm14271_vm6, %v10916_v39, %v2780_v56  ;;  %v2787_v30 = vrot.slane %v15640_v33, 7  ;;  %v13956_v5 = vld [vmem:[%s14122_s18 + $0x1a4] sm:$0xff]   ;;  %v13957_v56 = vld [vmem:[%s14122_s18 + $0x1b8] sm:$0xff]  }
 0x11a   : > { %v9398_v31 = vld [vmem:[#allocation2 + $0x68] sm:$0xff]  ;;  %v9415_v8 = vld [vmem:[#allocation2 + $0xf0] sm:$0xff]  ;;  %v2784_v12 = vsel %vm14271_vm6, %v2782_v40, %v2783_v47  ;;  %v2794_v17 = vrot.slane %v15646_v0, 7  ;;  %v13720_v42 = vpack.i.bf16 %v9483_v50, %v9482_v15  ;;  %v9470_v9 = vmax.f32 %v9438_v62, 0.0  ;;  %v10899_v52 = vld [vmem:[%s14122_s18 + $0x1fc] sm:$0x7] }
 0x11b   : > { %v13725_v21 = vpack.i.bf16 %v9465_v18, %v9464_v7  ;;  %v9413_v59 = vld [vmem:[#allocation2 + $0xe0] sm:$0xff]  ;;  %v9437_v45 = vadd.f32 %v15426_v49, %v9398_v31  ;;  %v2777_v63 = vsel %vm14271_vm6, %v2775_v25, %v2776_v6  ;;  %v9471_v26 = vmax.f32 %v9439_v57, 0.0  ;;  %v10901_v46 = vld [vmem:[%s14122_s18 + $0x20c] sm:$0xf]  ;;  %v10897_v32 = vld [vmem:[%s14122_s18 + $0x1f4] sm:$0x8] }
 0x11c   : > { %v9416_v22 = vld [vmem:[#allocation2 + $0xf8] sm:$0xff]  ;;  %v9452_v7 = vadd.f32 %v15426_v49, %v9413_v59  ;;  %v10894_v18 = vld [vmem:[%s14122_s18 + $0x1e0] sm:$0x8]  ;;  %v10932_v20 = vcombine.low %v15635_v38, %v2777_v63  ;;  %v10917_v37 = vrot.slane %v10891_v35, 11  ;;  %v10933_v19 = vcombine.low %v2781_v61, %v2784_v12  ;;  %v10900_v50 = vld [vmem:[%s14122_s18 + $0x208] sm:$0x8] }
 0x11d   : > { %13726 = vrot.lane.b32.xlu0 %v13725_v21, %s14036_s24  ;;  %v9414_v2 = vld [vmem:[#allocation2 + $0xe8] sm:$0xff]  ;;  %13716 = vrot.lane.b32.xlu1 %v13715_v44, %s14036_s24  ;;  %v9469_v51 = vmax.f32 %v9437_v45, 0.0  ;;  %v9455_v16 = vadd.f32 %v15426_v49, %v9416_v22  ;;  %v2789_v48 = vrot.slane %v2787_v30, 4  ;;  %v2790_v10 = vrot.slane %v10893_v13, 7  ;;  %v10902_v31 = vld [vmem:[%s14122_s18 + $0x210] sm:$0x7] }
 0x11e   : > { %v9453_v1 = vadd.f32 %v15426_v49, %v9414_v2  ;;  %v9484_v21 = vmax.f32 %v9452_v7, 0.0  ;;  %v10918_v29 = vrot.slane %v10894_v18, 11  ;;  %v2797_v25 = vrot.slane %v10896_v53, 7  ;;  %v13958_v44 = vld [vmem:[%s14122_s18 + $0x1cc] sm:$0xff]   ;;  %v13959_v57 = vld [vmem:[%s14122_s18 + $0x1e0] sm:$0xff]  }
 0x11f   : > { %12859 = vmatmul.mubr.msk.bf16.gmra.mrb[28].mxu0 %vm789_vm3, %v13954_v60  ;;  %v13745_v27 = vpack.i.bf16 %v9469_v51, %v9468_v58  ;;  %v9454_v60 = vadd.f32 %v15426_v49, %v9415_v8  ;;  %v13735_v6 = vpack.i.bf16 %v9471_v26, %v9470_v9  ;;  %v9487_v36 = vmax.f32 %v9455_v16, 0.0  ;;  %12557 = vmatmul.mubr.msk.bf16.gmra.mrb[32].mxu1 %vm789_vm3, %v10932_v20  ;;  %v10904_v45 = vld [vmem:[%s14122_s18 + $0x220] sm:$0xf]  ;;  %v11620_v63 = vld [vmem:[%s14122_s18 + $0xf8] sm:$0xf]  ;;  %v13961_v26 = vld [vmem:[%s14122_s18 + $0x208] sm:$0xff]  }
 0x120   : > { %12862 = vmatprep.mubr.msk.bf16.mxu0 %vm789_vm3, %v13955_v23  ;;  %v9485_v34 = vmax.f32 %v9453_v1, 0.0  ;;  %v2796_v23 = vrot.slane %v2794_v17, 4  ;;  %v2801_v28 = vrot.slane %v10898_v14, 7  ;;  %12560 = vmatprep.mubr.msk.bf16.mxu1 %vm789_vm3, %v10933_v19  ;;  %v2788_v38 = vsel %vm14271_vm6, %v10917_v37, %v2787_v30  ;;  %v10903_v1 = vld [vmem:[%s14122_s18 + $0x21c] sm:$0x8]  ;;  %v13960_v8 = vld [vmem:[%s14122_s18 + $0x1f4] sm:$0xff]  }
 0x121   : > { %13731 = vrot.lane.b32.xlu0 %v13730_v54, %s14036_s24  ;;  %13721 = vrot.lane.b32.xlu1 %v13720_v42, %s14036_s24  ;;  %v9486_v11 = vmax.f32 %v9454_v60, 0.0  ;;  %v2791_v39 = vsel %vm14271_vm6, %v2789_v48, %v2790_v10  ;;  %v2795_v55 = vsel %vm14271_vm6, %v10918_v29, %v2794_v17  ;;  %v2808_v47 = vrot.slane %v10901_v46, 7  ;;  %v10956_v35 = vld [vmem:[%s14122_s18 + $0xf8] sm:$0xf]  ;;  %v11619_v12 = vld [vmem:[%s14122_s18 + $0xf4] sm:$0xc] }
 0x122   : > { %v13750_v49 = vpack.i.bf16 %v9485_v34, %v9484_v21  ;;  %v2798_v40 = vsel %vm14271_vm6, %v2796_v23, %v2797_v25  ;;  %v10934_v62 = vcombine.low %v2788_v38, %v2791_v39  ;;  %v10919_v59 = vrot.slane %v10897_v32, 11  ;;  %v11621_v13 = vld [vmem:[%s14122_s18 + $0xfc] sm:$0x3]  ;;  %v15715_v17 = vld [vmem:[%s14122_s18 + $0x10c] sm:$0xf] }
 0x123   : > { %v13740_v33 = vpack.i.bf16 %v9487_v36, %v9486_v11  ;;  %v2803_v0 = vrot.slane %v2801_v28, 4  ;;  %v2804_v54 = vrot.slane %v10899_v52, 7  ;;  %v10935_v58 = vcombine.low %v2795_v55, %v2798_v40  ;;  %v10955_v18 = vld [vmem:[%s14122_s18 + $0xf4] sm:$0xc]  ;;  %v10957_v53 = vld [vmem:[%s14122_s18 + $0xfc] sm:$0x3] }
 0x124   : > { %v10920_v2 = vrot.slane %v10900_v50, 11  ;;  %v2810_v22 = vrot.slane %v2808_v47, 4  ;;  %v2811_v15 = vrot.slane %v10902_v31, 7  ;;  %v2815_v61 = vrot.slane %v10904_v45, 7  ;;  %v15725_v37 = vld [vmem:[%s14122_s18 + $0x108] sm:$0xc] }
 0x125   : > { %13746 = vrot.lane.b32.xlu0 %v13745_v27, %s14036_s24  ;;  %13736 = vrot.lane.b32.xlu1 %v13735_v6, %s14036_s24  ;;  %v2802_v30 = vsel %vm14271_vm6, %v10919_v59, %v2801_v28  ;;  %v2805_v51 = vsel %vm14271_vm6, %v2803_v0, %v2804_v54  ;;  %v7362_v7 = vrot.slane %v11620_v63, 6  ;;  %v10921_v16 = vrot.slane %v10903_v1, 11  ;;  %v11623_v60 = vld [vmem:[%s14122_s18 + $0x10c] sm:$0xf]  ;;  %v10960_v14 = vld [vmem:[%s14122_s18 + $0x110] sm:$0x3] }
 0x126   : > { %v2809_v42 = vsel %vm14271_vm6, %v10920_v2, %v2808_v47  ;;  %v2812_v9 = vsel %vm14271_vm6, %v2810_v22, %v2811_v15  ;;  %v3212_v27 = vrot.slane %v10956_v35, 6  ;;  %v10936_v20 = vcombine.low %v2802_v30, %v2805_v51  ;;  %v11622_v6 = vld [vmem:[%s14122_s18 + $0x108] sm:$0xc]  ;;  %v11624_v36 = vld [vmem:[%s14122_s18 + $0x110] sm:$0x3] }
 0x127   : > { %12863 = vmatmul.mubr.msk.bf16.gmra.mrb[32].mxu0 %vm789_vm3, %v13956_v5  ;;  %12561 = vmatmul.mubr.msk.bf16.gmra.mrb[36].mxu1 %vm789_vm3, %v10934_v62  ;;  %v10905_v5 = vld [vmem:[%s14122_s18 + $0x224] sm:$0x7]  ;;  %v2817_v34 = vrot.slane %v2815_v61, 4  ;;  %v11667_v19 = vrot.slane %v11619_v12, 10  ;;  %v7364_v48 = vrot.slane %v7362_v7, 4  ;;  %v7365_v10 = vrot.slane %v11621_v13, 6 }
 0x128   : > { %12866 = vmatprep.mubr.msk.bf16.mxu0 %vm789_vm3, %v13957_v56  ;;  %12564 = vmatprep.mubr.msk.bf16.mxu1 %vm789_vm3, %v10935_v58  ;;  %v2818_v56 = vrot.slane %v10905_v5, 7  ;;  %v3219_v21 = vrot.slane %v15715_v17, 6  ;;  %v10937_v29 = vcombine.low %v2809_v42, %v2812_v9  ;;  %v11003_v23 = vrot.slane %v10955_v18, 10  ;;  %v10961_v28 = vld [vmem:[%s14122_s18 + $0x11c] sm:$0xc] }
 0x129   : > { %13751 = vrot.lane.b32.xlu0 %v13750_v49, %s14036_s24  ;;  %13741 = vrot.lane.b32.xlu1 %v13740_v33, %s14036_s24  ;;  %v3215_v25 = vrot.slane %v10957_v53, 6  ;;  %v3214_v46 = vrot.slane %v3212_v27, 4  ;;  %v7369_v49 = vrot.slane %v11623_v60, 6  ;;  %v10962_v11 = vld [vmem:[%s14122_s18 + $0x120] sm:$0xf]  ;;  %v2816_v38 = vsel %vm14271_vm6, %v10921_v16, %v2815_v61  ;;  %s14038_s24 = smov 24  }
 0x12a   : > { %v2819_v39 = vsel %vm14271_vm6, %v2817_v34, %v2818_v56  ;;  %v11004_v32 = vrot.slane %v15725_v37, 10  ;;  %v3222_v52 = vrot.slane %v10960_v14, 6  ;;  %v10963_v55 = vld [vmem:[%s14122_s18 + $0x124] sm:$0x3]  ;;  %v7363_v40 = vsel %vm14125_vm2, %v11667_v19, %v7362_v7  ;;  %v11625_v50 = vld [vmem:[%s14122_s18 + $0x11c] sm:$0xc] }
 0x12b   : > { %v7366_v47 = vsel %vm14125_vm2, %v7364_v48, %v7365_v10  ;;  %v3221_v33 = vrot.slane %v3219_v21, 4  ;;  %v11626_v31 = vld [vmem:[%s14122_s18 + $0x120] sm:$0xf]  ;;  %v7372_v59 = vrot.slane %v11624_v36, 6  ;;  %v11005_v0 = vrot.slane %v10961_v28, 10 }
 0x12c   : > { %v13962_v62 = vld [vmem:[%s14122_s18 + $0x21c] sm:$0xff]   ;;  %v3226_v54 = vrot.slane %v10962_v11, 6  ;;  %v3213_v45 = vsel %vm14125_vm2, %v11003_v23, %v3212_v27  ;;  %v7371_v58 = vrot.slane %v7369_v49, 4  ;;  %v3229_v63 = vrot.slane %v10963_v55, 6  ;;  %v11627_v2 = vld [vmem:[%s14122_s18 + $0x124] sm:$0x3] }
 0x12d   : > { %v10965_v22 = vld [vmem:[%s14122_s18 + $0x134] sm:$0xf]  ;;  %v11669_v15 = vrot.slane %v11625_v50, 10  ;;  %v7376_v1 = vrot.slane %v11626_v31, 6  ;;  %v10964_v61 = vld [vmem:[%s14122_s18 + $0x130] sm:$0xc]  ;;  %v10938_v30 = vcombine.low %v2816_v38, %v2819_v39  ;;  %v11684_v51 = vcombine.low %v7363_v40, %v7366_v47 }
 0x12e   : > { %v11629_v35 = vld [vmem:[%s14122_s18 + $0x134] sm:$0xf]  ;;  %v10966_v5 = vld [vmem:[%s14122_s18 + $0x138] sm:$0x3]  ;;  %v11632_v7 = vld [vmem:[%s14122_s18 + $0x148] sm:$0xf]  ;;  %v3223_v34 = vsel %vm14125_vm2, %v3221_v33, %v3222_v52  ;;  %v3227_v19 = vsel %vm14125_vm2, %v11005_v0, %v3226_v54 }
 0x12f   : > { %12867 = vmatmul.mubr.msk.bf16.gmra.mrb[36].mxu0 %vm789_vm3, %v13958_v44  ;;  %12565 = vmatmul.mubr.msk.bf16.gmra.mrb[40].mxu1 %vm789_vm3, %v10936_v20  ;;  %v15749_v44 = vsel %vm625_vm0, %v15458_v43, 0  ;;  %v3216_v43 = vsel %vm14125_vm2, %v3214_v46, %v3215_v25  ;;  %v3228_v12 = vrot.slane %v3226_v54, 4  ;;  %v3233_v13 = vrot.slane %v10965_v22, 6  ;;  %v11628_v17 = vld [vmem:[%s14122_s18 + $0x130] sm:$0xc] }
 0x130   : > { %12870 = vmatprep.mubr.msk.bf16.mxu0 %vm789_vm3, %v13959_v57  ;;  %12568 = vmatprep.mubr.msk.bf16.mxu1 %vm789_vm3, %v10937_v29  ;;  %v11668_v57 = vrot.slane %v11622_v6, 10  ;;  %v15767_v42 = vld [vmem:[%s14122_s18 + $0x148] sm:$0xf]  ;;  %v7379_v16 = vrot.slane %v11627_v2, 6  ;;  %v11630_v18 = vld [vmem:[%s14122_s18 + $0x138] sm:$0x3]  ;;  %v3220_v20 = vsel %vm14125_vm2, %v11004_v32, %v3219_v21  ;;  %v7377_v38 = vsel %vm14125_vm2, %v11669_v15, %v7376_v1 }
 0x131   : > { %v7383_v53 = vrot.slane %v11629_v35, 6  ;;  %v11631_v27 = vld [vmem:[%s14122_s18 + $0x144] sm:$0xc]  ;;  %v7378_v56 = vrot.slane %v7376_v1, 4  ;;  %v7390_v37 = vrot.slane %v11632_v7, 6  ;;  %v7929_v60 = vsel %vm625_vm0, %v15479_v24, 0 }
 0x132   : > { %v7370_v9 = vsel %vm14125_vm2, %v11668_v57, %v7369_v49  ;;  %v11006_v48 = vrot.slane %v10964_v61, 10  ;;  %v3240_v10 = vrot.slane %v15767_v42, 6  ;;  %v11633_v14 = vld [vmem:[%s14122_s18 + $0x14c] sm:$0x3]  ;;  %v3230_v29 = vsel %vm14125_vm2, %v3228_v12, %v3229_v63  ;;  %v10967_v6 = vld [vmem:[%s14122_s18 + $0x144] sm:$0xc] }
 0x133   : > { %v3235_v23 = vrot.slane %v3233_v13, 4  ;;  %v3236_v25 = vrot.slane %v10966_v5, 6  ;;  %v10969_v36 = vld [vmem:[%s14122_s18 + $0x14c] sm:$0x3]  ;;  %v11670_v24 = vrot.slane %v11628_v17, 10  ;;  %v7385_v46 = vrot.slane %v7383_v53, 4 }
 0x134   : > { %v7386_v49 = vrot.slane %v11630_v18, 6  ;;  %v11671_v28 = vrot.slane %v11631_v27, 10  ;;  %v15794_v11 = vld [vmem:[%s14122_s18 + $0x15c] sm:$0xf]  ;;  %v7380_v39 = vsel %vm14125_vm2, %v7378_v56, %v7379_v16  ;;  %v7392_v32 = vrot.slane %v7390_v37, 4 }
 0x135   : > { %v7393_v52 = vrot.slane %v11633_v14, 6  ;;  %v11021_v55 = vcombine.low %v3220_v20, %v3223_v34  ;;  %v11007_v40 = vrot.slane %v10967_v6, 10  ;;  %v3242_v47 = vrot.slane %v3240_v10, 4  ;;  %v15801_v50 = vld [vmem:[%s14122_s18 + $0x15c] sm:$0xf] }
 0x136   : > { %v3243_v33 = vrot.slane %v10969_v36, 6  ;;  %v11022_v31 = vcombine.low %v3227_v19, %v3230_v29  ;;  %v15809_v57 = vsel %vm14125_vm2, %v3235_v23, %v3236_v25  ;;  %v10972_v0 = vld [vmem:[%s14122_s18 + $0x160] sm:$0x3]  ;;  %v15814_v54 = vld [vmem:[%s14122_s18 + $0x170] sm:$0xf]  ;;  %v7387_v63 = vsel %vm14125_vm2, %v7385_v46, %v7386_v49 }
 0x137   : > { %12871 = vmatmul.mubr.msk.bf16.gmra.mrb[40].mxu0 %vm789_vm3, %v13960_v8  ;;  %v11020_v8 = vcombine.low %v3213_v45, %v3216_v43  ;;  %12569 = vmatmul.mubr.msk.bf16.gmra.mrb[44].mxu1 %vm789_vm3, %v10938_v30  ;;  %v15817_v45 = vld [vmem:[%s14122_s18 + $0x170] sm:$0xf]  ;;  %v11686_v43 = vcombine.low %v7377_v38, %v7380_v39  ;;  %v3247_v2 = vrot.slane %v15794_v11, 6  ;;  %v11634_v22 = vld [vmem:[%s14122_s18 + $0x158] sm:$0xc]  ;;  %v7391_v61 = vsel %vm14125_vm2, %v11671_v28, %v7390_v37 }
 0x138   : > { %12874 = vmatprep.mubr.msk.bf16.mxu0 %vm789_vm3, %v13961_v26  ;;  %v7373_v26 = vsel %vm14125_vm2, %v7371_v58, %v7372_v59  ;;  %v10970_v59 = vld [vmem:[%s14122_s18 + $0x158] sm:$0xc]  ;;  %v7384_v58 = vsel %vm14125_vm2, %v11670_v24, %v7383_v53  ;;  %v11636_v15 = vld [vmem:[%s14122_s18 + $0x160] sm:$0x3]  ;;  %v10973_v1 = vld [vmem:[%s14122_s18 + $0x16c] sm:$0xc]  ;;  %v7394_v35 = vsel %vm14125_vm2, %v7392_v32, %v7393_v52 }
 0x139   : > { %12574 = vmatprep.mubr.msk.bf16.mxu1 %vm789_vm3, %v11020_v8  ;;  %v11685_v21 = vcombine.low %v7370_v9, %v7373_v26  ;;  %v7397_v30 = vrot.slane %v15801_v50, 6  ;;  %v11637_v5 = vld [vmem:[%s14122_s18 + $0x16c] sm:$0xc]  ;;  %v15838_v7 = vld [vmem:[%s17273_s4 + $0xc] sm:$0x3]  ;;  %v3254_v12 = vrot.slane %v15814_v54, 6  ;;  %v11687_v42 = vcombine.low %v7384_v58, %v7387_v63 }
 0x13a   : > { %v15848_v17 = vld [vmem:[%s17275_s6 + $0xc] sm:$0x3]  ;;  %v3241_v9 = vsel %vm14125_vm2, %v11007_v40, %v3240_v10  ;;  %v3244_v26 = vsel %vm14125_vm2, %v3242_v47, %v3243_v33  ;;  %v7404_v16 = vrot.slane %v15817_v45, 6  ;;  %v10977_v18 = vld [vmem:[%s14122_s18 + $0x184] sm:$0xf]  ;;  %v11688_v53 = vcombine.low %v7391_v61, %v7394_v35 }
 0x13b   : > { %v11008_v27 = vrot.slane %v10970_v59, 10  ;;  %v3250_v20 = vrot.slane %v10972_v0, 6  ;;  %v11672_v34 = vrot.slane %v11634_v22, 10  ;;  %v7399_v56 = vrot.slane %v7397_v30, 4  ;;  %v10976_v19 = vld [vmem:[%s14122_s18 + $0x180] sm:$0xc] }
 0x13c   : > { %v7400_v37 = vrot.slane %v11636_v15, 6  ;;  %v3256_v10 = vrot.slane %v3254_v12, 4  ;;  %v11641_v23 = vld [vmem:[%s14122_s18 + $0x184] sm:$0xf]  ;;  %v11024_v25 = vcombine.low %v3241_v9, %v3244_v26  ;;  %v7406_v6 = vrot.slane %v7404_v16, 4 }
 0x13d   : > { %v3261_v36 = vrot.slane %v10977_v18, 6  ;;  %v3248_v24 = vsel %vm14125_vm2, %v11008_v27, %v3247_v2  ;;  %v11640_v46 = vld [vmem:[%s14122_s18 + $0x180] sm:$0xc]  ;;  %v11642_v49 = vld [vmem:[%s14122_s18 + $0x188] sm:$0x3]  ;;  %v7398_v38 = vsel %vm14125_vm2, %v11672_v34, %v7397_v30  ;;  %v7411_v32 = vrot.slane %v11641_v23, 6 }
 0x13e   : > { %v11644_v28 = vld [vmem:[%s14122_s18 + $0x198] sm:$0xf]  ;;  %v7401_v39 = vsel %vm14125_vm2, %v7399_v56, %v7400_v37  ;;  %v10979_v52 = vld [vmem:[%s14122_s18 + $0x194] sm:$0xc]  ;;  %v11010_v33 = vrot.slane %v10976_v19, 10  ;;  %v11674_v45 = vrot.slane %v11640_v46, 10 }
 0x13f   : > { %12875 = vmatmul.mubr.msk.bf16.gmra.mrb[44].mxu0 %vm789_vm3, %v13962_v62  ;;  %v15805_v62 = vsel %vm14125_vm2, %v11006_v48, %v3233_v13  ;;  %12575 = vmatmul.mubr.msk.bf16.vlgmr.msra.gmra.mrb[16].mxu1 %vm789_vm3, %v11021_v55  ;;  %v11639_v13 = vld [vmem:[%s14122_s18 + $0x174] sm:$0x3]  ;;  %v10978_v48 = vld [vmem:[%s14122_s18 + $0x188] sm:$0x3]  ;;  %v10980_v55 = vld [vmem:[%s14122_s18 + $0x198] sm:$0xf]  ;;  %v11689_v22 = vcombine.low %v7398_v38, %v7401_v39 }
 0x140   : > { %12880 = vmatprep.mubr.msk.bf16.mxu0 %vm789_vm3, %v11684_v51  ;;  %v10975_v51 = vld [vmem:[%s14122_s18 + $0x174] sm:$0x3]  ;;  %v11023_v8 = vcombine.low %v15805_v62, %v15809_v57  ;;  %12607 = vmatpush3.bf16.msra.mxu1 %v15749_v44  ;;  %v3249_v44 = vrot.slane %v3247_v2, 4  ;;  %v7407_v29 = vrot.slane %v11639_v13, 6  ;;  %v3264_v50 = vrot.slane %v10978_v48, 6 }
 0x141   : > { %12578 = vmatprep.mubr.msk.bf16.mxu1 %vm789_vm3, %v11022_v31  ;;  %13634 = vmatprep.subr.msk.bf16.mxu1 %vm625_vm0, %v15838_v7  ;;  %v3257_v14 = vrot.slane %v10975_v51, 6  ;;  %v3263_v57 = vrot.slane %v3261_v36, 4  ;;  %v10981_v59 = vld [vmem:[%s14122_s18 + $0x19c] sm:$0x3]  ;;  %v11643_v0 = vld [vmem:[%s14122_s18 + $0x194] sm:$0xc]  ;;  %v3262_v30 = vsel %vm14125_vm2, %v11010_v33, %v3261_v36  ;;  %v7412_v34 = vsel %vm14125_vm2, %v11674_v45, %v7411_v32 }
 0x142   : > { %v3251_v11 = vsel %vm14125_vm2, %v3249_v44, %v3250_v20  ;;  %v7408_v62 = vsel %vm14125_vm2, %v7406_v6, %v7407_v29  ;;  %v7418_v54 = vrot.slane %v11644_v28, 6  ;;  %v11645_v58 = vld [vmem:[%s14122_s18 + $0x19c] sm:$0x3]  ;;  %v15895_v63 = vld [vmem:[%s14122_s18 + $0x1ac] sm:$0xf]  ;;  %v7413_v15 = vrot.slane %v7411_v32, 4 }
 0x143   : > { %v3258_v47 = vsel %vm14125_vm2, %v3256_v10, %v3257_v14  ;;  %v11025_v2 = vcombine.low %v3248_v24, %v3251_v11  ;;  %v11011_v51 = vrot.slane %v10979_v52, 10  ;;  %v11675_v13 = vrot.slane %v11643_v0, 10  ;;  %v10982_v26 = vld [vmem:[%s14122_s18 + $0x1a8] sm:$0xc]  ;;  %v11648_v44 = vld [vmem:[%s14122_s18 + $0x1b0] sm:$0x3] }
 0x144   : > { %v7421_v9 = vrot.slane %v11645_v58, 6  ;;  %v11646_v27 = vld [vmem:[%s14122_s18 + $0x1a8] sm:$0xc]  ;;  %v11650_v20 = vld [vmem:[%s14122_s18 + $0x1c0] sm:$0xf]  ;;  %v3275_v37 = vrot.slane %v15895_v63, 6 }
 0x145   : > { %v10985_v19 = vld [vmem:[%s14122_s18 + $0x1bc] sm:$0xc]  ;;  %v10987_v48 = vld [vmem:[%s14122_s18 + $0x1c4] sm:$0x3]  ;;  %v7419_v29 = vsel %vm14125_vm2, %v11675_v13, %v7418_v54  ;;  %v7432_v36 = vrot.slane %v11650_v20, 6  ;;  %v11676_v38 = vrot.slane %v11646_v27, 10 }
 0x146   : > { %v11651_v6 = vld [vmem:[%s14122_s18 + $0x1c4] sm:$0x3]  ;;  %v3277_v11 = vrot.slane %v3275_v37, 4  ;;  %v7428_v32 = vrot.slane %v11648_v44, 6  ;;  %v10989_v52 = vld [vmem:[%s14122_s18 + $0x1d4] sm:$0xf] }
 0x147   : > { %12881 = vmatmul.mubr.msk.bf16.vlgmr.msra.gmra.mrb[16].mxu0 %vm789_vm3, %v11685_v21  ;;  %v11673_v21 = vrot.slane %v11637_v5, 10  ;;  %12579 = vmatmul.mubr.msk.bf16.gmra.mrb[20].mxu1 %vm789_vm3, %v11023_v8  ;;  %v11647_v5 = vld [vmem:[%s14122_s18 + $0x1ac] sm:$0xf]  ;;  %v10986_v8 = vld [vmem:[%s14122_s18 + $0x1c0] sm:$0xf] }
 0x148   : > { %12913 = vmatpush3.bf16.msra.mxu0 %v7929_v60  ;;  %12884 = vmatprep.mubr.msk.bf16.mxu0 %vm789_vm3, %v11686_v43  ;;  %v11009_v60 = vrot.slane %v10973_v1, 10  ;;  %v3268_v43 = vrot.slane %v10980_v55, 6  ;;  %v7414_v1 = vrot.slane %v11642_v49, 6  ;;  %v3282_v14 = vrot.slane %v10986_v8, 6  ;;  %v11653_v55 = vld [vmem:[%s14122_s18 + $0x1d4] sm:$0xf] }
 0x149   : > { %13643 = vmatprep.subr.msk.bf16.mxu0 %vm625_vm0, %v15848_v17  ;;  %12582 = vmatprep.mubr.msk.bf16.mxu1 %vm789_vm3, %v11024_v25  ;;  %v7405_v31 = vsel %vm14125_vm2, %v11673_v21, %v7404_v16  ;;  %v10984_v16 = vld [vmem:[%s14122_s18 + $0x1b0] sm:$0x3]  ;;  %v11649_v25 = vld [vmem:[%s14122_s18 + $0x1bc] sm:$0xc]  ;;  %v11012_v49 = vrot.slane %v10982_v26, 10 }
 0x14a   : > { %v3255_v40 = vsel %vm14125_vm2, %v11009_v60, %v3254_v12  ;;  %v11690_v35 = vcombine.low %v7405_v31, %v7408_v62  ;;  %v3265_v12 = vsel %vm14125_vm2, %v3263_v57, %v3264_v50  ;;  %v3270_v18 = vrot.slane %v3268_v43, 4  ;;  %v10988_v0 = vld [vmem:[%s14122_s18 + $0x1d0] sm:$0xc]  ;;  %v10993_v13 = vld [vmem:[%s14122_s18 + $0x1ec] sm:$0x3] }
 0x14b   : > { %v11026_v61 = vcombine.low %v3255_v40, %v3258_v47  ;;  %v7415_v56 = vsel %vm14125_vm2, %v7413_v15, %v7414_v1  ;;  %v7425_v60 = vrot.slane %v11647_v5, 6  ;;  %v11027_v10 = vcombine.low %v3262_v30, %v3265_v12  ;;  %v11652_v45 = vld [vmem:[%s14122_s18 + $0x1d0] sm:$0xc]  ;;  %v10992_v15 = vld [vmem:[%s14122_s18 + $0x1e8] sm:$0xf] }
 0x14c   : > { %v3269_v21 = vsel %vm14125_vm2, %v11011_v51, %v3268_v43  ;;  %v11691_v24 = vcombine.low %v7412_v34, %v7415_v56  ;;  %v3278_v28 = vrot.slane %v10984_v16, 6  ;;  %v11013_v47 = vrot.slane %v10985_v19, 10  ;;  %v11656_v43 = vld [vmem:[%s14122_s18 + $0x1e8] sm:$0xf]  ;;  %v11654_v30 = vld [vmem:[%s14122_s18 + $0x1d8] sm:$0x3] }
 0x14d   : > { %v7427_v39 = vrot.slane %v7425_v60, 4  ;;  %v3284_v33 = vrot.slane %v3282_v14, 4  ;;  %v3285_v50 = vrot.slane %v10987_v48, 6  ;;  %v11677_v62 = vrot.slane %v11649_v25, 10  ;;  %v10991_v5 = vld [vmem:[%s14122_s18 + $0x1e4] sm:$0xc] }
 0x14e   : > { %v7434_v57 = vrot.slane %v7432_v36, 4  ;;  %v3276_v58 = vsel %vm14125_vm2, %v11012_v49, %v3275_v37  ;;  %v3279_v63 = vsel %vm14125_vm2, %v3277_v11, %v3278_v28  ;;  %v3283_v1 = vsel %vm14125_vm2, %v11013_v47, %v3282_v14  ;;  %v10995_v56 = vld [vmem:[%s14122_s18 + $0x1fc] sm:$0xf]  ;;  %v10994_v25 = vld [vmem:[%s14122_s18 + $0x1f8] sm:$0xc] }
 0x14f   : > { %12885 = vmatmul.mubr.msk.bf16.gmra.mrb[20].mxu0 %vm789_vm3, %v11687_v42  ;;  %v7420_v42 = vrot.slane %v7418_v54, 4  ;;  %12583 = vmatmul.mubr.msk.bf16.gmra.mrb[24].mxu1 %vm789_vm3, %v11025_v2  ;;  %v10990_v54 = vld [vmem:[%s14122_s18 + $0x1d8] sm:$0x3]  ;;  %v7426_v2 = vsel %vm14125_vm2, %v11676_v38, %v7425_v60  ;;  %v7439_v51 = vrot.slane %v11653_v55, 6  ;;  %v7433_v8 = vsel %vm14125_vm2, %v11677_v62, %v7432_v36  ;;  %v15963_v37 = vld [vmem:[%s14122_s18 + $0x1fc] sm:$0xf] }
 0x150   : > { %12888 = vmatprep.mubr.msk.bf16.mxu0 %vm789_vm3, %v11688_v53  ;;  %v3271_v53 = vrot.slane %v10981_v59, 6  ;;  %12586 = vmatprep.mubr.msk.bf16.mxu1 %vm789_vm3, %v11026_v61  ;;  %v7435_v59 = vrot.slane %v11651_v6, 6  ;;  %v3286_v61 = vsel %vm14125_vm2, %v3284_v33, %v3285_v50  ;;  %v3296_v16 = vrot.slane %v10992_v15, 6  ;;  %v11662_v6 = vld [vmem:[%s14122_s18 + $0x210] sm:$0xf] }
 0x151   : > { %v7422_v23 = vsel %vm14125_vm2, %v7420_v42, %v7421_v9  ;;  %v7446_v42 = vrot.slane %v11656_v43, 6  ;;  %v11029_v9 = vcombine.low %v3276_v58, %v3279_v63  ;;  %v11030_v27 = vcombine.low %v3283_v1, %v3286_v61  ;;  %v10996_v28 = vld [vmem:[%s14122_s18 + $0x200] sm:$0x3]  ;;  %v11658_v11 = vld [vmem:[%s14122_s18 + $0x1f8] sm:$0xc] }
 0x152   : > { %v3272_v46 = vsel %vm14125_vm2, %v3270_v18, %v3271_v53  ;;  %v11692_v40 = vcombine.low %v7419_v29, %v7422_v23  ;;  %v7436_v12 = vsel %vm14125_vm2, %v7434_v57, %v7435_v59  ;;  %v11655_v18 = vld [vmem:[%s14122_s18 + $0x1e4] sm:$0xc]  ;;  %v11657_v53 = vld [vmem:[%s14122_s18 + $0x1ec] sm:$0x3]  ;;  %v11014_v44 = vrot.slane %v10988_v0, 10 }
 0x153   : > { %v11028_v31 = vcombine.low %v3269_v21, %v3272_v46  ;;  %v3292_v20 = vrot.slane %v10990_v54, 6  ;;  %v11678_v34 = vrot.slane %v11652_v45, 10  ;;  %v11694_v60 = vcombine.low %v7433_v8, %v7436_v12  ;;  %v10998_v38 = vld [vmem:[%s14122_s18 + $0x210] sm:$0xf]  ;;  %v11660_v55 = vld [vmem:[%s14122_s18 + $0x200] sm:$0x3] }
 0x154   : > { %v7441_v48 = vrot.slane %v7439_v51, 4  ;;  %v11015_v14 = vrot.slane %v10991_v5, 10  ;;  %v11679_v21 = vrot.slane %v11655_v18, 10  ;;  %v7448_v29 = vrot.slane %v7446_v42, 4  ;;  %v10997_v50 = vld [vmem:[%s14122_s18 + $0x20c] sm:$0xc] }
 0x155   : > { %v7449_v23 = vrot.slane %v11657_v53, 6  ;;  %v3298_v36 = vrot.slane %v3296_v16, 4  ;;  %v7440_v49 = vsel %vm14125_vm2, %v11678_v34, %v7439_v51  ;;  %v7460_v62 = vrot.slane %v11662_v6, 6  ;;  %v11661_v45 = vld [vmem:[%s14122_s18 + $0x20c] sm:$0xc] }
 0x156   : > { %v7447_v47 = vsel %vm14125_vm2, %v11679_v21, %v7446_v42  ;;  %v3297_v57 = vsel %vm14125_vm2, %v11015_v14, %v3296_v16  ;;  %v11016_v0 = vrot.slane %v10994_v25, 10  ;;  %v3310_v54 = vrot.slane %v10998_v38, 6  ;;  %v11663_v43 = vld [vmem:[%s14122_s18 + $0x214] sm:$0x3]  ;;  %v11053_v18 = vld [vmem:[%s14122_s18 + $0xfc] sm:$0xf] }
 0x157   : > { %12889 = vmatmul.mubr.msk.bf16.gmra.mrb[24].mxu0 %vm789_vm3, %v11689_v22  ;;  %v7429_v22 = vsel %vm14125_vm2, %v7427_v39, %v7428_v32  ;;  %12587 = vmatmul.mubr.msk.bf16.gmra.mrb[28].mxu1 %vm789_vm3, %v11027_v10  ;;  %v7442_v10 = vrot.slane %v11654_v30, 6  ;;  %v7450_v33 = vsel %vm14125_vm2, %v7448_v29, %v7449_v23  ;;  %v11001_v30 = vld [vmem:[%s14122_s18 + $0x224] sm:$0xf]  ;;  %v11681_v5 = vrot.slane %v11661_v45, 10  ;;  %v11664_v34 = vld [vmem:[%s14122_s18 + $0x220] sm:$0xc] }
 0x158   : > { %12892 = vmatprep.mubr.msk.bf16.mxu0 %vm789_vm3, %v11690_v35  ;;  %v3289_v35 = vrot.slane %v10989_v52, 6  ;;  %12590 = vmatprep.mubr.msk.bf16.mxu1 %vm789_vm3, %v11028_v31  ;;  %v11693_v26 = vcombine.low %v7426_v2, %v7429_v22  ;;  %v3303_v52 = vrot.slane %v10995_v56, 6  ;;  %v10999_v31 = vld [vmem:[%s14122_s18 + $0x214] sm:$0x3]  ;;  %v3306_v2 = vrot.slane %v10996_v28, 6 }
 0x159   : > { %v7443_v32 = vsel %vm14125_vm2, %v7441_v48, %v7442_v10  ;;  %v11680_v22 = vrot.slane %v11658_v11, 10  ;;  %v11696_v15 = vcombine.low %v7447_v47, %v7450_v33  ;;  %v7462_v8 = vrot.slane %v7460_v62, 4  ;;  %v11666_v48 = vld [vmem:[%s14122_s18 + $0x228] sm:$0x3]  ;;  %v11052_v29 = vld [vmem:[%s14122_s18 + $0xf8] sm:$0xe] }
 0x15a   : > { %v3291_v19 = vrot.slane %v3289_v35, 4  ;;  %v3290_v46 = vsel %vm14125_vm2, %v11014_v44, %v3289_v35  ;;  %v11695_v63 = vcombine.low %v7440_v49, %v7443_v32  ;;  %v3305_v1 = vrot.slane %v3303_v52, 4  ;;  %v11002_v21 = vld [vmem:[%s14122_s18 + $0x228] sm:$0x3]  ;;  %v11056_v11 = vld [vmem:[%s14122_s18 + $0x110] sm:$0xf] }
 0x15b   : > { %v7456_v35 = vrot.slane %v11660_v55, 6  ;;  %v7463_v12 = vrot.slane %v11663_v43, 6  ;;  %v11017_v42 = vrot.slane %v10997_v50, 10  ;;  %v3304_v16 = vsel %vm14125_vm2, %v11016_v0, %v3303_v52  ;;  %v11059_v33 = vld [vmem:[%s14122_s18 + $0x124] sm:$0xf] }
 0x15c   : > { %v3293_v39 = vsel %vm14125_vm2, %v3291_v19, %v3292_v20  ;;  %v3307_v53 = vsel %vm14125_vm2, %v3305_v1, %v3306_v2  ;;  %v11000_v20 = vld [vmem:[%s14122_s18 + $0x220] sm:$0xc]  ;;  %v3317_v19 = vrot.slane %v11001_v30, 6  ;;  %v3714_v23 = vrot.slane %v11053_v18, 5  ;;  %v11057_v43 = vld [vmem:[%s14122_s18 + $0x114] sm:$0x1] }
 0x15d   : > { %v11031_v58 = vcombine.low %v3290_v46, %v3293_v39  ;;  %v3311_v10 = vsel %vm14125_vm2, %v11017_v42, %v3310_v54  ;;  %v11033_v25 = vcombine.low %v3304_v16, %v3307_v53  ;;  %v11682_v46 = vrot.slane %v11664_v34, 10  ;;  %v11058_v2 = vld [vmem:[%s14122_s18 + $0x120] sm:$0xe]  ;;  %v11065_v42 = vld [vmem:[%s14122_s18 + $0x14c] sm:$0xf]  ;;  %v13964_v34 = vld [vmem:[%s14122_s18 + $0x110] sm:$0xff]  }
 0x15e   : > { %v7470_v28 = vrot.slane %v11666_v48, 6  ;;  %v11018_v39 = vrot.slane %v11000_v20, 10  ;;  %v3319_v32 = vrot.slane %v3317_v19, 4  ;;  %v3320_v52 = vrot.slane %v11002_v21, 6  ;;  %v13963_v1 = vld [vmem:[%s14122_s18 + $0xfc] sm:$0xff]  }
 0x15f   : > { %12893 = vmatmul.mubr.msk.bf16.gmra.mrb[28].mxu0 %vm789_vm3, %v11691_v24  ;;  %v3299_v24 = vrot.slane %v10993_v13, 6  ;;  %12591 = vmatmul.mubr.msk.bf16.gmra.mrb[32].mxu1 %vm789_vm3, %v11029_v9  ;;  %v11665_v13 = vld [vmem:[%s14122_s18 + $0x224] sm:$0xf]  ;;  %v3312_v9 = vrot.slane %v3310_v54, 4  ;;  %v11100_v55 = vrot.slane %v11052_v29, 9  ;;  %v3721_v0 = vrot.slane %v11056_v11, 5 }
 0x160   : > { %12896 = vmatprep.mubr.msk.bf16.mxu0 %vm789_vm3, %v11692_v40  ;;  %v7453_v40 = vrot.slane %v15963_v37, 6  ;;  %12594 = vmatprep.mubr.msk.bf16.mxu1 %vm789_vm3, %v11030_v27  ;;  %v7467_v56 = vrot.slane %v11665_v13, 6  ;;  %v7461_v37 = vsel %vm14125_vm2, %v11681_v5, %v7460_v62  ;;  %v3318_v62 = vsel %vm14125_vm2, %v11018_v39, %v3317_v19  ;;  %v11062_v13 = vld [vmem:[%s14122_s18 + $0x138] sm:$0xf]  ;;  %v11061_v16 = vld [vmem:[%s14122_s18 + $0x134] sm:$0xe] }
 0x161   : > { %v3300_v59 = vsel %vm14125_vm2, %v3298_v36, %v3299_v24  ;;  %v11054_v36 = vld [vmem:[%s14122_s18 + $0x100] sm:$0x1]  ;;  %v3715_v54 = vsel %vm15091_vm10, %v11100_v55, %v3714_v23  ;;  %v3723_v30 = vrot.slane %v3721_v0, 4  ;;  %v11102_v5 = vrot.slane %v11058_v2, 9  ;;  %v11063_v18 = vld [vmem:[%s14122_s18 + $0x13c] sm:$0x1] }
 0x162   : > { %v7455_v61 = vrot.slane %v7453_v40, 4  ;;  %v11032_v51 = vcombine.low %v3297_v57, %v3300_v59  ;;  %v7454_v27 = vsel %vm14125_vm2, %v11680_v22, %v7453_v40  ;;  %v7469_v49 = vrot.slane %v7467_v56, 4  ;;  %v11055_v59 = vld [vmem:[%s14122_s18 + $0x10c] sm:$0xe]  ;;  %v11060_v22 = vld [vmem:[%s14122_s18 + $0x128] sm:$0x1] }
 0x163   : > { %v3716_v40 = vrot.slane %v3714_v23, 4  ;;  %v3717_v47 = vrot.slane %v11054_v36, 5  ;;  %v7468_v50 = vsel %vm14125_vm2, %v11682_v46, %v7467_v56  ;;  %v3321_v57 = vsel %vm14125_vm2, %v3319_v32, %v3320_v52  ;;  %v11064_v56 = vld [vmem:[%s14122_s18 + $0x148] sm:$0xe]  ;;  %v11068_v23 = vld [vmem:[%s14122_s18 + $0x160] sm:$0xf] }
 0x164   : > { %v7457_v44 = vsel %vm14125_vm2, %v7455_v61, %v7456_v35  ;;  %v11101_v61 = vrot.slane %v11055_v59, 9  ;;  %v3735_v53 = vrot.slane %v11062_v13, 5  ;;  %v3742_v20 = vrot.slane %v11065_v42, 5  ;;  %v11071_v46 = vld [vmem:[%s14122_s18 + $0x174] sm:$0xf]  ;;  %v13966_v39 = vld [vmem:[%s14122_s18 + $0x138] sm:$0xff]  }
 0x165   : > { %v11697_v6 = vcombine.low %v7454_v27, %v7457_v44  ;;  %v3718_v45 = vsel %vm15091_vm10, %v3716_v40, %v3717_v47  ;;  %v8288_v19 = vsel %vm625_vm0, %v15848_v17, 0  ;;  %v3738_v29 = vrot.slane %v11063_v18, 5  ;;  %v11067_v17 = vld [vmem:[%s14122_s18 + $0x15c] sm:$0xe]  ;;  %v11069_v55 = vld [vmem:[%s14122_s18 + $0x164] sm:$0x1] }
 0x166   : > { %v11117_v35 = vcombine.low %v3715_v54, %v3718_v45  ;;  %v3737_v21 = vrot.slane %v3735_v53, 4  ;;  %v3744_v36 = vrot.slane %v3742_v20, 4  ;;  %v11070_v40 = vld [vmem:[%s14122_s18 + $0x170] sm:$0xe]  ;;  %v3756_v47 = vrot.slane %v11071_v46, 5  ;;  %v13969_v42 = vld [vmem:[%s14122_s18 + $0x174] sm:$0xff]  }
 0x167   : > { %12897 = vmatmul.mubr.msk.bf16.gmra.mrb[32].mxu0 %vm789_vm3, %v11693_v26  ;;  %v3313_v26 = vrot.slane %v10999_v31, 6  ;;  %12595 = vmatmul.mubr.msk.bf16.gmra.mrb[36].mxu1 %vm789_vm3, %v11031_v58  ;;  %v7471_v31 = vsel %vm14125_vm2, %v7469_v49, %v7470_v28  ;;  %v3728_v58 = vrot.slane %v11059_v33, 5  ;;  %v16080_v49 = vld [vmem:[%s17273_s4 + $0xe] sm:$0x3]  ;;  %v11072_v33 = vld [vmem:[%s14122_s18 + $0x178] sm:$0x1] }
 0x168   : > { %12900 = vmatprep.mubr.msk.bf16.mxu0 %vm789_vm3, %v11694_v60  ;;  %12598 = vmatprep.mubr.msk.bf16.mxu1 %vm789_vm3, %v11032_v51  ;;  %v7464_v60 = vsel %vm14125_vm2, %v7462_v8, %v7463_v12  ;;  %v3724_v51 = vrot.slane %v11057_v43, 5  ;;  %v3731_v12 = vrot.slane %v11060_v22, 5  ;;  %v3739_v11 = vsel %vm15091_vm10, %v3737_v21, %v3738_v29  ;;  %v13970_v29 = vld [vmem:[%s14122_s18 + $0x188] sm:$0xff]  }
 0x169   : > { %v3314_v14 = vsel %vm14125_vm2, %v3312_v9, %v3313_v26  ;;  %v11698_v24 = vcombine.low %v7461_v37, %v7464_v60  ;;  %v3730_v8 = vrot.slane %v3728_v58, 4  ;;  %v3722_v9 = vsel %vm15091_vm10, %v11101_v61, %v3721_v0  ;;  %v11066_v37 = vld [vmem:[%s14122_s18 + $0x150] sm:$0x1] }
 0x16a   : > { %v11034_v38 = vcombine.low %v3311_v10, %v3314_v14  ;;  %v3725_v26 = vsel %vm15091_vm10, %v3723_v30, %v3724_v51  ;;  %v3729_v27 = vsel %vm15091_vm10, %v11102_v5, %v3728_v58  ;;  %v13965_v10 = vld [vmem:[%s14122_s18 + $0x124] sm:$0xff]   ;;  %v11103_v14 = vrot.slane %v11061_v16, 9  ;;  %v11075_v30 = vld [vmem:[%s14122_s18 + $0x18c] sm:$0x1] }
 0x16b   : > { %v3732_v44 = vsel %vm15091_vm10, %v3730_v8, %v3731_v12  ;;  %v11118_v60 = vcombine.low %v3722_v9, %v3725_v26  ;;  %v3752_v0 = vrot.slane %v11069_v55, 5  ;;  %v11106_v54 = vrot.slane %v11070_v40, 9  ;;  %v11074_v58 = vld [vmem:[%s14122_s18 + $0x188] sm:$0xf]  ;;  %v13968_v5 = vld [vmem:[%s14122_s18 + $0x160] sm:$0xff]  }
 0x16c   : > { %v11119_v48 = vcombine.low %v3729_v27, %v3732_v44  ;;  %v3736_v28 = vsel %vm15091_vm10, %v11103_v14, %v3735_v53  ;;  %v3758_v45 = vrot.slane %v3756_v47, 4  ;;  %v3759_v43 = vrot.slane %v11072_v33, 5  ;;  %v11076_v8 = vld [vmem:[%s14122_s18 + $0x198] sm:$0xe]  ;;  %v11078_v12 = vld [vmem:[%s14122_s18 + $0x1a0] sm:$0x1] }
 0x16d   : > { %v3766_v18 = vrot.slane %v11075_v30, 5  ;;  %v11108_v53 = vrot.slane %v11076_v8, 9  ;;  %v3773_v44 = vrot.slane %v11078_v12, 5  ;;  %v11081_v14 = vld [vmem:[%s14122_s18 + $0x1b4] sm:$0x1] }
 0x16e   : > { %v3760_v61 = vsel %vm15091_vm10, %v3758_v45, %v3759_v43  ;;  %v13973_v43 = vld [vmem:[%s14122_s18 + $0x1c4] sm:$0xff]   ;;  %v11095_v30 = vld [vmem:[%s14122_s18 + $0x214] sm:$0xf] }
 0x16f   : > { %12901 = vmatmul.mubr.msk.bf16.gmra.mrb[36].mxu0 %vm789_vm3, %v11695_v63  ;;  %12599 = vmatmul.mubr.msk.bf16.gmra.mrb[40].mxu1 %vm789_vm3, %v11033_v25  ;;  %v11699_v63 = vcombine.low %v7468_v50, %v7471_v31  ;;  %v4426_v25 = vsel %vm625_vm0, %v15838_v7, 0  ;;  %v16085_v7 = vld [vmem:[%s17275_s6 + $0xe] sm:$0x3]  ;;  %v11120_v50 = vcombine.low %v3736_v28, %v3739_v11  ;;  %v3780_v28 = vrot.slane %v11081_v14, 5 }
 0x170   : > { %12904 = vmatprep.mubr.msk.bf16.mxu0 %vm789_vm3, %v11696_v15  ;;  %12602 = vmatprep.mubr.msk.bf16.mxu1 %vm789_vm3, %v11034_v38  ;;  %v11035_v15 = vcombine.low %v3318_v62, %v3321_v57  ;;  %v3749_v38 = vrot.slane %v11068_v23, 5  ;;  %v13967_v31 = vld [vmem:[%s14122_s18 + $0x14c] sm:$0xff]   ;;  %v11105_v62 = vrot.slane %v11067_v17, 9  ;;  %v11082_v23 = vld [vmem:[%s14122_s18 + $0x1c0] sm:$0xe] }
 0x171   : > { %v11110_v11 = vrot.slane %v11082_v23, 9  ;;  %v11150_v14 = vld [vmem:[%s14122_s18 + $0x16c] sm:$0xf] }
 0x172   : > { %v3751_v59 = vrot.slane %v3749_v38, 4  ;;  %v3750_v2 = vsel %vm15091_vm10, %v11105_v62, %v3749_v38  ;;  %v11087_v62 = vld [vmem:[%s14122_s18 + $0x1dc] sm:$0x1] }
 0x174   : > { %v3753_v22 = vsel %vm15091_vm10, %v3751_v59, %v3752_v0  ;;  %v13972_v59 = vld [vmem:[%s14122_s18 + $0x1b0] sm:$0xff]   ;;  %v11088_v0 = vld [vmem:[%s14122_s18 + $0x1e8] sm:$0xe] }
 0x175   : > { %v11122_v13 = vcombine.low %v3750_v2, %v3753_v22  ;;  %v3794_v22 = vrot.slane %v11087_v62, 5  ;;  %v11156_v62 = vld [vmem:[%s14122_s18 + $0x194] sm:$0xf] }
 0x177   : > { %12905 = vmatmul.mubr.msk.bf16.gmra.mrb[40].mxu0 %vm789_vm3, %v11697_v6  ;;  %12603 = vmatmul.mubr.msk.bf16.gmra.mrb[44].mxu1 %vm789_vm3, %v11035_v15  ;;  %v11104_v6 = vrot.slane %v11064_v56, 9  ;;  %v3763_v15 = vrot.slane %v11074_v58, 5 }
 0x178   : > { %12908 = vmatprep.mubr.msk.bf16.mxu0 %vm789_vm3, %v11698_v24  ;;  %12608 = vmatprep.mubr.msk.bf16.mxu1 %vm789_vm3, %v11117_v35  ;;  %v3745_v24 = vrot.slane %v11066_v37, 5  ;;  %v11073_v35 = vld [vmem:[%s14122_s18 + $0x184] sm:$0xe] }
 0x179   : > { %v3743_v32 = vsel %vm15091_vm10, %v11104_v6, %v3742_v20  ;;  %v11107_v26 = vrot.slane %v11073_v35, 9  ;;  %v3765_v16 = vrot.slane %v3763_v15, 4  ;;  %v11080_v20 = vld [vmem:[%s14122_s18 + $0x1b0] sm:$0xf]  ;;  %v11092_v35 = vld [vmem:[%s14122_s18 + $0x200] sm:$0xf] }
 0x17a   : > { %v3746_v52 = vsel %vm15091_vm10, %v3744_v36, %v3745_v24  ;;  %v13971_v36 = vld [vmem:[%s14122_s18 + $0x19c] sm:$0xff]   ;;  %v3805_v8 = vrot.slane %v11092_v35, 5 }
 0x17b   : > { %v11121_v57 = vcombine.low %v3743_v32, %v3746_v52  ;;  %v3764_v56 = vsel %vm15091_vm10, %v11107_v26, %v3763_v15  ;;  %v3767_v37 = vsel %vm15091_vm10, %v3765_v16, %v3766_v18  ;;  %v11086_v32 = vld [vmem:[%s14122_s18 + $0x1d8] sm:$0xf]  ;;  %v11089_v52 = vld [vmem:[%s14122_s18 + $0x1ec] sm:$0xf]  ;;  %v11112_v15 = vrot.slane %v11088_v0, 9 }
 0x17c   : > { %v11124_v6 = vcombine.low %v3764_v56, %v3767_v37  ;;  %v3812_v26 = vrot.slane %v11095_v30, 5  ;;  %v13974_v16 = vld [vmem:[%s14122_s18 + $0x1d8] sm:$0xff]   ;;  %v11094_v18 = vld [vmem:[%s14122_s18 + $0x210] sm:$0xe]  ;;  %v3807_v56 = vrot.slane %v3805_v8, 4 }
 0x17f   : > { %12909 = vmatmul.mubr.msk.bf16.gmra.mrb[44].mxu0 %vm789_vm3, %v11699_v63  ;;  %12609 = vmatmul.mubr.msk.bf16.vlgmr.msra.gmra.mrb[16].mxu1 %vm789_vm3, %v11118_v60  ;;  %v11077_v63 = vld [vmem:[%s14122_s18 + $0x19c] sm:$0xf]  ;;  %v3777_v60 = vrot.slane %v11080_v20, 5 }
 0x180   : > { %12914 = vmatprep.mubr.msk.bf16.mxu0 %vm789_vm3, %v13963_v1  ;;  %12641 = vmatpush3.bf16.msra.mxu1 %v4426_v25  ;;  %v3757_v1 = vsel %vm15091_vm10, %v11106_v54, %v3756_v47  ;;  %v3770_v51 = vrot.slane %v11077_v63, 5  ;;  %v11084_v25 = vld [vmem:[%s14122_s18 + $0x1c8] sm:$0x1]  ;;  %v3791_v47 = vrot.slane %v11086_v32, 5  ;;  %v11090_v54 = vld [vmem:[%s14122_s18 + $0x1f0] sm:$0x1] }
 0x181   : > { %12612 = vmatprep.mubr.msk.bf16.mxu1 %vm789_vm3, %v11119_v48  ;;  %13635 = vmatprep.subr.msk.bf16.mxu1 %vm625_vm0, %v16080_v49  ;;  %v11123_v9 = vcombine.low %v3757_v1, %v3760_v61  ;;  %v3779_v17 = vrot.slane %v3777_v60, 4  ;;  %v3801_v61 = vrot.slane %v11090_v54, 5 }
 0x182   : > { %v3772_v27 = vrot.slane %v3770_v51, 4  ;;  %v3793_v2 = vrot.slane %v3791_v47, 4 }
 0x183   : > { %v3781_v40 = vsel %vm15091_vm10, %v3779_v17, %v3780_v28  ;;  %v13976_v17 = vld [vmem:[%s14122_s18 + $0x200] sm:$0xff]   ;;  %v11149_v28 = vld [vmem:[%s14122_s18 + $0x168] sm:$0x8] }
 0x184   : > { %v3774_v48 = vsel %vm15091_vm10, %v3772_v27, %v3773_v44  ;;  %v13975_v44 = vld [vmem:[%s14122_s18 + $0x1ec] sm:$0xff]  }
 0x187   : > { %12915 = vmatmul.mubr.msk.bf16.vlgmr.msra.gmra.mrb[16].mxu0 %vm789_vm3, %v13964_v34  ;;  %12613 = vmatmul.mubr.msk.bf16.gmra.mrb[20].mxu1 %vm789_vm3, %v11120_v50  ;;  %v11083_v34 = vld [vmem:[%s14122_s18 + $0x1c4] sm:$0xf] }
 0x188   : > { %12947 = vmatpush3.bf16.msra.mxu0 %v8288_v19  ;;  %12918 = vmatprep.mubr.msk.bf16.mxu0 %vm789_vm3, %v13965_v10  ;;  %v3771_v19 = vsel %vm15091_vm10, %v11108_v53, %v3770_v51  ;;  %v11079_v10 = vld [vmem:[%s14122_s18 + $0x1ac] sm:$0xe]  ;;  %v3784_v21 = vrot.slane %v11083_v34, 5  ;;  %v11096_v53 = vld [vmem:[%s14122_s18 + $0x218] sm:$0x1] }
 0x189   : > { %13644 = vmatprep.subr.msk.bf16.mxu0 %vm625_vm0, %v16085_v7  ;;  %12616 = vmatprep.mubr.msk.bf16.mxu1 %vm789_vm3, %v11121_v57  ;;  %v11125_v24 = vcombine.low %v3771_v19, %v3774_v48  ;;  %v11109_v46 = vrot.slane %v11079_v10, 9  ;;  %v3798_v57 = vrot.slane %v11089_v52, 5  ;;  %v3814_v19 = vrot.slane %v3812_v26, 4  ;;  %v11098_v10 = vld [vmem:[%s14122_s18 + $0x228] sm:$0xf] }
 0x18a   : > { %v3786_v38 = vrot.slane %v3784_v21, 4  ;;  %v3785_v33 = vsel %vm15091_vm10, %v11110_v11, %v3784_v21  ;;  %v3815_v48 = vrot.slane %v11096_v53, 5  ;;  %v3819_v23 = vrot.slane %v11098_v10, 5  ;;  %v11151_v11 = vld [vmem:[%s14122_s18 + $0x170] sm:$0x7] }
 0x18b   : > { %v3778_v55 = vsel %vm15091_vm10, %v11109_v46, %v3777_v60  ;;  %v3800_v1 = vrot.slane %v3798_v57, 4  ;;  %v3799_v12 = vsel %vm15091_vm10, %v11112_v15, %v3798_v57  ;;  %v11114_v60 = vrot.slane %v11094_v18, 9  ;;  %v11157_v15 = vld [vmem:[%s14122_s18 + $0x198] sm:$0x7]  ;;  %v11158_v18 = vld [vmem:[%s14122_s18 + $0x1a4] sm:$0x8] }
 0x18c   : > { %v11126_v45 = vcombine.low %v3778_v55, %v3781_v40  ;;  %v4217_v46 = vrot.slane %v11150_v14, 7  ;;  %v3821_v55 = vrot.slane %v3819_v23, 4  ;;  %v8790_v10 = vsel %vm625_vm0, %v16085_v7, 0  ;;  %v16262_v7 = vld [vmem:[%s17275_s6 + $0x10] sm:$0x3] }
 0x18d   : > { %v11200_v14 = vrot.slane %v11158_v18, 11 }
 0x18f   : > { %12919 = vmatmul.mubr.msk.bf16.gmra.mrb[20].mxu0 %vm789_vm3, %v13966_v39  ;;  %12617 = vmatmul.mubr.msk.bf16.gmra.mrb[24].mxu1 %vm789_vm3, %v11122_v13  ;;  %v3787_v39 = vrot.slane %v11084_v25, 5  ;;  %v3802_v13 = vsel %vm15091_vm10, %v3800_v1, %v3801_v61  ;;  %v3813_v25 = vsel %vm15091_vm10, %v11114_v60, %v3812_v26  ;;  %v13979_v61 = vld [vmem:[%s14122_s18 + $0x1e0] sm:$0xff]  }
 0x190   : > { %12922 = vmatprep.mubr.msk.bf16.mxu0 %vm789_vm3, %v13967_v31  ;;  %12620 = vmatprep.mubr.msk.bf16.mxu1 %vm789_vm3, %v11123_v9  ;;  %v11085_v31 = vld [vmem:[%s14122_s18 + $0x1d4] sm:$0xe]  ;;  %v11093_v9 = vld [vmem:[%s14122_s18 + $0x204] sm:$0x1]  ;;  %v11129_v20 = vcombine.low %v3799_v12, %v3802_v13  ;;  %v4234_v13 = vrot.slane %v11157_v15, 7 }
 0x191   : > { %v3788_v50 = vsel %vm15091_vm10, %v3786_v38, %v3787_v39  ;;  %v11111_v63 = vrot.slane %v11085_v31, 9  ;;  %v3808_v37 = vrot.slane %v11093_v9, 5  ;;  %v13977_v39 = vld [vmem:[%s14122_s18 + $0x214] sm:$0xff]   ;;  %v11153_v31 = vld [vmem:[%s14122_s18 + $0x180] sm:$0xf] }
 0x192   : > { %v11127_v58 = vcombine.low %v3785_v33, %v3788_v50  ;;  %v4219_v33 = vrot.slane %v4217_v46, 4  ;;  %v4220_v50 = vrot.slane %v11151_v11, 7  ;;  %v4224_v0 = vrot.slane %v11153_v31, 7  ;;  %v11162_v9 = vld [vmem:[%s14122_s18 + $0x1bc] sm:$0xf] }
 0x193   : > { %v3792_v51 = vsel %vm15091_vm10, %v11111_v63, %v3791_v47  ;;  %v11197_v47 = vrot.slane %v11149_v28, 11  ;;  %v4231_v63 = vrot.slane %v11156_v62, 7  ;;  %v11163_v60 = vld [vmem:[%s14122_s18 + $0x1c0] sm:$0x7]  ;;  %v13983_v62 = vld [vmem:[%s14122_s18 + $0x230] sm:$0xff]  }
 0x195   : > { %v4218_v54 = vsel %vm14271_vm6, %v11197_v47, %v4217_v46  ;;  %v4233_v12 = vrot.slane %v4231_v63, 4  ;;  %v11165_v46 = vld [vmem:[%s14122_s18 + $0x1d0] sm:$0xf]  ;;  %v13982_v47 = vld [vmem:[%s14122_s18 + $0x21c] sm:$0xff]  }
 0x197   : > { %12923 = vmatmul.mubr.msk.bf16.gmra.mrb[24].mxu0 %vm789_vm3, %v13968_v5  ;;  %12621 = vmatmul.mubr.msk.bf16.gmra.mrb[28].mxu1 %vm789_vm3, %v11124_v6  ;;  %v3795_v5 = vsel %vm15091_vm10, %v3793_v2, %v3794_v22  ;;  %v3816_v6 = vsel %vm15091_vm10, %v3814_v19, %v3815_v48  ;;  %v13978_v2 = vld [vmem:[%s14122_s18 + $0x228] sm:$0xff]   ;;  %v11155_v22 = vld [vmem:[%s14122_s18 + $0x190] sm:$0x8]  ;;  %v4928_v48 = vsel %vm625_vm0, %v16080_v49, 0  ;;  %v16256_v49 = vld [vmem:[%s17273_s4 + $0x10] sm:$0x3] }
 0x198   : > { %12926 = vmatprep.mubr.msk.bf16.mxu0 %vm789_vm3, %v13969_v42  ;;  %12624 = vmatprep.mubr.msk.bf16.mxu1 %vm789_vm3, %v11125_v24  ;;  %v11091_v42 = vld [vmem:[%s14122_s18 + $0x1fc] sm:$0xe]  ;;  %v11128_v27 = vcombine.low %v3792_v51, %v3795_v5  ;;  %v11099_v24 = vld [vmem:[%s14122_s18 + $0x22c] sm:$0x1]  ;;  %v11131_v32 = vcombine.low %v3813_v25, %v3816_v6  ;;  %v4226_v51 = vrot.slane %v4224_v0, 4 }
 0x199   : > { %v11113_v34 = vrot.slane %v11091_v42, 9  ;;  %v3822_v40 = vrot.slane %v11099_v24, 5  ;;  %v11159_v42 = vld [vmem:[%s14122_s18 + $0x1a8] sm:$0xf]  ;;  %v4248_v24 = vrot.slane %v11163_v60, 7 }
 0x19a   : > { %v4238_v53 = vrot.slane %v11159_v42, 7 }
 0x19b   : > { %v3806_v21 = vsel %vm15091_vm10, %v11113_v34, %v3805_v8  ;;  %v11199_v8 = vrot.slane %v11155_v22, 11  ;;  %v11161_v34 = vld [vmem:[%s14122_s18 + $0x1b8] sm:$0x8] }
 0x19c   : > { %v11201_v6 = vrot.slane %v11161_v34, 11  ;;  %v4239_v28 = vsel %vm14271_vm6, %v11200_v14, %v4238_v53 }
 0x19f   : > { %12927 = vmatmul.mubr.msk.bf16.gmra.mrb[28].mxu0 %vm789_vm3, %v13970_v29  ;;  %12625 = vmatmul.mubr.msk.bf16.gmra.mrb[32].mxu1 %vm789_vm3, %v11126_v45  ;;  %v3809_v29 = vsel %vm15091_vm10, %v3807_v56, %v3808_v37  ;;  %v4221_v45 = vsel %vm14271_vm6, %v4219_v33, %v4220_v50  ;;  %v4245_v56 = vrot.slane %v11162_v9, 7  ;;  %v13980_v37 = vld [vmem:[%s14122_s18 + $0x1f4] sm:$0xff]   ;;  %v11167_v33 = vld [vmem:[%s14122_s18 + $0x1e0] sm:$0x8]  ;;  %v11169_v50 = vld [vmem:[%s14122_s18 + $0x1e8] sm:$0x7] }
 0x1a0   : > { %12930 = vmatprep.mubr.msk.bf16.mxu0 %vm789_vm3, %v13971_v36  ;;  %12628 = vmatprep.mubr.msk.bf16.mxu1 %vm789_vm3, %v11127_v58  ;;  %v11097_v36 = vld [vmem:[%s14122_s18 + $0x224] sm:$0xe]  ;;  %v11130_v38 = vcombine.low %v3806_v21, %v3809_v29  ;;  %v11214_v35 = vcombine.low %v4218_v54, %v4221_v45  ;;  %v13981_v29 = vld [vmem:[%s14122_s18 + $0x208] sm:$0xff]   ;;  %v11203_v45 = vrot.slane %v11167_v33, 11  ;;  %v13985_v9 = vld [vmem:[%s14122_s18 + $0x258] sm:$0xff]  }
 0x1a1   : > { %v11115_v52 = vrot.slane %v11097_v36, 9  ;;  %v11154_v58 = vld [vmem:[%s14122_s18 + $0x184] sm:$0x7]  ;;  %v4247_v36 = vrot.slane %v4245_v56, 4  ;;  %v11184_v33 = vld [vmem:[%s14122_s18 + $0x24c] sm:$0x7] }
 0x1a2   : > { %v4227_v5 = vrot.slane %v11154_v58, 7  ;;  %v4262_v58 = vrot.slane %v11169_v50, 7  ;;  %v11185_v50 = vld [vmem:[%s14122_s18 + $0x258] sm:$0x8] }
 0x1a3   : > { %v3820_v57 = vsel %vm15091_vm10, %v11115_v52, %v3819_v23  ;;  %v4240_v23 = vrot.slane %v4238_v53, 4  ;;  %v11164_v52 = vld [vmem:[%s14122_s18 + $0x1cc] sm:$0x8] }
 0x1a7   : > { %12931 = vmatmul.mubr.msk.bf16.gmra.mrb[32].mxu0 %vm789_vm3, %v13972_v59  ;;  %12629 = vmatmul.mubr.msk.bf16.gmra.mrb[36].mxu1 %vm789_vm3, %v11128_v27  ;;  %v3823_v59 = vsel %vm15091_vm10, %v3821_v55, %v3822_v40  ;;  %v4232_v27 = vsel %vm14271_vm6, %v11199_v8, %v4231_v63  ;;  %v11166_v55 = vld [vmem:[%s14122_s18 + $0x1d4] sm:$0x7]  ;;  %v11171_v63 = vld [vmem:[%s14122_s18 + $0x1f8] sm:$0xf] }
 0x1a8   : > { %12934 = vmatprep.mubr.msk.bf16.mxu0 %vm789_vm3, %v13973_v43  ;;  %12632 = vmatprep.mubr.msk.bf16.mxu1 %vm789_vm3, %v11129_v20  ;;  %v11152_v43 = vld [vmem:[%s14122_s18 + $0x17c] sm:$0x8]  ;;  %v11132_v1 = vcombine.low %v3820_v57, %v3823_v59  ;;  %v11160_v20 = vld [vmem:[%s14122_s18 + $0x1ac] sm:$0x7]  ;;  %v11202_v59 = vrot.slane %v11164_v52, 11  ;;  %v4255_v54 = vrot.slane %v11166_v55, 7 }
 0x1a9   : > { %v11198_v30 = vrot.slane %v11152_v43, 11  ;;  %v4241_v25 = vrot.slane %v11160_v20, 7 }
 0x1ab   : > { %v4225_v26 = vsel %vm14271_vm6, %v11198_v30, %v4224_v0  ;;  %v4242_v11 = vsel %vm14271_vm6, %v4240_v23, %v4241_v25  ;;  %v13986_v25 = vld [vmem:[%s14122_s18 + $0x26c] sm:$0xff]  }
 0x1ac   : > { %v11217_v31 = vcombine.low %v4239_v28, %v4242_v11  ;;  %v11183_v28 = vld [vmem:[%s14122_s18 + $0x248] sm:$0xf] }
 0x1af   : > { %12935 = vmatmul.mubr.msk.bf16.gmra.mrb[36].mxu0 %vm789_vm3, %v13974_v16  ;;  %12633 = vmatmul.mubr.msk.bf16.gmra.mrb[40].mxu1 %vm789_vm3, %v11130_v38  ;;  %v4228_v16 = vsel %vm14271_vm6, %v4226_v51, %v4227_v5  ;;  %v4252_v38 = vrot.slane %v11165_v46, 7  ;;  %v11173_v5 = vld [vmem:[%s14122_s18 + $0x208] sm:$0x8] }
 0x1b0   : > { %12938 = vmatprep.mubr.msk.bf16.mxu0 %vm789_vm3, %v13975_v44  ;;  %12636 = vmatprep.mubr.msk.bf16.mxu1 %vm789_vm3, %v11131_v32  ;;  %v4235_v44 = vsel %vm14271_vm6, %v4233_v12, %v4234_v13  ;;  %v11215_v19 = vcombine.low %v4225_v26, %v4228_v16  ;;  %v4249_v32 = vsel %vm14271_vm6, %v4247_v36, %v4248_v24  ;;  %v13984_v12 = vld [vmem:[%s14122_s18 + $0x244] sm:$0xff]   ;;  %v11175_v13 = vld [vmem:[%s14122_s18 + $0x210] sm:$0x7] }
 0x1b1   : > { %v11216_v21 = vcombine.low %v4232_v27, %v4235_v44  ;;  %v4254_v0 = vrot.slane %v4252_v38, 4  ;;  %v4253_v22 = vsel %vm14271_vm6, %v11202_v59, %v4252_v38  ;;  %v11205_v27 = vrot.slane %v11173_v5, 11  ;;  %v11177_v44 = vld [vmem:[%s14122_s18 + $0x220] sm:$0xf]  ;;  %v13988_v59 = vld [vmem:[%s14122_s18 + $0x294] sm:$0xff]  }
 0x1b2   : > { %v4276_v34 = vrot.slane %v11175_v13, 7  ;;  %v13987_v24 = vld [vmem:[%s14122_s18 + $0x280] sm:$0xff]  }
 0x1b3   : > { %v4256_v15 = vsel %vm14271_vm6, %v4254_v0, %v4255_v54 }
 0x1b4   : > { %v11219_v42 = vcombine.low %v4253_v22, %v4256_v15  ;;  %v11209_v22 = vrot.slane %v11185_v50, 11  ;;  %v11189_v15 = vld [vmem:[%s14122_s18 + $0x270] sm:$0xf] }
 0x1b5   : > { %v4308_v5 = vrot.slane %v11189_v15, 7  ;;  %v11253_v15 = vld [vmem:[%s14122_s18 + $0x198] sm:$0xf] }
 0x1b7   : > { %12939 = vmatmul.mubr.msk.bf16.gmra.mrb[40].mxu0 %vm789_vm3, %v13976_v17  ;;  %12637 = vmatmul.mubr.msk.bf16.gmra.mrb[44].mxu1 %vm789_vm3, %v11132_v1  ;;  %v11168_v17 = vld [vmem:[%s14122_s18 + $0x1e4] sm:$0xf]  ;;  %v11170_v1 = vld [vmem:[%s14122_s18 + $0x1f4] sm:$0x8] }
 0x1b8   : > { %12942 = vmatprep.mubr.msk.bf16.mxu0 %vm789_vm3, %v13977_v39  ;;  %12642 = vmatprep.mubr.msk.bf16.mxu1 %vm789_vm3, %v11214_v35  ;;  %v4246_v39 = vsel %vm14271_vm6, %v11201_v6, %v4245_v56  ;;  %v4259_v40 = vrot.slane %v11168_v17, 7  ;;  %v4266_v35 = vrot.slane %v11171_v63, 7  ;;  %v11204_v26 = vrot.slane %v11170_v1, 11  ;;  %v11180_v56 = vld [vmem:[%s14122_s18 + $0x234] sm:$0xf] }
 0x1b9   : > { %v11218_v57 = vcombine.low %v4246_v39, %v4249_v32  ;;  %v4287_v23 = vrot.slane %v11180_v56, 7  ;;  %v11181_v6 = vld [vmem:[%s14122_s18 + $0x238] sm:$0x7]  ;;  %v11186_v32 = vld [vmem:[%s14122_s18 + $0x25c] sm:$0xf] }
 0x1ba   : > { %v4261_v43 = vrot.slane %v4259_v40, 4  ;;  %v4260_v30 = vsel %vm14271_vm6, %v11203_v45, %v4259_v40  ;;  %v4268_v18 = vrot.slane %v4266_v35, 4  ;;  %v4290_v55 = vrot.slane %v11181_v6, 7  ;;  %v13989_v45 = vld [vmem:[%s14122_s18 + $0x2a8] sm:$0xff]  }
 0x1bb   : > { %v4289_v52 = vrot.slane %v4287_v23, 4  ;;  %v4294_v40 = vrot.slane %v11183_v28, 7 }
 0x1bc   : > { %v4263_v51 = vsel %vm14271_vm6, %v4261_v43, %v4262_v58  ;;  %v11187_v43 = vld [vmem:[%s14122_s18 + $0x260] sm:$0x7] }
 0x1bd   : > { %v11220_v16 = vcombine.low %v4260_v30, %v4263_v51  ;;  %v4291_v54 = vsel %vm14271_vm6, %v4289_v52, %v4290_v55  ;;  %v4296_v63 = vrot.slane %v4294_v40, 4  ;;  %v4304_v51 = vrot.slane %v11187_v43, 7  ;;  %v11246_v52 = vld [vmem:[%s14122_s18 + $0x16c] sm:$0xc]  ;;  %v11248_v55 = vld [vmem:[%s14122_s18 + $0x174] sm:$0x3] }
 0x1bf   : > { %12943 = vmatmul.mubr.msk.bf16.gmra.mrb[44].mxu0 %vm789_vm3, %v13978_v2  ;;  %12643 = vmatmul.mubr.msk.bf16.vlgmr.msra.gmra.mrb[16].mxu1 %vm789_vm3, %v11215_v19  ;;  %v11174_v2 = vld [vmem:[%s14122_s18 + $0x20c] sm:$0xf]  ;;  %v11176_v19 = vld [vmem:[%s14122_s18 + $0x21c] sm:$0x8] }
 0x1c0   : > { %12948 = vmatprep.mubr.msk.bf16.mxu0 %vm789_vm3, %v13979_v61  ;;  %12675 = vmatpush3.bf16.msra.mxu1 %v4928_v48  ;;  %v11172_v61 = vld [vmem:[%s14122_s18 + $0x1fc] sm:$0x7]  ;;  %v4273_v8 = vrot.slane %v11174_v2, 7  ;;  %v11178_v48 = vld [vmem:[%s14122_s18 + $0x224] sm:$0x7]  ;;  %v11206_v46 = vrot.slane %v11176_v19, 11 }
 0x1c1   : > { %12646 = vmatprep.mubr.msk.bf16.mxu1 %vm789_vm3, %v11216_v21  ;;  %13636 = vmatprep.subr.msk.bf16.mxu1 %vm625_vm0, %v16256_v49  ;;  %v4269_v53 = vrot.slane %v11172_v61, 7  ;;  %v4283_v17 = vrot.slane %v11178_v48, 7  ;;  %v4297_v2 = vrot.slane %v11184_v33, 7  ;;  %v11192_v61 = vld [vmem:[%s14122_s18 + $0x284] sm:$0xf]  ;;  %v13993_v33 = vld [vmem:[%s14122_s18 + $0x2f8] sm:$0xff]  }
 0x1c2   : > { %v4275_v20 = vrot.slane %v4273_v8, 4  ;;  %v4274_v14 = vsel %vm14271_vm6, %v11205_v27, %v4273_v8  ;;  %v11188_v8 = vld [vmem:[%s14122_s18 + $0x26c] sm:$0x8]  ;;  %v11193_v27 = vld [vmem:[%s14122_s18 + $0x288] sm:$0x7] }
 0x1c3   : > { %v4270_v60 = vsel %vm14271_vm6, %v4268_v18, %v4269_v53  ;;  %v11191_v53 = vld [vmem:[%s14122_s18 + $0x280] sm:$0x8] }
 0x1c4   : > { %v4277_v21 = vsel %vm14271_vm6, %v4275_v20, %v4276_v34  ;;  %v11210_v20 = vrot.slane %v11188_v8, 11  ;;  %v4310_v34 = vrot.slane %v4308_v5, 4  ;;  %v11211_v19 = vrot.slane %v11191_v53, 11  ;;  %v11249_v8 = vld [vmem:[%s14122_s18 + $0x180] sm:$0xc]  ;;  %v13994_v53 = vld [vmem:[%s14122_s18 + $0x30c] sm:$0xff]  }
 0x1c5   : > { %v11222_v11 = vcombine.low %v4274_v14, %v4277_v21  ;;  %v11195_v14 = vld [vmem:[%s14122_s18 + $0x298] sm:$0xf]  ;;  %v11847_v21 = vld [vmem:[%s14122_s18 + $0x1e8] sm:$0xf] }
 0x1c6   : > { %v8581_v28 = vrot.slane %v11847_v21, 6 }
 0x1c7   : > { %12949 = vmatmul.mubr.msk.bf16.vlgmr.msra.gmra.mrb[16].mxu0 %vm789_vm3, %v13980_v37  ;;  %12647 = vmatmul.mubr.msk.bf16.gmra.mrb[20].mxu1 %vm789_vm3, %v11217_v31  ;;  %v4267_v37 = vsel %vm14271_vm6, %v11204_v26, %v4266_v35  ;;  %v13990_v26 = vld [vmem:[%s14122_s18 + $0x2bc] sm:$0xff]  }
 0x1c8   : > { %12981 = vmatpush3.bf16.msra.mxu0 %v8790_v10  ;;  %12952 = vmatprep.mubr.msk.bf16.mxu0 %vm789_vm3, %v13981_v29  ;;  %v4280_v10 = vrot.slane %v11177_v44, 7  ;;  %v11179_v29 = vld [vmem:[%s14122_s18 + $0x230] sm:$0x8]  ;;  %v11221_v36 = vcombine.low %v4267_v37, %v4270_v60 }
 0x1c9   : > { %13645 = vmatprep.subr.msk.bf16.mxu0 %vm625_vm0, %v16262_v7  ;;  %12650 = vmatprep.mubr.msk.bf16.mxu1 %vm789_vm3, %v11218_v57  ;;  %v11207_v39 = vrot.slane %v11179_v29, 11  ;;  %v4301_v57 = vrot.slane %v11186_v32, 7  ;;  %v13991_v44 = vld [vmem:[%s14122_s18 + $0x2d0] sm:$0xff]   ;;  %v13992_v32 = vld [vmem:[%s14122_s18 + $0x2e4] sm:$0xff]  }
 0x1ca   : > { %v4282_v38 = vrot.slane %v4280_v10, 4  ;;  %v4281_v31 = vsel %vm14271_vm6, %v11206_v46, %v4280_v10  ;;  %v4318_v10 = vrot.slane %v11193_v27, 7  ;;  %v11247_v29 = vld [vmem:[%s14122_s18 + $0x170] sm:$0xf]  ;;  %v11196_v46 = vld [vmem:[%s14122_s18 + $0x29c] sm:$0x7] }
 0x1cb   : > { %v4288_v0 = vsel %vm14271_vm6, %v11207_v39, %v4287_v23  ;;  %v4303_v30 = vrot.slane %v4301_v57, 4  ;;  %v4309_v23 = vsel %vm14271_vm6, %v11210_v20, %v4308_v5  ;;  %v11848_v39 = vld [vmem:[%s14122_s18 + $0x1ec] sm:$0x3]  ;;  %v11852_v20 = vld [vmem:[%s14122_s18 + $0x20c] sm:$0xc] }
 0x1cc   : > { %v11224_v35 = vcombine.low %v4288_v0, %v4291_v54  ;;  %v8583_v0 = vrot.slane %v8581_v28, 4  ;;  %v8584_v54 = vrot.slane %v11848_v39, 6 }
 0x1cd   : > { %v4305_v18 = vsel %vm14271_vm6, %v4303_v30, %v4304_v51 }
 0x1ce   : > { %v8585_v5 = vsel %vm14125_vm2, %v8583_v0, %v8584_v54 }
 0x1cf   : > { %12953 = vmatmul.mubr.msk.bf16.gmra.mrb[20].mxu0 %vm789_vm3, %v13982_v47  ;;  %12651 = vmatmul.mubr.msk.bf16.gmra.mrb[24].mxu1 %vm789_vm3, %v11219_v42  ;;  %v11182_v47 = vld [vmem:[%s14122_s18 + $0x244] sm:$0x8]  ;;  %v4298_v42 = vsel %vm14271_vm6, %v4296_v63, %v4297_v2  ;;  %v11849_v2 = vld [vmem:[%s14122_s18 + $0x1f8] sm:$0xc] }
 0x1d0   : > { %12956 = vmatprep.mubr.msk.bf16.mxu0 %vm789_vm3, %v13983_v62  ;;  %12654 = vmatprep.mubr.msk.bf16.mxu1 %vm789_vm3, %v11220_v16  ;;  %v4284_v62 = vsel %vm14271_vm6, %v4282_v38, %v4283_v17  ;;  %v11208_v58 = vrot.slane %v11182_v47, 11  ;;  %v4302_v16 = vsel %vm14271_vm6, %v11209_v22, %v4301_v57  ;;  %v4322_v17 = vrot.slane %v11195_v14, 7  ;;  %v11846_v38 = vld [vmem:[%s14122_s18 + $0x1e4] sm:$0xc] }
 0x1d1   : > { %v11223_v1 = vcombine.low %v4281_v31, %v4284_v62  ;;  %v11226_v60 = vcombine.low %v4302_v16, %v4305_v18  ;;  %v4325_v31 = vrot.slane %v11196_v46, 7  ;;  %v11850_v62 = vld [vmem:[%s14122_s18 + $0x1fc] sm:$0xf]  ;;  %v11250_v63 = vld [vmem:[%s14122_s18 + $0x184] sm:$0xf]  ;;  %v11895_v41 = vrot.slane %v11849_v2, 10 }
 0x1d2   : > { %v4295_v13 = vsel %vm14271_vm6, %v11208_v58, %v4294_v40  ;;  %v4324_v57 = vrot.slane %v4322_v17, 4  ;;  %v4722_v58 = vrot.slane %v11248_v55, 6  ;;  %v8588_v22 = vrot.slane %v11850_v62, 6  ;;  %v11254_v16 = vld [vmem:[%s14122_s18 + $0x19c] sm:$0x3] }
 0x1d3   : > { %v11225_v37 = vcombine.low %v4295_v13, %v4298_v42  ;;  %v4726_v13 = vrot.slane %v11250_v63, 6  ;;  %v4733_v18 = vrot.slane %v11253_v15, 6  ;;  %v11255_v46 = vld [vmem:[%s14122_s18 + $0x1a8] sm:$0xc]  ;;  %v5430_v55 = vsel %vm625_vm0, %v16256_v49, 0 }
 0x1d4   : > { %v4326_v30 = vsel %vm14271_vm6, %v4324_v57, %v4325_v31  ;;  %v8590_v27 = vrot.slane %v8588_v22, 4  ;;  %v9148_v31 = vsel %vm625_vm0, %v16262_v7, 0  ;;  %v11857_v57 = vld [vmem:[%s14122_s18 + $0x228] sm:$0x3]  ;;  %v11860_v7 = vld [vmem:[%s14122_s18 + $0x23c] sm:$0x3] }
 0x1d5   : > { %v4728_v14 = vrot.slane %v4726_v13, 4  ;;  %v11297_v2 = vrot.slane %v11255_v46, 10 }
 0x1d7   : > { %12957 = vmatmul.mubr.msk.bf16.gmra.mrb[24].mxu0 %vm789_vm3, %v13984_v12  ;;  %12655 = vmatmul.mubr.msk.bf16.gmra.mrb[28].mxu1 %vm789_vm3, %v11221_v36  ;;  %v11190_v12 = vld [vmem:[%s14122_s18 + $0x274] sm:$0x7] }
 0x1d8   : > { %12960 = vmatprep.mubr.msk.bf16.mxu0 %vm789_vm3, %v13985_v9  ;;  %12658 = vmatprep.mubr.msk.bf16.mxu1 %vm789_vm3, %v11222_v11  ;;  %v4315_v9 = vrot.slane %v11192_v61, 7  ;;  %v4311_v56 = vrot.slane %v11190_v12, 7  ;;  %v4719_v11 = vrot.slane %v11247_v29, 6  ;;  %v11851_v61 = vld [vmem:[%s14122_s18 + $0x200] sm:$0x3] }
 0x1d9   : > { %v11251_v12 = vld [vmem:[%s14122_s18 + $0x188] sm:$0x3] }
 0x1da   : > { %v4317_v48 = vrot.slane %v4315_v9, 4  ;;  %v4316_v6 = vsel %vm14271_vm6, %v11211_v19, %v4315_v9  ;;  %v4721_v43 = vrot.slane %v4719_v11, 4  ;;  %v11854_v19 = vld [vmem:[%s14122_s18 + $0x214] sm:$0x3]  ;;  %v4729_v21 = vrot.slane %v11251_v12, 6 }
 0x1dc   : > { %v4319_v36 = vsel %vm14271_vm6, %v4317_v48, %v4318_v10  ;;  %v4723_v9 = vsel %vm14125_vm2, %v4721_v43, %v4722_v58  ;;  %v11256_v48 = vld [vmem:[%s14122_s18 + $0x1ac] sm:$0xf]  ;;  %v11858_v58 = vld [vmem:[%s14122_s18 + $0x234] sm:$0xc] }
 0x1dd   : > { %v11228_v47 = vcombine.low %v4316_v6, %v4319_v36  ;;  %v4735_v6 = vrot.slane %v4733_v18, 4  ;;  %v4736_v36 = vrot.slane %v11254_v16, 6  ;;  %v4740_v39 = vrot.slane %v11256_v48, 6  ;;  %v11861_v48 = vld [vmem:[%s14122_s18 + $0x248] sm:$0xc] }
 0x1de   : > { %v11898_v12 = vrot.slane %v11858_v58, 10 }
 0x1df   : > { %12961 = vmatmul.mubr.msk.bf16.gmra.mrb[28].mxu0 %vm789_vm3, %v13986_v25  ;;  %12659 = vmatmul.mubr.msk.bf16.gmra.mrb[32].mxu1 %vm789_vm3, %v11223_v1  ;;  %v4312_v25 = vsel %vm14271_vm6, %v4310_v34, %v4311_v56  ;;  %v4737_v54 = vsel %vm14125_vm2, %v4735_v6, %v4736_v36 }
 0x1e0   : > { %12964 = vmatprep.mubr.msk.bf16.mxu0 %vm789_vm3, %v13987_v24  ;;  %12662 = vmatprep.mubr.msk.bf16.mxu1 %vm789_vm3, %v11224_v35  ;;  %v11194_v24 = vld [vmem:[%s14122_s18 + $0x294] sm:$0x8]  ;;  %v11227_v40 = vcombine.low %v4309_v23, %v4312_v25  ;;  %v11853_v35 = vld [vmem:[%s14122_s18 + $0x210] sm:$0xf]  ;;  %v16418_v23 = vld [vmem:[%s14122_s18 + $0x224] sm:$0xf]  ;;  %v8589_v25 = vsel %vm14125_vm2, %v11895_v41, %v8588_v22 }
 0x1e1   : > { %v11212_v50 = vrot.slane %v11194_v24, 11  ;;  %v8595_v34 = vrot.slane %v11853_v35, 6  ;;  %v11896_v24 = vrot.slane %v11852_v20, 10  ;;  %v4742_v22 = vrot.slane %v4740_v39, 4  ;;  %v11261_v20 = vld [vmem:[%s14122_s18 + $0x1d0] sm:$0xc] }
 0x1e3   : > { %v4323_v1 = vsel %vm14271_vm6, %v11212_v50, %v4322_v17  ;;  %v16424_v17 = vld [vmem:[%s14122_s18 + $0x238] sm:$0xf]  ;;  %v4730_v50 = vsel %vm14125_vm2, %v4728_v14, %v4729_v21 }
 0x1e4   : > { %v11229_v56 = vcombine.low %v4323_v1, %v4326_v30  ;;  %v8609_v49 = vrot.slane %v16424_v17, 6  ;;  %v11260_v1 = vld [vmem:[%s14122_s18 + $0x1c4] sm:$0x3]  ;;  %v11864_v17 = vld [vmem:[%s14122_s18 + $0x25c] sm:$0xc] }
 0x1e6   : > { %v8610_v14 = vsel %vm14125_vm2, %v11898_v12, %v8609_v49  ;;  %v11270_v12 = vld [vmem:[%s14122_s18 + $0x20c] sm:$0xc] }
 0x1e7   : > { %12965 = vmatmul.mubr.msk.bf16.gmra.mrb[32].mxu0 %vm789_vm3, %v13988_v59  ;;  %12663 = vmatmul.mubr.msk.bf16.gmra.mrb[36].mxu1 %vm789_vm3, %v11225_v37  ;;  %v11894_v59 = vrot.slane %v11846_v38, 10  ;;  %v8598_v38 = vrot.slane %v11854_v19, 6  ;;  %v11263_v19 = vld [vmem:[%s14122_s18 + $0x1d8] sm:$0x3] }
 0x1e8   : > { %12968 = vmatprep.mubr.msk.bf16.mxu0 %vm789_vm3, %v13989_v45  ;;  %12666 = vmatprep.mubr.msk.bf16.mxu1 %vm789_vm3, %v11226_v60  ;;  %v11294_v45 = vrot.slane %v11246_v52, 10  ;;  %v11295_v60 = vrot.slane %v11249_v8, 10 }
 0x1e9   : > { %v8582_v51 = vsel %vm14125_vm2, %v11894_v59, %v8581_v28  ;;  %v11258_v59 = vld [vmem:[%s14122_s18 + $0x1bc] sm:$0xc] }
 0x1ea   : > { %v4720_v42 = vsel %vm14125_vm2, %v11294_v45, %v4719_v11  ;;  %v11911_v37 = vcombine.low %v8582_v51, %v8585_v5  ;;  %v8597_v11 = vrot.slane %v8595_v34, 4  ;;  %v4727_v52 = vsel %vm14125_vm2, %v11295_v60, %v4726_v13  ;;  %v11262_v5 = vld [vmem:[%s14122_s18 + $0x1d4] sm:$0xf] }
 0x1eb   : > { %v11311_v10 = vcombine.low %v4720_v42, %v4723_v9  ;;  %v8596_v45 = vsel %vm14125_vm2, %v11896_v24, %v8595_v34  ;;  %v8605_v51 = vrot.slane %v11857_v57, 6  ;;  %v8611_v13 = vrot.slane %v8609_v49, 4  ;;  %v11862_v9 = vld [vmem:[%s14122_s18 + $0x24c] sm:$0xf]  ;;  %v11868_v49 = vld [vmem:[%s14122_s18 + $0x274] sm:$0xf] }
 0x1ec   : > { %v8599_v63 = vsel %vm14125_vm2, %v8597_v11, %v8598_v38  ;;  %v8612_v42 = vrot.slane %v11860_v7, 6  ;;  %v4754_v34 = vrot.slane %v11262_v5, 6  ;;  %v11299_v38 = vrot.slane %v11261_v20, 10 }
 0x1ed   : > { %v11913_v41 = vcombine.low %v8596_v45, %v8599_v63  ;;  %v11267_v63 = vld [vmem:[%s14122_s18 + $0x1f8] sm:$0xc] }
 0x1ee   : > { %v8613_v21 = vsel %vm14125_vm2, %v8611_v13, %v8612_v42  ;;  %v4755_v58 = vsel %vm14125_vm2, %v11299_v38, %v4754_v34  ;;  %v11277_v38 = vld [vmem:[%s14122_s18 + $0x238] sm:$0xf] }
 0x1ef   : > { %12969 = vmatmul.mubr.msk.bf16.gmra.mrb[36].mxu0 %vm789_vm3, %v13990_v26  ;;  %12667 = vmatmul.mubr.msk.bf16.gmra.mrb[40].mxu1 %vm789_vm3, %v11227_v40  ;;  %v11252_v26 = vld [vmem:[%s14122_s18 + $0x194] sm:$0xc]  ;;  %v11257_v40 = vld [vmem:[%s14122_s18 + $0x1b0] sm:$0x3] }
 0x1f0   : > { %12972 = vmatprep.mubr.msk.bf16.mxu0 %vm789_vm3, %v13991_v44  ;;  %12670 = vmatprep.mubr.msk.bf16.mxu1 %vm789_vm3, %v11228_v47  ;;  %v8591_v44 = vrot.slane %v11851_v61, 6  ;;  %v11296_v29 = vrot.slane %v11252_v26, 10  ;;  %v11855_v47 = vld [vmem:[%s14122_s18 + $0x220] sm:$0xc]  ;;  %v4743_v15 = vrot.slane %v11257_v40, 6  ;;  %v11312_v61 = vcombine.low %v4727_v52, %v4730_v50 }
 0x1f1   : > { %v11897_v35 = vrot.slane %v11855_v47, 10  ;;  %v11298_v26 = vrot.slane %v11258_v59, 10  ;;  %v11266_v52 = vld [vmem:[%s14122_s18 + $0x1ec] sm:$0x3]  ;;  %v11899_v40 = vrot.slane %v11861_v48, 10 }
 0x1f2   : > { %v8592_v28 = vsel %vm14125_vm2, %v8590_v27, %v8591_v44  ;;  %v4734_v62 = vsel %vm14125_vm2, %v11296_v29, %v4733_v18  ;;  %v4750_v18 = vrot.slane %v11260_v1, 6  ;;  %v4741_v27 = vsel %vm14125_vm2, %v11297_v2, %v4740_v39  ;;  %v11863_v29 = vld [vmem:[%s14122_s18 + $0x250] sm:$0x3]  ;;  %v11268_v50 = vld [vmem:[%s14122_s18 + $0x1fc] sm:$0xf] }
 0x1f3   : > { %v11912_v0 = vcombine.low %v8589_v25, %v8592_v28  ;;  %v11313_v8 = vcombine.low %v4734_v62, %v4737_v54  ;;  %v4744_v44 = vsel %vm14125_vm2, %v4742_v22, %v4743_v15  ;;  %v11866_v28 = vld [vmem:[%s14122_s18 + $0x264] sm:$0x3]  ;;  %v4756_v39 = vrot.slane %v4754_v34, 4  ;;  %v11271_v22 = vld [vmem:[%s14122_s18 + $0x210] sm:$0xf] }
 0x1f4   : > { %v11314_v6 = vcombine.low %v4741_v27, %v4744_v44  ;;  %v11900_v62 = vrot.slane %v11864_v17, 10  ;;  %v8626_v59 = vrot.slane %v11866_v28, 6  ;;  %v4764_v45 = vrot.slane %v11266_v52, 6  ;;  %v11272_v34 = vld [vmem:[%s14122_s18 + $0x214] sm:$0x3] }
 0x1f5   : > { %v4768_v2 = vrot.slane %v11268_v50, 6  ;;  %v11301_v27 = vrot.slane %v11267_v63, 10  ;;  %v11274_v48 = vld [vmem:[%s14122_s18 + $0x224] sm:$0xf]  ;;  %v11273_v28 = vld [vmem:[%s14122_s18 + $0x220] sm:$0xc] }
 0x1f6   : > { %v11275_v52 = vld [vmem:[%s14122_s18 + $0x228] sm:$0x3]  ;;  %v11875_v50 = vld [vmem:[%s14122_s18 + $0x2a0] sm:$0x3] }
 0x1f7   : > { %12973 = vmatmul.mubr.msk.bf16.gmra.mrb[40].mxu0 %vm789_vm3, %v13992_v32  ;;  %v16430_v32 = vld [vmem:[%s14122_s18 + $0x1c0] sm:$0xf]  ;;  %12671 = vmatmul.mubr.msk.bf16.gmra.mrb[44].mxu1 %vm789_vm3, %v11229_v56  ;;  %v16473_v56 = vld [vmem:[%s14122_s18 + $0x1e8] sm:$0xf]  ;;  %v4770_v44 = vrot.slane %v4768_v2, 4  ;;  %v4785_v63 = vrot.slane %v11275_v52, 6 }
 0x1f8   : > { %12976 = vmatprep.mubr.msk.bf16.mxu0 %vm789_vm3, %v13993_v33  ;;  %v8602_v33 = vrot.slane %v16418_v23, 6  ;;  %12676 = vmatprep.mubr.msk.bf16.mxu1 %vm789_vm3, %v11311_v10  ;;  %v4747_v43 = vrot.slane %v16430_v32, 6  ;;  %v8616_v10 = vrot.slane %v11862_v9, 6  ;;  %v11264_v23 = vld [vmem:[%s14122_s18 + $0x1e4] sm:$0xc]  ;;  %v4761_v46 = vrot.slane %v16473_v56, 6 }
 0x1f9   : > { %v4757_v32 = vrot.slane %v11263_v19, 6 }
 0x1fa   : > { %v8604_v30 = vrot.slane %v8602_v33, 4  ;;  %v4749_v16 = vrot.slane %v4747_v43, 4  ;;  %v4748_v36 = vsel %vm14125_vm2, %v11298_v26, %v4747_v43  ;;  %v8618_v47 = vrot.slane %v8616_v10, 4  ;;  %v11871_v43 = vld [vmem:[%s14122_s18 + $0x288] sm:$0xf] }
 0x1fb   : > { %v4763_v54 = vrot.slane %v4761_v46, 4  ;;  %v4758_v7 = vsel %vm14125_vm2, %v4756_v39, %v4757_v32  ;;  %v8617_v15 = vsel %vm14125_vm2, %v11899_v40, %v8616_v10  ;;  %v8637_v13 = vrot.slane %v11871_v43, 6 }
 0x1fc   : > { %v8606_v60 = vsel %vm14125_vm2, %v8604_v30, %v8605_v51  ;;  %v4751_v24 = vsel %vm14125_vm2, %v4749_v16, %v4750_v18  ;;  %v8630_v30 = vrot.slane %v11868_v49, 6  ;;  %v11316_v42 = vcombine.low %v4755_v58, %v4758_v7  ;;  %v11870_v16 = vld [vmem:[%s14122_s18 + $0x284] sm:$0xc]  ;;  %v11872_v18 = vld [vmem:[%s14122_s18 + $0x28c] sm:$0x3] }
 0x1fd   : > { %v4775_v26 = vrot.slane %v11271_v22, 6  ;;  %v11303_v58 = vrot.slane %v11273_v28, 10 }
 0x1ff   : > { %12977 = vmatmul.mubr.msk.bf16.gmra.mrb[44].mxu0 %vm789_vm3, %v13994_v53  ;;  %v16464_v53 = vld [vmem:[%s14122_s18 + $0x260] sm:$0xf]  ;;  %12677 = vmatmul.mubr.msk.bf16.vlgmr.msra.gmra.mrb[16].mxu1 %vm789_vm3, %v11312_v61 }
 0x200   : > { %12982 = vmatprep.mubr.msk.bf16.mxu0 %vm789_vm3, %v11911_v37  ;;  %v8603_v37 = vsel %vm14125_vm2, %v11897_v35, %v8602_v33  ;;  %12709 = vmatpush3.bf16.msra.mxu1 %v5430_v55  ;;  %v8623_v25 = vrot.slane %v16464_v53, 6  ;;  %v11915_v55 = vcombine.low %v8610_v14, %v8613_v21  ;;  %v8619_v33 = vrot.slane %v11863_v29, 6  ;;  %v11269_v61 = vld [vmem:[%s14122_s18 + $0x200] sm:$0x3]  ;;  %v11867_v35 = vld [vmem:[%s14122_s18 + $0x270] sm:$0xc] }
 0x201   : > { %12680 = vmatprep.mubr.msk.bf16.mxu1 %vm789_vm3, %v11313_v8  ;;  %v11914_v11 = vcombine.low %v8603_v37, %v8606_v60  ;;  %v11869_v8 = vld [vmem:[%s14122_s18 + $0x278] sm:$0x3]  ;;  %v4771_v20 = vrot.slane %v11269_v61, 6  ;;  %v11901_v37 = vrot.slane %v11867_v35, 10  ;;  %v8632_v60 = vrot.slane %v8630_v30, 4 }
 0x202   : > { %v8625_v57 = vrot.slane %v8623_v25, 4  ;;  %v8620_v1 = vsel %vm14125_vm2, %v8618_v47, %v8619_v33  ;;  %v8624_v51 = vsel %vm14125_vm2, %v11900_v62, %v8623_v25  ;;  %v8633_v19 = vrot.slane %v11869_v8, 6  ;;  %v11280_v35 = vld [vmem:[%s14122_s18 + $0x24c] sm:$0xf] }
 0x203   : > { %v11916_v53 = vcombine.low %v8617_v15, %v8620_v1  ;;  %v11902_v14 = vrot.slane %v11870_v16, 10  ;;  %v8639_v21 = vrot.slane %v8637_v13, 4  ;;  %v8640_v29 = vrot.slane %v11872_v18, 6  ;;  %v11279_v18 = vld [vmem:[%s14122_s18 + $0x248] sm:$0xc] }
 0x204   : > { %v8627_v5 = vsel %vm14125_vm2, %v8625_v57, %v8626_v59  ;;  %v11302_v25 = vrot.slane %v11270_v12, 10  ;;  %v4772_v17 = vsel %vm14125_vm2, %v4770_v44, %v4771_v20  ;;  %v8631_v39 = vsel %vm14125_vm2, %v11901_v37, %v8630_v30  ;;  %v11880_v12 = vld [vmem:[%s14122_s18 + $0x2c4] sm:$0xf] }
 0x205   : > { %v11917_v56 = vcombine.low %v8624_v51, %v8627_v5  ;;  %v8634_v32 = vsel %vm14125_vm2, %v8632_v60, %v8633_v19  ;;  %v8638_v47 = vsel %vm14125_vm2, %v11902_v14, %v8637_v13  ;;  %v8641_v33 = vsel %vm14125_vm2, %v8639_v21, %v8640_v29 }
 0x206   : > { %v4776_v59 = vsel %vm14125_vm2, %v11302_v25, %v4775_v26  ;;  %v11918_v43 = vcombine.low %v8631_v39, %v8634_v32  ;;  %v11919_v22 = vcombine.low %v8638_v47, %v8641_v33  ;;  %v8647_v61 = vrot.slane %v11875_v50, 6 }
 0x207   : > { %12983 = vmatmul.mubr.msk.bf16.vlgmr.msra.gmra.mrb[16].mxu0 %vm789_vm3, %v11912_v0  ;;  %v11300_v0 = vrot.slane %v11264_v23, 10  ;;  %12681 = vmatmul.mubr.msk.bf16.gmra.mrb[20].mxu1 %vm789_vm3, %v11314_v6  ;;  %v11874_v23 = vld [vmem:[%s14122_s18 + $0x29c] sm:$0xf]  ;;  %v4777_v6 = vrot.slane %v4775_v26, 4  ;;  %v8658_v37 = vrot.slane %v11880_v12, 6 }
 0x208   : > { %13015 = vmatpush3.bf16.msra.mxu0 %v9148_v31  ;;  %12986 = vmatprep.mubr.msk.bf16.mxu0 %vm789_vm3, %v11913_v41  ;;  %v11315_v31 = vcombine.low %v4748_v36, %v4751_v24  ;;  %v4765_v41 = vsel %vm14125_vm2, %v4763_v54, %v4764_v45  ;;  %v4778_v36 = vrot.slane %v11272_v34, 6  ;;  %v11877_v24 = vld [vmem:[%s14122_s18 + $0x2b0] sm:$0xf]  ;;  %v8644_v40 = vrot.slane %v11874_v23, 6  ;;  %v11876_v54 = vld [vmem:[%s14122_s18 + $0x2ac] sm:$0xc] }
 0x209   : > { %v4762_v9 = vsel %vm14125_vm2, %v11300_v0, %v4761_v46  ;;  %v4769_v46 = vsel %vm14125_vm2, %v11301_v27, %v4768_v2  ;;  %v8651_v62 = vrot.slane %v11877_v24, 6  ;;  %v4789_v0 = vrot.slane %v11277_v38, 6  ;;  %v11878_v45 = vld [vmem:[%s14122_s18 + $0x2b4] sm:$0x3]  ;;  %v11278_v2 = vld [vmem:[%s14122_s18 + $0x23c] sm:$0x3] }
 0x20a   : > { %12684 = vmatprep.mubr.msk.bf16.mxu1 %vm789_vm3, %v11315_v31  ;;  %v11317_v10 = vcombine.low %v4762_v9, %v4765_v41  ;;  %v11276_v31 = vld [vmem:[%s14122_s18 + $0x234] sm:$0xc]  ;;  %v11318_v57 = vcombine.low %v4769_v46, %v4772_v17  ;;  %v4779_v49 = vsel %vm14125_vm2, %v4777_v6, %v4778_v36  ;;  %v8646_v1 = vrot.slane %v8644_v40, 4  ;;  %v11883_v41 = vld [vmem:[%s14122_s18 + $0x2d8] sm:$0xf] }
 0x20b   : > { %v11319_v30 = vcombine.low %v4776_v59, %v4779_v49  ;;  %v11904_v51 = vrot.slane %v11876_v54, 10  ;;  %v8653_v5 = vrot.slane %v8651_v62, 4  ;;  %v8654_v8 = vrot.slane %v11878_v45, 6  ;;  %v11283_v27 = vld [vmem:[%s14122_s18 + $0x260] sm:$0xf] }
 0x20c   : > { %v11304_v13 = vrot.slane %v11276_v31, 10  ;;  %v4792_v9 = vrot.slane %v11278_v2, 6  ;;  %v8648_v20 = vsel %vm14125_vm2, %v8646_v1, %v8647_v61  ;;  %v11281_v34 = vld [vmem:[%s14122_s18 + $0x250] sm:$0x3]  ;;  %v8665_v14 = vrot.slane %v11883_v41, 6 }
 0x20d   : > { %v8652_v60 = vsel %vm14125_vm2, %v11904_v51, %v8651_v62  ;;  %v8655_v19 = vsel %vm14125_vm2, %v8653_v5, %v8654_v8  ;;  %v4803_v25 = vrot.slane %v11283_v27, 6  ;;  %v11882_v6 = vld [vmem:[%s14122_s18 + $0x2d4] sm:$0xc]  ;;  %v11884_v36 = vld [vmem:[%s14122_s18 + $0x2dc] sm:$0x3]  ;;  %v11305_v46 = vrot.slane %v11279_v18, 10 }
 0x20e   : > { %v4790_v29 = vsel %vm14125_vm2, %v11304_v13, %v4789_v0  ;;  %v4799_v28 = vrot.slane %v11281_v34, 6  ;;  %v11921_v38 = vcombine.low %v8652_v60, %v8655_v19  ;;  %v8660_v32 = vrot.slane %v8658_v37, 4  ;;  %v11886_v31 = vld [vmem:[%s14122_s18 + $0x2ec] sm:$0xf]  ;;  %v11889_v49 = vld [vmem:[%s14122_s18 + $0x300] sm:$0xf] }
 0x20f   : > { %12987 = vmatmul.mubr.msk.bf16.gmra.mrb[20].mxu0 %vm789_vm3, %v11914_v11  ;;  %v4782_v11 = vrot.slane %v11274_v48, 6  ;;  %12685 = vmatmul.mubr.msk.bf16.gmra.mrb[24].mxu1 %vm789_vm3, %v11316_v42  ;;  %v4791_v42 = vrot.slane %v4789_v0, 4  ;;  %v11881_v48 = vld [vmem:[%s14122_s18 + $0x2c8] sm:$0x3]  ;;  %v11906_v47 = vrot.slane %v11882_v6, 10  ;;  %v8667_v33 = vrot.slane %v8665_v14, 4 }
 0x210   : > { %12990 = vmatprep.mubr.msk.bf16.mxu0 %vm789_vm3, %v11915_v55  ;;  %v11873_v55 = vld [vmem:[%s14122_s18 + $0x298] sm:$0xc]  ;;  %12688 = vmatprep.mubr.msk.bf16.mxu1 %vm789_vm3, %v11317_v10  ;;  %v11282_v10 = vld [vmem:[%s14122_s18 + $0x25c] sm:$0xc]  ;;  %v8661_v52 = vrot.slane %v11881_v48, 6  ;;  %v8668_v50 = vrot.slane %v11884_v36, 6 }
 0x211   : > { %v4784_v7 = vrot.slane %v4782_v11, 4  ;;  %v11903_v15 = vrot.slane %v11873_v55, 10  ;;  %v4783_v26 = vsel %vm14125_vm2, %v11303_v58, %v4782_v11  ;;  %v4793_v23 = vsel %vm14125_vm2, %v4791_v42, %v4792_v9  ;;  %v11284_v11 = vld [vmem:[%s14122_s18 + $0x264] sm:$0x3]  ;;  %v11286_v55 = vld [vmem:[%s14122_s18 + $0x274] sm:$0xf] }
 0x212   : > { %v11306_v62 = vrot.slane %v11282_v10, 10  ;;  %v4806_v59 = vrot.slane %v11284_v11, 6  ;;  %v11285_v45 = vld [vmem:[%s14122_s18 + $0x270] sm:$0xc]  ;;  %v4810_v2 = vrot.slane %v11286_v55, 6  ;;  %v8666_v1 = vsel %vm14125_vm2, %v11906_v47, %v8665_v14 }
 0x213   : > { %v4786_v16 = vsel %vm14125_vm2, %v4784_v7, %v4785_v63  ;;  %v8645_v44 = vsel %vm14125_vm2, %v11903_v15, %v8644_v40  ;;  %v11321_v40 = vcombine.low %v4790_v29, %v4793_v23  ;;  %v8662_v7 = vsel %vm14125_vm2, %v8660_v32, %v8661_v52  ;;  %v11287_v63 = vld [vmem:[%s14122_s18 + $0x278] sm:$0x3]  ;;  %v11888_v42 = vld [vmem:[%s14122_s18 + $0x2fc] sm:$0xc]  ;;  %v11890_v9 = vld [vmem:[%s14122_s18 + $0x304] sm:$0x3] }
 0x214   : > { %v11320_v21 = vcombine.low %v4783_v26, %v4786_v16  ;;  %v11920_v24 = vcombine.low %v8645_v44, %v8648_v20  ;;  %v8672_v15 = vrot.slane %v11886_v31, 6  ;;  %v8669_v61 = vsel %vm14125_vm2, %v8667_v33, %v8668_v50  ;;  %v11892_v48 = vld [vmem:[%s14122_s18 + $0x314] sm:$0xf]  ;;  %v11292_v29 = vld [vmem:[%s14122_s18 + $0x29c] sm:$0xf] }
 0x215   : > { %v8679_v51 = vrot.slane %v11889_v49, 6  ;;  %v4804_v8 = vsel %vm14125_vm2, %v11306_v62, %v4803_v25  ;;  %v11307_v26 = vrot.slane %v11285_v45, 10  ;;  %v4813_v16 = vrot.slane %v11287_v63, 6  ;;  %v11291_v55 = vld [vmem:[%s14122_s18 + $0x298] sm:$0xc] }
 0x216   : > { %v11923_v27 = vcombine.low %v8666_v1, %v8669_v61  ;;  %v4812_v44 = vrot.slane %v4810_v2, 4  ;;  %v8674_v20 = vrot.slane %v8672_v15, 4  ;;  %v8682_v19 = vrot.slane %v11890_v9, 6  ;;  %v11343_v31 = vld [vmem:[%s14122_s18 + $0x170] sm:$0xe] }
 0x217   : > { %12991 = vmatmul.mubr.msk.bf16.gmra.mrb[24].mxu0 %vm789_vm3, %v11916_v53  ;;  %v4796_v53 = vrot.slane %v11280_v35, 6  ;;  %12689 = vmatmul.mubr.msk.bf16.gmra.mrb[28].mxu1 %vm789_vm3, %v11318_v57  ;;  %v4805_v57 = vrot.slane %v4803_v25, 4  ;;  %v11887_v35 = vld [vmem:[%s14122_s18 + $0x2f0] sm:$0x3]  ;;  %v8681_v60 = vrot.slane %v8679_v51, 4  ;;  %v4811_v23 = vsel %vm14125_vm2, %v11307_v26, %v4810_v2 }
 0x218   : > { %12994 = vmatprep.mubr.msk.bf16.mxu0 %vm789_vm3, %v11917_v56  ;;  %v11879_v56 = vld [vmem:[%s14122_s18 + $0x2c0] sm:$0xc]  ;;  %12692 = vmatprep.mubr.msk.bf16.mxu1 %vm789_vm3, %v11319_v30  ;;  %v11288_v30 = vld [vmem:[%s14122_s18 + $0x284] sm:$0xc]  ;;  %v8675_v34 = vrot.slane %v11887_v35, 6  ;;  %v4814_v6 = vsel %vm14125_vm2, %v4812_v44, %v4813_v16  ;;  %v4824_v11 = vrot.slane %v11292_v29, 6 }
 0x219   : > { %v4798_v17 = vrot.slane %v4796_v53, 4  ;;  %v11905_v39 = vrot.slane %v11879_v56, 10  ;;  %v4797_v0 = vsel %vm14125_vm2, %v11305_v46, %v4796_v53  ;;  %v4807_v12 = vsel %vm14125_vm2, %v4805_v57, %v4806_v59  ;;  %v11290_v53 = vld [vmem:[%s14122_s18 + $0x28c] sm:$0x3]  ;;  %v11344_v25 = vld [vmem:[%s14122_s18 + $0x174] sm:$0xf] }
 0x21a   : > { %v11323_v56 = vcombine.low %v4804_v8, %v4807_v12  ;;  %v11308_v10 = vrot.slane %v11288_v30, 10  ;;  %v8686_v46 = vrot.slane %v11892_v48, 6  ;;  %v5221_v47 = vrot.slane %v11344_v25, 5  ;;  %v11345_v62 = vld [vmem:[%s14122_s18 + $0x178] sm:$0x1] }
 0x21b   : > { %v4800_v54 = vsel %vm14125_vm2, %v4798_v17, %v4799_v28  ;;  %v8659_v58 = vsel %vm14125_vm2, %v11905_v39, %v8658_v37  ;;  %v11908_v37 = vrot.slane %v11888_v42, 10  ;;  %v8683_v28 = vsel %vm14125_vm2, %v8681_v60, %v8682_v19  ;;  %v11893_v39 = vld [vmem:[%s14122_s18 + $0x318] sm:$0x3]  ;;  %v11346_v12 = vld [vmem:[%s14122_s18 + $0x184] sm:$0xe] }
 0x21c   : > { %v11322_v5 = vcombine.low %v4797_v0, %v4800_v54  ;;  %v11922_v41 = vcombine.low %v8659_v58, %v8662_v7  ;;  %v11324_v33 = vcombine.low %v4811_v23, %v4814_v6  ;;  %v8688_v49 = vrot.slane %v8686_v46, 4  ;;  %v11351_v26 = vld [vmem:[%s14122_s18 + $0x1a0] sm:$0x1]  ;;  %v11356_v60 = vld [vmem:[%s14122_s18 + $0x1c4] sm:$0xf] }
 0x21d   : > { %v8680_v17 = vsel %vm14125_vm2, %v11908_v37, %v8679_v51  ;;  %v8689_v0 = vrot.slane %v11893_v39, 6  ;;  %v11309_v45 = vrot.slane %v11291_v55, 10  ;;  %v11391_v7 = vrot.slane %v11343_v31, 9  ;;  %v11353_v37 = vld [vmem:[%s14122_s18 + $0x1b0] sm:$0xf]  ;;  %v13996_v6 = vld [vmem:[%s14122_s18 + $0x200] sm:$0xff]  }
 0x21e   : > { %v11925_v57 = vcombine.low %v8680_v17, %v8683_v28  ;;  %v5223_v63 = vrot.slane %v5221_v47, 4  ;;  %v5224_v2 = vrot.slane %v11345_v62, 5  ;;  %v11392_v4 = vrot.slane %v11346_v12, 9  ;;  %v11352_v29 = vld [vmem:[%s14122_s18 + $0x1ac] sm:$0xe]  ;;  %v13997_v17 = vld [vmem:[%s14122_s18 + $0x214] sm:$0xff]  }
 0x21f   : > { %12995 = vmatmul.mubr.msk.bf16.gmra.mrb[28].mxu0 %vm789_vm3, %v11918_v43  ;;  %v11289_v43 = vld [vmem:[%s14122_s18 + $0x288] sm:$0xf]  ;;  %12693 = vmatmul.mubr.msk.bf16.gmra.mrb[32].mxu1 %vm789_vm3, %v11320_v21  ;;  %v4820_v21 = vrot.slane %v11290_v53, 6  ;;  %v8690_v61 = vsel %vm14125_vm2, %v8688_v49, %v8689_v0  ;;  %v4825_v35 = vsel %vm14125_vm2, %v11309_v45, %v4824_v11  ;;  %v11354_v23 = vld [vmem:[%s14122_s18 + $0x1b4] sm:$0x1]  ;;  %v5249_v25 = vrot.slane %v11356_v60, 5 }
 0x220   : > { %12998 = vmatprep.mubr.msk.bf16.mxu0 %vm789_vm3, %v11919_v22  ;;  %v11885_v22 = vld [vmem:[%s14122_s18 + $0x2e8] sm:$0xc]  ;;  %12696 = vmatprep.mubr.msk.bf16.mxu1 %vm789_vm3, %v11321_v40  ;;  %v4817_v13 = vrot.slane %v11289_v43, 6  ;;  %v11293_v40 = vld [vmem:[%s14122_s18 + $0x2a0] sm:$0x3]  ;;  %v4826_v43 = vrot.slane %v4824_v11, 4  ;;  %v5225_v8 = vsel %vm15091_vm10, %v5223_v63, %v5224_v2 }
 0x221   : > { %v11907_v18 = vrot.slane %v11885_v22, 10  ;;  %v4827_v58 = vrot.slane %v11293_v40, 6  ;;  %v11347_v22 = vld [vmem:[%s14122_s18 + $0x188] sm:$0xf]  ;;  %v11394_v11 = vrot.slane %v11352_v29, 9  ;;  %v5245_v39 = vrot.slane %v11354_v23, 5 }
 0x222   : > { %v4819_v14 = vrot.slane %v4817_v13, 4  ;;  %v4818_v32 = vsel %vm14125_vm2, %v11308_v10, %v4817_v13  ;;  %v5228_v51 = vrot.slane %v11347_v22, 5  ;;  %v11348_v13 = vld [vmem:[%s14122_s18 + $0x18c] sm:$0x1]  ;;  %v5242_v10 = vrot.slane %v11353_v37, 5 }
 0x223   : > { %v8673_v36 = vsel %vm14125_vm2, %v11907_v18, %v8672_v15  ;;  %v11350_v15 = vld [vmem:[%s14122_s18 + $0x19c] sm:$0xf]  ;;  %v4828_v30 = vsel %vm14125_vm2, %v4826_v43, %v4827_v58  ;;  %v13995_v18 = vld [vmem:[%s14122_s18 + $0x1ec] sm:$0xff]   ;;  %v5231_v44 = vrot.slane %v11348_v13, 5  ;;  %v11359_v40 = vld [vmem:[%s14122_s18 + $0x1d8] sm:$0xf] }
 0x224   : > { %v4821_v52 = vsel %vm14125_vm2, %v4819_v14, %v4820_v21  ;;  %v5235_v42 = vrot.slane %v11350_v15, 5  ;;  %v11326_v16 = vcombine.low %v4825_v35, %v4828_v30  ;;  %v5229_v19 = vsel %vm15091_vm10, %v11392_v4, %v5228_v51  ;;  %v11360_v49 = vld [vmem:[%s14122_s18 + $0x1dc] sm:$0x1]  ;;  %v11361_v45 = vld [vmem:[%s14122_s18 + $0x1e8] sm:$0xe] }
 0x225   : > { %v11325_v54 = vcombine.low %v4818_v32, %v4821_v52  ;;  %v5251_v52 = vrot.slane %v5249_v25, 4  ;;  %v5256_v31 = vrot.slane %v11359_v40, 5  ;;  %v11363_v43 = vld [vmem:[%s14122_s18 + $0x1f0] sm:$0x1]  ;;  %v5259_v15 = vrot.slane %v11360_v49, 5 }
 0x226   : > { %v5266_v35 = vrot.slane %v11363_v43, 5  ;;  %v11365_v30 = vld [vmem:[%s14122_s18 + $0x200] sm:$0xf] }
 0x227   : > { %12999 = vmatmul.mubr.msk.bf16.gmra.mrb[32].mxu0 %vm789_vm3, %v11920_v24  ;;  %12697 = vmatmul.mubr.msk.bf16.gmra.mrb[36].mxu1 %vm789_vm3, %v11322_v5  ;;  %v8676_v24 = vsel %vm14125_vm2, %v8674_v20, %v8675_v34  ;;  %v5222_v5 = vsel %vm15091_vm10, %v11391_v7, %v5221_v47  ;;  %v5237_v34 = vrot.slane %v5235_v42, 4  ;;  %v11362_v47 = vld [vmem:[%s14122_s18 + $0x1ec] sm:$0xf]  ;;  %v13999_v7 = vld [vmem:[%s14122_s18 + $0x23c] sm:$0xff]   ;;  %v5258_v22 = vrot.slane %v5256_v31, 4 }
 0x228   : > { %13002 = vmatprep.mubr.msk.bf16.mxu0 %vm789_vm3, %v11921_v38  ;;  %12700 = vmatprep.mubr.msk.bf16.mxu1 %vm789_vm3, %v11323_v56  ;;  %v11891_v38 = vld [vmem:[%s14122_s18 + $0x310] sm:$0xc]  ;;  %v11924_v50 = vcombine.low %v8673_v36, %v8676_v24  ;;  %v11408_v53 = vcombine.low %v5222_v5, %v5225_v8  ;;  %v5238_v56 = vrot.slane %v11351_v26, 5  ;;  %v11355_v36 = vld [vmem:[%s14122_s18 + $0x1c0] sm:$0xe]  ;;  %v5263_v0 = vrot.slane %v11362_v47, 5 }
 0x229   : > { %v11909_v59 = vrot.slane %v11891_v38, 10  ;;  %v11357_v24 = vld [vmem:[%s14122_s18 + $0x1c8] sm:$0x1]  ;;  %v5244_v38 = vrot.slane %v5242_v10, 4  ;;  %v11395_v32 = vrot.slane %v11355_v36, 9  ;;  %v5260_v8 = vsel %vm15091_vm10, %v5258_v22, %v5259_v15  ;;  %v14005_v22 = vld [vmem:[%s14122_s18 + $0x2b4] sm:$0xff]  }
 0x22a   : > { %v5239_v21 = vsel %vm15091_vm10, %v5237_v34, %v5238_v56  ;;  %v5252_v55 = vrot.slane %v11357_v24, 5  ;;  %v5270_v12 = vrot.slane %v11365_v30, 5  ;;  %v11372_v36 = vld [vmem:[%s14122_s18 + $0x22c] sm:$0x1] }
 0x22b   : > { %v8687_v1 = vsel %vm14125_vm2, %v11909_v59, %v8686_v46  ;;  %v5250_v62 = vsel %vm15091_vm10, %v11395_v32, %v5249_v25  ;;  %v11358_v59 = vld [vmem:[%s14122_s18 + $0x1d4] sm:$0xe] }
 0x22c   : > { %v11926_v9 = vcombine.low %v8687_v1, %v8690_v61  ;;  %v11396_v2 = vrot.slane %v11358_v59, 9  ;;  %v11397_v1 = vrot.slane %v11361_v45, 9  ;;  %v5265_v61 = vrot.slane %v5263_v0, 4  ;;  %v11378_v45 = vld [vmem:[%s14122_s18 + $0x254] sm:$0x1] }
 0x22d   : > { %v5272_v34 = vrot.slane %v5270_v12, 4 }
 0x22e   : > { %v5257_v5 = vsel %vm15091_vm10, %v11396_v2, %v5256_v31  ;;  %v5264_v13 = vsel %vm15091_vm10, %v11397_v1, %v5263_v0  ;;  %v11380_v31 = vld [vmem:[%s14122_s18 + $0x264] sm:$0xf] }
 0x22f   : > { %13003 = vmatmul.mubr.msk.bf16.gmra.mrb[36].mxu0 %vm789_vm3, %v11922_v41  ;;  %12701 = vmatmul.mubr.msk.bf16.gmra.mrb[40].mxu1 %vm789_vm3, %v11324_v33  ;;  %v11349_v41 = vld [vmem:[%s14122_s18 + $0x198] sm:$0xe]  ;;  %v5243_v33 = vsel %vm15091_vm10, %v11394_v11, %v5242_v10  ;;  %v11413_v4 = vcombine.low %v5257_v5, %v5260_v8  ;;  %v11374_v10 = vld [vmem:[%s14122_s18 + $0x23c] sm:$0xf]  ;;  %v5305_v43 = vrot.slane %v11380_v31, 5  ;;  %v1070_v31 = vld [vmem:[#allocation3 + $0x10] sm:$0xff] }
 0x230   : > { %13006 = vmatprep.mubr.msk.bf16.mxu0 %vm789_vm3, %v11923_v27  ;;  %12704 = vmatprep.mubr.msk.bf16.mxu1 %vm789_vm3, %v11325_v54  ;;  %v5230_v27 = vrot.slane %v5228_v51, 4  ;;  %v11393_v20 = vrot.slane %v11349_v41, 9  ;;  %v13998_v54 = vld [vmem:[%s14122_s18 + $0x228] sm:$0xff]   ;;  %v11368_v51 = vld [vmem:[%s14122_s18 + $0x214] sm:$0xf]  ;;  %v5291_v24 = vrot.slane %v11374_v10, 5 }
 0x231   : > { %v11366_v41 = vld [vmem:[%s14122_s18 + $0x204] sm:$0x1]  ;;  %v5277_v26 = vrot.slane %v11368_v51, 5  ;;  %v5307_v51 = vrot.slane %v5305_v43, 4  ;;  %v11383_v8 = vld [vmem:[%s14122_s18 + $0x278] sm:$0xf] }
 0x232   : > { %v5232_v48 = vsel %vm15091_vm10, %v5230_v27, %v5231_v44  ;;  %v5236_v14 = vsel %vm15091_vm10, %v11393_v20, %v5235_v42  ;;  %v5267_v42 = vsel %vm15091_vm10, %v5265_v61, %v5266_v35  ;;  %v14001_v27 = vld [vmem:[%s14122_s18 + $0x264] sm:$0xff]   ;;  %v5273_v56 = vrot.slane %v11366_v41, 5 }
 0x233   : > { %v11409_v46 = vcombine.low %v5229_v19, %v5232_v48  ;;  %v11410_v28 = vcombine.low %v5236_v14, %v5239_v21  ;;  %v11414_v44 = vcombine.low %v5264_v13, %v5267_v42  ;;  %v5279_v60 = vrot.slane %v5277_v26, 4  ;;  %v11371_v48 = vld [vmem:[%s14122_s18 + $0x228] sm:$0xf] }
 0x234   : > { %v5274_v21 = vsel %vm15091_vm10, %v5272_v34, %v5273_v56  ;;  %v5284_v29 = vrot.slane %v11371_v48, 5  ;;  %v5293_v47 = vrot.slane %v5291_v24, 4  ;;  %v5301_v35 = vrot.slane %v11378_v45, 5  ;;  %v14007_v34 = vld [vmem:[%s14122_s18 + $0x2dc] sm:$0xff]  }
 0x237   : > { %13007 = vmatmul.mubr.msk.bf16.gmra.mrb[40].mxu0 %vm789_vm3, %v11924_v50  ;;  %12705 = vmatmul.mubr.msk.bf16.gmra.mrb[44].mxu1 %vm789_vm3, %v11326_v16  ;;  %v5246_v50 = vsel %vm15091_vm10, %v5244_v38, %v5245_v39  ;;  %v14000_v16 = vld [vmem:[%s14122_s18 + $0x250] sm:$0xff]  }
 0x238   : > { %13010 = vmatprep.mubr.msk.bf16.mxu0 %vm789_vm3, %v11925_v57  ;;  %12710 = vmatprep.mubr.msk.bf16.mxu1 %vm789_vm3, %v11408_v53  ;;  %v5253_v57 = vsel %vm15091_vm10, %v5251_v52, %v5252_v55  ;;  %v11411_v58 = vcombine.low %v5243_v33, %v5246_v50  ;;  %v11369_v53 = vld [vmem:[%s14122_s18 + $0x218] sm:$0x1]  ;;  %v14003_v38 = vld [vmem:[%s14122_s18 + $0x28c] sm:$0xff]   ;;  %v5286_v52 = vrot.slane %v5284_v29, 4  ;;  %v5287_v55 = vrot.slane %v11372_v36, 5 }
 0x239   : > { %v11412_v63 = vcombine.low %v5250_v62, %v5253_v57  ;;  %v5280_v19 = vrot.slane %v11369_v53, 5  ;;  %v11377_v50 = vld [vmem:[%s14122_s18 + $0x250] sm:$0xf] }
 0x23a   : > { %v5288_v57 = vsel %vm15091_vm10, %v5286_v52, %v5287_v55  ;;  %v5298_v59 = vrot.slane %v11377_v50, 5  ;;  %v5659_v50 = vld [vmem:[#allocation4 + $0x10] sm:$0xff] }
 0x23b   : > { %v5281_v25 = vsel %vm15091_vm10, %v5279_v60, %v5280_v19 }
 0x23c   : > { %v5300_v61 = vrot.slane %v5298_v59, 4 }
 0x23e   : > { %v5302_v42 = vsel %vm15091_vm10, %v5300_v61, %v5301_v35 }
 0x23f   : > { %13011 = vmatmul.mubr.msk.bf16.gmra.mrb[44].mxu0 %vm789_vm3, %v11926_v9  ;;  %12711 = vmatmul.mubr.msk.bf16.vlgmr.msra.gmra.mrb[16].mxu1 %vm789_vm3, %v11409_v46  ;;  %v11364_v9 = vld [vmem:[%s14122_s18 + $0x1fc] sm:$0xe] }
 0x240   : > { %13016 = vmatprep.mubr.msk.bf16.mxu0 %vm789_vm3, %v13995_v18  ;;  %12714 = vmatprep.mubr.msk.bf16.mxu1 %vm789_vm3, %v11410_v28  ;;  %v11367_v18 = vld [vmem:[%s14122_s18 + $0x210] sm:$0xe]  ;;  %v11398_v20 = vrot.slane %v11364_v9, 9  ;;  %v14002_v46 = vld [vmem:[%s14122_s18 + $0x278] sm:$0xff]   ;;  %v11375_v28 = vld [vmem:[%s14122_s18 + $0x240] sm:$0x1] }
 0x241   : > { %v11399_v37 = vrot.slane %v11367_v18, 9  ;;  %v5294_v33 = vrot.slane %v11375_v28, 5  ;;  %v5312_v9 = vrot.slane %v11383_v8, 5  ;;  %v11384_v18 = vld [vmem:[%s14122_s18 + $0x27c] sm:$0x1] }
 0x242   : > { %v5271_v14 = vsel %vm15091_vm10, %v11398_v20, %v5270_v12  ;;  %v11386_v12 = vld [vmem:[%s14122_s18 + $0x28c] sm:$0xf]  ;;  %v5315_v19 = vrot.slane %v11384_v18, 5 }
 0x243   : > { %v5278_v23 = vsel %vm15091_vm10, %v11399_v37, %v5277_v26  ;;  %v11415_v11 = vcombine.low %v5271_v14, %v5274_v21  ;;  %v5295_v0 = vsel %vm15091_vm10, %v5293_v47, %v5294_v33  ;;  %v5319_v53 = vrot.slane %v11386_v12, 5  ;;  %v11389_v21 = vld [vmem:[%s14122_s18 + $0x2a0] sm:$0xf]  ;;  %v14010_v47 = vld [vmem:[%s14122_s18 + $0x318] sm:$0xff]   ;;  %v5663_v12 = vld [vmem:[#allocation4 + $0x30] sm:$0xff] }
 0x244   : > { %v11416_v39 = vcombine.low %v5278_v23, %v5281_v25  ;;  %v5314_v60 = vrot.slane %v5312_v9, 4  ;;  %v5326_v25 = vrot.slane %v11389_v21, 5 }
 0x245   : > { %v5321_v10 = vrot.slane %v5319_v53, 4 }
 0x246   : > { %v5316_v23 = vsel %vm15091_vm10, %v5314_v60, %v5315_v19  ;;  %v1073_v60 = vld [vmem:[#allocation3 + $0x28] sm:$0xff] }
 0x247   : > { %13017 = vmatmul.mubr.msk.bf16.vlgmr.msra.gmra.mrb[16].mxu0 %vm789_vm3, %v13996_v6  ;;  %12715 = vmatmul.mubr.msk.bf16.gmra.mrb[20].mxu1 %vm789_vm3, %v11411_v58  ;;  %v11370_v6 = vld [vmem:[%s14122_s18 + $0x224] sm:$0xe] }
 0x248   : > { %13020 = vmatprep.mubr.msk.bf16.mxu0 %vm789_vm3, %v13997_v17  ;;  %12718 = vmatprep.mubr.msk.bf16.mxu1 %vm789_vm3, %v11412_v63  ;;  %v11373_v17 = vld [vmem:[%s14122_s18 + $0x238] sm:$0xe]  ;;  %v11400_v32 = vrot.slane %v11370_v6, 9  ;;  %v14004_v58 = vld [vmem:[%s14122_s18 + $0x2a0] sm:$0xff]   ;;  %v11381_v63 = vld [vmem:[%s14122_s18 + $0x268] sm:$0x1] }
 0x249   : > { %v11401_v40 = vrot.slane %v11373_v17, 9  ;;  %v5308_v5 = vrot.slane %v11381_v63, 5  ;;  %v14008_v17 = vld [vmem:[%s14122_s18 + $0x2f0] sm:$0xff]  }
 0x24a   : > { %v5285_v62 = vsel %vm15091_vm10, %v11400_v32, %v5284_v29  ;;  %v5328_v32 = vrot.slane %v5326_v25, 4 }
 0x24b   : > { %v5292_v49 = vsel %vm15091_vm10, %v11401_v40, %v5291_v24  ;;  %v11417_v2 = vcombine.low %v5285_v62, %v5288_v57  ;;  %v5309_v26 = vsel %vm15091_vm10, %v5307_v51, %v5308_v5  ;;  %v11388_v24 = vld [vmem:[%s14122_s18 + $0x29c] sm:$0xe]  ;;  %v5657_v62 = vld [vmem:[#allocation4] sm:$0xff] }
 0x24c   : > { %v11418_v15 = vcombine.low %v5292_v49, %v5295_v0  ;;  %v5660_v49 = vld [vmem:[#allocation4 + $0x18] sm:$0xff] }
 0x24f   : > { %13021 = vmatmul.mubr.msk.bf16.gmra.mrb[20].mxu0 %vm789_vm3, %v13998_v54  ;;  %12719 = vmatmul.mubr.msk.bf16.gmra.mrb[24].mxu1 %vm789_vm3, %v11413_v4  ;;  %v11376_v54 = vld [vmem:[%s14122_s18 + $0x24c] sm:$0xe] }
 0x250   : > { %13024 = vmatprep.mubr.msk.bf16.mxu0 %vm789_vm3, %v13999_v7  ;;  %12722 = vmatprep.mubr.msk.bf16.mxu1 %vm789_vm3, %v11414_v44  ;;  %v11379_v7 = vld [vmem:[%s14122_s18 + $0x260] sm:$0xe]  ;;  %v11402_v1 = vrot.slane %v11376_v54, 9  ;;  %v14006_v4 = vld [vmem:[%s14122_s18 + $0x2c8] sm:$0xff]   ;;  %v11387_v44 = vld [vmem:[%s14122_s18 + $0x290] sm:$0x1] }
 0x251   : > { %v11403_v30 = vrot.slane %v11379_v7, 9  ;;  %v5322_v14 = vrot.slane %v11387_v44, 5  ;;  %v16838_v44 = vld [vmem:[%s17274_s5] ss:$0 sm:$0xff] }
 0x252   : > { %v5299_v13 = vsel %vm15091_vm10, %v11402_v1, %v5298_v59  ;;  %v1068_v59 = vld [vmem:[#allocation3] sm:$0xff] }
 0x253   : > { %v5306_v41 = vsel %vm15091_vm10, %v11403_v30, %v5305_v43  ;;  %v11419_v20 = vcombine.low %v5299_v13, %v5302_v42  ;;  %v5323_v36 = vsel %vm15091_vm10, %v5321_v10, %v5322_v14  ;;  %v1071_v43 = vld [vmem:[#allocation3 + $0x18] sm:$0xff]  ;;  %v1074_v13 = vld [vmem:[#allocation3 + $0x30] sm:$0xff]  ;;  %v5661_v42 = vld [vmem:[#allocation4 + $0x20] sm:$0xff] }
 0x254   : > { %v11420_v56 = vcombine.low %v5306_v41, %v5309_v26  ;;  %v1072_v41 = vld [vmem:[#allocation3 + $0x20] sm:$0xff]  ;;  %v5664_v26 = vld [vmem:[#allocation4 + $0x38] sm:$0xff] }
 0x257   : > { %13025 = vmatmul.mubr.msk.bf16.gmra.mrb[24].mxu0 %vm789_vm3, %v14000_v16  ;;  %12723 = vmatmul.mubr.msk.bf16.gmra.mrb[28].mxu1 %vm789_vm3, %v11415_v11  ;;  %v11382_v16 = vld [vmem:[%s14122_s18 + $0x274] sm:$0xe]  ;;  %v14009_v11 = vld [vmem:[%s14122_s18 + $0x304] sm:$0xff]  }
 0x258   : > { %13028 = vmatprep.mubr.msk.bf16.mxu0 %vm789_vm3, %v14001_v27  ;;  %12726 = vmatprep.mubr.msk.bf16.mxu1 %vm789_vm3, %v11416_v39  ;;  %v11385_v27 = vld [vmem:[%s14122_s18 + $0x288] sm:$0xe]  ;;  %v11404_v37 = vrot.slane %v11382_v16, 9  ;;  %v11406_v39 = vrot.slane %v11388_v24, 9 }
 0x259   : > { %v11405_v48 = vrot.slane %v11385_v27, 9  ;;  %v5662_v27 = vld [vmem:[#allocation4 + $0x28] sm:$0xff] }
 0x25a   : > { %v5313_v29 = vsel %vm15091_vm10, %v11404_v37, %v5312_v9  ;;  %v5327_v55 = vsel %vm15091_vm10, %v11406_v39, %v5326_v25 }
 0x25b   : > { %v5320_v6 = vsel %vm15091_vm10, %v11405_v48, %v5319_v53  ;;  %v11421_v28 = vcombine.low %v5313_v29, %v5316_v23 }
 0x25f   : > { %13029 = vmatmul.mubr.msk.bf16.gmra.mrb[28].mxu0 %vm789_vm3, %v14002_v46  ;;  %12727 = vmatmul.mubr.msk.bf16.gmra.mrb[32].mxu1 %vm789_vm3, %v11417_v2  ;;  %v11390_v46 = vld [vmem:[%s14122_s18 + $0x2a4] sm:$0x1] }
 0x260   : > { %13032 = vmatprep.mubr.msk.bf16.mxu0 %vm789_vm3, %v14003_v38  ;;  %12730 = vmatprep.mubr.msk.bf16.mxu1 %vm789_vm3, %v11418_v15  ;;  %v11422_v38 = vcombine.low %v5320_v6, %v5323_v36  ;;  %v5329_v52 = vrot.slane %v11390_v46, 5  ;;  %v16847_v46 = vld [vmem:[%s17276_s7] ss:$0 sm:$0xff] }
 0x262   : > { %v5330_v40 = vsel %vm15091_vm10, %v5328_v32, %v5329_v52  ;;  %v5667_v32 = vld [vmem:[#allocation4 + $0x50] sm:$0xff] }
 0x263   : > { %v11423_v33 = vcombine.low %v5327_v55, %v5330_v40 }
 0x267   : > { %13033 = vmatmul.mubr.msk.bf16.gmra.mrb[32].mxu0 %vm789_vm3, %v14004_v58  ;;  %12731 = vmatmul.mubr.msk.bf16.gmra.mrb[36].mxu1 %vm789_vm3, %v11419_v20  ;;  %v5658_v58 = vld [vmem:[#allocation4 + $0x8] sm:$0xff] }
 0x268   : > { %13036 = vmatprep.mubr.msk.bf16.mxu0 %vm789_vm3, %v14005_v22  ;;  %12734 = vmatprep.mubr.msk.bf16.mxu1 %vm789_vm3, %v11420_v56  ;;  %v1069_v22 = vld [vmem:[#allocation3 + $0x8] sm:$0xff] }
 0x26f   : > { %13037 = vmatmul.mubr.msk.bf16.gmra.mrb[36].mxu0 %vm789_vm3, %v14006_v4  ;;  %12735 = vmatmul.mubr.msk.bf16.gmra.mrb[40].mxu1 %vm789_vm3, %v11421_v28  ;;  %v1075_v4 = vld [vmem:[#allocation3 + $0x38] sm:$0xff] }
 0x270   : > { %13040 = vmatprep.mubr.msk.bf16.mxu0 %vm789_vm3, %v14007_v34  ;;  %12738 = vmatprep.mubr.msk.bf16.mxu1 %vm789_vm3, %v11422_v38 }
 0x277   : > { %13041 = vmatmul.mubr.msk.bf16.gmra.mrb[40].mxu0 %vm789_vm3, %v14008_v17  ;;  %12739 = vmatmul.mubr.msk.bf16.gmra.mrb[44].mxu1 %vm789_vm3, %v11423_v33  ;;  %v1078_v33 = vld [vmem:[#allocation3 + $0x50] sm:$0xff] }
 0x278   : > { %13044 = vmatprep.mubr.msk.bf16.mxu0 %vm789_vm3, %v14009_v11 }
 0x27f   : > { %13045 = vmatmul.mubr.msk.bf16.gmra.mrb[44].mxu0 %vm789_vm3, %v14010_v47 }
 0x312   : > { %v12712_v0 = vpop.f32.mrb[16].mxu1 }
 0x313   : > { %v13050_v7 = vadd.f32 %v12712_v0, %v1070_v31  ;;  %v5466_v3 = vpop.f32.mrb[17].mxu1  ;;  %v5668_v0 = vld [vmem:[#allocation4 + $0x58] sm:$0xff] }
 0x314   : > { %v13051_v15 = vadd.f32 %v5466_v3, %v1068_v59  ;;  %v12713_v1 = vpop.f32.mrb[18].mxu1  ;;  %v1076_v59 = vld [vmem:[#allocation3 + $0x40] sm:$0xff] }
 0x315   : > { %5627 = vst.msk [vmem:[#allocation3 + $0x10] sm:$0xff] %vm399_vm7, %v13050_v7  ;;  %v13052_v30 = vadd.f32 %v12713_v1, %v1071_v43  ;;  %v5469_v51 = vpop.f32.mrb[19].mxu1 }
 0x316   : > { %5625 = vst.msk [vmem:[#allocation3] sm:$0xff] %vm399_vm7, %v13051_v15  ;;  %v13053_v8 = vadd.f32 %v5469_v51, %v1069_v22  ;;  %v1077_v51 = vld [vmem:[#allocation3 + $0x48] sm:$0xff] }
 0x317   : > { %5628 = vst.msk [vmem:[#allocation3 + $0x18] sm:$0xff] %vm399_vm7, %v13052_v30 }
 0x318   : > { %5626 = vst.msk [vmem:[#allocation3 + $0x8] sm:$0xff] %vm399_vm7, %v13053_v8 }
 0x31a   : > { %v13018_v57 = vpop.f32.mrb[16].mxu0  ;;  %v12716_v16 = vpop.f32.mrb[20].mxu1 }
 0x31b   : > { %v13082_v54 = vadd.f32 %v13018_v57, %v5659_v50  ;;  %v9184_v45 = vpop.f32.mrb[17].mxu0  ;;  %v13054_v20 = vadd.f32 %v12716_v16, %v1074_v13  ;;  %v5482_v34 = vpop.f32.mrb[21].mxu1  ;;  %v5665_v50 = vld [vmem:[#allocation4 + $0x40] sm:$0xff] }
 0x31c   : > { %v13083_v63 = vadd.f32 %v9184_v45, %v5657_v62  ;;  %v13019_v2 = vpop.f32.mrb[18].mxu0  ;;  %v13055_v19 = vadd.f32 %v5482_v34, %v1072_v41  ;;  %v12717_v48 = vpop.f32.mrb[22].mxu1  ;;  %v9490_v21 = vld [vmem:[#allocation3 + $0x10] sm:$0xff] }
 0x31d   : > { %9345 = vst.msk [vmem:[#allocation4 + $0x10] sm:$0xff] %vm399_vm7, %v13082_v54  ;;  %v13084_v61 = vadd.f32 %v13019_v2, %v5660_v49  ;;  %v9187_v35 = vpop.f32.mrb[19].mxu0  ;;  %5631 = vst.msk [vmem:[#allocation3 + $0x30] sm:$0xff] %vm399_vm7, %v13054_v20  ;;  %v13056_v29 = vadd.f32 %v12717_v48, %v1075_v4  ;;  %v5485_v23 = vpop.f32.mrb[23].mxu1  ;;  %v9529_v6 = vadd.f32 %v16838_v44, %v9490_v21  ;;  %v9488_v36 = vld [vmem:[#allocation3] sm:$0xff]  ;;  %v1079_v49 = vld [vmem:[#allocation3 + $0x58] sm:$0xff] }
 0x31e   : > { %9343 = vst.msk [vmem:[#allocation4] sm:$0xff] %vm399_vm7, %v13083_v63  ;;  %v13085_v5 = vadd.f32 %v9187_v35, %v5658_v58  ;;  %5629 = vst.msk [vmem:[#allocation3 + $0x20] sm:$0xff] %vm399_vm7, %v13055_v19  ;;  %v13057_v17 = vadd.f32 %v5485_v23, %v1073_v60  ;;  %v9491_v28 = vld [vmem:[#allocation3 + $0x18] sm:$0xff]  ;;  %v9527_v11 = vadd.f32 %v16838_v44, %v9488_v36  ;;  %v5666_v63 = vld [vmem:[#allocation4 + $0x48] sm:$0xff] }
 0x31f   : > { %9346 = vst.msk [vmem:[#allocation4 + $0x18] sm:$0xff] %vm399_vm7, %v13084_v61  ;;  %5632 = vst.msk [vmem:[#allocation3 + $0x38] sm:$0xff] %vm399_vm7, %v13056_v29  ;;  %v9530_v52 = vadd.f32 %v16838_v44, %v9491_v28  ;;  %v9489_v55 = vld [vmem:[#allocation3 + $0x8] sm:$0xff]  ;;  %v9561_v54 = vmax.f32 %v9529_v6, 0.0  ;;  %v5671_v29 = vld [vmem:[#allocation4 + $0x70] sm:$0xff] }
 0x320   : > { %9344 = vst.msk [vmem:[#allocation4 + $0x8] sm:$0xff] %vm399_vm7, %v13085_v5  ;;  %5630 = vst.msk [vmem:[#allocation3 + $0x28] sm:$0xff] %vm399_vm7, %v13057_v17  ;;  %v9528_v31 = vadd.f32 %v16838_v44, %v9489_v55  ;;  %v9559_v2 = vmax.f32 %v9527_v11, 0.0  ;;  %v5669_v28 = vld [vmem:[#allocation4 + $0x60] sm:$0xff] }
 0x321   : > { %v9562_v45 = vmax.f32 %v9530_v52, 0.0  ;;  %v5672_v52 = vld [vmem:[#allocation4 + $0x78] sm:$0xff] }
 0x322   : > { %v13022_v9 = vpop.f32.mrb[20].mxu0  ;;  %v12720_v58 = vpop.f32.mrb[24].mxu1  ;;  %v9560_v22 = vmax.f32 %v9528_v31, 0.0 }
 0x323   : > { %v13086_v18 = vadd.f32 %v13022_v9, %v5663_v12  ;;  %v9200_v53 = vpop.f32.mrb[21].mxu0  ;;  %v13058_v1 = vadd.f32 %v12720_v58, %v1078_v33  ;;  %v5498_v61 = vpop.f32.mrb[25].mxu1  ;;  %v13755_v5 = vpack.i.bf16 %v9562_v45, %v9561_v54 }
 0x324   : > { %v13087_v56 = vadd.f32 %v9200_v53, %v5661_v42  ;;  %v13023_v37 = vpop.f32.mrb[22].mxu0  ;;  %v9593_v38 = vld [vmem:[#allocation4 + $0x10] sm:$0xff]  ;;  %v13059_v12 = vadd.f32 %v5498_v61, %v1076_v59  ;;  %v12721_v13 = vpop.f32.mrb[26].mxu1  ;;  %v13765_v41 = vpack.i.bf16 %v9560_v22, %v9559_v2 }
 0x325   : > { %9349 = vst.msk [vmem:[#allocation4 + $0x30] sm:$0xff] %vm399_vm7, %v13086_v18  ;;  %v13088_v10 = vadd.f32 %v13023_v37, %v5664_v26  ;;  %v9203_v14 = vpop.f32.mrb[23].mxu0  ;;  %v9591_v47 = vld [vmem:[#allocation4] sm:$0xff]  ;;  %v9632_v43 = vadd.f32 %v16847_v46, %v9593_v38  ;;  %v9494_v16 = vld [vmem:[#allocation3 + $0x30] sm:$0xff]  ;;  %5635 = vst.msk [vmem:[#allocation3 + $0x50] sm:$0xff] %vm399_vm7, %v13058_v1  ;;  %v13060_v18 = vadd.f32 %v12721_v13, %v1079_v49  ;;  %v5501_v53 = vpop.f32.mrb[27].mxu1  ;;  %13756 = vrot.lane.b32.xlu1 %v13755_v5, %s14037_s23 }
 0x326   : > { %9347 = vst.msk [vmem:[#allocation4 + $0x20] sm:$0xff] %vm399_vm7, %v13087_v56  ;;  %v13089_v25 = vadd.f32 %v9203_v14, %v5662_v27  ;;  %v9594_v24 = vld [vmem:[#allocation4 + $0x18] sm:$0xff]  ;;  %v9630_v15 = vadd.f32 %v16847_v46, %v9591_v47  ;;  %v9533_v20 = vadd.f32 %v16838_v44, %v9494_v16  ;;  %v9492_v34 = vld [vmem:[#allocation3 + $0x20] sm:$0xff]  ;;  %5633 = vst.msk [vmem:[#allocation3 + $0x40] sm:$0xff] %vm399_vm7, %v13059_v12  ;;  %13766 = vrot.lane.b32.xlu0 %v13765_v41, %s14037_s23 }
 0x327   : > { %9350 = vst.msk [vmem:[#allocation4 + $0x38] sm:$0xff] %vm399_vm7, %v13088_v10  ;;  %v9592_v39 = vld [vmem:[#allocation4 + $0x8] sm:$0xff]  ;;  %v9633_v40 = vadd.f32 %v16847_v46, %v9594_v24  ;;  %v9664_v27 = vmax.f32 %v9632_v43, 0.0  ;;  %v13061_v37 = vadd.f32 %v5501_v53, %v1077_v51  ;;  %v9495_v19 = vld [vmem:[#allocation3 + $0x38] sm:$0xff]  ;;  %v9531_v48 = vadd.f32 %v16838_v44, %v9492_v34  ;;  %5636 = vst.msk [vmem:[#allocation3 + $0x58] sm:$0xff] %vm399_vm7, %v13060_v18 }
 0x328   : > { %9348 = vst.msk [vmem:[#allocation4 + $0x28] sm:$0xff] %vm399_vm7, %v13089_v25  ;;  %v9631_v62 = vadd.f32 %v16847_v46, %v9592_v39  ;;  %v9662_v60 = vmax.f32 %v9630_v15, 0.0  ;;  %v9534_v23 = vadd.f32 %v16838_v44, %v9495_v19  ;;  %v9493_v25 = vld [vmem:[#allocation3 + $0x28] sm:$0xff]  ;;  %v1082_v24 = vld [vmem:[#allocation3 + $0x70] sm:$0xff]  ;;  %v9565_v55 = vmax.f32 %v9533_v20, 0.0 }
 0x329   : > { %v9665_v8 = vmax.f32 %v9633_v40, 0.0  ;;  %5634 = vst.msk [vmem:[#allocation3 + $0x48] sm:$0xff] %vm399_vm7, %v13061_v37  ;;  %v9532_v11 = vadd.f32 %v16838_v44, %v9493_v25  ;;  %v9563_v59 = vmax.f32 %v9531_v48, 0.0  ;;  %v5675_v20 = vld [vmem:[#allocation4 + $0x90] sm:$0xff]  ;;  %v5676_v25 = vld [vmem:[#allocation4 + $0x98] sm:$0xff] }
 0x32a   : > { %v13026_v57 = vpop.f32.mrb[24].mxu0  ;;  %v9663_v26 = vmax.f32 %v9631_v62, 0.0  ;;  %v9566_v40 = vmax.f32 %v9534_v23, 0.0  ;;  %v12724_v33 = vpop.f32.mrb[28].mxu1  ;;  %v1083_v62 = vld [vmem:[#allocation3 + $0x78] sm:$0xff]  ;;  %v1086_v19 = vld [vmem:[#allocation3 + $0x90] sm:$0xff] }
 0x32b   : > { %v13090_v7 = vadd.f32 %v13026_v57, %v5667_v32  ;;  %v9216_v3 = vpop.f32.mrb[25].mxu0  ;;  %v13760_v21 = vpack.i.bf16 %v9665_v8, %v9664_v27  ;;  %v1080_v32 = vld [vmem:[#allocation3 + $0x60] sm:$0xff]  ;;  %v5670_v57 = vld [vmem:[#allocation4 + $0x68] sm:$0xff]  ;;  %v9564_v49 = vmax.f32 %v9532_v11, 0.0  ;;  %v13062_v54 = vadd.f32 %v12724_v33, %v1082_v24  ;;  %v5514_v45 = vpop.f32.mrb[29].mxu1 }
 0x32c   : > { %v13091_v35 = vadd.f32 %v9216_v3, %v5665_v50  ;;  %v13027_v30 = vpop.f32.mrb[26].mxu0  ;;  %v9597_v10 = vld [vmem:[#allocation4 + $0x30] sm:$0xff]  ;;  %v13770_v17 = vpack.i.bf16 %v9663_v26, %v9662_v60  ;;  %v13775_v3 = vpack.i.bf16 %v9566_v40, %v9565_v55  ;;  %v13063_v2 = vadd.f32 %v5514_v45, %v1080_v32  ;;  %v12725_v22 = vpop.f32.mrb[30].mxu1  ;;  %v1084_v23 = vld [vmem:[#allocation3 + $0x80] sm:$0xff] }
 0x32d   : > { %9353 = vst.msk [vmem:[#allocation4 + $0x50] sm:$0xff] %vm399_vm7, %v13090_v7  ;;  %v13092_v42 = vadd.f32 %v13027_v30, %v5668_v0  ;;  %v9219_v9 = vpop.f32.mrb[27].mxu0  ;;  %v9595_v36 = vld [vmem:[#allocation4 + $0x20] sm:$0xff]  ;;  %13761 = vrot.lane.b32.xlu1 %v13760_v21, %s14038_s24  ;;  %v9636_v47 = vadd.f32 %v16847_v46, %v9597_v10  ;;  %v1081_v7 = vld [vmem:[#allocation3 + $0x68] sm:$0xff]  ;;  %v13785_v61 = vpack.i.bf16 %v9564_v49, %v9563_v59  ;;  %v9498_v30 = vld [vmem:[#allocation3 + $0x50] sm:$0xff]  ;;  %v5517_v5 = vpop.f32.mrb[31].mxu1 }
 0x32e   : > { %9351 = vst.msk [vmem:[#allocation4 + $0x40] sm:$0xff] %vm399_vm7, %v13091_v35  ;;  %v13093_v4 = vadd.f32 %v9219_v9, %v5666_v63  ;;  %v9598_v56 = vld [vmem:[#allocation4 + $0x38] sm:$0xff]  ;;  %13771 = vrot.lane.b32.xlu0 %v13770_v17, %s14038_s24  ;;  %v9634_v0 = vadd.f32 %v16847_v46, %v9595_v36  ;;  %5639 = vst.msk [vmem:[#allocation3 + $0x70] sm:$0xff] %vm399_vm7, %v13062_v54  ;;  %v13064_v51 = vadd.f32 %v12725_v22, %v1083_v62  ;;  %v5673_v10 = vld [vmem:[#allocation4 + $0x80] sm:$0xff] }
 0x32f   : > { %9354 = vst.msk [vmem:[#allocation4 + $0x58] sm:$0xff] %vm399_vm7, %v13092_v42  ;;  %v9596_v14 = vld [vmem:[#allocation4 + $0x28] sm:$0xff]  ;;  %v9637_v6 = vadd.f32 %v16847_v46, %v9598_v56  ;;  %v9668_v12 = vmax.f32 %v9636_v47, 0.0  ;;  %v9537_v13 = vadd.f32 %v16838_v44, %v9498_v30  ;;  %v9496_v42 = vld [vmem:[#allocation3 + $0x40] sm:$0xff]  ;;  %5637 = vst.msk [vmem:[#allocation3 + $0x60] sm:$0xff] %vm399_vm7, %v13063_v2  ;;  %v13065_v41 = vadd.f32 %v5517_v5, %v1081_v7 }
 0x330   : > { %9352 = vst.msk [vmem:[#allocation4 + $0x48] sm:$0xff] %vm399_vm7, %v13093_v4  ;;  %v16877_v38 = vadd.f32 %v16847_v46, %v9596_v14  ;;  %v9666_v26 = vmax.f32 %v9634_v0, 0.0  ;;  %v9499_v16 = vld [vmem:[#allocation3 + $0x58] sm:$0xff]  ;;  %v9535_v18 = vadd.f32 %v16838_v44, %v9496_v42  ;;  %5640 = vst.msk [vmem:[#allocation3 + $0x78] sm:$0xff] %vm399_vm7, %v13064_v51  ;;  %v9497_v56 = vld [vmem:[#allocation3 + $0x48] sm:$0xff] }
 0x331   : > { %v9669_v63 = vmax.f32 %v9637_v6, 0.0  ;;  %13776 = vrot.lane.b32.xlu1 %v13775_v3, %s14037_s23  ;;  %v9538_v34 = vadd.f32 %v16838_v44, %v9499_v16  ;;  %5638 = vst.msk [vmem:[#allocation3 + $0x68] sm:$0xff] %vm399_vm7, %v13065_v41  ;;  %v9536_v14 = vadd.f32 %v16838_v44, %v9497_v56  ;;  %v9569_v6 = vmax.f32 %v9537_v13, 0.0  ;;  %v5679_v13 = vld [vmem:[#allocation4 + $0xb0] sm:$0xff]  ;;  %v5680_v56 = vld [vmem:[#allocation4 + $0xb8] sm:$0xff] }
 0x332   : > { %v13030_v39 = vpop.f32.mrb[28].mxu0  ;;  %v9667_v35 = vmax.f32 %v16877_v38, 0.0  ;;  %13786 = vrot.lane.b32.xlu0 %v13785_v61, %s14037_s23  ;;  %v12728_v17 = vpop.f32.mrb[32].mxu1  ;;  %v1087_v38 = vld [vmem:[#allocation3 + $0x98] sm:$0xff]  ;;  %v9567_v32 = vmax.f32 %v9535_v18, 0.0  ;;  %v1090_v16 = vld [vmem:[#allocation3 + $0xb0] sm:$0xff] }
 0x333   : > { %v13094_v50 = vadd.f32 %v13030_v39, %v5671_v29  ;;  %v9232_v31 = vpop.f32.mrb[29].mxu0  ;;  %v13780_v27 = vpack.i.bf16 %v9669_v63, %v9668_v12  ;;  %v9570_v36 = vmax.f32 %v9538_v34, 0.0  ;;  %v5674_v39 = vld [vmem:[#allocation4 + $0x88] sm:$0xff]  ;;  %v13066_v40 = vadd.f32 %v12728_v17, %v1086_v19  ;;  %v5530_v47 = vpop.f32.mrb[33].mxu1  ;;  %v1088_v34 = vld [vmem:[#allocation3 + $0xa0] sm:$0xff] }
 0x334   : > { %v13095_v43 = vadd.f32 %v9232_v31, %v5669_v28  ;;  %v13031_v58 = vpop.f32.mrb[30].mxu0  ;;  %v9601_v53 = vld [vmem:[#allocation4 + $0x50] sm:$0xff]  ;;  %v13790_v48 = vpack.i.bf16 %v9667_v35, %v9666_v26  ;;  %v1085_v31 = vld [vmem:[#allocation3 + $0x88] sm:$0xff]  ;;  %v13067_v59 = vadd.f32 %v5530_v47, %v1084_v23  ;;  %v12729_v49 = vpop.f32.mrb[34].mxu1 }
 0x335   : > { %9357 = vst.msk [vmem:[#allocation4 + $0x70] sm:$0xff] %vm399_vm7, %v13094_v50  ;;  %v13096_v15 = vadd.f32 %v13031_v58, %v5672_v52  ;;  %v9235_v1 = vpop.f32.mrb[31].mxu0  ;;  %v9599_v60 = vld [vmem:[#allocation4 + $0x40] sm:$0xff]  ;;  %13781 = vrot.lane.b32.xlu1 %v13780_v27, %s14038_s24  ;;  %v9640_v24 = vadd.f32 %v16847_v46, %v9601_v53  ;;  %v9568_v52 = vmax.f32 %v9536_v14, 0.0  ;;  %v13795_v62 = vpack.i.bf16 %v9570_v36, %v9569_v6  ;;  %v9502_v58 = vld [vmem:[#allocation3 + $0x70] sm:$0xff]  ;;  %v5533_v3 = vpop.f32.mrb[35].mxu1 }
 0x336   : > { %9355 = vst.msk [vmem:[#allocation4 + $0x60] sm:$0xff] %vm399_vm7, %v13095_v43  ;;  %v13097_v8 = vadd.f32 %v9235_v1, %v5670_v57  ;;  %v9602_v9 = vld [vmem:[#allocation4 + $0x58] sm:$0xff]  ;;  %13791 = vrot.lane.b32.xlu0 %v13790_v48, %s14038_s24  ;;  %v9638_v55 = vadd.f32 %v16847_v46, %v9599_v60  ;;  %5643 = vst.msk [vmem:[#allocation3 + $0x90] sm:$0xff] %vm399_vm7, %v13066_v40  ;;  %v13068_v7 = vadd.f32 %v12729_v49, %v1087_v38  ;;  %v5677_v53 = vld [vmem:[#allocation4 + $0xa0] sm:$0xff] }
 0x337   : > { %9358 = vst.msk [vmem:[#allocation4 + $0x78] sm:$0xff] %vm399_vm7, %v13096_v15  ;;  %v9600_v4 = vld [vmem:[#allocation4 + $0x48] sm:$0xff]  ;;  %v9641_v37 = vadd.f32 %v16847_v46, %v9602_v9  ;;  %v13805_v45 = vpack.i.bf16 %v9568_v52, %v9567_v32  ;;  %v9672_v2 = vmax.f32 %v9640_v24, 0.0  ;;  %v9541_v22 = vadd.f32 %v16838_v44, %v9502_v58  ;;  %v9500_v15 = vld [vmem:[#allocation3 + $0x60] sm:$0xff]  ;;  %5641 = vst.msk [vmem:[#allocation3 + $0x80] sm:$0xff] %vm399_vm7, %v13067_v59 }
 0x338   : > { %9356 = vst.msk [vmem:[#allocation4 + $0x68] sm:$0xff] %vm399_vm7, %v13097_v8  ;;  %v9639_v21 = vadd.f32 %v16847_v46, %v9600_v4  ;;  %v13069_v61 = vadd.f32 %v5533_v3, %v1085_v31  ;;  %v9670_v35 = vmax.f32 %v9638_v55, 0.0  ;;  %v9503_v30 = vld [vmem:[#allocation3 + $0x78] sm:$0xff]  ;;  %v9539_v51 = vadd.f32 %v16838_v44, %v9500_v15  ;;  %5644 = vst.msk [vmem:[#allocation3 + $0x98] sm:$0xff] %vm399_vm7, %v13068_v7  ;;  %v9501_v9 = vld [vmem:[#allocation3 + $0x68] sm:$0xff] }
 0x339   : > { %v9673_v57 = vmax.f32 %v9641_v37, 0.0  ;;  %13796 = vrot.lane.b32.xlu1 %v13795_v62, %s14037_s23  ;;  %v9542_v42 = vadd.f32 %v16838_v44, %v9503_v30  ;;  %v9540_v4 = vadd.f32 %v16838_v44, %v9501_v9  ;;  %v9573_v37 = vmax.f32 %v9541_v22, 0.0  ;;  %v5683_v22 = vld [vmem:[#allocation4 + $0xd0] sm:$0xff]  ;;  %v5684_v9 = vld [vmem:[#allocation4 + $0xd8] sm:$0xff] }
 0x33a   : > { %v13034_v29 = vpop.f32.mrb[32].mxu0  ;;  %v9671_v43 = vmax.f32 %v9639_v21, 0.0  ;;  %13806 = vrot.lane.b32.xlu0 %v13805_v45, %s14037_s23  ;;  %5642 = vst.msk [vmem:[#allocation3 + $0x88] sm:$0xff] %vm399_vm7, %v13069_v61  ;;  %v12732_v48 = vpop.f32.mrb[36].mxu1  ;;  %v1091_v21 = vld [vmem:[#allocation3 + $0xb8] sm:$0xff]  ;;  %v9571_v23 = vmax.f32 %v9539_v51, 0.0 }
 0x33b   : > { %v13098_v28 = vadd.f32 %v13034_v29, %v5675_v20  ;;  %v9248_v11 = vpop.f32.mrb[33].mxu0  ;;  %v13800_v12 = vpack.i.bf16 %v9673_v57, %v9672_v2  ;;  %v9574_v60 = vmax.f32 %v9542_v42, 0.0  ;;  %v5678_v29 = vld [vmem:[#allocation4 + $0xa8] sm:$0xff]  ;;  %v13070_v36 = vadd.f32 %v12732_v48, %v1090_v16  ;;  %v5546_v24 = vpop.f32.mrb[37].mxu1  ;;  %v1094_v30 = vld [vmem:[#allocation3 + $0xd0] sm:$0xff]  ;;  %v1092_v42 = vld [vmem:[#allocation3 + $0xc0] sm:$0xff] }
 0x33c   : > { %v13099_v33 = vadd.f32 %v9248_v11, %v5673_v10  ;;  %v13035_v50 = vpop.f32.mrb[34].mxu0  ;;  %v9605_v5 = vld [vmem:[#allocation4 + $0x70] sm:$0xff]  ;;  %v13810_v18 = vpack.i.bf16 %v9671_v43, %v9670_v35  ;;  %v1089_v11 = vld [vmem:[#allocation3 + $0xa8] sm:$0xff]  ;;  %v13071_v32 = vadd.f32 %v5546_v24, %v1088_v34  ;;  %v12733_v52 = vpop.f32.mrb[38].mxu1 }
 0x33d   : > { %9361 = vst.msk [vmem:[#allocation4 + $0x90] sm:$0xff] %vm399_vm7, %v13098_v28  ;;  %v13100_v0 = vadd.f32 %v13035_v50, %v5676_v25  ;;  %v9251_v54 = vpop.f32.mrb[35].mxu0  ;;  %v9603_v26 = vld [vmem:[#allocation4 + $0x60] sm:$0xff]  ;;  %13801 = vrot.lane.b32.xlu1 %v13800_v12, %s14038_s24  ;;  %v9644_v19 = vadd.f32 %v16847_v46, %v9605_v5  ;;  %v9572_v25 = vmax.f32 %v9540_v4, 0.0  ;;  %v13815_v38 = vpack.i.bf16 %v9574_v60, %v9573_v37  ;;  %v9506_v50 = vld [vmem:[#allocation3 + $0x90] sm:$0xff]  ;;  %v5549_v62 = vpop.f32.mrb[39].mxu1 }
 0x33e   : > { %9359 = vst.msk [vmem:[#allocation4 + $0x80] sm:$0xff] %vm399_vm7, %v13099_v33  ;;  %v13101_v63 = vadd.f32 %v9251_v54, %v5674_v39  ;;  %v9606_v1 = vld [vmem:[#allocation4 + $0x78] sm:$0xff]  ;;  %13811 = vrot.lane.b32.xlu0 %v13810_v18, %s14038_s24  ;;  %v9642_v6 = vadd.f32 %v16847_v46, %v9603_v26  ;;  %5647 = vst.msk [vmem:[#allocation3 + $0xb0] sm:$0xff] %vm399_vm7, %v13070_v36  ;;  %v13072_v31 = vadd.f32 %v12733_v52, %v1091_v21  ;;  %v5681_v5 = vld [vmem:[#allocation4 + $0xc0] sm:$0xff] }
 0x33f   : > { %9362 = vst.msk [vmem:[#allocation4 + $0x98] sm:$0xff] %vm399_vm7, %v13100_v0  ;;  %v9604_v8 = vld [vmem:[#allocation4 + $0x68] sm:$0xff]  ;;  %v9645_v41 = vadd.f32 %v16847_v46, %v9606_v1  ;;  %v13825_v47 = vpack.i.bf16 %v9572_v25, %v9571_v23  ;;  %v9676_v59 = vmax.f32 %v9644_v19, 0.0  ;;  %v9545_v49 = vadd.f32 %v16838_v44, %v9506_v50  ;;  %v9504_v0 = vld [vmem:[#allocation3 + $0x80] sm:$0xff]  ;;  %5645 = vst.msk [vmem:[#allocation3 + $0xa0] sm:$0xff] %vm399_vm7, %v13071_v32 }
 0x340   : > { %9360 = vst.msk [vmem:[#allocation4 + $0x88] sm:$0xff] %vm399_vm7, %v13101_v63  ;;  %v9643_v27 = vadd.f32 %v16847_v46, %v9604_v8  ;;  %v13073_v45 = vadd.f32 %v5549_v62, %v1089_v11  ;;  %v9674_v43 = vmax.f32 %v9642_v6, 0.0  ;;  %v9507_v58 = vld [vmem:[#allocation3 + $0x98] sm:$0xff]  ;;  %v9543_v7 = vadd.f32 %v16838_v44, %v9504_v0  ;;  %5648 = vst.msk [vmem:[#allocation3 + $0xb8] sm:$0xff] %vm399_vm7, %v13072_v31 }
 0x341   : > { %v9677_v39 = vmax.f32 %v9645_v41, 0.0  ;;  %13816 = vrot.lane.b32.xlu1 %v13815_v38, %s14037_s23  ;;  %v9546_v15 = vadd.f32 %v16838_v44, %v9507_v58  ;;  %v9505_v1 = vld [vmem:[#allocation3 + $0x88] sm:$0xff]  ;;  %v9577_v41 = vmax.f32 %v9545_v49, 0.0  ;;  %v5687_v49 = vld [vmem:[#allocation4 + $0xf0] sm:$0xff] }
 0x342   : > { %v13038_v20 = vpop.f32.mrb[36].mxu0  ;;  %v9675_v33 = vmax.f32 %v9643_v27, 0.0  ;;  %13826 = vrot.lane.b32.xlu0 %v13825_v47, %s14037_s23  ;;  %5646 = vst.msk [vmem:[#allocation3 + $0xa8] sm:$0xff] %vm399_vm7, %v13073_v45  ;;  %v9544_v8 = vadd.f32 %v16838_v44, %v9505_v1  ;;  %v12736_v18 = vpop.f32.mrb[40].mxu1  ;;  %v1095_v27 = vld [vmem:[#allocation3 + $0xd8] sm:$0xff]  ;;  %v9575_v34 = vmax.f32 %v9543_v7, 0.0 }
 0x343   : > { %v13102_v10 = vadd.f32 %v13038_v20, %v5679_v13  ;;  %v9264_v14 = vpop.f32.mrb[37].mxu0  ;;  %v13820_v2 = vpack.i.bf16 %v9677_v39, %v9676_v59  ;;  %v9578_v26 = vmax.f32 %v9546_v15, 0.0  ;;  %v5682_v20 = vld [vmem:[#allocation4 + $0xc8] sm:$0xff]  ;;  %v13074_v60 = vadd.f32 %v12736_v18, %v1094_v30  ;;  %v5562_v19 = vpop.f32.mrb[41].mxu1  ;;  %v1098_v58 = vld [vmem:[#allocation3 + $0xf0] sm:$0xff]  ;;  %v1096_v15 = vld [vmem:[#allocation3 + $0xe0] sm:$0xff] }
 0x344   : > { %v13103_v17 = vadd.f32 %v9264_v14, %v5677_v53  ;;  %v13039_v28 = vpop.f32.mrb[38].mxu0  ;;  %v9609_v3 = vld [vmem:[#allocation4 + $0x90] sm:$0xff]  ;;  %v13830_v51 = vpack.i.bf16 %v9675_v33, %v9674_v43  ;;  %v1093_v14 = vld [vmem:[#allocation3 + $0xc8] sm:$0xff]  ;;  %v13075_v23 = vadd.f32 %v5562_v19, %v1092_v42  ;;  %v12737_v25 = vpop.f32.mrb[42].mxu1  ;;  %v5688_v1 = vld [vmem:[#allocation4 + $0xf8] sm:$0xff] }
 0x345   : > { %9365 = vst.msk [vmem:[#allocation4 + $0xb0] sm:$0xff] %vm399_vm7, %v13102_v10  ;;  %v13104_v55 = vadd.f32 %v13039_v28, %v5680_v56  ;;  %v9267_v40 = vpop.f32.mrb[39].mxu0  ;;  %v9607_v35 = vld [vmem:[#allocation4 + $0x80] sm:$0xff]  ;;  %13821 = vrot.lane.b32.xlu1 %v13820_v2, %s14038_s24  ;;  %v9648_v16 = vadd.f32 %v16847_v46, %v9609_v3  ;;  %v9576_v56 = vmax.f32 %v9544_v8, 0.0  ;;  %v13835_v21 = vpack.i.bf16 %v9578_v26, %v9577_v41  ;;  %v9510_v28 = vld [vmem:[#allocation3 + $0xb0] sm:$0xff]  ;;  %v5565_v38 = vpop.f32.mrb[43].mxu1 }
 0x346   : > { %9363 = vst.msk [vmem:[#allocation4 + $0xa0] sm:$0xff] %vm399_vm7, %v13103_v17  ;;  %v13105_v57 = vadd.f32 %v9267_v40, %v5678_v29  ;;  %v9610_v54 = vld [vmem:[#allocation4 + $0x98] sm:$0xff]  ;;  %13831 = vrot.lane.b32.xlu0 %v13830_v51, %s14038_s24  ;;  %v9646_v37 = vadd.f32 %v16847_v46, %v9607_v35  ;;  %5651 = vst.msk [vmem:[#allocation3 + $0xd0] sm:$0xff] %vm399_vm7, %v13074_v60  ;;  %v13076_v11 = vadd.f32 %v12737_v25, %v1095_v27  ;;  %v5685_v3 = vld [vmem:[#allocation4 + $0xe0] sm:$0xff] }
 0x347   : > { %9366 = vst.msk [vmem:[#allocation4 + $0xb8] sm:$0xff] %vm399_vm7, %v13104_v55  ;;  %v9608_v63 = vld [vmem:[#allocation4 + $0x88] sm:$0xff]  ;;  %v9649_v61 = vadd.f32 %v16847_v46, %v9610_v54  ;;  %v13845_v24 = vpack.i.bf16 %v9576_v56, %v9575_v34  ;;  %v9680_v32 = vmax.f32 %v9648_v16, 0.0  ;;  %v9549_v52 = vadd.f32 %v16838_v44, %v9510_v28  ;;  %v9508_v55 = vld [vmem:[#allocation3 + $0xa0] sm:$0xff]  ;;  %5649 = vst.msk [vmem:[#allocation3 + $0xc0] sm:$0xff] %vm399_vm7, %v13075_v23 }
 0x348   : > { %9364 = vst.msk [vmem:[#allocation4 + $0xa8] sm:$0xff] %vm399_vm7, %v13105_v57  ;;  %v9647_v12 = vadd.f32 %v16847_v46, %v9608_v63  ;;  %v13077_v47 = vadd.f32 %v5565_v38, %v1093_v14  ;;  %v9678_v33 = vmax.f32 %v9646_v37, 0.0  ;;  %v9511_v50 = vld [vmem:[#allocation3 + $0xb8] sm:$0xff]  ;;  %v9547_v31 = vadd.f32 %v16838_v44, %v9508_v55  ;;  %5652 = vst.msk [vmem:[#allocation3 + $0xd8] sm:$0xff] %vm399_vm7, %v13076_v11 }
 0x349   : > { %v9681_v29 = vmax.f32 %v9649_v61, 0.0  ;;  %13836 = vrot.lane.b32.xlu1 %v13835_v21, %s14037_s23  ;;  %v9550_v0 = vadd.f32 %v16838_v44, %v9511_v50  ;;  %v9509_v54 = vld [vmem:[#allocation3 + $0xa8] sm:$0xff]  ;;  %v9581_v61 = vmax.f32 %v9549_v52, 0.0 }
 0x34a   : > { %v13042_v13 = vpop.f32.mrb[40].mxu0  ;;  %v9679_v17 = vmax.f32 %v9647_v12, 0.0  ;;  %13846 = vrot.lane.b32.xlu0 %v13845_v24, %s14037_s23  ;;  %5650 = vst.msk [vmem:[#allocation3 + $0xc8] sm:$0xff] %vm399_vm7, %v13077_v47  ;;  %v9548_v63 = vadd.f32 %v16838_v44, %v9509_v54  ;;  %v12740_v51 = vpop.f32.mrb[44].mxu1  ;;  %v1099_v12 = vld [vmem:[#allocation3 + $0xf8] sm:$0xff]  ;;  %v9579_v42 = vmax.f32 %v9547_v31, 0.0 }
 0x34b   : > { %v13106_v53 = vadd.f32 %v13042_v13, %v5683_v22  ;;  %v9280_v4 = vpop.f32.mrb[41].mxu0  ;;  %v13840_v59 = vpack.i.bf16 %v9681_v29, %v9680_v32  ;;  %v9582_v35 = vmax.f32 %v9550_v0, 0.0  ;;  %v5686_v13 = vld [vmem:[#allocation4 + $0xe8] sm:$0xff]  ;;  %v13078_v26 = vadd.f32 %v12740_v51, %v1098_v58  ;;  %v5578_v16 = vpop.f32.mrb[45].mxu1 }
 0x34c   : > { %v13107_v48 = vadd.f32 %v9280_v4, %v5681_v5  ;;  %v13043_v10 = vpop.f32.mrb[42].mxu0  ;;  %v9613_v62 = vld [vmem:[#allocation4 + $0xb0] sm:$0xff]  ;;  %v13850_v7 = vpack.i.bf16 %v9679_v17, %v9678_v33  ;;  %v1097_v4 = vld [vmem:[#allocation3 + $0xe8] sm:$0xff]  ;;  %v13079_v34 = vadd.f32 %v5578_v16, %v1096_v15  ;;  %v12741_v56 = vpop.f32.mrb[46].mxu1 }
 0x34d   : > { %9369 = vst.msk [vmem:[#allocation4 + $0xd0] sm:$0xff] %vm399_vm7, %v13106_v53  ;;  %v13108_v6 = vadd.f32 %v13043_v10, %v5684_v9  ;;  %v9283_v36 = vpop.f32.mrb[43].mxu0  ;;  %v9611_v43 = vld [vmem:[#allocation4 + $0xa0] sm:$0xff]  ;;  %13841 = vrot.lane.b32.xlu1 %v13840_v59, %s14038_s24  ;;  %v9652_v30 = vadd.f32 %v16847_v46, %v9613_v62  ;;  %v9580_v9 = vmax.f32 %v9548_v63, 0.0  ;;  %v13855_v27 = vpack.i.bf16 %v9582_v35, %v9581_v61  ;;  %v9514_v10 = vld [vmem:[#allocation3 + $0xd0] sm:$0xff]  ;;  %v5581_v21 = vpop.f32.mrb[47].mxu1 }
 0x34e   : > { %9367 = vst.msk [vmem:[#allocation4 + $0xc0] sm:$0xff] %vm399_vm7, %v13107_v48  ;;  %v13109_v39 = vadd.f32 %v9283_v36, %v5682_v20  ;;  %v9614_v40 = vld [vmem:[#allocation4 + $0xb8] sm:$0xff]  ;;  %13851 = vrot.lane.b32.xlu0 %v13850_v7, %s14038_s24  ;;  %v9650_v41 = vadd.f32 %v16847_v46, %v9611_v43  ;;  %5655 = vst.msk [vmem:[#allocation3 + $0xf0] sm:$0xff] %vm399_vm7, %v13078_v26  ;;  %v13080_v14 = vadd.f32 %v12741_v56, %v1099_v12 }
 0x34f   : > { %9370 = vst.msk [vmem:[#allocation4 + $0xd8] sm:$0xff] %vm399_vm7, %v13108_v6  ;;  %v9612_v57 = vld [vmem:[#allocation4 + $0xa8] sm:$0xff]  ;;  %v9653_v45 = vadd.f32 %v16847_v46, %v9614_v40  ;;  %v13865_v19 = vpack.i.bf16 %v9580_v9, %v9579_v42  ;;  %v9684_v23 = vmax.f32 %v9652_v30, 0.0  ;;  %v9553_v25 = vadd.f32 %v16838_v44, %v9514_v10  ;;  %v9512_v6 = vld [vmem:[#allocation3 + $0xc0] sm:$0xff]  ;;  %5653 = vst.msk [vmem:[#allocation3 + $0xe0] sm:$0xff] %vm399_vm7, %v13079_v34 }
 0x350   : > { %9368 = vst.msk [vmem:[#allocation4 + $0xc8] sm:$0xff] %vm399_vm7, %v13109_v39  ;;  %v9651_v2 = vadd.f32 %v16847_v46, %v9612_v57  ;;  %v13081_v24 = vadd.f32 %v5581_v21, %v1097_v4  ;;  %v9682_v17 = vmax.f32 %v9650_v41, 0.0  ;;  %v9515_v28 = vld [vmem:[#allocation3 + $0xd8] sm:$0xff]  ;;  %v9551_v11 = vadd.f32 %v16838_v44, %v9512_v6  ;;  %5656 = vst.msk [vmem:[#allocation3 + $0xf8] sm:$0xff] %vm399_vm7, %v13080_v14  ;;  %v13677_v14 = vpop.permute.xlu0 %13676  ;;  %v17000_v21 = vpop.permute.xlu1 %13681 }
 0x351   : > { %v9685_v20 = vmax.f32 %v9653_v45, 0.0  ;;  %13856 = vrot.lane.b32.xlu1 %v13855_v27, %s14037_s23  ;;  %v9554_v52 = vadd.f32 %v16838_v44, %v9515_v28  ;;  %v9513_v55 = vld [vmem:[#allocation3 + $0xc8] sm:$0xff]  ;;  %v9585_v62 = vmax.f32 %v9553_v25, 0.0 }
 0x352   : > { %v13046_v22 = vpop.f32.mrb[44].mxu0  ;;  %v9683_v48 = vmax.f32 %v9651_v2, 0.0  ;;  %13866 = vrot.lane.b32.xlu0 %v13865_v19, %s14037_s23  ;;  %5654 = vst.msk [vmem:[#allocation3 + $0xe8] sm:$0xff] %vm399_vm7, %v13081_v24  ;;  %v9552_v50 = vadd.f32 %v16838_v44, %v9513_v55 }
 0x353   : > { %v13110_v5 = vadd.f32 %v13046_v22, %v5687_v49  ;;  %v9296_v8 = vpop.f32.mrb[45].mxu0  ;;  %v13860_v32 = vpack.i.bf16 %v9685_v20, %v9684_v23  ;;  %v9586_v57 = vmax.f32 %v9554_v52, 0.0  ;;  %v9583_v49 = vmax.f32 %v9551_v11, 0.0 }
 0x354   : > { %v13111_v18 = vadd.f32 %v9296_v8, %v5685_v3  ;;  %v13047_v53 = vpop.f32.mrb[46].mxu0  ;;  %v9617_v38 = vld [vmem:[#allocation4 + $0xd0] sm:$0xff]  ;;  %v13870_v33 = vpack.i.bf16 %v9683_v48, %v9682_v17  ;;  %v9584_v0 = vmax.f32 %v9552_v50, 0.0  ;;  %v13679_v52 = vunpack.i.h.bf16 %v13677_v14  ;;  %v17032_v50 = vld [vmem:[%s376_s9] ss:$0 sm:$0xff] }
 0x355   : > { %9373 = vst.msk [vmem:[#allocation4 + $0xf0] sm:$0xff] %vm399_vm7, %v13110_v5  ;;  %v13112_v37 = vadd.f32 %v13047_v53, %v5688_v1  ;;  %v9299_v60 = vpop.f32.mrb[47].mxu0  ;;  %v9615_v47 = vld [vmem:[#allocation4 + $0xc0] sm:$0xff]  ;;  %13861 = vrot.lane.b32.xlu1 %v13860_v32, %s14038_s24  ;;  %v9656_v59 = vadd.f32 %v16847_v46, %v9617_v38  ;;  %v13875_v45 = vpack.i.bf16 %v9586_v57, %v9585_v62  ;;  %v9518_v3 = vld [vmem:[#allocation3 + $0xf0] sm:$0xff] }
 0x356   : > { %9371 = vst.msk [vmem:[#allocation4 + $0xe0] sm:$0xff] %vm399_vm7, %v13111_v18  ;;  %v13113_v29 = vadd.f32 %v9299_v60, %v5686_v13  ;;  %v9618_v36 = vld [vmem:[#allocation4 + $0xd8] sm:$0xff]  ;;  %13871 = vrot.lane.b32.xlu0 %v13870_v33, %s14038_s24  ;;  %v9654_v54 = vadd.f32 %v16847_v46, %v9615_v47  ;;  %v13885_v58 = vpack.i.bf16 %v9584_v0, %v9583_v49  ;;  %v9516_v22 = vld [vmem:[#allocation3 + $0xe0] sm:$0xff] }
 0x357   : > { %9374 = vst.msk [vmem:[#allocation4 + $0xf8] sm:$0xff] %vm399_vm7, %v13112_v37  ;;  %v9616_v39 = vld [vmem:[#allocation4 + $0xc8] sm:$0xff]  ;;  %v9657_v40 = vadd.f32 %v16847_v46, %v9618_v36  ;;  %v9688_v63 = vmax.f32 %v9656_v59, 0.0  ;;  %v9557_v2 = vadd.f32 %v16838_v44, %v9518_v3  ;;  %v9519_v61 = vld [vmem:[#allocation3 + $0xf8] sm:$0xff]  ;;  %v9555_v35 = vadd.f32 %v16838_v44, %v9516_v22 }
 0x358   : > { %9372 = vst.msk [vmem:[#allocation4 + $0xe8] sm:$0xff] %vm399_vm7, %v13113_v29  ;;  %v9655_v31 = vadd.f32 %v16847_v46, %v9616_v39  ;;  %v9686_v1 = vmax.f32 %v9654_v54, 0.0  ;;  %v9558_v8 = vadd.f32 %v16838_v44, %v9519_v61  ;;  %v13687_v29 = vpop.permute.xlu0 %13686  ;;  %v10081_v62 = vsel %vm399_vm7, %v17032_v50, %v13679_v52 }
 0x359   : > { %v9689_v43 = vmax.f32 %v9657_v40, 0.0  ;;  %13876 = vrot.lane.b32.xlu1 %v13875_v45, %s14037_s23  ;;  %v9517_v12 = vld [vmem:[#allocation3 + $0xe8] sm:$0xff]  ;;  %v9589_v16 = vmax.f32 %v9557_v2, 0.0  ;;  %v9587_v4 = vmax.f32 %v9555_v35, 0.0  ;;  %v13678_v40 = vunpack.i.l.bf16 %v13677_v14 }
 0x35a   : > { %v9687_v7 = vmax.f32 %v9655_v31, 0.0  ;;  %13886 = vrot.lane.b32.xlu0 %v13885_v58, %s14037_s23  ;;  %v9556_v41 = vadd.f32 %v16838_v44, %v9517_v12  ;;  %v9590_v18 = vmax.f32 %v9558_v8, 0.0  ;;  %v13689_v47 = vunpack.i.h.bf16 %v13687_v29 }
 0x35b   : > { %v13880_v5 = vpack.i.bf16 %v9689_v43, %v9688_v63  ;;  %v13688_v33 = vunpack.i.l.bf16 %v13687_v29  ;;  %v10080_v59 = vsel %vm399_vm7, %v17032_v50, %v13678_v40 }
 0x35c   : > { %v9621_v30 = vld [vmem:[#allocation4 + $0xf0] sm:$0xff]  ;;  %v13890_v9 = vpack.i.bf16 %v9687_v7, %v9686_v1  ;;  %v9588_v27 = vmax.f32 %v9556_v41, 0.0  ;;  %v13895_v34 = vpack.i.bf16 %v9590_v18, %v9589_v16  ;;  %v17006_v25 = vpop.permute.xlu0 %13691  ;;  %v10079_v49 = vsel %vm399_vm7, %v17032_v50, %v13689_v47 }
 0x35d   : > { %v9619_v42 = vld [vmem:[#allocation4 + $0xe0] sm:$0xff]  ;;  %13881 = vrot.lane.b32.xlu1 %v13880_v5, %s14038_s24  ;;  %v9660_v53 = vadd.f32 %v16847_v46, %v9621_v30  ;;  %v10078_v45 = vsel %vm399_vm7, %v17032_v50, %v13688_v33 }
 0x35e   : > { %v9622_v15 = vld [vmem:[#allocation4 + $0xf8] sm:$0xff]  ;;  %13891 = vrot.lane.b32.xlu0 %v13890_v9, %s14038_s24  ;;  %v9658_v20 = vadd.f32 %v16847_v46, %v9619_v42  ;;  %v13900_v37 = vpack.i.bf16 %v9588_v27, %v9587_v4 }
 0x35f   : > { %v9620_v51 = vld [vmem:[#allocation4 + $0xe8] sm:$0xff]  ;;  %v9661_v13 = vadd.f32 %v16847_v46, %v9622_v15  ;;  %v9692_v44 = vmax.f32 %v9660_v53, 0.0 }
 0x360   : > { %v9659_v26 = vadd.f32 %v16847_v46, %v9620_v51  ;;  %v9690_v19 = vmax.f32 %v9658_v20, 0.0  ;;  %v17002_v46 = vpop.permute.xlu1 %13696  ;;  %v17010_v36 = vpop.permute.xlu0 %13711 }
 0x361   : > { %v9693_v56 = vmax.f32 %v9661_v13, 0.0  ;;  %13896 = vrot.lane.b32.xlu1 %v13895_v34, %s14037_s23  ;;  %v13699_v7 = vunpack.i.h.bf16 %v17002_v46  ;;  %v13698_v3 = vunpack.i.l.bf16 %v17002_v46 }
 0x362   : > { %v9691_v60 = vmax.f32 %v9659_v26, 0.0  ;;  %13901 = vrot.lane.b32.xlu0 %v13900_v37, %s14037_s23 }
 0x363   : > { %v13910_v48 = vpack.i.bf16 %v9693_v56, %v9692_v44  ;;  %v10085_v56 = vsel %vm399_vm7, %v17032_v50, %v13699_v7  ;;  %v10084_v37 = vsel %vm399_vm7, %v17032_v50, %v13698_v3 }
 0x364   : > { %v13905_v10 = vpack.i.bf16 %v9691_v60, %v9690_v19  ;;  %v17004_v23 = vpop.permute.xlu1 %13701  ;;  %v17014_v17 = vpop.permute.xlu0 %13726 }
 0x365   : > { %13911 = vrot.lane.b32.xlu1 %v13910_v48, %s14038_s24  ;;  %v13728_v14 = vunpack.i.l.bf16 %v17014_v17 }
 0x366   : > { %13906 = vrot.lane.b32.xlu0 %v13905_v10, %s14038_s24  ;;  %v13729_v10 = vunpack.i.h.bf16 %v17014_v17 }
 0x368   : > { %v17008_v6 = vpop.permute.xlu1 %13706  ;;  %v17018_v11 = vpop.permute.xlu0 %13731 }
 0x369   : > { %v13709_v63 = vunpack.i.h.bf16 %v17008_v6  ;;  %v13708_v22 = vunpack.i.l.bf16 %v17008_v6 }
 0x36b   : > { %v10083_v19 = vsel %vm399_vm7, %v17032_v50, %v13709_v63  ;;  %v10082_v48 = vsel %vm399_vm7, %v17032_v50, %v13708_v22 }
 0x36c   : > { %v17012_v24 = vpop.permute.xlu1 %13716  ;;  %v17022_v39 = vpop.permute.xlu0 %13746 }
 0x36d   : > { %v13719_v29 = vunpack.i.h.bf16 %v17012_v24  ;;  %v13718_v6 = vunpack.i.l.bf16 %v17012_v24 }
 0x370   : > { %v17016_v28 = vpop.permute.xlu1 %13721  ;;  %v17030_v55 = vpop.permute.xlu0 %13751 }
 0x374   : > { %v17020_v38 = vpop.permute.xlu1 %13736 }
 0x378   : > { %v17024_v32 = vpop.permute.xlu1 %13741 }
 0x397   : > { %v13757_v31 = vpop.permute.xlu1 %13756 }
 0x398   : > { %v13767_v57 = vpop.permute.xlu0 %13766  ;;  %v13759_v0 = vunpack.i.h.bf16 %v13757_v31  ;;  %v13758_v54 = vunpack.i.l.bf16 %v13757_v31 }
 0x399   : > { %v13769_v43 = vunpack.i.h.bf16 %v13767_v57  ;;  %v13768_v58 = vunpack.i.l.bf16 %v13767_v57 }
 0x39a   : > { %v10114_v35 = vsel %vm10110_vm11, %v10081_v62, %v13759_v0  ;;  %v10113_v30 = vsel %vm10110_vm11, %v10080_v59, %v13758_v54 }
 0x39b   : > { %v10112_v8 = vsel %vm10110_vm11, %v10079_v49, %v13769_v43  ;;  %v10111_v12 = vsel %vm10110_vm11, %v10078_v45, %v13768_v58 }
 0x39f   : > { %v13762_v2 = vpop.permute.xlu1 %13761 }
 0x3a0   : > { %v13764_v15 = vunpack.i.h.bf16 %v13762_v2  ;;  %v13763_v1 = vunpack.i.l.bf16 %v13762_v2  ;;  %v13772_v61 = vpop.permute.xlu0 %13771 }
 0x3a1   : > { %v13774_v51 = vunpack.i.h.bf16 %v13772_v61  ;;  %v13773_v5 = vunpack.i.l.bf16 %v13772_v61  ;;  %v10087_v61 = vsel %vm399_vm7, %v17032_v50, %v13729_v10 }
 0x3a2   : > { %v10147_v13 = vsel %vm10143_vm12, %v10114_v35, %v13764_v15  ;;  %v10146_v42 = vsel %vm10143_vm12, %v10113_v30, %v13763_v1  ;;  %v10086_v35 = vsel %vm399_vm7, %v17032_v50, %v13728_v14  ;;  %v10089_v30 = vsel %vm399_vm7, %v17032_v50, %v13719_v29 }
 0x3a3   : > { %v12050_v9 = vpack.c.bf16 %v10147_v13, %v10147_v13  ;;  %v12049_v41 = vpack.c.bf16 %v10146_v42, %v10146_v42  ;;  %v10144_v26 = vsel %vm10143_vm12, %v10111_v12, %v13773_v5  ;;  %v10145_v16 = vsel %vm10143_vm12, %v10112_v8, %v13774_v51  ;;  %v13777_v18 = vpop.permute.xlu1 %13776 }
 0x3a4   : > { %v12047_v53 = vpack.c.bf16 %v10144_v26, %v10144_v26  ;;  %v12048_v4 = vpack.c.bf16 %v10145_v16, %v10145_v16  ;;  %v13787_v27 = vpop.permute.xlu0 %13786  ;;  %v13779_v20 = vunpack.i.h.bf16 %v13777_v18  ;;  %v13778_v34 = vunpack.i.l.bf16 %v13777_v18 }
 0x3a5   : > { %10308 = vst.msk [vmem:[%s17054_s12 + $0xc] sm:$0xf] %vm10304_vm13, %v12050_v9  ;;  %10307 = vst.msk [vmem:[%s17054_s12 + $0x8] sm:$0xf] %vm10304_vm13, %v12049_v41  ;;  %v13789_v60 = vunpack.i.h.bf16 %v13787_v27  ;;  %v13788_v44 = vunpack.i.l.bf16 %v13787_v27  ;;  %v10088_v51 = vsel %vm399_vm7, %v17032_v50, %v13718_v6  ;;  %v13749_v8 = vunpack.i.h.bf16 %v17022_v39 }
 0x3a6   : > { %10305 = vst.msk [vmem:[%s17054_s12] sm:$0xf] %vm10304_vm13, %v12047_v53  ;;  %10306 = vst.msk [vmem:[%s17054_s12 + $0x4] sm:$0xf] %vm10304_vm13, %v12048_v4  ;;  %v10118_v33 = vsel %vm10110_vm11, %v10085_v56, %v13779_v20  ;;  %v10117_v31 = vsel %vm10110_vm11, %v10084_v37, %v13778_v34  ;;  %v13748_v12 = vunpack.i.l.bf16 %v17022_v39  ;;  %v13684_v6 = vunpack.i.h.bf16 %v17000_v21 }
 0x3a7   : > { %v13782_v46 = vpop.permute.xlu1 %13781  ;;  %v10116_v59 = vsel %vm10110_vm11, %v10083_v19, %v13789_v60  ;;  %v10115_v17 = vsel %vm10110_vm11, %v10082_v48, %v13788_v44  ;;  %v13739_v44 = vunpack.i.h.bf16 %v17020_v38  ;;  %v13738_v19 = vunpack.i.l.bf16 %v17020_v38 }
 0x3a8   : > { %v13784_v52 = vunpack.i.h.bf16 %v13782_v46  ;;  %v13783_v40 = vunpack.i.l.bf16 %v13782_v46  ;;  %v13792_v47 = vpop.permute.xlu0 %13791  ;;  %v13694_v38 = vunpack.i.h.bf16 %v17006_v25 }
 0x3a9   : > { %v13794_v62 = vunpack.i.h.bf16 %v13792_v47  ;;  %v13793_v57 = vunpack.i.l.bf16 %v13792_v47 }
 0x3aa   : > { %v10151_v49 = vsel %vm10143_vm12, %v10118_v33, %v13784_v52  ;;  %v10150_v24 = vsel %vm10143_vm12, %v10117_v31, %v13783_v40  ;;  %v13683_v52 = vunpack.i.l.bf16 %v17000_v21  ;;  %v13693_v33 = vunpack.i.l.bf16 %v17006_v25 }
 0x3ab   : > { %v12054_v0 = vpack.c.bf16 %v10151_v49, %v10151_v49  ;;  %v12053_v54 = vpack.c.bf16 %v10150_v24, %v10150_v24  ;;  %v10148_v45 = vsel %vm10143_vm12, %v10115_v17, %v13793_v57  ;;  %v10149_v43 = vsel %vm10143_vm12, %v10116_v59, %v13794_v62  ;;  %v13797_v58 = vpop.permute.xlu1 %13796 }
 0x3ac   : > { %v12051_v7 = vpack.c.bf16 %v10148_v45, %v10148_v45  ;;  %v12052_v3 = vpack.c.bf16 %v10149_v43, %v10149_v43  ;;  %v13807_v63 = vpop.permute.xlu0 %13806  ;;  %v13799_v2 = vunpack.i.h.bf16 %v13797_v58  ;;  %v13798_v22 = vunpack.i.l.bf16 %v13797_v58 }
 0x3ad   : > { %10312 = vst.msk [vmem:[%s17054_s12 + $0x1c] sm:$0xf] %vm10304_vm13, %v12054_v0  ;;  %10311 = vst.msk [vmem:[%s17054_s12 + $0x18] sm:$0xf] %vm10304_vm13, %v12053_v54  ;;  %v13809_v15 = vunpack.i.h.bf16 %v13807_v63  ;;  %v13808_v1 = vunpack.i.l.bf16 %v13807_v63  ;;  %v10091_v31 = vsel %vm399_vm7, %v17032_v50, %v13749_v8  ;;  %v10090_v62 = vsel %vm399_vm7, %v17032_v50, %v13748_v12 }
 0x3ae   : > { %10309 = vst.msk [vmem:[%s17054_s12 + $0x10] sm:$0xf] %vm10304_vm13, %v12051_v7  ;;  %10310 = vst.msk [vmem:[%s17054_s12 + $0x14] sm:$0xf] %vm10304_vm13, %v12052_v3  ;;  %v10122_v41 = vsel %vm10110_vm11, %v10089_v30, %v13799_v2  ;;  %v10121_v26 = vsel %vm10110_vm11, %v10088_v51, %v13798_v22  ;;  %v10093_v21 = vsel %vm399_vm7, %v17032_v50, %v13739_v44 }
 0x3af   : > { %v13802_v5 = vpop.permute.xlu1 %13801  ;;  %v10120_v53 = vsel %vm10110_vm11, %v10087_v61, %v13809_v15  ;;  %v10119_v4 = vsel %vm10110_vm11, %v10086_v35, %v13808_v1  ;;  %v10092_v59 = vsel %vm399_vm7, %v17032_v50, %v13738_v19  ;;  %v10097_v8 = vsel %vm399_vm7, %v17032_v50, %v13684_v6 }
 0x3b0   : > { %v13804_v13 = vunpack.i.h.bf16 %v13802_v5  ;;  %v13803_v42 = vunpack.i.l.bf16 %v13802_v5  ;;  %v13812_v9 = vpop.permute.xlu0 %13811  ;;  %v10096_v12 = vsel %vm399_vm7, %v17032_v50, %v13683_v52 }
 0x3b1   : > { %v13814_v16 = vunpack.i.h.bf16 %v13812_v9  ;;  %v13813_v18 = vunpack.i.l.bf16 %v13812_v9  ;;  %v10095_v9 = vsel %vm399_vm7, %v17032_v50, %v13694_v38 }
 0x3b2   : > { %v10155_v27 = vsel %vm10143_vm12, %v10122_v41, %v13804_v13  ;;  %v10154_v20 = vsel %vm10143_vm12, %v10121_v26, %v13803_v42  ;;  %v10094_v41 = vsel %vm399_vm7, %v17032_v50, %v13693_v33  ;;  %v13714_v26 = vunpack.i.h.bf16 %v17010_v36 }
 0x3b3   : > { %v12058_v39 = vpack.c.bf16 %v10155_v27, %v10155_v27  ;;  %v12057_v34 = vpack.c.bf16 %v10154_v20, %v10154_v20  ;;  %v10152_v56 = vsel %vm10143_vm12, %v10119_v4, %v13813_v18  ;;  %v10153_v37 = vsel %vm10143_vm12, %v10120_v53, %v13814_v16  ;;  %v13817_v60 = vpop.permute.xlu1 %13816 }
 0x3b4   : > { %v12055_v48 = vpack.c.bf16 %v10152_v56, %v10152_v56  ;;  %v12056_v10 = vpack.c.bf16 %v10153_v37, %v10153_v37  ;;  %v13827_v14 = vpop.permute.xlu0 %13826  ;;  %v13819_v46 = vunpack.i.h.bf16 %v13817_v60  ;;  %v13818_v29 = vunpack.i.l.bf16 %v13817_v60 }
 0x3b5   : > { %10316 = vst.msk [vmem:[%s17054_s12 + $0x2c] sm:$0xf] %vm10304_vm13, %v12058_v39  ;;  %10315 = vst.msk [vmem:[%s17054_s12 + $0x28] sm:$0xf] %vm10304_vm13, %v12057_v34  ;;  %v13829_v40 = vunpack.i.h.bf16 %v13827_v14  ;;  %v13828_v47 = vunpack.i.l.bf16 %v13827_v14  ;;  %v13713_v16 = vunpack.i.l.bf16 %v17010_v36  ;;  %v13704_v53 = vunpack.i.h.bf16 %v17004_v23 }
 0x3b6   : > { %10313 = vst.msk [vmem:[%s17054_s12 + $0x20] sm:$0xf] %vm10304_vm13, %v12055_v48  ;;  %10314 = vst.msk [vmem:[%s17054_s12 + $0x24] sm:$0xf] %vm10304_vm13, %v12056_v10  ;;  %v10126_v0 = vsel %vm10110_vm11, %v10093_v21, %v13819_v46  ;;  %v10125_v25 = vsel %vm10110_vm11, %v10092_v59, %v13818_v29  ;;  %v13703_v4 = vunpack.i.l.bf16 %v17004_v23  ;;  %v10099_v33 = vsel %vm399_vm7, %v17032_v50, %v13714_v26 }
 0x3b7   : > { %v13822_v57 = vpop.permute.xlu1 %13821  ;;  %v10123_v43 = vsel %vm10110_vm11, %v10090_v62, %v13828_v47  ;;  %v10124_v58 = vsel %vm10110_vm11, %v10091_v31, %v13829_v40  ;;  %v10098_v31 = vsel %vm399_vm7, %v17032_v50, %v13713_v16  ;;  %v10101_v21 = vsel %vm399_vm7, %v17032_v50, %v13704_v53 }
 0x3b8   : > { %v13824_v17 = vunpack.i.h.bf16 %v13822_v57  ;;  %v13823_v49 = vunpack.i.l.bf16 %v13822_v57  ;;  %v13832_v24 = vpop.permute.xlu0 %13831  ;;  %v10100_v59 = vsel %vm399_vm7, %v17032_v50, %v13703_v4  ;;  %v13754_v4 = vunpack.i.h.bf16 %v17030_v55 }
 0x3b9   : > { %v13834_v54 = vunpack.i.h.bf16 %v13832_v24  ;;  %v13833_v45 = vunpack.i.l.bf16 %v13832_v24 }
 0x3ba   : > { %v10159_v7 = vsel %vm10143_vm12, %v10126_v0, %v13824_v17  ;;  %v10158_v3 = vsel %vm10143_vm12, %v10125_v25, %v13823_v49  ;;  %v13734_v17 = vunpack.i.h.bf16 %v17018_v11  ;;  %v13733_v49 = vunpack.i.l.bf16 %v17018_v11 }
 0x3bb   : > { %v12062_v63 = vpack.c.bf16 %v10159_v7, %v10159_v7  ;;  %v12061_v2 = vpack.c.bf16 %v10158_v3, %v10158_v3  ;;  %v10156_v22 = vsel %vm10143_vm12, %v10123_v43, %v13833_v45  ;;  %v10157_v15 = vsel %vm10143_vm12, %v10124_v58, %v13834_v54  ;;  %v13837_v1 = vpop.permute.xlu1 %13836 }
 0x3bc   : > { %v12059_v61 = vpack.c.bf16 %v10156_v22, %v10156_v22  ;;  %v12060_v35 = vpack.c.bf16 %v10157_v15, %v10157_v15  ;;  %v13847_v30 = vpop.permute.xlu0 %13846  ;;  %v13839_v51 = vunpack.i.h.bf16 %v13837_v1  ;;  %v13838_v5 = vunpack.i.l.bf16 %v13837_v1 }
 0x3bd   : > { %10320 = vst.msk [vmem:[%s17054_s12 + $0x3c] sm:$0xf] %vm10304_vm13, %v12062_v63  ;;  %10319 = vst.msk [vmem:[%s17054_s12 + $0x38] sm:$0xf] %vm10304_vm13, %v12061_v2  ;;  %v13849_v13 = vunpack.i.h.bf16 %v13847_v30  ;;  %v13848_v42 = vunpack.i.l.bf16 %v13847_v30  ;;  %v13724_v0 = vunpack.i.h.bf16 %v17016_v28  ;;  %v13723_v25 = vunpack.i.l.bf16 %v17016_v28 }
 0x3be   : > { %10317 = vst.msk [vmem:[%s17054_s12 + $0x30] sm:$0xf] %vm10304_vm13, %v12059_v61  ;;  %10318 = vst.msk [vmem:[%s17054_s12 + $0x34] sm:$0xf] %vm10304_vm13, %v12060_v35  ;;  %v10130_v34 = vsel %vm10110_vm11, %v10097_v8, %v13839_v51  ;;  %v10129_v56 = vsel %vm10110_vm11, %v10096_v12, %v13838_v5  ;;  %v10102_v26 = vsel %vm399_vm7, %v17032_v50, %v13733_v49 }
 0x3bf   : > { %v13842_v18 = vpop.permute.xlu1 %13841  ;;  %v10128_v44 = vsel %vm10110_vm11, %v10095_v9, %v13849_v13  ;;  %v10127_v36 = vsel %vm10110_vm11, %v10094_v41, %v13848_v42  ;;  %v10103_v41 = vsel %vm399_vm7, %v17032_v50, %v13734_v17  ;;  %v10105_v16 = vsel %vm399_vm7, %v17032_v50, %v13724_v0 }
 0x3c0   : > { %v13844_v27 = vunpack.i.h.bf16 %v13842_v18  ;;  %v13843_v20 = vunpack.i.l.bf16 %v13842_v18  ;;  %v13852_v39 = vpop.permute.xlu0 %13851  ;;  %v10104_v18 = vsel %vm399_vm7, %v17032_v50, %v13723_v25 }
 0x3c1   : > { %v13854_v37 = vunpack.i.h.bf16 %v13852_v39  ;;  %v13853_v60 = vunpack.i.l.bf16 %v13852_v39 }
 0x3c2   : > { %v10163_v19 = vsel %vm10143_vm12, %v10130_v34, %v13844_v27  ;;  %v10162_v23 = vsel %vm10143_vm12, %v10129_v56, %v13843_v20  ;;  %v13753_v27 = vunpack.i.l.bf16 %v17030_v55 }
 0x3c3   : > { %v12066_v48 = vpack.c.bf16 %v10163_v19, %v10163_v19  ;;  %v12065_v10 = vpack.c.bf16 %v10162_v23, %v10162_v23  ;;  %v10160_v14 = vsel %vm10143_vm12, %v10127_v36, %v13853_v60  ;;  %v10161_v46 = vsel %vm10143_vm12, %v10128_v44, %v13854_v37  ;;  %v13857_v29 = vpop.permute.xlu1 %13856 }
 0x3c4   : > { %v12063_v6 = vpack.c.bf16 %v10160_v14, %v10160_v14  ;;  %v12064_v52 = vpack.c.bf16 %v10161_v46, %v10161_v46  ;;  %v13867_v40 = vpop.permute.xlu0 %13866  ;;  %v13859_v47 = vunpack.i.h.bf16 %v13857_v29  ;;  %v13858_v38 = vunpack.i.l.bf16 %v13857_v29 }
 0x3c5   : > { %10324 = vst.msk [vmem:[%s17054_s12 + $0x4c] sm:$0xf] %vm10304_vm13, %v12066_v48  ;;  %10323 = vst.msk [vmem:[%s17054_s12 + $0x48] sm:$0xf] %vm10304_vm13, %v12065_v10  ;;  %v13869_v62 = vunpack.i.h.bf16 %v13867_v40  ;;  %v13868_v57 = vunpack.i.l.bf16 %v13867_v40 }
 0x3c6   : > { %10321 = vst.msk [vmem:[%s17054_s12 + $0x40] sm:$0xf] %vm10304_vm13, %v12063_v6  ;;  %10322 = vst.msk [vmem:[%s17054_s12 + $0x44] sm:$0xf] %vm10304_vm13, %v12064_v52  ;;  %v10134_v58 = vsel %vm10110_vm11, %v10101_v21, %v13859_v47  ;;  %v10133_v7 = vsel %vm10110_vm11, %v10100_v59, %v13858_v38  ;;  %v13744_v6 = vunpack.i.h.bf16 %v17024_v32  ;;  %v13743_v52 = vunpack.i.l.bf16 %v17024_v32 }
 0x3c7   : > { %v13862_v24 = vpop.permute.xlu1 %13861  ;;  %v10132_v2 = vsel %vm10110_vm11, %v10099_v33, %v13869_v62  ;;  %v10131_v11 = vsel %vm10110_vm11, %v10098_v31, %v13868_v57  ;;  %v10107_v21 = vsel %vm399_vm7, %v17032_v50, %v13754_v4  ;;  %v10106_v32 = vsel %vm399_vm7, %v17032_v50, %v13753_v27 }
 0x3c8   : > { %v13864_v54 = vunpack.i.h.bf16 %v13862_v24  ;;  %v13863_v45 = vunpack.i.l.bf16 %v13862_v24  ;;  %v13872_v43 = vpop.permute.xlu0 %13871  ;;  %v10109_v17 = vsel %vm399_vm7, %v17032_v50, %v13744_v6  ;;  %v10108_v49 = vsel %vm399_vm7, %v17032_v50, %v13743_v52 }
 0x3c9   : > { %v13874_v3 = vunpack.i.h.bf16 %v13872_v43  ;;  %v13873_v63 = vunpack.i.l.bf16 %v13872_v43 }
 0x3ca   : > { %v10167_v22 = vsel %vm10143_vm12, %v10134_v58, %v13864_v54  ;;  %v10166_v28 = vsel %vm10143_vm12, %v10133_v7, %v13863_v45 }
 0x3cb   : > { %v12070_v15 = vpack.c.bf16 %v10167_v22, %v10167_v22  ;;  %v12069_v1 = vpack.c.bf16 %v10166_v28, %v10166_v28  ;;  %v10164_v61 = vsel %vm10143_vm12, %v10131_v11, %v13873_v63  ;;  %v10165_v35 = vsel %vm10143_vm12, %v10132_v2, %v13874_v3  ;;  %v13877_v30 = vpop.permute.xlu1 %13876 }
 0x3cc   : > { %v12067_v51 = vpack.c.bf16 %v10164_v61, %v10164_v61  ;;  %v12068_v5 = vpack.c.bf16 %v10165_v35, %v10165_v35  ;;  %v13887_v8 = vpop.permute.xlu0 %13886  ;;  %v13879_v12 = vunpack.i.h.bf16 %v13877_v30  ;;  %v13878_v13 = vunpack.i.l.bf16 %v13877_v30 }
 0x3cd   : > { %10328 = vst.msk [vmem:[%s17054_s12 + $0x5c] sm:$0xf] %vm10304_vm13, %v12070_v15  ;;  %10327 = vst.msk [vmem:[%s17054_s12 + $0x58] sm:$0xf] %vm10304_vm13, %v12069_v1  ;;  %v13889_v42 = vunpack.i.h.bf16 %v13887_v8  ;;  %v13888_v9 = vunpack.i.l.bf16 %v13887_v8 }
 0x3ce   : > { %10325 = vst.msk [vmem:[%s17054_s12 + $0x50] sm:$0xf] %vm10304_vm13, %v12067_v51  ;;  %10326 = vst.msk [vmem:[%s17054_s12 + $0x54] sm:$0xf] %vm10304_vm13, %v12068_v5  ;;  %v10138_v56 = vsel %vm10110_vm11, %v10105_v16, %v13879_v12  ;;  %v10137_v37 = vsel %vm10110_vm11, %v10104_v18, %v13878_v13 }
 0x3cf   : > { %v13882_v53 = vpop.permute.xlu1 %13881  ;;  %v10136_v36 = vsel %vm10110_vm11, %v10103_v41, %v13889_v42  ;;  %v10135_v19 = vsel %vm10110_vm11, %v10102_v26, %v13888_v9 }
 0x3d0   : > { %v13884_v20 = vunpack.i.h.bf16 %v13882_v53  ;;  %v13883_v39 = vunpack.i.l.bf16 %v13882_v53  ;;  %v13892_v34 = vpop.permute.xlu0 %13891 }
 0x3d1   : > { %v13894_v60 = vunpack.i.h.bf16 %v13892_v34  ;;  %v13893_v44 = vunpack.i.l.bf16 %v13892_v34 }
 0x3d2   : > { %v10171_v23 = vsel %vm10143_vm12, %v10138_v56, %v13884_v20  ;;  %v10170_v55 = vsel %vm10143_vm12, %v10137_v37, %v13883_v39 }
 0x3d3   : > { %v12074_v48 = vpack.c.bf16 %v10171_v23, %v10171_v23  ;;  %v12073_v10 = vpack.c.bf16 %v10170_v55, %v10170_v55  ;;  %v10168_v14 = vsel %vm10143_vm12, %v10135_v19, %v13893_v44  ;;  %v10169_v46 = vsel %vm10143_vm12, %v10136_v36, %v13894_v60  ;;  %v13897_v29 = vpop.permute.xlu1 %13896 }
 0x3d4   : > { %v12071_v40 = vpack.c.bf16 %v10168_v14, %v10168_v14  ;;  %v12072_v47 = vpack.c.bf16 %v10169_v46, %v10169_v46  ;;  %v13902_v38 = vpop.permute.xlu0 %13901  ;;  %v13899_v33 = vunpack.i.h.bf16 %v13897_v29  ;;  %v13898_v31 = vunpack.i.l.bf16 %v13897_v29 }
 0x3d5   : > { %10332 = vst.msk [vmem:[%s17054_s12 + $0x6c] sm:$0xf] %vm10304_vm13, %v12074_v48  ;;  %10331 = vst.msk [vmem:[%s17054_s12 + $0x68] sm:$0xf] %vm10304_vm13, %v12073_v10  ;;  %v13904_v62 = vunpack.i.h.bf16 %v13902_v38  ;;  %v13903_v57 = vunpack.i.l.bf16 %v13902_v38 }
 0x3d6   : > { %10329 = vst.msk [vmem:[%s17054_s12 + $0x60] sm:$0xf] %vm10304_vm13, %v12071_v40  ;;  %10330 = vst.msk [vmem:[%s17054_s12 + $0x64] sm:$0xf] %vm10304_vm13, %v12072_v47  ;;  %v10142_v54 = vsel %vm10110_vm11, %v10109_v17, %v13899_v33  ;;  %v10141_v45 = vsel %vm10110_vm11, %v10108_v49, %v13898_v31 }
 0x3d7   : > { %v13912_v59 = vpop.permute.xlu1 %13911  ;;  %v10139_v7 = vsel %vm10110_vm11, %v10106_v32, %v13903_v57  ;;  %v10140_v3 = vsel %vm10110_vm11, %v10107_v21, %v13904_v62 }
 0x3d8   : > { %v13914_v24 = vunpack.i.h.bf16 %v13912_v59  ;;  %v13913_v0 = vunpack.i.l.bf16 %v13912_v59  ;;  %v13907_v25 = vpop.permute.xlu0 %13906 }
 0x3d9   : > { %v13909_v43 = vunpack.i.h.bf16 %v13907_v25  ;;  %v13908_v58 = vunpack.i.l.bf16 %v13907_v25 }
 0x3da   : > { %v10175_v63 = vsel %vm10143_vm12, %v10142_v54, %v13914_v24  ;;  %v10174_v50 = vsel %vm10143_vm12, %v10141_v45, %v13913_v0 }
 0x3db   : > { %v12078_v2 = vpack.c.bf16 %v10175_v63, %v10175_v63  ;;  %v12077_v11 = vpack.c.bf16 %v10174_v50, %v10174_v50  ;;  %v10172_v22 = vsel %vm10143_vm12, %v10139_v7, %v13908_v58  ;;  %v10173_v28 = vsel %vm10143_vm12, %v10140_v3, %v13909_v43 }
 0x3dc   : > { %v12075_v15 = vpack.c.bf16 %v10172_v22, %v10172_v22  ;;  %v12076_v1 = vpack.c.bf16 %v10173_v28, %v10173_v28 }
 0x3dd   : > { %10336 = vst.msk [vmem:[%s17054_s12 + $0x7c] sm:$0xf] %vm10304_vm13, %v12078_v2  ;;  %10335 = vst.msk [vmem:[%s17054_s12 + $0x78] sm:$0xf] %vm10304_vm13, %v12077_v11 }
 0x3de   : > { %10333 = vst.msk [vmem:[%s17054_s12 + $0x70] sm:$0xf] %vm10304_vm13, %v12075_v15  ;;  %10334 = vst.msk [vmem:[%s17054_s12 + $0x74] sm:$0xf] %vm10304_vm13, %v12076_v1 }
 0x3df PF: > { %s18_s29 = sadd.s32 1, %s14033_s29   ;;  %s17284_s27 = smov %s14029_s28 }
 0x3e0   : > { %p15_p5 = scmp.ge.s32.totalorder %s18_s29, 4   ;;  %s17285_s28 = smov %s17287_s30 }
 0x3e2   :  { %17 = sbr.rel (!%p15_p5) target bundleno = 2 (0x2), region = 122 }

</bundles_post_ra>
